<compile_context>
chip_gen: v6e
topology: v6e:2x2x1
jax: 0.10.0
libtpu: 0.0.40
codegen_flags: <defaults>
</compile_context>

<pallas_src>
import math
from functools import partial

import jax
import jax.numpy as jnp
from jax.experimental import pallas as pl
from jax.experimental.pallas import tpu as pltpu


def _round_up(x, m):
    return (x + m - 1) // m * m


# ----------------------------- Pallas kernels ------------------------------

def _mm_bias_kernel(a_ref, b_ref, bias_ref, o_ref):
    o_ref[...] = (jnp.dot(a_ref[...], b_ref[...],
                          preferred_element_type=jnp.float32) + bias_ref[...])


def _mm_bias_gdn_kernel(a_ref, b_ref, bias_ref, gamma_t_ref, beta_ref, o_ref, *,
                        inverse):
    x = (jnp.dot(a_ref[...], b_ref[...],
                 preferred_element_type=jnp.float32) + bias_ref[...])
    # GDN: norm_c = beta_c + sum_j gamma[c, j] * x_j^2  (1x1 conv over channels)
    norm = jnp.dot(x * x, gamma_t_ref[...],
                   preferred_element_type=jnp.float32) + beta_ref[...]
    # TODO(synk): reference GDN reparameterizes gamma/beta to stay positive; we
    # clamp instead so raw/perturbed params cannot produce sqrt of a negative.
    norm = jnp.maximum(norm, 1e-9)
    if inverse:
        o_ref[...] = x * jnp.sqrt(norm)          # IGDN: x * sqrt(norm)
    else:
        o_ref[...] = x * jax.lax.rsqrt(norm)     # GDN:  x / sqrt(norm) (EUP rsqrt)


def pallas_matmul_bias(a, b, bias, gamma=None, beta=None, inverse=False):
    """out = a @ b + bias, optionally followed by (I)GDN over the N (channel) axis.

    a:(M,K), b:(K,N), bias:(N,), gamma:(N,N) in [out,in] order, beta:(N,).
    MXU operands are bf16; accumulation and the GDN epilogue are f32.
    K is kept as one full (128-padded) block: for this model K <= 25*C, so the
    grid is purely parallel over M and the output is written once (lane-dense).
    """
    M, K = a.shape
    K2, N = b.shape
    assert K == K2
    Np = _round_up(N, 128)
    Kp = _round_up(K, 128)
    if M >= 512:
        tm = 512
    else:
        tm = _round_up(max(M, 8), 128)
    Mp = _round_up(M, tm)

    a_p = a.astype(jnp.bfloat16)
    if Mp != M or Kp != K:
        a_p = jnp.pad(a_p, ((0, Mp - M), (0, Kp - K)))   # fuses with im2col fusion
    b_p = jnp.pad(b.astype(jnp.bfloat16), ((0, Kp - K), (0, Np - N)))
    bias_p = jnp.pad(bias.astype(jnp.float32).reshape(1, N), ((0, 0), (0, Np - N)))

    in_arrays = [a_p, b_p, bias_p]
    in_specs = [pl.BlockSpec((tm, Kp), lambda i: (i, 0)),
                pl.BlockSpec((Kp, Np), lambda i: (0, 0)),
                pl.BlockSpec((1, Np), lambda i: (0, 0))]
    if gamma is None:
        kernel = _mm_bias_kernel
    else:
        gamma_t = jnp.pad(jnp.transpose(gamma).astype(jnp.float32),
                          ((0, Np - N), (0, Np - N)))
        beta_p = jnp.pad(beta.astype(jnp.float32).reshape(1, N),
                         ((0, 0), (0, Np - N)))
        kernel = partial(_mm_bias_gdn_kernel, inverse=inverse)
        in_arrays += [gamma_t, beta_p]
        in_specs += [pl.BlockSpec((Np, Np), lambda i: (0, 0)),
                     pl.BlockSpec((1, Np), lambda i: (0, 0))]

    out = pl.pallas_call(
        kernel,
        out_shape=jax.ShapeDtypeStruct((Mp, Np), jnp.float32),
        grid=(Mp // tm,),
        in_specs=in_specs,
        out_specs=pl.BlockSpec((tm, Np), lambda i: (i, 0)),
        compiler_params=pltpu.CompilerParams(dimension_semantics=("parallel",)),
    )(*in_arrays)
    return out[:M, :N]


def _bits_partial_kernel(z_ref, h_ref, b_ref, a_ref, out_ref, *, total_elems):
    tp = z_ref.shape[0]
    z = z_ref[...]                        # (tp, 128) lane-dense flattened feature
    h = jax.nn.softplus(h_ref[...])       # (4, 128)
    b = b_ref[...]                        # (4, 128)
    ta = jnp.tanh(a_ref[...])             # (3, 128)

    def bit_cdf(x):
        for i in range(3):
            x = x * h[i:i + 1, :] + b[i:i + 1, :]
            x = x + jnp.tanh(x) * ta[i:i + 1, :]
        return jax.nn.sigmoid(x * h[3:4, :] + b[3:4, :])

    prob = bit_cdf(z + 0.5) - bit_cdf(z - 0.5)
    bits = jnp.clip(-jnp.log(prob + 1e-10) * (1.0 / math.log(2.0)), 0.0, 50.0)

    # Mask flattened-tail padding via iota (no extra mask array DMA).
    row = jax.lax.broadcasted_iota(jnp.int32, z.shape, 0) + pl.program_id(0) * tp
    lane = jax.lax.broadcasted_iota(jnp.int32, z.shape, 1)
    bits = bits * ((row * 128 + lane) < total_elems).astype(jnp.float32)

    # Per-block partial sum kept as a lane-dense (8, 128) vector; scalar reduce
    # happens outside the kernel in plain JAX.
    out_ref[...] = jnp.sum(bits.reshape(-1, 8, 128), axis=0)


def pallas_total_bits(z2d, h, b, a):
    """Total estimated bits over z2d of shape (P, C), channels minor."""
    P, C = z2d.shape
    # TODO(synk): lane-dense layout requires 128 % C == 0 (true for the module
    # default 128 and this test's 32); other widths need a channel-padded path.
    assert 128 % C == 0, "lane-dense bit estimator requires 128 % C == 0"
    rep = 128 // C
    h_l = jnp.tile(h.astype(jnp.float32), (1, rep))   # (4, 128)
    b_l = jnp.tile(b.astype(jnp.float32), (1, rep))   # (4, 128)
    a_l = jnp.tile(a.astype(jnp.float32), (1, rep))   # (3, 128)

    total = P * C
    rows = -(-total // 128)
    tp = 512 if rows >= 512 else _round_up(max(rows, 8), 8)
    rows_p = _round_up(rows, tp)
    zf = jnp.pad(z2d.astype(jnp.float32).reshape(-1),
                 (0, rows_p * 128 - total)).reshape(rows_p, 128)
    nblk = rows_p // tp

    partials = pl.pallas_call(
        partial(_bits_partial_kernel, total_elems=total),
        out_shape=jax.ShapeDtypeStruct((nblk * 8, 128), jnp.float32),
        grid=(nblk,),
        in_specs=[pl.BlockSpec((tp, 128), lambda i: (i, 0)),
                  pl.BlockSpec((4, 128), lambda i: (0, 0)),
                  pl.BlockSpec((4, 128), lambda i: (0, 0)),
                  pl.BlockSpec((3, 128), lambda i: (0, 0))],
        out_specs=pl.BlockSpec((8, 128), lambda i: (i, 0)),
        compiler_params=pltpu.CompilerParams(dimension_semantics=("parallel",)),
    )(zf, h_l, b_l, a_l)
    return jnp.sum(partials)


def _sqdiff_partial_kernel(a_ref, b_ref, out_ref):
    d = a_ref[...] - b_ref[...]
    out_ref[...] = jnp.sum((d * d).reshape(-1, 8, 128), axis=0)


def pallas_mse(x, y):
    n = x.size
    rows = -(-n // 128)
    tr = 512 if rows >= 512 else _round_up(max(rows, 8), 8)
    rows_p = _round_up(rows, tr)
    pad = rows_p * 128 - n
    xf = jnp.pad(x.reshape(-1).astype(jnp.float32), (0, pad)).reshape(rows_p, 128)
    yf = jnp.pad(y.reshape(-1).astype(jnp.float32), (0, pad)).reshape(rows_p, 128)
    nblk = rows_p // tr
    partials = pl.pallas_call(
        _sqdiff_partial_kernel,
        out_shape=jax.ShapeDtypeStruct((nblk * 8, 128), jnp.float32),
        grid=(nblk,),
        in_specs=[pl.BlockSpec((tr, 128), lambda i: (i, 0)),
                  pl.BlockSpec((tr, 128), lambda i: (i, 0))],
        out_specs=pl.BlockSpec((8, 128), lambda i: (i, 0)),
        compiler_params=pltpu.CompilerParams(dimension_semantics=("parallel",)),
    )(xf, yf)
    return jnp.sum(partials) / n


# --------------------------- conv glue (im2col) ----------------------------

def _im2col(x, kh, kw, stride):
    # x: (N, H, W, C) already padded -> (N, Ho, Wo, kh*kw*C)
    N, H, W, C = x.shape
    Ho = (H - kh) // stride + 1
    Wo = (W - kw) // stride + 1
    cols = []
    for i in range(kh):
        for j in range(kw):
            cols.append(x[:, i:i + stride * Ho:stride, j:j + stride * Wo:stride, :])
    patches = jnp.stack(cols, axis=3)           # (N, Ho, Wo, kh*kw, C)
    return patches.reshape(N, Ho, Wo, kh * kw * C), Ho, Wo


def _conv_core(x, w, b, stride, gamma, beta, inverse):
    # x: NHWC (already spatially padded, bf16) ; w: (Cout, Cin, kh, kw) ; b:(Cout,)
    N = x.shape[0]
    Cin = x.shape[3]
    Cout, _, kh, kw = w.shape
    patches, Ho, Wo = _im2col(x, kh, kw, stride)
    a = patches.reshape(N * Ho * Wo, kh * kw * Cin)
    wmat = jnp.transpose(w, (2, 3, 1, 0)).reshape(kh * kw * Cin, Cout)
    out = pallas_matmul_bias(a, wmat, b, gamma, beta, inverse)
    return out.reshape(N, Ho, Wo, Cout)


def conv2d(x, w, b, stride, padding, gamma=None, beta=None, inverse=False):
    # x: NHWC ; w: (Cout, Cin, k, k) (PyTorch nn.Conv2d layout) ; b: (Cout,)
    xp = jnp.pad(x.astype(jnp.bfloat16),
                 ((0, 0), (padding, padding), (padding, padding), (0, 0)))
    return _conv_core(xp, w, b, stride, gamma, beta, inverse)


def conv_transpose2d(x, w, b, stride, padding, output_padding,
                     gamma=None, beta=None, inverse=False):
    """PyTorch nn.ConvTranspose2d via sub-pixel (phase) decomposition.

    Instead of a stride-1 conv over a zero-dilated input (75% / 94% zeros for
    stride 2 / 4), each of the stride^2 output phases is a dense stride-1 conv
    of x with a sub-sampled flipped kernel; phase outputs are interleaved.
    Optional fused (I)GDN is applied per phase (all channels of a pixel come
    from a single matmul row, so the fusion stays valid)."""
    N, H, W, Cin = x.shape
    _, Cout, k, _ = w.shape
    s = stride
    Ho = (H - 1) * s - 2 * padding + k + output_padding
    Wo = (W - 1) * s - 2 * padding + k + output_padding
    pb = k - 1 - padding
    # equivalent dense-conv weight: flipped and (Cin,Cout,k,k) -> (Cout,Cin,k,k)
    w_flip = jnp.transpose(w[:, :, ::-1, ::-1], (1, 0, 2, 3))
    x_bf = x.astype(jnp.bfloat16)

    phases = {}
    for rh in range(s):
        oh0 = (pb - rh) % s
        n_oh = max(0, -(-(Ho - oh0) // s))
        if n_oh == 0:
            continue
        base_h = (oh0 + rh - pb) // s
        kh_r = len(range(rh, k, s))
        pad_h_lo = max(0, -base_h)
        pad_h_hi = max(0, base_h + n_oh + kh_r - 2 - (H - 1))
        h_start = base_h + pad_h_lo
        h_len = n_oh + kh_r - 1
        for rw in range(s):
            ow0 = (pb - rw) % s
            n_ow = max(0, -(-(Wo - ow0) // s))
            if n_ow == 0:
                continue
            base_w = (ow0 + rw - pb) // s
            kw_r = len(range(rw, k, s))
            pad_w_lo = max(0, -base_w)
            pad_w_hi = max(0, base_w + n_ow + kw_r - 2 - (W - 1))
            w_start = base_w + pad_w_lo
            w_len = n_ow + kw_r - 1

            xp = jnp.pad(x_bf, ((0, 0), (pad_h_lo, pad_h_hi),
                                (pad_w_lo, pad_w_hi), (0, 0)))
            x_use = xp[:, h_start:h_start + h_len, w_start:w_start + w_len, :]
            w_sub = w_flip[:, :, rh::s, rw::s]          # (Cout, Cin, kh_r, kw_r)
            phases[(oh0, ow0)] = _conv_core(x_use, w_sub, b, 1,
                                            gamma, beta, inverse)

    if (Ho % s == 0 and Wo % s == 0 and len(phases) == s * s and
            all(p.shape[1] == Ho // s and p.shape[2] == Wo // s
                for p in phases.values())):
        ys = jnp.stack([jnp.stack([phases[(i, j)] for j in range(s)], axis=0)
                        for i in range(s)], axis=0)     # (s, s, N, Ho/s, Wo/s, C)
        out = jnp.transpose(ys, (2, 3, 0, 4, 1, 5)).reshape(N, Ho, Wo, Cout)
    else:
        out = jnp.zeros((N, Ho, Wo, Cout), jnp.float32)
        for (i, j), yp in phases.items():
            out = out.at[:, i::s, j::s, :].set(yp)
    return out


# ------------------------------ model setup --------------------------------

def init_params(key, out_channel_N=32):
    C = out_channel_N
    ks = jax.random.split(key, 9)

    def conv_w(k, cout, cin, ksz):
        return jax.random.normal(k, (cout, cin, ksz, ksz), jnp.float32) / math.sqrt(cin * ksz * ksz)

    def deconv_w(k, cin, cout, ksz):
        return jax.random.normal(k, (cin, cout, ksz, ksz), jnp.float32) / math.sqrt(cin * ksz * ksz)

    gamma0 = 0.1 * jnp.eye(C, dtype=jnp.float32) + 1e-3   # GDN gamma (non-negative)
    beta0 = jnp.ones((C,), jnp.float32)                   # GDN beta (positive)

    return dict(
        enc_w1=conv_w(ks[0], C, 3, 9), enc_b1=jnp.full((C,), 0.01, jnp.float32),
        enc_w2=conv_w(ks[1], C, C, 5), enc_b2=jnp.full((C,), 0.01, jnp.float32),
        enc_w3=conv_w(ks[2], C, C, 5), enc_b3=jnp.full((C,), 0.01, jnp.float32),
        gdn1_gamma=gamma0, gdn1_beta=beta0,
        gdn2_gamma=gamma0, gdn2_beta=beta0,
        dec_w1=deconv_w(ks[3], C, C, 5), dec_b1=jnp.full((C,), 0.01, jnp.float32),
        dec_w2=deconv_w(ks[4], C, C, 5), dec_b2=jnp.full((C,), 0.01, jnp.float32),
        dec_w3=deconv_w(ks[5], C, 3, 9), dec_b3=jnp.full((3,), 0.01, jnp.float32),
        igdn1_gamma=gamma0, igdn1_beta=beta0,
        igdn2_gamma=gamma0, igdn2_beta=beta0,
        be_h=0.01 * jax.random.normal(ks[6], (4, C), jnp.float32),
        be_b=0.01 * jax.random.normal(ks[7], (4, C), jnp.float32),
        be_a=0.01 * jax.random.normal(ks[8], (3, C), jnp.float32),
    )


def image_compressor_forward(params, input_image, out_channel_N=32):
    """input_image: (N, 3, H, W) NCHW float32 in [0,1]. Returns (clipped_recon, mse, bpp)."""
    N, _, H, W = input_image.shape
    C = out_channel_N
    x = jnp.transpose(input_image, (0, 2, 3, 1)).astype(jnp.float32)   # -> NHWC

    # ---- Encoder (Analysis_net_17): conv9/4 +GDN -> conv5/2 +GDN -> conv5/2 ----
    y = conv2d(x, params['enc_w1'], params['enc_b1'], stride=4, padding=4,
               gamma=params['gdn1_gamma'], beta=params['gdn1_beta'], inverse=False)
    y = conv2d(y, params['enc_w2'], params['enc_b2'], stride=2, padding=2,
               gamma=params['gdn2_gamma'], beta=params['gdn2_beta'], inverse=False)
    feature = conv2d(y, params['enc_w3'], params['enc_b3'], stride=2, padding=2)

    # ---- Quantization (eval path) ----
    # TODO(synk): training path adds Uniform(-0.5, 0.5) quantization noise instead of round().
    compressed = jnp.round(feature)

    # ---- Decoder (Synthesis_net_17): deconv5/2 +IGDN -> deconv5/2 +IGDN -> deconv9/4 ----
    d = conv_transpose2d(compressed, params['dec_w1'], params['dec_b1'], 2, 2, 1,
                         gamma=params['igdn1_gamma'], beta=params['igdn1_beta'],
                         inverse=True)
    d = conv_transpose2d(d, params['dec_w2'], params['dec_b2'], 2, 2, 1,
                         gamma=params['igdn2_gamma'], beta=params['igdn2_beta'],
                         inverse=True)
    recon = conv_transpose2d(d, params['dec_w3'], params['dec_b3'], 4, 4, 3)

    recon_nchw = jnp.transpose(recon, (0, 3, 1, 2))
    clipped_recon = jnp.clip(recon_nchw, 0.0, 1.0)

    mse_loss = pallas_mse(recon_nchw, input_image.astype(jnp.float32))

    total_bits = pallas_total_bits(compressed.reshape(-1, C),
                                   params['be_h'], params['be_b'], params['be_a'])
    bpp_feature = total_bits / (N * H * W)

    return clipped_recon, mse_loss, bpp_feature


if __name__ == "__main__":
    out_channel_N = 32                      # synthetic small config (module default: 128)
    key = jax.random.PRNGKey(0)
    k_img, k_par = jax.random.split(key)
    x = jax.random.uniform(k_img, (2, 3, 32, 32), jnp.float32)   # N=2, 3x32x32 image
    params = init_params(k_par, out_channel_N)

    fwd = jax.jit(partial(image_compressor_forward, out_channel_N=out_channel_N))
    clipped, mse, bpp = fwd(params, x)
    jax.block_until_ready((clipped, mse, bpp))

    assert clipped.shape == x.shape
    assert bool(jnp.isfinite(mse)) and bool(jnp.isfinite(bpp))
    print("KERNEL_OK")
</pallas_src>

<mosaic_0001>
module attributes {stable_mosaic.version = 11 : i64} {
  func.func @_mm_bias_gdn_kernel(%arg0: i32, %arg1: memref<128x256xbf16, #tpu.memory_space<vmem>>, %arg2: memref<256x128xbf16, #tpu.memory_space<vmem>>, %arg3: memref<1x128xf32, #tpu.memory_space<vmem>>, %arg4: memref<128x128xf32, #tpu.memory_space<vmem>>, %arg5: memref<1x128xf32, #tpu.memory_space<vmem>>, %arg6: memref<128x128xf32, #tpu.memory_space<vmem>>) attributes {dimension_semantics = [#tpu.dimension_semantics<parallel>], iteration_bounds = array<i64: 1>, scalar_prefetch = 0 : i64, scratch_operands = 0 : i64, tpu.core_type = #tpu.core_type<tc>, window_params = [{transform_indices = @transform_0, window_bounds = array<i64: 128, 256>}, {pipeline_mode = #tpu.pipeline_mode<synchronous>, transform_indices = @transform_1, window_bounds = array<i64: 256, 128>}, {pipeline_mode = #tpu.pipeline_mode<synchronous>, transform_indices = @transform_2, window_bounds = array<i64: 1, 128>}, {pipeline_mode = #tpu.pipeline_mode<synchronous>, transform_indices = @transform_3, window_bounds = array<i64: 128, 128>}, {pipeline_mode = #tpu.pipeline_mode<synchronous>, transform_indices = @transform_4, window_bounds = array<i64: 1, 128>}, {transform_indices = @transform_5, window_bounds = array<i64: 128, 128>}]} {
    %c0 = arith.constant 0 : index
    %c0_0 = arith.constant 0 : index
    %0 = vector.load %arg1[%c0, %c0_0] : memref<128x256xbf16, #tpu.memory_space<vmem>>, vector<128x256xbf16>
    %c0_1 = arith.constant 0 : index
    %c0_2 = arith.constant 0 : index
    %1 = vector.load %arg2[%c0_1, %c0_2] : memref<256x128xbf16, #tpu.memory_space<vmem>>, vector<256x128xbf16>
    %cst = arith.constant dense<0.000000e+00> : vector<128x128xf32>
    %2 = tpu.matmul %0, %1, %cst {dimension_numbers = #tpu.dot_dimension_numbers<[1], [0], [0], [1], [0, 0, 1, 1], [], []>} : vector<128x256xbf16>, vector<256x128xbf16>, vector<128x128xf32> -> vector<128x128xf32>
    %c0_3 = arith.constant 0 : index
    %c0_4 = arith.constant 0 : index
    %3 = vector.load %arg3[%c0_3, %c0_4] : memref<1x128xf32, #tpu.memory_space<vmem>>, vector<1x128xf32>
    %4 = vector.broadcast %3 : vector<1x128xf32> to vector<128x128xf32>
    %5 = arith.addf %2, %4 : vector<128x128xf32>
    %6 = arith.mulf %5, %5 : vector<128x128xf32>
    %c0_5 = arith.constant 0 : index
    %c0_6 = arith.constant 0 : index
    %7 = vector.load %arg4[%c0_5, %c0_6] : memref<128x128xf32, #tpu.memory_space<vmem>>, vector<128x128xf32>
    %cst_7 = arith.constant dense<0.000000e+00> : vector<128x128xf32>
    %8 = tpu.matmul %6, %7, %cst_7 {dimension_numbers = #tpu.dot_dimension_numbers<[1], [0], [0], [1], [0, 0, 1, 1], [], []>} : vector<128x128xf32>, vector<128x128xf32>, vector<128x128xf32> -> vector<128x128xf32>
    %c0_8 = arith.constant 0 : index
    %c0_9 = arith.constant 0 : index
    %9 = vector.load %arg5[%c0_8, %c0_9] : memref<1x128xf32, #tpu.memory_space<vmem>>, vector<1x128xf32>
    %10 = vector.broadcast %9 : vector<1x128xf32> to vector<128x128xf32>
    %11 = arith.addf %8, %10 : vector<128x128xf32>
    %cst_10 = arith.constant 9.99999971E-10 : f32
    %12 = vector.broadcast %cst_10 : f32 to vector<128x128xf32>
    %13 = arith.maximumf %11, %12 : vector<128x128xf32>
    %14 = math.rsqrt %13 : vector<128x128xf32>
    %15 = arith.mulf %5, %14 : vector<128x128xf32>
    %c0_11 = arith.constant 0 : index
    %c0_12 = arith.constant 0 : index
    %16 = vector.load %arg6[%c0_11, %c0_12] : memref<128x128xf32, #tpu.memory_space<vmem>>, vector<128x128xf32>
    tpu.vector_store %arg6[%c0_11, %c0_12], %15 {strides = array<i32>} : memref<128x128xf32, #tpu.memory_space<vmem>>, vector<128x128xf32>,
    return
  }
  func.func @transform_0(%arg0: i32) -> (i32, i32) {
    %c0_i32 = arith.constant 0 : i32
    %c0_i32_0 = arith.constant 0 : i32
    return %arg0, %c0_i32 : i32, i32
  }
  func.func @transform_1(%arg0: i32) -> (i32, i32) {
    %c0_i32 = arith.constant 0 : i32
    %c0_i32_0 = arith.constant 0 : i32
    %c0_i32_1 = arith.constant 0 : i32
    return %c0_i32, %c0_i32_0 : i32, i32
  }
  func.func @transform_2(%arg0: i32) -> (i32, i32) {
    %c0_i32 = arith.constant 0 : i32
    %c0_i32_0 = arith.constant 0 : i32
    %c0_i32_1 = arith.constant 0 : i32
    return %c0_i32, %c0_i32_0 : i32, i32
  }
  func.func @transform_3(%arg0: i32) -> (i32, i32) {
    %c0_i32 = arith.constant 0 : i32
    %c0_i32_0 = arith.constant 0 : i32
    %c0_i32_1 = arith.constant 0 : i32
    return %c0_i32, %c0_i32_0 : i32, i32
  }
  func.func @transform_4(%arg0: i32) -> (i32, i32) {
    %c0_i32 = arith.constant 0 : i32
    %c0_i32_0 = arith.constant 0 : i32
    %c0_i32_1 = arith.constant 0 : i32
    return %c0_i32, %c0_i32_0 : i32, i32
  }
  func.func @transform_5(%arg0: i32) -> (i32, i32) {
    %c0_i32 = arith.constant 0 : i32
    %c0_i32_0 = arith.constant 0 : i32
    return %arg0, %c0_i32 : i32, i32
  }
}

module attributes {stable_mosaic.version = 11 : i64} {
  func.func @_mm_bias_gdn_kernel(%arg0: i32, %arg1: memref<128x896xbf16, #tpu.memory_space<vmem>>, %arg2: memref<896x128xbf16, #tpu.memory_space<vmem>>, %arg3: memref<1x128xf32, #tpu.memory_space<vmem>>, %arg4: memref<128x128xf32, #tpu.memory_space<vmem>>, %arg5: memref<1x128xf32, #tpu.memory_space<vmem>>, %arg6: memref<128x128xf32, #tpu.memory_space<vmem>>) attributes {dimension_semantics = [#tpu.dimension_semantics<parallel>], iteration_bounds = array<i64: 1>, scalar_prefetch = 0 : i64, scratch_operands = 0 : i64, tpu.core_type = #tpu.core_type<tc>, window_params = [{transform_indices = @transform_0, window_bounds = array<i64: 128, 896>}, {pipeline_mode = #tpu.pipeline_mode<synchronous>, transform_indices = @transform_1, window_bounds = array<i64: 896, 128>}, {pipeline_mode = #tpu.pipeline_mode<synchronous>, transform_indices = @transform_2, window_bounds = array<i64: 1, 128>}, {pipeline_mode = #tpu.pipeline_mode<synchronous>, transform_indices = @transform_3, window_bounds = array<i64: 128, 128>}, {pipeline_mode = #tpu.pipeline_mode<synchronous>, transform_indices = @transform_4, window_bounds = array<i64: 1, 128>}, {transform_indices = @transform_5, window_bounds = array<i64: 128, 128>}]} {
    %c0 = arith.constant 0 : index
    %c0_0 = arith.constant 0 : index
    %0 = vector.load %arg1[%c0, %c0_0] : memref<128x896xbf16, #tpu.memory_space<vmem>>, vector<128x896xbf16>
    %c0_1 = arith.constant 0 : index
    %c0_2 = arith.constant 0 : index
    %1 = vector.load %arg2[%c0_1, %c0_2] : memref<896x128xbf16, #tpu.memory_space<vmem>>, vector<896x128xbf16>
    %cst = arith.constant dense<0.000000e+00> : vector<128x128xf32>
    %2 = tpu.matmul %0, %1, %cst {dimension_numbers = #tpu.dot_dimension_numbers<[1], [0], [0], [1], [0, 0, 1, 1], [], []>} : vector<128x896xbf16>, vector<896x128xbf16>, vector<128x128xf32> -> vector<128x128xf32>
    %c0_3 = arith.constant 0 : index
    %c0_4 = arith.constant 0 : index
    %3 = vector.load %arg3[%c0_3, %c0_4] : memref<1x128xf32, #tpu.memory_space<vmem>>, vector<1x128xf32>
    %4 = vector.broadcast %3 : vector<1x128xf32> to vector<128x128xf32>
    %5 = arith.addf %2, %4 : vector<128x128xf32>
    %6 = arith.mulf %5, %5 : vector<128x128xf32>
    %c0_5 = arith.constant 0 : index
    %c0_6 = arith.constant 0 : index
    %7 = vector.load %arg4[%c0_5, %c0_6] : memref<128x128xf32, #tpu.memory_space<vmem>>, vector<128x128xf32>
    %cst_7 = arith.constant dense<0.000000e+00> : vector<128x128xf32>
    %8 = tpu.matmul %6, %7, %cst_7 {dimension_numbers = #tpu.dot_dimension_numbers<[1], [0], [0], [1], [0, 0, 1, 1], [], []>} : vector<128x128xf32>, vector<128x128xf32>, vector<128x128xf32> -> vector<128x128xf32>
    %c0_8 = arith.constant 0 : index
    %c0_9 = arith.constant 0 : index
    %9 = vector.load %arg5[%c0_8, %c0_9] : memref<1x128xf32, #tpu.memory_space<vmem>>, vector<1x128xf32>
    %10 = vector.broadcast %9 : vector<1x128xf32> to vector<128x128xf32>
    %11 = arith.addf %8, %10 : vector<128x128xf32>
    %cst_10 = arith.constant 9.99999971E-10 : f32
    %12 = vector.broadcast %cst_10 : f32 to vector<128x128xf32>
    %13 = arith.maximumf %11, %12 : vector<128x128xf32>
    %14 = math.rsqrt %13 : vector<128x128xf32>
    %15 = arith.mulf %5, %14 : vector<128x128xf32>
    %c0_11 = arith.constant 0 : index
    %c0_12 = arith.constant 0 : index
    %16 = vector.load %arg6[%c0_11, %c0_12] : memref<128x128xf32, #tpu.memory_space<vmem>>, vector<128x128xf32>
    tpu.vector_store %arg6[%c0_11, %c0_12], %15 {strides = array<i32>} : memref<128x128xf32, #tpu.memory_space<vmem>>, vector<128x128xf32>,
    return
  }
  func.func @transform_0(%arg0: i32) -> (i32, i32) {
    %c0_i32 = arith.constant 0 : i32
    %c0_i32_0 = arith.constant 0 : i32
    return %arg0, %c0_i32 : i32, i32
  }
  func.func @transform_1(%arg0: i32) -> (i32, i32) {
    %c0_i32 = arith.constant 0 : i32
    %c0_i32_0 = arith.constant 0 : i32
    %c0_i32_1 = arith.constant 0 : i32
    return %c0_i32, %c0_i32_0 : i32, i32
  }
  func.func @transform_2(%arg0: i32) -> (i32, i32) {
    %c0_i32 = arith.constant 0 : i32
    %c0_i32_0 = arith.constant 0 : i32
    %c0_i32_1 = arith.constant 0 : i32
    return %c0_i32, %c0_i32_0 : i32, i32
  }
  func.func @transform_3(%arg0: i32) -> (i32, i32) {
    %c0_i32 = arith.constant 0 : i32
    %c0_i32_0 = arith.constant 0 : i32
    %c0_i32_1 = arith.constant 0 : i32
    return %c0_i32, %c0_i32_0 : i32, i32
  }
  func.func @transform_4(%arg0: i32) -> (i32, i32) {
    %c0_i32 = arith.constant 0 : i32
    %c0_i32_0 = arith.constant 0 : i32
    %c0_i32_1 = arith.constant 0 : i32
    return %c0_i32, %c0_i32_0 : i32, i32
  }
  func.func @transform_5(%arg0: i32) -> (i32, i32) {
    %c0_i32 = arith.constant 0 : i32
    %c0_i32_0 = arith.constant 0 : i32
    return %arg0, %c0_i32 : i32, i32
  }
}

module attributes {stable_mosaic.version = 11 : i64} {
  func.func @_mm_bias_kernel(%arg0: i32, %arg1: memref<128x896xbf16, #tpu.memory_space<vmem>>, %arg2: memref<896x128xbf16, #tpu.memory_space<vmem>>, %arg3: memref<1x128xf32, #tpu.memory_space<vmem>>, %arg4: memref<128x128xf32, #tpu.memory_space<vmem>>) attributes {dimension_semantics = [#tpu.dimension_semantics<parallel>], iteration_bounds = array<i64: 1>, scalar_prefetch = 0 : i64, scratch_operands = 0 : i64, tpu.core_type = #tpu.core_type<tc>, window_params = [{transform_indices = @transform_0, window_bounds = array<i64: 128, 896>}, {pipeline_mode = #tpu.pipeline_mode<synchronous>, transform_indices = @transform_1, window_bounds = array<i64: 896, 128>}, {pipeline_mode = #tpu.pipeline_mode<synchronous>, transform_indices = @transform_2, window_bounds = array<i64: 1, 128>}, {transform_indices = @transform_3, window_bounds = array<i64: 128, 128>}]} {
    %c0 = arith.constant 0 : index
    %c0_0 = arith.constant 0 : index
    %0 = vector.load %arg1[%c0, %c0_0] : memref<128x896xbf16, #tpu.memory_space<vmem>>, vector<128x896xbf16>
    %c0_1 = arith.constant 0 : index
    %c0_2 = arith.constant 0 : index
    %1 = vector.load %arg2[%c0_1, %c0_2] : memref<896x128xbf16, #tpu.memory_space<vmem>>, vector<896x128xbf16>
    %cst = arith.constant dense<0.000000e+00> : vector<128x128xf32>
    %2 = tpu.matmul %0, %1, %cst {dimension_numbers = #tpu.dot_dimension_numbers<[1], [0], [0], [1], [0, 0, 1, 1], [], []>} : vector<128x896xbf16>, vector<896x128xbf16>, vector<128x128xf32> -> vector<128x128xf32>
    %c0_3 = arith.constant 0 : index
    %c0_4 = arith.constant 0 : index
    %3 = vector.load %arg3[%c0_3, %c0_4] : memref<1x128xf32, #tpu.memory_space<vmem>>, vector<1x128xf32>
    %4 = vector.broadcast %3 : vector<1x128xf32> to vector<128x128xf32>
    %5 = arith.addf %2, %4 : vector<128x128xf32>
    %c0_5 = arith.constant 0 : index
    %c0_6 = arith.constant 0 : index
    %6 = vector.load %arg4[%c0_5, %c0_6] : memref<128x128xf32, #tpu.memory_space<vmem>>, vector<128x128xf32>
    tpu.vector_store %arg4[%c0_5, %c0_6], %5 {strides = array<i32>} : memref<128x128xf32, #tpu.memory_space<vmem>>, vector<128x128xf32>,
    return
  }
  func.func @transform_0(%arg0: i32) -> (i32, i32) {
    %c0_i32 = arith.constant 0 : i32
    %c0_i32_0 = arith.constant 0 : i32
    return %arg0, %c0_i32 : i32, i32
  }
  func.func @transform_1(%arg0: i32) -> (i32, i32) {
    %c0_i32 = arith.constant 0 : i32
    %c0_i32_0 = arith.constant 0 : i32
    %c0_i32_1 = arith.constant 0 : i32
    return %c0_i32, %c0_i32_0 : i32, i32
  }
  func.func @transform_2(%arg0: i32) -> (i32, i32) {
    %c0_i32 = arith.constant 0 : i32
    %c0_i32_0 = arith.constant 0 : i32
    %c0_i32_1 = arith.constant 0 : i32
    return %c0_i32, %c0_i32_0 : i32, i32
  }
  func.func @transform_3(%arg0: i32) -> (i32, i32) {
    %c0_i32 = arith.constant 0 : i32
    %c0_i32_0 = arith.constant 0 : i32
    return %arg0, %c0_i32 : i32, i32
  }
}

module attributes {stable_mosaic.version = 11 : i64} {
  func.func @_mm_bias_gdn_kernel(%arg0: i32, %arg1: memref<128x128xbf16, #tpu.memory_space<vmem>>, %arg2: memref<128x128xbf16, #tpu.memory_space<vmem>>, %arg3: memref<1x128xf32, #tpu.memory_space<vmem>>, %arg4: memref<128x128xf32, #tpu.memory_space<vmem>>, %arg5: memref<1x128xf32, #tpu.memory_space<vmem>>, %arg6: memref<128x128xf32, #tpu.memory_space<vmem>>) attributes {dimension_semantics = [#tpu.dimension_semantics<parallel>], iteration_bounds = array<i64: 1>, scalar_prefetch = 0 : i64, scratch_operands = 0 : i64, tpu.core_type = #tpu.core_type<tc>, window_params = [{transform_indices = @transform_0, window_bounds = array<i64: 128, 128>}, {pipeline_mode = #tpu.pipeline_mode<synchronous>, transform_indices = @transform_1, window_bounds = array<i64: 128, 128>}, {pipeline_mode = #tpu.pipeline_mode<synchronous>, transform_indices = @transform_2, window_bounds = array<i64: 1, 128>}, {pipeline_mode = #tpu.pipeline_mode<synchronous>, transform_indices = @transform_3, window_bounds = array<i64: 128, 128>}, {pipeline_mode = #tpu.pipeline_mode<synchronous>, transform_indices = @transform_4, window_bounds = array<i64: 1, 128>}, {transform_indices = @transform_5, window_bounds = array<i64: 128, 128>}]} {
    %c0 = arith.constant 0 : index
    %c0_0 = arith.constant 0 : index
    %0 = vector.load %arg1[%c0, %c0_0] : memref<128x128xbf16, #tpu.memory_space<vmem>>, vector<128x128xbf16>
    %c0_1 = arith.constant 0 : index
    %c0_2 = arith.constant 0 : index
    %1 = vector.load %arg2[%c0_1, %c0_2] : memref<128x128xbf16, #tpu.memory_space<vmem>>, vector<128x128xbf16>
    %cst = arith.constant dense<0.000000e+00> : vector<128x128xf32>
    %2 = tpu.matmul %0, %1, %cst {dimension_numbers = #tpu.dot_dimension_numbers<[1], [0], [0], [1], [0, 0, 1, 1], [], []>} : vector<128x128xbf16>, vector<128x128xbf16>, vector<128x128xf32> -> vector<128x128xf32>
    %c0_3 = arith.constant 0 : index
    %c0_4 = arith.constant 0 : index
    %3 = vector.load %arg3[%c0_3, %c0_4] : memref<1x128xf32, #tpu.memory_space<vmem>>, vector<1x128xf32>
    %4 = vector.broadcast %3 : vector<1x128xf32> to vector<128x128xf32>
    %5 = arith.addf %2, %4 : vector<128x128xf32>
    %6 = arith.mulf %5, %5 : vector<128x128xf32>
    %c0_5 = arith.constant 0 : index
    %c0_6 = arith.constant 0 : index
    %7 = vector.load %arg4[%c0_5, %c0_6] : memref<128x128xf32, #tpu.memory_space<vmem>>, vector<128x128xf32>
    %cst_7 = arith.constant dense<0.000000e+00> : vector<128x128xf32>
    %8 = tpu.matmul %6, %7, %cst_7 {dimension_numbers = #tpu.dot_dimension_numbers<[1], [0], [0], [1], [0, 0, 1, 1], [], []>} : vector<128x128xf32>, vector<128x128xf32>, vector<128x128xf32> -> vector<128x128xf32>
    %c0_8 = arith.constant 0 : index
    %c0_9 = arith.constant 0 : index
    %9 = vector.load %arg5[%c0_8, %c0_9] : memref<1x128xf32, #tpu.memory_space<vmem>>, vector<1x128xf32>
    %10 = vector.broadcast %9 : vector<1x128xf32> to vector<128x128xf32>
    %11 = arith.addf %8, %10 : vector<128x128xf32>
    %cst_10 = arith.constant 9.99999971E-10 : f32
    %12 = vector.broadcast %cst_10 : f32 to vector<128x128xf32>
    %13 = arith.maximumf %11, %12 : vector<128x128xf32>
    %14 = math.sqrt %13 : vector<128x128xf32>
    %15 = arith.mulf %5, %14 : vector<128x128xf32>
    %c0_11 = arith.constant 0 : index
    %c0_12 = arith.constant 0 : index
    %16 = vector.load %arg6[%c0_11, %c0_12] : memref<128x128xf32, #tpu.memory_space<vmem>>, vector<128x128xf32>
    tpu.vector_store %arg6[%c0_11, %c0_12], %15 {strides = array<i32>} : memref<128x128xf32, #tpu.memory_space<vmem>>, vector<128x128xf32>,
    return
  }
  func.func @transform_0(%arg0: i32) -> (i32, i32) {
    %c0_i32 = arith.constant 0 : i32
    %c0_i32_0 = arith.constant 0 : i32
    return %arg0, %c0_i32 : i32, i32
  }
  func.func @transform_1(%arg0: i32) -> (i32, i32) {
    %c0_i32 = arith.constant 0 : i32
    %c0_i32_0 = arith.constant 0 : i32
    %c0_i32_1 = arith.constant 0 : i32
    return %c0_i32, %c0_i32_0 : i32, i32
  }
  func.func @transform_2(%arg0: i32) -> (i32, i32) {
    %c0_i32 = arith.constant 0 : i32
    %c0_i32_0 = arith.constant 0 : i32
    %c0_i32_1 = arith.constant 0 : i32
    return %c0_i32, %c0_i32_0 : i32, i32
  }
  func.func @transform_3(%arg0: i32) -> (i32, i32) {
    %c0_i32 = arith.constant 0 : i32
    %c0_i32_0 = arith.constant 0 : i32
    %c0_i32_1 = arith.constant 0 : i32
    return %c0_i32, %c0_i32_0 : i32, i32
  }
  func.func @transform_4(%arg0: i32) -> (i32, i32) {
    %c0_i32 = arith.constant 0 : i32
    %c0_i32_0 = arith.constant 0 : i32
    %c0_i32_1 = arith.constant 0 : i32
    return %c0_i32, %c0_i32_0 : i32, i32
  }
  func.func @transform_5(%arg0: i32) -> (i32, i32) {
    %c0_i32 = arith.constant 0 : i32
    %c0_i32_0 = arith.constant 0 : i32
    return %arg0, %c0_i32 : i32, i32
  }
}

module attributes {stable_mosaic.version = 11 : i64} {
  func.func @_mm_bias_gdn_kernel(%arg0: i32, %arg1: memref<128x384xbf16, #tpu.memory_space<vmem>>, %arg2: memref<384x128xbf16, #tpu.memory_space<vmem>>, %arg3: memref<1x128xf32, #tpu.memory_space<vmem>>, %arg4: memref<128x128xf32, #tpu.memory_space<vmem>>, %arg5: memref<1x128xf32, #tpu.memory_space<vmem>>, %arg6: memref<128x128xf32, #tpu.memory_space<vmem>>) attributes {dimension_semantics = [#tpu.dimension_semantics<parallel>], iteration_bounds = array<i64: 1>, scalar_prefetch = 0 : i64, scratch_operands = 0 : i64, tpu.core_type = #tpu.core_type<tc>, window_params = [{transform_indices = @transform_0, window_bounds = array<i64: 128, 384>}, {pipeline_mode = #tpu.pipeline_mode<synchronous>, transform_indices = @transform_1, window_bounds = array<i64: 384, 128>}, {pipeline_mode = #tpu.pipeline_mode<synchronous>, transform_indices = @transform_2, window_bounds = array<i64: 1, 128>}, {pipeline_mode = #tpu.pipeline_mode<synchronous>, transform_indices = @transform_3, window_bounds = array<i64: 128, 128>}, {pipeline_mode = #tpu.pipeline_mode<synchronous>, transform_indices = @transform_4, window_bounds = array<i64: 1, 128>}, {transform_indices = @transform_5, window_bounds = array<i64: 128, 128>}]} {
    %c0 = arith.constant 0 : index
    %c0_0 = arith.constant 0 : index
    %0 = vector.load %arg1[%c0, %c0_0] : memref<128x384xbf16, #tpu.memory_space<vmem>>, vector<128x384xbf16>
    %c0_1 = arith.constant 0 : index
    %c0_2 = arith.constant 0 : index
    %1 = vector.load %arg2[%c0_1, %c0_2] : memref<384x128xbf16, #tpu.memory_space<vmem>>, vector<384x128xbf16>
    %cst = arith.constant dense<0.000000e+00> : vector<128x128xf32>
    %2 = tpu.matmul %0, %1, %cst {dimension_numbers = #tpu.dot_dimension_numbers<[1], [0], [0], [1], [0, 0, 1, 1], [], []>} : vector<128x384xbf16>, vector<384x128xbf16>, vector<128x128xf32> -> vector<128x128xf32>
    %c0_3 = arith.constant 0 : index
    %c0_4 = arith.constant 0 : index
    %3 = vector.load %arg3[%c0_3, %c0_4] : memref<1x128xf32, #tpu.memory_space<vmem>>, vector<1x128xf32>
    %4 = vector.broadcast %3 : vector<1x128xf32> to vector<128x128xf32>
    %5 = arith.addf %2, %4 : vector<128x128xf32>
    %6 = arith.mulf %5, %5 : vector<128x128xf32>
    %c0_5 = arith.constant 0 : index
    %c0_6 = arith.constant 0 : index
    %7 = vector.load %arg4[%c0_5, %c0_6] : memref<128x128xf32, #tpu.memory_space<vmem>>, vector<128x128xf32>
    %cst_7 = arith.constant dense<0.000000e+00> : vector<128x128xf32>
    %8 = tpu.matmul %6, %7, %cst_7 {dimension_numbers = #tpu.dot_dimension_numbers<[1], [0], [0], [1], [0, 0, 1, 1], [], []>} : vector<128x128xf32>, vector<128x128xf32>, vector<128x128xf32> -> vector<128x128xf32>
    %c0_8 = arith.constant 0 : index
    %c0_9 = arith.constant 0 : index
    %9 = vector.load %arg5[%c0_8, %c0_9] : memref<1x128xf32, #tpu.memory_space<vmem>>, vector<1x128xf32>
    %10 = vector.broadcast %9 : vector<1x128xf32> to vector<128x128xf32>
    %11 = arith.addf %8, %10 : vector<128x128xf32>
    %cst_10 = arith.constant 9.99999971E-10 : f32
    %12 = vector.broadcast %cst_10 : f32 to vector<128x128xf32>
    %13 = arith.maximumf %11, %12 : vector<128x128xf32>
    %14 = math.sqrt %13 : vector<128x128xf32>
    %15 = arith.mulf %5, %14 : vector<128x128xf32>
    %c0_11 = arith.constant 0 : index
    %c0_12 = arith.constant 0 : index
    %16 = vector.load %arg6[%c0_11, %c0_12] : memref<128x128xf32, #tpu.memory_space<vmem>>, vector<128x128xf32>
    tpu.vector_store %arg6[%c0_11, %c0_12], %15 {strides = array<i32>} : memref<128x128xf32, #tpu.memory_space<vmem>>, vector<128x128xf32>,
    return
  }
  func.func @transform_0(%arg0: i32) -> (i32, i32) {
    %c0_i32 = arith.constant 0 : i32
    %c0_i32_0 = arith.constant 0 : i32
    return %arg0, %c0_i32 : i32, i32
  }
  func.func @transform_1(%arg0: i32) -> (i32, i32) {
    %c0_i32 = arith.constant 0 : i32
    %c0_i32_0 = arith.constant 0 : i32
    %c0_i32_1 = arith.constant 0 : i32
    return %c0_i32, %c0_i32_0 : i32, i32
  }
  func.func @transform_2(%arg0: i32) -> (i32, i32) {
    %c0_i32 = arith.constant 0 : i32
    %c0_i32_0 = arith.constant 0 : i32
    %c0_i32_1 = arith.constant 0 : i32
    return %c0_i32, %c0_i32_0 : i32, i32
  }
  func.func @transform_3(%arg0: i32) -> (i32, i32) {
    %c0_i32 = arith.constant 0 : i32
    %c0_i32_0 = arith.constant 0 : i32
    %c0_i32_1 = arith.constant 0 : i32
    return %c0_i32, %c0_i32_0 : i32, i32
  }
  func.func @transform_4(%arg0: i32) -> (i32, i32) {
    %c0_i32 = arith.constant 0 : i32
    %c0_i32_0 = arith.constant 0 : i32
    %c0_i32_1 = arith.constant 0 : i32
    return %c0_i32, %c0_i32_0 : i32, i32
  }
  func.func @transform_5(%arg0: i32) -> (i32, i32) {
    %c0_i32 = arith.constant 0 : i32
    %c0_i32_0 = arith.constant 0 : i32
    return %arg0, %c0_i32 : i32, i32
  }
}

module attributes {stable_mosaic.version = 11 : i64} {
  func.func @_mm_bias_gdn_kernel(%arg0: i32, %arg1: memref<128x256xbf16, #tpu.memory_space<vmem>>, %arg2: memref<256x128xbf16, #tpu.memory_space<vmem>>, %arg3: memref<1x128xf32, #tpu.memory_space<vmem>>, %arg4: memref<128x128xf32, #tpu.memory_space<vmem>>, %arg5: memref<1x128xf32, #tpu.memory_space<vmem>>, %arg6: memref<128x128xf32, #tpu.memory_space<vmem>>) attributes {dimension_semantics = [#tpu.dimension_semantics<parallel>], iteration_bounds = array<i64: 1>, scalar_prefetch = 0 : i64, scratch_operands = 0 : i64, tpu.core_type = #tpu.core_type<tc>, window_params = [{transform_indices = @transform_0, window_bounds = array<i64: 128, 256>}, {pipeline_mode = #tpu.pipeline_mode<synchronous>, transform_indices = @transform_1, window_bounds = array<i64: 256, 128>}, {pipeline_mode = #tpu.pipeline_mode<synchronous>, transform_indices = @transform_2, window_bounds = array<i64: 1, 128>}, {pipeline_mode = #tpu.pipeline_mode<synchronous>, transform_indices = @transform_3, window_bounds = array<i64: 128, 128>}, {pipeline_mode = #tpu.pipeline_mode<synchronous>, transform_indices = @transform_4, window_bounds = array<i64: 1, 128>}, {transform_indices = @transform_5, window_bounds = array<i64: 128, 128>}]} {
    %c0 = arith.constant 0 : index
    %c0_0 = arith.constant 0 : index
    %0 = vector.load %arg1[%c0, %c0_0] : memref<128x256xbf16, #tpu.memory_space<vmem>>, vector<128x256xbf16>
    %c0_1 = arith.constant 0 : index
    %c0_2 = arith.constant 0 : index
    %1 = vector.load %arg2[%c0_1, %c0_2] : memref<256x128xbf16, #tpu.memory_space<vmem>>, vector<256x128xbf16>
    %cst = arith.constant dense<0.000000e+00> : vector<128x128xf32>
    %2 = tpu.matmul %0, %1, %cst {dimension_numbers = #tpu.dot_dimension_numbers<[1], [0], [0], [1], [0, 0, 1, 1], [], []>} : vector<128x256xbf16>, vector<256x128xbf16>, vector<128x128xf32> -> vector<128x128xf32>
    %c0_3 = arith.constant 0 : index
    %c0_4 = arith.constant 0 : index
    %3 = vector.load %arg3[%c0_3, %c0_4] : memref<1x128xf32, #tpu.memory_space<vmem>>, vector<1x128xf32>
    %4 = vector.broadcast %3 : vector<1x128xf32> to vector<128x128xf32>
    %5 = arith.addf %2, %4 : vector<128x128xf32>
    %6 = arith.mulf %5, %5 : vector<128x128xf32>
    %c0_5 = arith.constant 0 : index
    %c0_6 = arith.constant 0 : index
    %7 = vector.load %arg4[%c0_5, %c0_6] : memref<128x128xf32, #tpu.memory_space<vmem>>, vector<128x128xf32>
    %cst_7 = arith.constant dense<0.000000e+00> : vector<128x128xf32>
    %8 = tpu.matmul %6, %7, %cst_7 {dimension_numbers = #tpu.dot_dimension_numbers<[1], [0], [0], [1], [0, 0, 1, 1], [], []>} : vector<128x128xf32>, vector<128x128xf32>, vector<128x128xf32> -> vector<128x128xf32>
    %c0_8 = arith.constant 0 : index
    %c0_9 = arith.constant 0 : index
    %9 = vector.load %arg5[%c0_8, %c0_9] : memref<1x128xf32, #tpu.memory_space<vmem>>, vector<1x128xf32>
    %10 = vector.broadcast %9 : vector<1x128xf32> to vector<128x128xf32>
    %11 = arith.addf %8, %10 : vector<128x128xf32>
    %cst_10 = arith.constant 9.99999971E-10 : f32
    %12 = vector.broadcast %cst_10 : f32 to vector<128x128xf32>
    %13 = arith.maximumf %11, %12 : vector<128x128xf32>
    %14 = math.sqrt %13 : vector<128x128xf32>
    %15 = arith.mulf %5, %14 : vector<128x128xf32>
    %c0_11 = arith.constant 0 : index
    %c0_12 = arith.constant 0 : index
    %16 = vector.load %arg6[%c0_11, %c0_12] : memref<128x128xf32, #tpu.memory_space<vmem>>, vector<128x128xf32>
    tpu.vector_store %arg6[%c0_11, %c0_12], %15 {strides = array<i32>} : memref<128x128xf32, #tpu.memory_space<vmem>>, vector<128x128xf32>,
    return
  }
  func.func @transform_0(%arg0: i32) -> (i32, i32) {
    %c0_i32 = arith.constant 0 : i32
    %c0_i32_0 = arith.constant 0 : i32
    return %arg0, %c0_i32 : i32, i32
  }
  func.func @transform_1(%arg0: i32) -> (i32, i32) {
    %c0_i32 = arith.constant 0 : i32
    %c0_i32_0 = arith.constant 0 : i32
    %c0_i32_1 = arith.constant 0 : i32
    return %c0_i32, %c0_i32_0 : i32, i32
  }
  func.func @transform_2(%arg0: i32) -> (i32, i32) {
    %c0_i32 = arith.constant 0 : i32
    %c0_i32_0 = arith.constant 0 : i32
    %c0_i32_1 = arith.constant 0 : i32
    return %c0_i32, %c0_i32_0 : i32, i32
  }
  func.func @transform_3(%arg0: i32) -> (i32, i32) {
    %c0_i32 = arith.constant 0 : i32
    %c0_i32_0 = arith.constant 0 : i32
    %c0_i32_1 = arith.constant 0 : i32
    return %c0_i32, %c0_i32_0 : i32, i32
  }
  func.func @transform_4(%arg0: i32) -> (i32, i32) {
    %c0_i32 = arith.constant 0 : i32
    %c0_i32_0 = arith.constant 0 : i32
    %c0_i32_1 = arith.constant 0 : i32
    return %c0_i32, %c0_i32_0 : i32, i32
  }
  func.func @transform_5(%arg0: i32) -> (i32, i32) {
    %c0_i32 = arith.constant 0 : i32
    %c0_i32_0 = arith.constant 0 : i32
    return %arg0, %c0_i32 : i32, i32
  }
}

module attributes {stable_mosaic.version = 11 : i64} {
  func.func @_mm_bias_kernel(%arg0: i32, %arg1: memref<128x256xbf16, #tpu.memory_space<vmem>>, %arg2: memref<256x128xbf16, #tpu.memory_space<vmem>>, %arg3: memref<1x128xf32, #tpu.memory_space<vmem>>, %arg4: memref<128x128xf32, #tpu.memory_space<vmem>>) attributes {dimension_semantics = [#tpu.dimension_semantics<parallel>], iteration_bounds = array<i64: 1>, scalar_prefetch = 0 : i64, scratch_operands = 0 : i64, tpu.core_type = #tpu.core_type<tc>, window_params = [{transform_indices = @transform_0, window_bounds = array<i64: 128, 256>}, {pipeline_mode = #tpu.pipeline_mode<synchronous>, transform_indices = @transform_1, window_bounds = array<i64: 256, 128>}, {pipeline_mode = #tpu.pipeline_mode<synchronous>, transform_indices = @transform_2, window_bounds = array<i64: 1, 128>}, {transform_indices = @transform_3, window_bounds = array<i64: 128, 128>}]} {
    %c0 = arith.constant 0 : index
    %c0_0 = arith.constant 0 : index
    %0 = vector.load %arg1[%c0, %c0_0] : memref<128x256xbf16, #tpu.memory_space<vmem>>, vector<128x256xbf16>
    %c0_1 = arith.constant 0 : index
    %c0_2 = arith.constant 0 : index
    %1 = vector.load %arg2[%c0_1, %c0_2] : memref<256x128xbf16, #tpu.memory_space<vmem>>, vector<256x128xbf16>
    %cst = arith.constant dense<0.000000e+00> : vector<128x128xf32>
    %2 = tpu.matmul %0, %1, %cst {dimension_numbers = #tpu.dot_dimension_numbers<[1], [0], [0], [1], [0, 0, 1, 1], [], []>} : vector<128x256xbf16>, vector<256x128xbf16>, vector<128x128xf32> -> vector<128x128xf32>
    %c0_3 = arith.constant 0 : index
    %c0_4 = arith.constant 0 : index
    %3 = vector.load %arg3[%c0_3, %c0_4] : memref<1x128xf32, #tpu.memory_space<vmem>>, vector<1x128xf32>
    %4 = vector.broadcast %3 : vector<1x128xf32> to vector<128x128xf32>
    %5 = arith.addf %2, %4 : vector<128x128xf32>
    %c0_5 = arith.constant 0 : index
    %c0_6 = arith.constant 0 : index
    %6 = vector.load %arg4[%c0_5, %c0_6] : memref<128x128xf32, #tpu.memory_space<vmem>>, vector<128x128xf32>
    tpu.vector_store %arg4[%c0_5, %c0_6], %5 {strides = array<i32>} : memref<128x128xf32, #tpu.memory_space<vmem>>, vector<128x128xf32>,
    return
  }
  func.func @transform_0(%arg0: i32) -> (i32, i32) {
    %c0_i32 = arith.constant 0 : i32
    %c0_i32_0 = arith.constant 0 : i32
    return %arg0, %c0_i32 : i32, i32
  }
  func.func @transform_1(%arg0: i32) -> (i32, i32) {
    %c0_i32 = arith.constant 0 : i32
    %c0_i32_0 = arith.constant 0 : i32
    %c0_i32_1 = arith.constant 0 : i32
    return %c0_i32, %c0_i32_0 : i32, i32
  }
  func.func @transform_2(%arg0: i32) -> (i32, i32) {
    %c0_i32 = arith.constant 0 : i32
    %c0_i32_0 = arith.constant 0 : i32
    %c0_i32_1 = arith.constant 0 : i32
    return %c0_i32, %c0_i32_0 : i32, i32
  }
  func.func @transform_3(%arg0: i32) -> (i32, i32) {
    %c0_i32 = arith.constant 0 : i32
    %c0_i32_0 = arith.constant 0 : i32
    return %arg0, %c0_i32 : i32, i32
  }
}

module attributes {stable_mosaic.version = 11 : i64} {
  func.func @_mm_bias_kernel(%arg0: i32, %arg1: memref<128x384xbf16, #tpu.memory_space<vmem>>, %arg2: memref<384x128xbf16, #tpu.memory_space<vmem>>, %arg3: memref<1x128xf32, #tpu.memory_space<vmem>>, %arg4: memref<128x128xf32, #tpu.memory_space<vmem>>) attributes {dimension_semantics = [#tpu.dimension_semantics<parallel>], iteration_bounds = array<i64: 1>, scalar_prefetch = 0 : i64, scratch_operands = 0 : i64, tpu.core_type = #tpu.core_type<tc>, window_params = [{transform_indices = @transform_0, window_bounds = array<i64: 128, 384>}, {pipeline_mode = #tpu.pipeline_mode<synchronous>, transform_indices = @transform_1, window_bounds = array<i64: 384, 128>}, {pipeline_mode = #tpu.pipeline_mode<synchronous>, transform_indices = @transform_2, window_bounds = array<i64: 1, 128>}, {transform_indices = @transform_3, window_bounds = array<i64: 128, 128>}]} {
    %c0 = arith.constant 0 : index
    %c0_0 = arith.constant 0 : index
    %0 = vector.load %arg1[%c0, %c0_0] : memref<128x384xbf16, #tpu.memory_space<vmem>>, vector<128x384xbf16>
    %c0_1 = arith.constant 0 : index
    %c0_2 = arith.constant 0 : index
    %1 = vector.load %arg2[%c0_1, %c0_2] : memref<384x128xbf16, #tpu.memory_space<vmem>>, vector<384x128xbf16>
    %cst = arith.constant dense<0.000000e+00> : vector<128x128xf32>
    %2 = tpu.matmul %0, %1, %cst {dimension_numbers = #tpu.dot_dimension_numbers<[1], [0], [0], [1], [0, 0, 1, 1], [], []>} : vector<128x384xbf16>, vector<384x128xbf16>, vector<128x128xf32> -> vector<128x128xf32>
    %c0_3 = arith.constant 0 : index
    %c0_4 = arith.constant 0 : index
    %3 = vector.load %arg3[%c0_3, %c0_4] : memref<1x128xf32, #tpu.memory_space<vmem>>, vector<1x128xf32>
    %4 = vector.broadcast %3 : vector<1x128xf32> to vector<128x128xf32>
    %5 = arith.addf %2, %4 : vector<128x128xf32>
    %c0_5 = arith.constant 0 : index
    %c0_6 = arith.constant 0 : index
    %6 = vector.load %arg4[%c0_5, %c0_6] : memref<128x128xf32, #tpu.memory_space<vmem>>, vector<128x128xf32>
    tpu.vector_store %arg4[%c0_5, %c0_6], %5 {strides = array<i32>} : memref<128x128xf32, #tpu.memory_space<vmem>>, vector<128x128xf32>,
    return
  }
  func.func @transform_0(%arg0: i32) -> (i32, i32) {
    %c0_i32 = arith.constant 0 : i32
    %c0_i32_0 = arith.constant 0 : i32
    return %arg0, %c0_i32 : i32, i32
  }
  func.func @transform_1(%arg0: i32) -> (i32, i32) {
    %c0_i32 = arith.constant 0 : i32
    %c0_i32_0 = arith.constant 0 : i32
    %c0_i32_1 = arith.constant 0 : i32
    return %c0_i32, %c0_i32_0 : i32, i32
  }
  func.func @transform_2(%arg0: i32) -> (i32, i32) {
    %c0_i32 = arith.constant 0 : i32
    %c0_i32_0 = arith.constant 0 : i32
    %c0_i32_1 = arith.constant 0 : i32
    return %c0_i32, %c0_i32_0 : i32, i32
  }
  func.func @transform_3(%arg0: i32) -> (i32, i32) {
    %c0_i32 = arith.constant 0 : i32
    %c0_i32_0 = arith.constant 0 : i32
    return %arg0, %c0_i32 : i32, i32
  }
}

module attributes {stable_mosaic.version = 11 : i64} {
  func.func @_mm_bias_kernel(%arg0: i32, %arg1: memref<128x128xbf16, #tpu.memory_space<vmem>>, %arg2: memref<128x128xbf16, #tpu.memory_space<vmem>>, %arg3: memref<1x128xf32, #tpu.memory_space<vmem>>, %arg4: memref<128x128xf32, #tpu.memory_space<vmem>>) attributes {dimension_semantics = [#tpu.dimension_semantics<parallel>], iteration_bounds = array<i64: 1>, scalar_prefetch = 0 : i64, scratch_operands = 0 : i64, tpu.core_type = #tpu.core_type<tc>, window_params = [{transform_indices = @transform_0, window_bounds = array<i64: 128, 128>}, {pipeline_mode = #tpu.pipeline_mode<synchronous>, transform_indices = @transform_1, window_bounds = array<i64: 128, 128>}, {pipeline_mode = #tpu.pipeline_mode<synchronous>, transform_indices = @transform_2, window_bounds = array<i64: 1, 128>}, {transform_indices = @transform_3, window_bounds = array<i64: 128, 128>}]} {
    %c0 = arith.constant 0 : index
    %c0_0 = arith.constant 0 : index
    %0 = vector.load %arg1[%c0, %c0_0] : memref<128x128xbf16, #tpu.memory_space<vmem>>, vector<128x128xbf16>
    %c0_1 = arith.constant 0 : index
    %c0_2 = arith.constant 0 : index
    %1 = vector.load %arg2[%c0_1, %c0_2] : memref<128x128xbf16, #tpu.memory_space<vmem>>, vector<128x128xbf16>
    %cst = arith.constant dense<0.000000e+00> : vector<128x128xf32>
    %2 = tpu.matmul %0, %1, %cst {dimension_numbers = #tpu.dot_dimension_numbers<[1], [0], [0], [1], [0, 0, 1, 1], [], []>} : vector<128x128xbf16>, vector<128x128xbf16>, vector<128x128xf32> -> vector<128x128xf32>
    %c0_3 = arith.constant 0 : index
    %c0_4 = arith.constant 0 : index
    %3 = vector.load %arg3[%c0_3, %c0_4] : memref<1x128xf32, #tpu.memory_space<vmem>>, vector<1x128xf32>
    %4 = vector.broadcast %3 : vector<1x128xf32> to vector<128x128xf32>
    %5 = arith.addf %2, %4 : vector<128x128xf32>
    %c0_5 = arith.constant 0 : index
    %c0_6 = arith.constant 0 : index
    %6 = vector.load %arg4[%c0_5, %c0_6] : memref<128x128xf32, #tpu.memory_space<vmem>>, vector<128x128xf32>
    tpu.vector_store %arg4[%c0_5, %c0_6], %5 {strides = array<i32>} : memref<128x128xf32, #tpu.memory_space<vmem>>, vector<128x128xf32>,
    return
  }
  func.func @transform_0(%arg0: i32) -> (i32, i32) {
    %c0_i32 = arith.constant 0 : i32
    %c0_i32_0 = arith.constant 0 : i32
    return %arg0, %c0_i32 : i32, i32
  }
  func.func @transform_1(%arg0: i32) -> (i32, i32) {
    %c0_i32 = arith.constant 0 : i32
    %c0_i32_0 = arith.constant 0 : i32
    %c0_i32_1 = arith.constant 0 : i32
    return %c0_i32, %c0_i32_0 : i32, i32
  }
  func.func @transform_2(%arg0: i32) -> (i32, i32) {
    %c0_i32 = arith.constant 0 : i32
    %c0_i32_0 = arith.constant 0 : i32
    %c0_i32_1 = arith.constant 0 : i32
    return %c0_i32, %c0_i32_0 : i32, i32
  }
  func.func @transform_3(%arg0: i32) -> (i32, i32) {
    %c0_i32 = arith.constant 0 : i32
    %c0_i32_0 = arith.constant 0 : i32
    return %arg0, %c0_i32 : i32, i32
  }
}

module attributes {stable_mosaic.version = 11 : i64} {
  func.func @_sqdiff_partial_kernel(%arg0: i32, %arg1: memref<48x128xf32, #tpu.memory_space<vmem>>, %arg2: memref<48x128xf32, #tpu.memory_space<vmem>>, %arg3: memref<8x128xf32, #tpu.memory_space<vmem>>) attributes {dimension_semantics = [#tpu.dimension_semantics<parallel>], iteration_bounds = array<i64: 1>, scalar_prefetch = 0 : i64, scratch_operands = 0 : i64, tpu.core_type = #tpu.core_type<tc>, window_params = [{transform_indices = @transform_0, window_bounds = array<i64: 48, 128>}, {transform_indices = @transform_1, window_bounds = array<i64: 48, 128>}, {transform_indices = @transform_2, window_bounds = array<i64: 8, 128>}]} {
    %c0 = arith.constant 0 : index
    %c0_0 = arith.constant 0 : index
    %0 = vector.load %arg1[%c0, %c0_0] : memref<48x128xf32, #tpu.memory_space<vmem>>, vector<48x128xf32>
    %c0_1 = arith.constant 0 : index
    %c0_2 = arith.constant 0 : index
    %1 = vector.load %arg2[%c0_1, %c0_2] : memref<48x128xf32, #tpu.memory_space<vmem>>, vector<48x128xf32>
    %2 = arith.subf %0, %1 : vector<48x128xf32>
    %3 = arith.mulf %2, %2 : vector<48x128xf32>
    %4 = vector.shape_cast %3 : vector<48x128xf32> to vector<6x8x128xf32>
    %cst = arith.constant dense<0.000000e+00> : vector<8x128xf32>
    %5 = vector.multi_reduction <add>, %4, %cst [0] : vector<6x8x128xf32> to vector<8x128xf32>
    %c0_3 = arith.constant 0 : index
    %c0_4 = arith.constant 0 : index
    %6 = vector.load %arg3[%c0_3, %c0_4] : memref<8x128xf32, #tpu.memory_space<vmem>>, vector<8x128xf32>
    tpu.vector_store %arg3[%c0_3, %c0_4], %5 {strides = array<i32>} : memref<8x128xf32, #tpu.memory_space<vmem>>, vector<8x128xf32>,
    return
  }
  func.func @transform_0(%arg0: i32) -> (i32, i32) {
    %c0_i32 = arith.constant 0 : i32
    %c0_i32_0 = arith.constant 0 : i32
    return %arg0, %c0_i32 : i32, i32
  }
  func.func @transform_1(%arg0: i32) -> (i32, i32) {
    %c0_i32 = arith.constant 0 : i32
    %c0_i32_0 = arith.constant 0 : i32
    return %arg0, %c0_i32 : i32, i32
  }
  func.func @transform_2(%arg0: i32) -> (i32, i32) {
    %c0_i32 = arith.constant 0 : i32
    %c0_i32_0 = arith.constant 0 : i32
    return %arg0, %c0_i32 : i32, i32
  }
}

module attributes {stable_mosaic.version = 11 : i64} {
  func.func @_bits_partial_kernel(%arg0: i32, %arg1: memref<8x128xf32, #tpu.memory_space<vmem>>, %arg2: memref<4x128xf32, #tpu.memory_space<vmem>>, %arg3: memref<4x128xf32, #tpu.memory_space<vmem>>, %arg4: memref<3x128xf32, #tpu.memory_space<vmem>>, %arg5: memref<8x128xf32, #tpu.memory_space<vmem>>) attributes {dimension_semantics = [#tpu.dimension_semantics<parallel>], iteration_bounds = array<i64: 1>, scalar_prefetch = 0 : i64, scratch_operands = 0 : i64, tpu.core_type = #tpu.core_type<tc>, window_params = [{transform_indices = @transform_0, window_bounds = array<i64: 8, 128>}, {pipeline_mode = #tpu.pipeline_mode<synchronous>, transform_indices = @transform_1, window_bounds = array<i64: 4, 128>}, {pipeline_mode = #tpu.pipeline_mode<synchronous>, transform_indices = @transform_2, window_bounds = array<i64: 4, 128>}, {pipeline_mode = #tpu.pipeline_mode<synchronous>, transform_indices = @transform_3, window_bounds = array<i64: 3, 128>}, {transform_indices = @transform_4, window_bounds = array<i64: 8, 128>}]} {
    %c0 = arith.constant 0 : index
    %c0_0 = arith.constant 0 : index
    %0 = vector.load %arg1[%c0, %c0_0] : memref<8x128xf32, #tpu.memory_space<vmem>>, vector<8x128xf32>
    %c0_1 = arith.constant 0 : index
    %c0_2 = arith.constant 0 : index
    %1 = vector.load %arg2[%c0_1, %c0_2] : memref<4x128xf32, #tpu.memory_space<vmem>>, vector<4x128xf32>
    %cst = arith.constant 0.000000e+00 : f32
    %2 = vector.broadcast %cst : f32 to vector<4x128xf32>
    %3 = arith.maximumf %1, %2 : vector<4x128xf32>
    %4 = vector.broadcast %cst : f32 to vector<4x128xf32>
    %5 = arith.subf %1, %4 : vector<4x128xf32>
    %6 = arith.cmpf one, %5, %5 : vector<4x128xf32>
    %7 = vector.broadcast %cst : f32 to vector<4x128xf32>
    %8 = arith.addf %1, %7 : vector<4x128xf32>
    %9 = math.absf %5 : vector<4x128xf32>
    %cst_3 = arith.constant 0.000000e+00 : f32
    %10 = vector.broadcast %cst_3 : f32 to vector<4x128xf32>
    %11 = arith.subf %10, %9 : vector<4x128xf32>
    %12 = math.exp %11 : vector<4x128xf32>
    %13 = math.log1p %12 : vector<4x128xf32>
    %14 = arith.addf %3, %13 : vector<4x128xf32>
    %15 = arith.select %6, %8, %14 : vector<4x128xi1>, vector<4x128xf32>
    %c0_4 = arith.constant 0 : index
    %c0_5 = arith.constant 0 : index
    %16 = vector.load %arg3[%c0_4, %c0_5] : memref<4x128xf32, #tpu.memory_space<vmem>>, vector<4x128xf32>
    %c0_6 = arith.constant 0 : index
    %c0_7 = arith.constant 0 : index
    %17 = vector.load %arg4[%c0_6, %c0_7] : memref<3x128xf32, #tpu.memory_space<vmem>>, vector<3x128xf32>
    %18 = math.tanh %17 : vector<3x128xf32>
    %cst_8 = arith.constant 5.000000e-01 : f32
    %19 = vector.broadcast %cst_8 : f32 to vector<8x128xf32>
    %20 = arith.addf %0, %19 : vector<8x128xf32>
    %21 = vector.extract_strided_slice %15 {offsets = [0, 0], sizes = [1, 128], strides = [1, 1]} : vector<4x128xf32> to vector<1x128xf32>
    %22 = vector.broadcast %21 : vector<1x128xf32> to vector<8x128xf32>
    %23 = arith.mulf %20, %22 : vector<8x128xf32>
    %24 = vector.extract_strided_slice %16 {offsets = [0, 0], sizes = [1, 128], strides = [1, 1]} : vector<4x128xf32> to vector<1x128xf32>
    %25 = vector.broadcast %24 : vector<1x128xf32> to vector<8x128xf32>
    %26 = arith.addf %23, %25 : vector<8x128xf32>
    %27 = math.tanh %26 : vector<8x128xf32>
    %28 = vector.extract_strided_slice %18 {offsets = [0, 0], sizes = [1, 128], strides = [1, 1]} : vector<3x128xf32> to vector<1x128xf32>
    %29 = vector.broadcast %28 : vector<1x128xf32> to vector<8x128xf32>
    %30 = arith.mulf %27, %29 : vector<8x128xf32>
    %31 = arith.addf %26, %30 : vector<8x128xf32>
    %32 = vector.extract_strided_slice %15 {offsets = [1, 0], sizes = [1, 128], strides = [1, 1]} : vector<4x128xf32> to vector<1x128xf32>
    %33 = vector.broadcast %32 : vector<1x128xf32> to vector<8x128xf32>
    %34 = arith.mulf %31, %33 : vector<8x128xf32>
    %35 = vector.extract_strided_slice %16 {offsets = [1, 0], sizes = [1, 128], strides = [1, 1]} : vector<4x128xf32> to vector<1x128xf32>
    %36 = vector.broadcast %35 : vector<1x128xf32> to vector<8x128xf32>
    %37 = arith.addf %34, %36 : vector<8x128xf32>
    %38 = math.tanh %37 : vector<8x128xf32>
    %39 = vector.extract_strided_slice %18 {offsets = [1, 0], sizes = [1, 128], strides = [1, 1]} : vector<3x128xf32> to vector<1x128xf32>
    %40 = vector.broadcast %39 : vector<1x128xf32> to vector<8x128xf32>
    %41 = arith.mulf %38, %40 : vector<8x128xf32>
    %42 = arith.addf %37, %41 : vector<8x128xf32>
    %43 = vector.extract_strided_slice %15 {offsets = [2, 0], sizes = [1, 128], strides = [1, 1]} : vector<4x128xf32> to vector<1x128xf32>
    %44 = vector.broadcast %43 : vector<1x128xf32> to vector<8x128xf32>
    %45 = arith.mulf %42, %44 : vector<8x128xf32>
    %46 = vector.extract_strided_slice %16 {offsets = [2, 0], sizes = [1, 128], strides = [1, 1]} : vector<4x128xf32> to vector<1x128xf32>
    %47 = vector.broadcast %46 : vector<1x128xf32> to vector<8x128xf32>
    %48 = arith.addf %45, %47 : vector<8x128xf32>
    %49 = math.tanh %48 : vector<8x128xf32>
    %50 = vector.extract_strided_slice %18 {offsets = [2, 0], sizes = [1, 128], strides = [1, 1]} : vector<3x128xf32> to vector<1x128xf32>
    %51 = vector.broadcast %50 : vector<1x128xf32> to vector<8x128xf32>
    %52 = arith.mulf %49, %51 : vector<8x128xf32>
    %53 = arith.addf %48, %52 : vector<8x128xf32>
    %54 = vector.extract_strided_slice %15 {offsets = [3, 0], sizes = [1, 128], strides = [1, 1]} : vector<4x128xf32> to vector<1x128xf32>
    %55 = vector.broadcast %54 : vector<1x128xf32> to vector<8x128xf32>
    %56 = arith.mulf %53, %55 : vector<8x128xf32>
    %57 = vector.extract_strided_slice %16 {offsets = [3, 0], sizes = [1, 128], strides = [1, 1]} : vector<4x128xf32> to vector<1x128xf32>
    %58 = vector.broadcast %57 : vector<1x128xf32> to vector<8x128xf32>
    %59 = arith.addf %56, %58 : vector<8x128xf32>
    %60 = arith.negf %59 : vector<8x128xf32>
    %61 = math.exp %60 : vector<8x128xf32>
    %cst_9 = arith.constant 1.000000e+00 : f32
    %62 = vector.broadcast %cst_9 : f32 to vector<8x128xf32>
    %63 = arith.addf %62, %61 : vector<8x128xf32>
    %64 = arith.divf %62, %63 : vector<8x128xf32>
    %cst_10 = arith.constant 5.000000e-01 : f32
    %65 = vector.broadcast %cst_10 : f32 to vector<8x128xf32>
    %66 = arith.subf %0, %65 : vector<8x128xf32>
    %67 = vector.extract_strided_slice %15 {offsets = [0, 0], sizes = [1, 128], strides = [1, 1]} : vector<4x128xf32> to vector<1x128xf32>
    %68 = vector.broadcast %67 : vector<1x128xf32> to vector<8x128xf32>
    %69 = arith.mulf %66, %68 : vector<8x128xf32>
    %70 = vector.extract_strided_slice %16 {offsets = [0, 0], sizes = [1, 128], strides = [1, 1]} : vector<4x128xf32> to vector<1x128xf32>
    %71 = vector.broadcast %70 : vector<1x128xf32> to vector<8x128xf32>
    %72 = arith.addf %69, %71 : vector<8x128xf32>
    %73 = math.tanh %72 : vector<8x128xf32>
    %74 = vector.extract_strided_slice %18 {offsets = [0, 0], sizes = [1, 128], strides = [1, 1]} : vector<3x128xf32> to vector<1x128xf32>
    %75 = vector.broadcast %74 : vector<1x128xf32> to vector<8x128xf32>
    %76 = arith.mulf %73, %75 : vector<8x128xf32>
    %77 = arith.addf %72, %76 : vector<8x128xf32>
    %78 = vector.extract_strided_slice %15 {offsets = [1, 0], sizes = [1, 128], strides = [1, 1]} : vector<4x128xf32> to vector<1x128xf32>
    %79 = vector.broadcast %78 : vector<1x128xf32> to vector<8x128xf32>
    %80 = arith.mulf %77, %79 : vector<8x128xf32>
    %81 = vector.extract_strided_slice %16 {offsets = [1, 0], sizes = [1, 128], strides = [1, 1]} : vector<4x128xf32> to vector<1x128xf32>
    %82 = vector.broadcast %81 : vector<1x128xf32> to vector<8x128xf32>
    %83 = arith.addf %80, %82 : vector<8x128xf32>
    %84 = math.tanh %83 : vector<8x128xf32>
    %85 = vector.extract_strided_slice %18 {offsets = [1, 0], sizes = [1, 128], strides = [1, 1]} : vector<3x128xf32> to vector<1x128xf32>
    %86 = vector.broadcast %85 : vector<1x128xf32> to vector<8x128xf32>
    %87 = arith.mulf %84, %86 : vector<8x128xf32>
    %88 = arith.addf %83, %87 : vector<8x128xf32>
    %89 = vector.extract_strided_slice %15 {offsets = [2, 0], sizes = [1, 128], strides = [1, 1]} : vector<4x128xf32> to vector<1x128xf32>
    %90 = vector.broadcast %89 : vector<1x128xf32> to vector<8x128xf32>
    %91 = arith.mulf %88, %90 : vector<8x128xf32>
    %92 = vector.extract_strided_slice %16 {offsets = [2, 0], sizes = [1, 128], strides = [1, 1]} : vector<4x128xf32> to vector<1x128xf32>
    %93 = vector.broadcast %92 : vector<1x128xf32> to vector<8x128xf32>
    %94 = arith.addf %91, %93 : vector<8x128xf32>
    %95 = math.tanh %94 : vector<8x128xf32>
    %96 = vector.extract_strided_slice %18 {offsets = [2, 0], sizes = [1, 128], strides = [1, 1]} : vector<3x128xf32> to vector<1x128xf32>
    %97 = vector.broadcast %96 : vector<1x128xf32> to vector<8x128xf32>
    %98 = arith.mulf %95, %97 : vector<8x128xf32>
    %99 = arith.addf %94, %98 : vector<8x128xf32>
    %100 = vector.extract_strided_slice %15 {offsets = [3, 0], sizes = [1, 128], strides = [1, 1]} : vector<4x128xf32> to vector<1x128xf32>
    %101 = vector.broadcast %100 : vector<1x128xf32> to vector<8x128xf32>
    %102 = arith.mulf %99, %101 : vector<8x128xf32>
    %103 = vector.extract_strided_slice %16 {offsets = [3, 0], sizes = [1, 128], strides = [1, 1]} : vector<4x128xf32> to vector<1x128xf32>
    %104 = vector.broadcast %103 : vector<1x128xf32> to vector<8x128xf32>
    %105 = arith.addf %102, %104 : vector<8x128xf32>
    %106 = arith.negf %105 : vector<8x128xf32>
    %107 = math.exp %106 : vector<8x128xf32>
    %cst_11 = arith.constant 1.000000e+00 : f32
    %108 = vector.broadcast %cst_11 : f32 to vector<8x128xf32>
    %109 = arith.addf %108, %107 : vector<8x128xf32>
    %110 = arith.divf %108, %109 : vector<8x128xf32>
    %111 = arith.subf %64, %110 : vector<8x128xf32>
    %cst_12 = arith.constant 1.000000e-10 : f32
    %112 = vector.broadcast %cst_12 : f32 to vector<8x128xf32>
    %113 = arith.addf %111, %112 : vector<8x128xf32>
    %114 = math.log %113 : vector<8x128xf32>
    %cst_13 = arith.constant 0.000000e+00 : f32
    %115 = vector.broadcast %cst_13 : f32 to vector<8x128xf32>
    %116 = arith.subf %115, %114 : vector<8x128xf32>
    %cst_14 = arith.constant 1.44269502 : f32
    %117 = vector.broadcast %cst_14 : f32 to vector<8x128xf32>
    %118 = arith.mulf %116, %117 : vector<8x128xf32>
    %cst_15 = arith.constant 0.000000e+00 : f32
    %cst_16 = arith.constant 5.000000e+01 : f32
    %119 = vector.broadcast %cst_15 : f32 to vector<8x128xf32>
    %120 = arith.maximumf %119, %118 : vector<8x128xf32>
    %121 = vector.broadcast %cst_16 : f32 to vector<8x128xf32>
    %122 = arith.minimumf %121, %120 : vector<8x128xf32>
    %123 = tpu.iota {dimensions = array<i32: 0>} : vector<8x128xi32>
    %c8_i32 = arith.constant 8 : i32
    %124 = arith.muli %arg0, %c8_i32 : i32
    %125 = vector.broadcast %124 : i32 to vector<8x128xi32>
    %126 = arith.addi %123, %125 : vector<8x128xi32>
    %127 = tpu.iota {dimensions = array<i32: 1>} : vector<8x128xi32>
    %c128_i32 = arith.constant 128 : i32
    %128 = vector.broadcast %c128_i32 : i32 to vector<8x128xi32>
    %129 = arith.muli %126, %128 : vector<8x128xi32>
    %130 = arith.addi %129, %127 : vector<8x128xi32>
    %c256_i32 = arith.constant 256 : i32
    %131 = vector.broadcast %c256_i32 : i32 to vector<8x128xi32>
    %132 = arith.cmpi slt, %130, %131 : vector<8x128xi32>
    %133 = arith.extui %132 : vector<8x128xi1> to vector<8x128xi32>
    %134 = arith.sitofp %133 : vector<8x128xi32> to vector<8x128xf32>
    %135 = arith.mulf %122, %134 : vector<8x128xf32>
    %136 = vector.shape_cast %135 : vector<8x128xf32> to vector<1x8x128xf32>
    %cst_17 = arith.constant dense<0.000000e+00> : vector<8x128xf32>
    %137 = vector.multi_reduction <add>, %136, %cst_17 [0] : vector<1x8x128xf32> to vector<8x128xf32>
    %c0_18 = arith.constant 0 : index
    %c0_19 = arith.constant 0 : index
    %138 = vector.load %arg5[%c0_18, %c0_19] : memref<8x128xf32, #tpu.memory_space<vmem>>, vector<8x128xf32>
    tpu.vector_store %arg5[%c0_18, %c0_19], %137 {strides = array<i32>} : memref<8x128xf32, #tpu.memory_space<vmem>>, vector<8x128xf32>,
    return
  }
  func.func @transform_0(%arg0: i32) -> (i32, i32) {
    %c0_i32 = arith.constant 0 : i32
    %c0_i32_0 = arith.constant 0 : i32
    return %arg0, %c0_i32 : i32, i32
  }
  func.func @transform_1(%arg0: i32) -> (i32, i32) {
    %c0_i32 = arith.constant 0 : i32
    %c0_i32_0 = arith.constant 0 : i32
    %c0_i32_1 = arith.constant 0 : i32
    return %c0_i32, %c0_i32_0 : i32, i32
  }
  func.func @transform_2(%arg0: i32) -> (i32, i32) {
    %c0_i32 = arith.constant 0 : i32
    %c0_i32_0 = arith.constant 0 : i32
    %c0_i32_1 = arith.constant 0 : i32
    return %c0_i32, %c0_i32_0 : i32, i32
  }
  func.func @transform_3(%arg0: i32) -> (i32, i32) {
    %c0_i32 = arith.constant 0 : i32
    %c0_i32_0 = arith.constant 0 : i32
    %c0_i32_1 = arith.constant 0 : i32
    return %c0_i32, %c0_i32_0 : i32, i32
  }
  func.func @transform_4(%arg0: i32) -> (i32, i32) {
    %c0_i32 = arith.constant 0 : i32
    %c0_i32_0 = arith.constant 0 : i32
    return %arg0, %c0_i32 : i32, i32
  }
}

</mosaic_0001>

<bundles_post_ra>
// kernel: image_compressor_forward.29
= control target key start
LH: loop header
LB: loop body
LE: loop exit
PB: predicated region body
PF: predicated region fallthrough
CT: control target
= control target key end

     0   :  { %s1203_s1 = inlined_call_operand.vmem [shape: bf16[256,128], index: 1, kind: input, shape index: {}]   ;;  %s1204_s0 = inlined_call_operand.vmem [shape: bf16[128,256], index: 0, kind: input, shape index: {}]   ;;  %s1205_s3 = inlined_call_operand.vmem [shape: f32[128,128], index: 3, kind: input, shape index: {}]   ;;  %s1206_s2 = inlined_call_operand.vmem [shape: f32[1,128], index: 2, kind: input, shape index: {}]   ;;  %s1207_s4 = inlined_call_operand.vmem [shape: f32[1,128], index: 4, kind: input, shape index: {}]   ;;  %s1208_s5 = inlined_call_operand.vmem [shape: f32[128,128], index: 5, kind: output, shape index: {}]  }
   0x1   :  { %v787_v0 = vld [vmem:[%s1203_s1 + $0x78] sm:$0xff]   ;;  %v789_v2 = vld [vmem:[%s1203_s1 + $0x70] sm:$0xff]   ;;  %v791_v4 = vld [vmem:[%s1203_s1 + $0x68] sm:$0xff]  }
   0x2   :  { %v788_v1 = vld [vmem:[%s1203_s1 + $0x38] sm:$0xff]   ;;  %635 = vmatprep.subr.bf16.mxu0 %v787_v0  ;;  %v790_v3 = vld [vmem:[%s1203_s1 + $0x30] sm:$0xff]   ;;  %v792_v5 = vld [vmem:[%s1203_s1 + $0x28] sm:$0xff]  }
   0x3   :  { %636 = vmatpush3.bf16.msra.mxu0 %v788_v1  ;;  %v793_v6 = vld [vmem:[%s1203_s1 + $0x60] sm:$0xff]   ;;  %v795_v8 = vld [vmem:[%s1203_s1 + $0x58] sm:$0xff]   ;;  %v797_v10 = vld [vmem:[%s1203_s1 + $0x50] sm:$0xff]  }
   0x4   :  { %637 = vmatprep.subr.bf16.mxu0 %v789_v2  ;;  %v794_v7 = vld [vmem:[%s1203_s1 + $0x20] sm:$0xff]   ;;  %v796_v9 = vld [vmem:[%s1203_s1 + $0x18] sm:$0xff]   ;;  %v798_v12 = vld [vmem:[%s1203_s1 + $0x10] sm:$0xff]  }
   0x5   :  { %v805_v11 = vld [vmem:[%s1204_s0 + $0x4] ss:$8 sps:$4 sm:$0xff]   ;;  %v380_v16 = vld [vmem:[%s1205_s3 + $0x78] sm:$0xff]  ;;  %v379_v18 = vld [vmem:[%s1205_s3 + $0x70] sm:$0xff] }
   0x6   :  { %284 = vmatprep.mubr.bf16.mxu0 %v805_v11  ;;  %v799_v13 = vld [vmem:[%s1203_s1 + $0x48] sm:$0xff]   ;;  %v801_v15 = vld [vmem:[%s1203_s1 + $0x40] sm:$0xff]   ;;  %731 = vmatprep.subr.mxu1 %v380_v16  ;;  %v806_v22 = vld [vmem:[%s1204_s0 + $0x14] ss:$8 sps:$4 sm:$0xff]  }
   0x7   :  { %638 = vmatpush3.bf16.msra.mxu0 %v790_v3  ;;  %v800_v14 = vld [vmem:[%s1203_s1 + $0x8] sm:$0xff]   ;;  %v802_v17 = vld [vmem:[%s1203_s1] sm:$0xff]   ;;  %732 = vmatpush3.msra.mxu1 %v380_v16  ;;  %v376_v23 = vld [vmem:[%s1205_s3 + $0x58] sm:$0xff] }
   0x8   :  { %639 = vmatprep.subr.bf16.mxu0 %v791_v4  ;;  %v378_v19 = vld [vmem:[%s1205_s3 + $0x68] sm:$0xff]  ;;  %733 = vmatprep.subr.mxu1 %v379_v18  ;;  %v377_v21 = vld [vmem:[%s1205_s3 + $0x60] sm:$0xff]  ;;  %v375_v24 = vld [vmem:[%s1205_s3 + $0x50] sm:$0xff] }
   0x9   :  { %v803_v20 = vld [vmem:[%s1204_s0] ss:$8 sps:$4 sm:$0xff]   ;;  %734 = vmatpush3.msra.mxu1 %v379_v18  ;;  %v808_v26 = vld [vmem:[%s1204_s0 + $0x10] ss:$8 sps:$4 sm:$0xff]   ;;  %v809_v28 = vld [vmem:[%s1204_s0 + $0x24] ss:$8 sps:$4 sm:$0xff]  }
   0xa   :  { %735 = vmatprep.subr.mxu1 %v378_v19  ;;  %v374_v25 = vld [vmem:[%s1205_s3 + $0x48] sm:$0xff]  ;;  %v373_v27 = vld [vmem:[%s1205_s3 + $0x40] sm:$0xff]  ;;  %v372_v29 = vld [vmem:[%s1205_s3 + $0x38] sm:$0xff] }
   0xb   :  { %640 = vmatpush3.bf16.msra.mxu0 %v792_v5  ;;  %736 = vmatpush3.msra.mxu1 %v378_v19  ;;  %v371_v30 = vld [vmem:[%s1205_s3 + $0x30] sm:$0xff]  ;;  %v811_v31 = vld [vmem:[%s1204_s0 + $0x20] ss:$8 sps:$4 sm:$0xff]   ;;  %v815_v34 = vld [vmem:[%s1204_s0 + $0x44] ss:$8 sps:$4 sm:$0xff]  }
   0xc   :  { %641 = vmatprep.subr.bf16.mxu0 %v793_v6  ;;  %737 = vmatprep.subr.mxu1 %v377_v21  ;;  %v812_v32 = vld [vmem:[%s1204_s0 + $0x34] ss:$8 sps:$4 sm:$0xff]   ;;  %v814_v33 = vld [vmem:[%s1204_s0 + $0x30] ss:$8 sps:$4 sm:$0xff]   ;;  %v817_v35 = vld [vmem:[%s1204_s0 + $0x40] ss:$8 sps:$4 sm:$0xff]  }
   0xd   :  { %738 = vmatpush3.msra.mxu1 %v377_v21  ;;  %v818_v36 = vld [vmem:[%s1204_s0 + $0x54] ss:$8 sps:$4 sm:$0xff]   ;;  %v820_v37 = vld [vmem:[%s1204_s0 + $0x50] ss:$8 sps:$4 sm:$0xff]   ;;  %v821_v38 = vld [vmem:[%s1204_s0 + $0x64] ss:$8 sps:$4 sm:$0xff]  }
   0xe   :  { %739 = vmatprep.subr.mxu1 %v376_v23  ;;  %v823_v39 = vld [vmem:[%s1204_s0 + $0x60] ss:$8 sps:$4 sm:$0xff]   ;;  %v824_v40 = vld [vmem:[%s1204_s0 + $0x74] ss:$8 sps:$4 sm:$0xff]   ;;  %v826_v41 = vld [vmem:[%s1204_s0 + $0x70] ss:$8 sps:$4 sm:$0xff]  }
   0xf   :  { %642 = vmatpush3.bf16.msra.mxu0 %v794_v7  ;;  %740 = vmatpush3.msra.mxu1 %v376_v23  ;;  %v370_v42 = vld [vmem:[%s1205_s3 + $0x28] sm:$0xff]  ;;  %v369_v43 = vld [vmem:[%s1205_s3 + $0x20] sm:$0xff]  ;;  %v368_v44 = vld [vmem:[%s1205_s3 + $0x18] sm:$0xff] }
  0x10   :  { %643 = vmatprep.subr.bf16.mxu0 %v795_v8  ;;  %741 = vmatprep.subr.mxu1 %v375_v24  ;;  %v367_v45 = vld [vmem:[%s1205_s3 + $0x10] sm:$0xff]  ;;  %v366_v46 = vld [vmem:[%s1205_s3 + $0x8] sm:$0xff]  ;;  %v365_v47 = vld [vmem:[%s1205_s3] sm:$0xff] }
  0x11   :  { %742 = vmatpush3.msra.mxu1 %v375_v24  ;;  %v1036_v50 = vld [vmem:[%s1206_s2] ss:$0 sm:$0xff] }
  0x12   :  { %743 = vmatprep.subr.mxu1 %v374_v25 }
  0x13   :  { %644 = vmatpush3.bf16.msra.mxu0 %v796_v9  ;;  %744 = vmatpush3.msra.mxu1 %v374_v25 }
  0x14   :  { %645 = vmatprep.subr.bf16.mxu0 %v797_v10  ;;  %745 = vmatprep.subr.mxu1 %v373_v27 }
  0x15   :  { %746 = vmatpush3.msra.mxu1 %v373_v27 }
  0x16   :  { %747 = vmatprep.subr.mxu1 %v372_v29 }
  0x17   :  { %646 = vmatpush3.bf16.msra.mxu0 %v798_v12  ;;  %748 = vmatpush3.msra.mxu1 %v372_v29 }
  0x18   :  { %647 = vmatprep.subr.bf16.mxu0 %v799_v13  ;;  %749 = vmatprep.subr.mxu1 %v371_v30 }
  0x19   :  { %750 = vmatpush3.msra.mxu1 %v371_v30 }
  0x1a   :  { %751 = vmatprep.subr.mxu1 %v370_v42 }
  0x1b   :  { %648 = vmatpush3.bf16.msra.mxu0 %v800_v14  ;;  %752 = vmatpush3.msra.mxu1 %v370_v42 }
  0x1c   :  { %649 = vmatprep.subr.bf16.mxu0 %v801_v15  ;;  %753 = vmatprep.subr.mxu1 %v369_v43 }
  0x1d   :  { %754 = vmatpush3.msra.mxu1 %v369_v43 }
  0x1e   :  { %755 = vmatprep.subr.mxu1 %v368_v44 }
  0x1f   :  { %650 = vmatpush3.bf16.msra.mxu0 %v802_v17  ;;  %756 = vmatpush3.msra.mxu1 %v368_v44 }
  0x20   :  { %757 = vmatprep.subr.mxu1 %v367_v45 }
  0x21   :  { %758 = vmatpush3.msra.mxu1 %v367_v45 }
  0x22   :  { %285 = vmatmul.mubr.bf16.vlgmr.msra.gmra.mxu0 %v803_v20  ;;  %759 = vmatprep.subr.mxu1 %v366_v46 }
  0x23   :  { %292 = vmatprep.mubr.bf16.mxu0 %v806_v22  ;;  %760 = vmatpush3.msra.mxu1 %v366_v46 }
  0x24   :  { %761 = vmatprep.subr.mxu1 %v365_v47 }
  0x25   :  { %762 = vmatpush3.msra.mxu1 %v365_v47 }
  0x2a   :  { %293 = vmatmul.mubr.bf16.gmra.mxu0 %v808_v26 }
  0x2b   :  { %300 = vmatprep.mubr.bf16.mxu0 %v809_v28 }
  0x32   :  { %301 = vmatmul.mubr.bf16.gmra.mxu0 %v811_v31 }
  0x33   :  { %308 = vmatprep.mubr.bf16.mxu0 %v812_v32 }
  0x3a   :  { %309 = vmatmul.mubr.bf16.gmra.mxu0 %v814_v33 }
  0x3b   :  { %316 = vmatprep.mubr.bf16.mxu0 %v815_v34 }
  0x42   :  { %317 = vmatmul.mubr.bf16.gmra.mxu0 %v817_v35 }
  0x43   :  { %324 = vmatprep.mubr.bf16.mxu0 %v818_v36 }
  0x4a   :  { %325 = vmatmul.mubr.bf16.gmra.mxu0 %v820_v37 }
  0x4b   :  { %332 = vmatprep.mubr.bf16.mxu0 %v821_v38 }
  0x52   :  { %333 = vmatmul.mubr.bf16.gmra.mxu0 %v823_v39 }
  0x53   :  { %340 = vmatprep.mubr.bf16.mxu0 %v824_v40 }
  0x5a   :  { %341 = vmatmul.mubr.bf16.gmra.mxu0 %v826_v41 }
  0xe2   :  { %v651_v48 = vpop.f32.mrf.mxu0 }
  0xe4   :  { %v652_v49 = vpop.f32.mrf.mxu0 }
  0xe5   :  { %v653_v51 = vadd.f32 %v652_v49, %v651_v48 }
  0xe6   :  { %v654_v52 = vpop.f32.mrf.mxu0 }
  0xe7   :  { %v1039_v53 = vadd.f32 %v653_v51, %v1036_v50 }
  0xe8   :  { %v655_v54 = vpop.f32.mrf.mxu0 }
  0xe9   :  { %v656_v55 = vadd.f32 %v655_v54, %v654_v52  ;;  %v349_v56 = vmul.f32 %v1039_v53, %v1039_v53 }
  0xea   :  { %v657_v57 = vpop.f32.mrf.mxu0 }
  0xeb   :  { %v1044_v58 = vadd.f32 %v656_v55, %v1036_v50  ;;  %763 = vmatprep.mubr.f32.mxu1 %v349_v56 }
  0xec   :  { %v658_v59 = vpop.f32.mrf.mxu0 }
  0xed   :  { %v659_v60 = vadd.f32 %v658_v59, %v657_v57  ;;  %v350_v61 = vmul.f32 %v1044_v58, %v1044_v58 }
  0xee   :  { %v660_v62 = vpop.f32.mrf.mxu0 }
  0xef   :  { %v1049_v63 = vadd.f32 %v659_v60, %v1036_v50  ;;  %764 = vmatmul.mubr.f32.vlgmr.msra.gmra.mxu1 %v350_v61 }
  0xf0   :  { %v661_v0 = vpop.f32.mrf.mxu0 }
  0xf1   :  { %v662_v1 = vadd.f32 %v661_v0, %v660_v62  ;;  %v351_v2 = vmul.f32 %v1049_v63, %v1049_v63 }
  0xf2   :  { %v663_v3 = vpop.f32.mrf.mxu0 }
  0xf3   :  { %v1054_v4 = vadd.f32 %v662_v1, %v1036_v50  ;;  %766 = vmatprep.mubr.f32.mxu1 %v351_v2 }
  0xf4   :  { %v664_v5 = vpop.f32.mrf.mxu0 }
  0xf5   :  { %v665_v6 = vadd.f32 %v664_v5, %v663_v3  ;;  %v352_v7 = vmul.f32 %v1054_v4, %v1054_v4 }
  0xf6   :  { %v666_v8 = vpop.f32.mrf.mxu0 }
  0xf7   :  { %v1059_v9 = vadd.f32 %v665_v6, %v1036_v50  ;;  %767 = vmatmul.mubr.f32.gmra.mxu1 %v352_v7  ;;  %v1121_v6 = vld [vmem:[%s1207_s4] ss:$0 sm:$0xff] }
  0xf8   :  { %v667_v10 = vpop.f32.mrf.mxu0 }
  0xf9   :  { %v668_v11 = vadd.f32 %v667_v10, %v666_v8  ;;  %v353_v12 = vmul.f32 %v1059_v9, %v1059_v9 }
  0xfa   :  { %v669_v13 = vpop.f32.mrf.mxu0 }
  0xfb   :  { %v1064_v14 = vadd.f32 %v668_v11, %v1036_v50  ;;  %769 = vmatprep.mubr.f32.mxu1 %v353_v12 }
  0xfc   :  { %v670_v15 = vpop.f32.mrf.mxu0 }
  0xfd   :  { %v671_v16 = vadd.f32 %v670_v15, %v669_v13  ;;  %v354_v17 = vmul.f32 %v1064_v14, %v1064_v14 }
  0xfe   :  { %v672_v18 = vpop.f32.mrf.mxu0 }
  0xff   :  { %v1069_v19 = vadd.f32 %v671_v16, %v1036_v50  ;;  %770 = vmatmul.mubr.f32.gmra.mxu1 %v354_v17 }
 0x100   :  { %v673_v20 = vpop.f32.mrf.mxu0 }
 0x101   :  { %v674_v21 = vadd.f32 %v673_v20, %v672_v18  ;;  %v355_v22 = vmul.f32 %v1069_v19, %v1069_v19 }
 0x102   :  { %v675_v23 = vpop.f32.mrf.mxu0 }
 0x103   :  { %v1074_v24 = vadd.f32 %v674_v21, %v1036_v50  ;;  %772 = vmatprep.mubr.f32.mxu1 %v355_v22 }
 0x104   :  { %v676_v25 = vpop.f32.mrf.mxu0 }
 0x105   :  { %v677_v26 = vadd.f32 %v676_v25, %v675_v23  ;;  %v356_v27 = vmul.f32 %v1074_v24, %v1074_v24 }
 0x106   :  { %v678_v28 = vpop.f32.mrf.mxu0 }
 0x107   :  { %v1079_v29 = vadd.f32 %v677_v26, %v1036_v50  ;;  %773 = vmatmul.mubr.f32.gmra.mxu1 %v356_v27 }
 0x108   :  { %v679_v30 = vpop.f32.mrf.mxu0 }
 0x109   :  { %v680_v31 = vadd.f32 %v679_v30, %v678_v28  ;;  %v357_v32 = vmul.f32 %v1079_v29, %v1079_v29 }
 0x10a   :  { %v681_v33 = vpop.f32.mrf.mxu0 }
 0x10b   :  { %v1084_v34 = vadd.f32 %v680_v31, %v1036_v50  ;;  %775 = vmatprep.mubr.f32.mxu1 %v357_v32 }
 0x10c   :  { %v682_v35 = vpop.f32.mrf.mxu0 }
 0x10d   :  { %v683_v36 = vadd.f32 %v682_v35, %v681_v33  ;;  %v358_v37 = vmul.f32 %v1084_v34, %v1084_v34 }
 0x10e   :  { %v684_v38 = vpop.f32.mrf.mxu0 }
 0x10f   :  { %v1089_v39 = vadd.f32 %v683_v36, %v1036_v50  ;;  %776 = vmatmul.mubr.f32.gmra.mxu1 %v358_v37 }
 0x110   :  { %v685_v40 = vpop.f32.mrf.mxu0 }
 0x111   :  { %v686_v41 = vadd.f32 %v685_v40, %v684_v38  ;;  %v359_v42 = vmul.f32 %v1089_v39, %v1089_v39 }
 0x112   :  { %v687_v43 = vpop.f32.mrf.mxu0 }
 0x113   :  { %v1094_v44 = vadd.f32 %v686_v41, %v1036_v50  ;;  %778 = vmatprep.mubr.f32.mxu1 %v359_v42 }
 0x114   :  { %v688_v45 = vpop.f32.mrf.mxu0 }
 0x115   :  { %v689_v46 = vadd.f32 %v688_v45, %v687_v43  ;;  %v360_v47 = vmul.f32 %v1094_v44, %v1094_v44 }
 0x116   :  { %v690_v48 = vpop.f32.mrf.mxu0 }
 0x117   :  { %v1099_v49 = vadd.f32 %v689_v46, %v1036_v50  ;;  %779 = vmatmul.mubr.f32.gmra.mxu1 %v360_v47 }
 0x118   :  { %v691_v51 = vpop.f32.mrf.mxu0 }
 0x119   :  { %v692_v52 = vadd.f32 %v691_v51, %v690_v48  ;;  %v361_v54 = vmul.f32 %v1099_v49, %v1099_v49 }
 0x11a   :  { %v693_v55 = vpop.f32.mrf.mxu0 }
 0x11b   :  { %v1104_v56 = vadd.f32 %v692_v52, %v1036_v50  ;;  %781 = vmatprep.mubr.f32.mxu1 %v361_v54 }
 0x11c   :  { %v694_v57 = vpop.f32.mrf.mxu0 }
 0x11d   :  { %v695_v59 = vadd.f32 %v694_v57, %v693_v55  ;;  %v362_v60 = vmul.f32 %v1104_v56, %v1104_v56 }
 0x11e   :  { %v696_v61 = vpop.f32.mrf.mxu0 }
 0x11f   :  { %v1109_v62 = vadd.f32 %v695_v59, %v1036_v50  ;;  %782 = vmatmul.mubr.f32.gmra.mxu1 %v362_v60 }
 0x120   :  { %v697_v0 = vpop.f32.mrf.mxu0 }
 0x121   :  { %v698_v1 = vadd.f32 %v697_v0, %v696_v61  ;;  %v363_v2 = vmul.f32 %v1109_v62, %v1109_v62 }
 0x123   :  { %v1114_v3 = vadd.f32 %v698_v1, %v1036_v50  ;;  %784 = vmatprep.mubr.f32.mxu1 %v363_v2 }
 0x125   :  { %v364_v5 = vmul.f32 %v1114_v3, %v1114_v3 }
 0x127   :  { %785 = vmatmul.mubr.f32.gmra.mxu1 %v364_v5 }
 0x1af   :  { %v765_v7 = vpop.f32.mrf.mxu1 }
 0x1b0   :  { %v460_v8 = vadd.f32 %v765_v7, %v1121_v6 }
 0x1b1   :  { %v454_v10 = vpop.f32.mrf.mxu1 }
 0x1b2   :  { %v534_v11 = vmax.f32 %v460_v8, 1e-09  ;;  %v455_v12 = vadd.f32 %v1121_v6, %v454_v10 }
 0x1b4   :  { %827 = vrsqrt.f32 %v534_v11  ;;  %v533_v50 = vmax.f32 %v455_v12, 1e-09 }
 0x1b6   :  { %829 = vrsqrt.f32 %v533_v50 }
 0x1b7   :  { %v768_v13 = vpop.f32.mrf.mxu1 }
 0x1b8   :  { %v470_v15 = vadd.f32 %v768_v13, %v1121_v6 }
 0x1b9   :  { %v464_v16 = vpop.f32.mrf.mxu1 }
 0x1ba   :  { %v536_v17 = vmax.f32 %v470_v15, 1e-09  ;;  %v465_v18 = vadd.f32 %v1121_v6, %v464_v16 }
 0x1bc   :  { %831 = vrsqrt.f32 %v536_v17  ;;  %v535_v20 = vmax.f32 %v465_v18, 1e-09 }
 0x1be   :  { %833 = vrsqrt.f32 %v535_v20 }
 0x1bf   :  { %v771_v21 = vpop.f32.mrf.mxu1 }
 0x1c0   :  { %v480_v22 = vadd.f32 %v771_v21, %v1121_v6 }
 0x1c1   :  { %v828_v23 = vpop.eup %827  ;;  %v474_v25 = vpop.f32.mrf.mxu1 }
 0x1c2   :  { %v566_v26 = vmul.f32 %v828_v23, %v1044_v58  ;;  %v538_v27 = vmax.f32 %v480_v22, 1e-09  ;;  %v475_v28 = vadd.f32 %v1121_v6, %v474_v25 }
 0x1c3   :  { %v830_v30 = vpop.eup %829 }
 0x1c4   :  { %582 = vst [vmem:[%s1208_s5 + $0x8] sm:$0xff] %v566_v26  ;;  %v565_v31 = vmul.f32 %v830_v30, %v1039_v53  ;;  %835 = vrsqrt.f32 %v538_v27  ;;  %v537_v32 = vmax.f32 %v475_v28, 1e-09 }
 0x1c6   :  { %581 = vst [vmem:[%s1208_s5] sm:$0xff] %v565_v31  ;;  %837 = vrsqrt.f32 %v537_v32 }
 0x1c7   :  { %v774_v33 = vpop.f32.mrf.mxu1 }
 0x1c8   :  { %v490_v58 = vadd.f32 %v774_v33, %v1121_v6 }
 0x1c9   :  { %v832_v35 = vpop.eup %831  ;;  %v484_v36 = vpop.f32.mrf.mxu1 }
 0x1ca   :  { %v568_v37 = vmul.f32 %v832_v35, %v1054_v4  ;;  %v540_v38 = vmax.f32 %v490_v58, 1e-09  ;;  %v485_v40 = vadd.f32 %v1121_v6, %v484_v36 }
 0x1cb   :  { %v834_v41 = vpop.eup %833 }
 0x1cc   :  { %584 = vst [vmem:[%s1208_s5 + $0x18] sm:$0xff] %v568_v37  ;;  %v567_v53 = vmul.f32 %v834_v41, %v1049_v63  ;;  %839 = vrsqrt.f32 %v540_v38  ;;  %v539_v42 = vmax.f32 %v485_v40, 1e-09 }
 0x1ce   :  { %583 = vst [vmem:[%s1208_s5 + $0x10] sm:$0xff] %v567_v53  ;;  %841 = vrsqrt.f32 %v539_v42 }
 0x1cf   :  { %v777_v43 = vpop.f32.mrf.mxu1 }
 0x1d0   :  { %v500_v4 = vadd.f32 %v777_v43, %v1121_v6 }
 0x1d1   :  { %v836_v45 = vpop.eup %835  ;;  %v494_v46 = vpop.f32.mrf.mxu1 }
 0x1d2   :  { %v570_v47 = vmul.f32 %v836_v45, %v1064_v14  ;;  %v542_v48 = vmax.f32 %v500_v4, 1e-09  ;;  %v495_v51 = vadd.f32 %v1121_v6, %v494_v46 }
 0x1d3   :  { %v838_v52 = vpop.eup %837 }
 0x1d4   :  { %586 = vst [vmem:[%s1208_s5 + $0x28] sm:$0xff] %v570_v47  ;;  %v569_v63 = vmul.f32 %v838_v52, %v1059_v9  ;;  %843 = vrsqrt.f32 %v542_v48  ;;  %v541_v54 = vmax.f32 %v495_v51, 1e-09 }
 0x1d6   :  { %585 = vst [vmem:[%s1208_s5 + $0x20] sm:$0xff] %v569_v63  ;;  %845 = vrsqrt.f32 %v541_v54 }
 0x1d7   :  { %v780_v55 = vpop.f32.mrf.mxu1 }
 0x1d8   :  { %v510_v14 = vadd.f32 %v780_v55, %v1121_v6 }
 0x1d9   :  { %v840_v57 = vpop.eup %839  ;;  %v504_v59 = vpop.f32.mrf.mxu1 }
 0x1da   :  { %v572_v60 = vmul.f32 %v840_v57, %v1074_v24  ;;  %v544_v61 = vmax.f32 %v510_v14, 1e-09  ;;  %v505_v0 = vadd.f32 %v1121_v6, %v504_v59 }
 0x1db   :  { %v842_v1 = vpop.eup %841 }
 0x1dc   :  { %588 = vst [vmem:[%s1208_s5 + $0x38] sm:$0xff] %v572_v60  ;;  %v571_v9 = vmul.f32 %v842_v1, %v1069_v19  ;;  %847 = vrsqrt.f32 %v544_v61  ;;  %v543_v2 = vmax.f32 %v505_v0, 1e-09 }
 0x1de   :  { %587 = vst [vmem:[%s1208_s5 + $0x30] sm:$0xff] %v571_v9  ;;  %849 = vrsqrt.f32 %v543_v2 }
 0x1df   :  { %v783_v5 = vpop.f32.mrf.mxu1 }
 0x1e0   :  { %v520_v24 = vadd.f32 %v783_v5, %v1121_v6 }
 0x1e1   :  { %v844_v7 = vpop.eup %843  ;;  %v514_v8 = vpop.f32.mrf.mxu1 }
 0x1e2   :  { %v574_v10 = vmul.f32 %v844_v7, %v1084_v34  ;;  %v546_v11 = vmax.f32 %v520_v24, 1e-09  ;;  %v515_v12 = vadd.f32 %v1121_v6, %v514_v8 }
 0x1e3   :  { %v846_v50 = vpop.eup %845 }
 0x1e4   :  { %590 = vst [vmem:[%s1208_s5 + $0x48] sm:$0xff] %v574_v10  ;;  %v573_v19 = vmul.f32 %v846_v50, %v1079_v29  ;;  %851 = vrsqrt.f32 %v546_v11  ;;  %v545_v13 = vmax.f32 %v515_v12, 1e-09 }
 0x1e6   :  { %589 = vst [vmem:[%s1208_s5 + $0x40] sm:$0xff] %v573_v19  ;;  %853 = vrsqrt.f32 %v545_v13 }
 0x1e7   :  { %v786_v15 = vpop.f32.mrf.mxu1 }
 0x1e8   :  { %v530_v34 = vadd.f32 %v786_v15, %v1121_v6 }
 0x1e9   :  { %v848_v16 = vpop.eup %847  ;;  %v524_v17 = vpop.f32.mrf.mxu1 }
 0x1ea   :  { %v576_v18 = vmul.f32 %v848_v16, %v1094_v44  ;;  %v548_v20 = vmax.f32 %v530_v34, 1e-09  ;;  %v525_v21 = vadd.f32 %v1121_v6, %v524_v17 }
 0x1eb   :  { %v850_v22 = vpop.eup %849 }
 0x1ec   :  { %592 = vst [vmem:[%s1208_s5 + $0x58] sm:$0xff] %v576_v18  ;;  %v575_v29 = vmul.f32 %v850_v22, %v1089_v39  ;;  %855 = vrsqrt.f32 %v548_v20  ;;  %v547_v23 = vmax.f32 %v525_v21, 1e-09 }
 0x1ee   :  { %591 = vst [vmem:[%s1208_s5 + $0x50] sm:$0xff] %v575_v29  ;;  %857 = vrsqrt.f32 %v547_v23 }
 0x1f1   :  { %v852_v25 = vpop.eup %851 }
 0x1f2   :  { %v578_v44 = vmul.f32 %v852_v25, %v1104_v56 }
 0x1f3   :  { %v854_v26 = vpop.eup %853 }
 0x1f4   :  { %594 = vst [vmem:[%s1208_s5 + $0x68] sm:$0xff] %v578_v44  ;;  %v577_v6 = vmul.f32 %v854_v26, %v1099_v49 }
 0x1f6   :  { %593 = vst [vmem:[%s1208_s5 + $0x60] sm:$0xff] %v577_v6 }
 0x1f9   :  { %v856_v39 = vpop.eup %855 }
 0x1fa   :  { %v580_v27 = vmul.f32 %v856_v39, %v1114_v3 }
 0x1fb   :  { %v858_v28 = vpop.eup %857 }
 0x1fc   :  { %596 = vst [vmem:[%s1208_s5 + $0x78] sm:$0xff] %v580_v27  ;;  %v579_v56 = vmul.f32 %v858_v28, %v1109_v62 }
 0x1fe   :  { %595 = vst [vmem:[%s1208_s5 + $0x70] sm:$0xff] %v579_v56 }

// kernel: image_compressor_forward.30
= control target key start
LH: loop header
LB: loop body
LE: loop exit
PB: predicated region body
PF: predicated region fallthrough
CT: control target
= control target key end

     0   :  { %s2839_s1 = inlined_call_operand.vmem [shape: bf16[896,128], index: 1, kind: input, shape index: {}]   ;;  %s2840_s0 = inlined_call_operand.vmem [shape: bf16[128,896], index: 0, kind: input, shape index: {}]   ;;  %s2841_s3 = inlined_call_operand.vmem [shape: f32[128,128], index: 3, kind: input, shape index: {}]   ;;  %s2842_s2 = inlined_call_operand.vmem [shape: f32[1,128], index: 2, kind: input, shape index: {}]   ;;  %s2843_s4 = inlined_call_operand.vmem [shape: f32[1,128], index: 4, kind: input, shape index: {}]   ;;  %s2844_s5 = inlined_call_operand.vmem [shape: f32[128,128], index: 5, kind: output, shape index: {}]  }
   0x1   :  { %v1910_v0 = vld [vmem:[%s2839_s1 + $0x78] sm:$0xff]   ;;  %v1914_v4 = vld [vmem:[%s2839_s1 + $0x70] sm:$0xff]   ;;  %v1918_v8 = vld [vmem:[%s2839_s1 + $0x68] sm:$0xff]  }
   0x2   :  { %v1911_v1 = vld [vmem:[%s2839_s1 + $0x38] sm:$0xff]   ;;  %1582 = vmatprep.subr.bf16.mxu0 %v1910_v0  ;;  %v1915_v5 = vld [vmem:[%s2839_s1 + $0x30] sm:$0xff]   ;;  %v1919_v9 = vld [vmem:[%s2839_s1 + $0x28] sm:$0xff]  }
   0x3   :  { %v1912_v2 = vld [vmem:[%s2839_s1 + $0xf8] sm:$0xff]   ;;  %1583 = vmatpush3.bf16.msra.mxu0 %v1911_v1  ;;  %v1916_v6 = vld [vmem:[%s2839_s1 + $0xf0] sm:$0xff]   ;;  %v1920_v10 = vld [vmem:[%s2839_s1 + $0xe8] sm:$0xff]  }
   0x4   :  { %v1913_v3 = vld [vmem:[%s2839_s1 + $0xb8] sm:$0xff]   ;;  %1646 = vmatprep.subr.bf16.mxu1 %v1912_v2  ;;  %1584 = vmatprep.subr.bf16.mxu0 %v1914_v4  ;;  %v1917_v7 = vld [vmem:[%s2839_s1 + $0xb0] sm:$0xff]   ;;  %v1921_v11 = vld [vmem:[%s2839_s1 + $0xa8] sm:$0xff]  }
   0x5   :  { %1647 = vmatpush3.bf16.msra.mxu1 %v1913_v3  ;;  %v1922_v12 = vld [vmem:[%s2839_s1 + $0x60] sm:$0xff]   ;;  %v1926_v16 = vld [vmem:[%s2839_s1 + $0x58] sm:$0xff]   ;;  %v1930_v20 = vld [vmem:[%s2839_s1 + $0x50] sm:$0xff]  }
   0x6   :  { %1648 = vmatprep.subr.bf16.mxu1 %v1916_v6  ;;  %v1923_v13 = vld [vmem:[%s2839_s1 + $0x20] sm:$0xff]   ;;  %v1927_v17 = vld [vmem:[%s2839_s1 + $0x18] sm:$0xff]   ;;  %v1931_v21 = vld [vmem:[%s2839_s1 + $0x10] sm:$0xff]  }
   0x7   :  { %1585 = vmatpush3.bf16.msra.mxu0 %v1915_v5  ;;  %v1924_v14 = vld [vmem:[%s2839_s1 + $0xe0] sm:$0xff]   ;;  %v1928_v18 = vld [vmem:[%s2839_s1 + $0xd8] sm:$0xff]   ;;  %v1932_v22 = vld [vmem:[%s2839_s1 + $0xd0] sm:$0xff]  }
   0x8   :  { %1586 = vmatprep.subr.bf16.mxu0 %v1918_v8  ;;  %v1925_v15 = vld [vmem:[%s2839_s1 + $0xa0] sm:$0xff]   ;;  %v1929_v19 = vld [vmem:[%s2839_s1 + $0x98] sm:$0xff]   ;;  %v1933_v23 = vld [vmem:[%s2839_s1 + $0x90] sm:$0xff]  }
   0x9   :  { %1649 = vmatpush3.bf16.msra.mxu1 %v1917_v7  ;;  %v1934_v24 = vld [vmem:[%s2839_s1 + $0x48] sm:$0xff]   ;;  %v1938_v28 = vld [vmem:[%s2839_s1 + $0x40] sm:$0xff]   ;;  %v1945_v34 = vld [vmem:[%s2839_s1 + $0x178] sm:$0xff]  }
   0xa   :  { %1650 = vmatprep.subr.bf16.mxu1 %v1920_v10  ;;  %v1935_v25 = vld [vmem:[%s2839_s1 + $0x8] sm:$0xff]   ;;  %v1939_v29 = vld [vmem:[%s2839_s1] sm:$0xff]   ;;  %v1949_v37 = vld [vmem:[%s2839_s1 + $0x138] sm:$0xff]  }
   0xb   :  { %1587 = vmatpush3.bf16.msra.mxu0 %v1919_v9  ;;  %v1936_v26 = vld [vmem:[%s2839_s1 + $0xc8] sm:$0xff]   ;;  %v1940_v30 = vld [vmem:[%s2839_s1 + $0xc0] sm:$0xff]   ;;  %v1950_v38 = vld [vmem:[%s2840_s0 + $0x3c] ss:$28 sps:$4 sm:$0xff]  }
   0xc   :  { %1588 = vmatprep.subr.bf16.mxu0 %v1922_v12  ;;  %v1937_v27 = vld [vmem:[%s2839_s1 + $0x88] sm:$0xff]   ;;  %v1941_v31 = vld [vmem:[%s2840_s0] ss:$28 sps:$4 sm:$0xff]   ;;  %v1952_v39 = vld [vmem:[%s2840_s0 + $0x38] ss:$28 sps:$4 sm:$0xff]  }
   0xd   :  { %1651 = vmatpush3.bf16.msra.mxu1 %v1921_v11  ;;  %v1943_v32 = vld [vmem:[%s2840_s0 + $0x4] ss:$28 sps:$4 sm:$0xff]   ;;  %v1948_v36 = vld [vmem:[%s2840_s0 + $0xc] ss:$28 sps:$4 sm:$0xff]   ;;  %v1953_v40 = vld [vmem:[%s2839_s1 + $0x170] sm:$0xff]  }
   0xe   :  { %1652 = vmatprep.subr.bf16.mxu1 %v1924_v14  ;;  %v1944_v33 = vld [vmem:[%s2839_s1 + $0x80] sm:$0xff]   ;;  %860 = vmatprep.mubr.bf16.mxu0 %v1943_v32  ;;  %v1956_v42 = vld [vmem:[%s2839_s1 + $0x130] sm:$0xff]   ;;  %v1961_v45 = vld [vmem:[%s2839_s1 + $0x168] sm:$0xff]  }
   0xf   :  { %1589 = vmatpush3.bf16.msra.mxu0 %v1923_v13  ;;  %v1946_v35 = vld [vmem:[%s2840_s0 + $0x8] ss:$28 sps:$4 sm:$0xff]   ;;  %957 = vmatprep.mubr.bf16.mxu1 %v1948_v36  ;;  %v1957_v43 = vld [vmem:[%s2840_s0 + $0x40] ss:$28 sps:$4 sm:$0xff]   ;;  %v1958_v44 = vld [vmem:[%s2840_s0 + $0x74] ss:$28 sps:$4 sm:$0xff]  }
  0x10   :  { %1590 = vmatprep.subr.bf16.mxu0 %v1926_v16  ;;  %v1954_v41 = vld [vmem:[%s2840_s0 + $0x44] ss:$28 sps:$4 sm:$0xff]   ;;  %v1962_v46 = vld [vmem:[%s2840_s0 + $0x7c] ss:$28 sps:$4 sm:$0xff]   ;;  %v1964_v47 = vld [vmem:[%s2839_s1 + $0x128] sm:$0xff]  }
  0x11   :  { %1653 = vmatpush3.bf16.msra.mxu1 %v1925_v15  ;;  %v1960_v48 = vld [vmem:[%s2840_s0 + $0x70] ss:$28 sps:$4 sm:$0xff]   ;;  %v1969_v50 = vld [vmem:[%s2839_s1 + $0x160] sm:$0xff]   ;;  %v1965_v51 = vld [vmem:[%s2840_s0 + $0x78] ss:$28 sps:$4 sm:$0xff]  }
  0x12   :  { %1654 = vmatprep.subr.bf16.mxu1 %v1928_v18  ;;  %v1966_v49 = vld [vmem:[%s2840_s0 + $0xac] ss:$28 sps:$4 sm:$0xff]   ;;  %v1972_v52 = vld [vmem:[%s2839_s1 + $0x120] sm:$0xff]   ;;  %v1970_v53 = vld [vmem:[%s2840_s0 + $0xb4] ss:$28 sps:$4 sm:$0xff]  }
  0x13   :  { %1591 = vmatpush3.bf16.msra.mxu0 %v1927_v17  ;;  %v1977_v54 = vld [vmem:[%s2839_s1 + $0x158] sm:$0xff]   ;;  %v1968_v56 = vld [vmem:[%s2840_s0 + $0xa8] ss:$28 sps:$4 sm:$0xff]   ;;  %v1973_v59 = vld [vmem:[%s2840_s0 + $0xb0] ss:$28 sps:$4 sm:$0xff]  }
  0x14   :  { %1592 = vmatprep.subr.bf16.mxu0 %v1930_v20  ;;  %v1978_v55 = vld [vmem:[%s2839_s1 + $0x1b8] sm:$0xff]   ;;  %v1974_v58 = vld [vmem:[%s2840_s0 + $0xe4] ss:$28 sps:$4 sm:$0xff]   ;;  %v1979_v60 = vld [vmem:[%s2840_s0 + $0xec] ss:$28 sps:$4 sm:$0xff]  }
  0x15   :  { %1655 = vmatpush3.bf16.msra.mxu1 %v1929_v19  ;;  %v1981_v57 = vld [vmem:[%s2839_s1 + $0x118] sm:$0xff]   ;;  %v1986_v61 = vld [vmem:[%s2839_s1 + $0x150] sm:$0xff]   ;;  %v1992_v0 = vld [vmem:[%s2839_s1 + $0x1a8] sm:$0xff]  }
  0x16   :  { %1656 = vmatprep.subr.bf16.mxu1 %v1932_v22  ;;  %v1987_v62 = vld [vmem:[%s2839_s1 + $0x1b0] sm:$0xff]   ;;  %v1976_v1 = vld [vmem:[%s2840_s0 + $0xe0] ss:$28 sps:$4 sm:$0xff]   ;;  %v1982_v2 = vld [vmem:[%s2840_s0 + $0xe8] ss:$28 sps:$4 sm:$0xff]  }
  0x17   :  { %1593 = vmatpush3.bf16.msra.mxu0 %v1931_v21  ;;  %v1990_v63 = vld [vmem:[%s2839_s1 + $0x110] sm:$0xff]   ;;  %v1983_v3 = vld [vmem:[%s2840_s0 + $0x11c] ss:$28 sps:$4 sm:$0xff]   ;;  %v1996_v4 = vld [vmem:[%s2839_s1 + $0x148] sm:$0xff]  }
  0x18   :  { %1594 = vmatprep.subr.bf16.mxu0 %v1934_v24  ;;  %v1997_v5 = vld [vmem:[%s2839_s1 + $0x1a0] sm:$0xff]   ;;  %v2000_v7 = vld [vmem:[%s2839_s1 + $0x108] sm:$0xff]   ;;  %v2002_v8 = vld [vmem:[%s2839_s1 + $0x198] sm:$0xff]  }
  0x19   :  { %1657 = vmatpush3.bf16.msra.mxu1 %v1933_v23  ;;  %v1988_v6 = vld [vmem:[%s2840_s0 + $0x124] ss:$28 sps:$4 sm:$0xff]   ;;  %v1985_v9 = vld [vmem:[%s2840_s0 + $0x118] ss:$28 sps:$4 sm:$0xff]   ;;  %v2012_v16 = vld [vmem:[%s2839_s1 + $0x188] sm:$0xff]  }
  0x1a   :  { %1658 = vmatprep.subr.bf16.mxu1 %v1936_v26  ;;  %v2006_v10 = vld [vmem:[%s2839_s1 + $0x140] sm:$0xff]   ;;  %v1993_v12 = vld [vmem:[%s2840_s0 + $0x154] ss:$28 sps:$4 sm:$0xff]   ;;  %v1998_v15 = vld [vmem:[%s2840_s0 + $0x15c] ss:$28 sps:$4 sm:$0xff]  }
  0x1b   :  { %1595 = vmatpush3.bf16.msra.mxu0 %v1935_v25  ;;  %v1991_v11 = vld [vmem:[%s2840_s0 + $0x120] ss:$28 sps:$4 sm:$0xff]   ;;  %v2007_v13 = vld [vmem:[%s2839_s1 + $0x190] sm:$0xff]   ;;  %v2003_v18 = vld [vmem:[%s2840_s0 + $0x18c] ss:$28 sps:$4 sm:$0xff]  }
  0x1c   :  { %1596 = vmatprep.subr.bf16.mxu0 %v1938_v28  ;;  %v2010_v14 = vld [vmem:[%s2839_s1 + $0x100] sm:$0xff]   ;;  %v1995_v17 = vld [vmem:[%s2840_s0 + $0x150] ss:$28 sps:$4 sm:$0xff]   ;;  %v2001_v20 = vld [vmem:[%s2840_s0 + $0x158] ss:$28 sps:$4 sm:$0xff]  }
  0x1d   :  { %1659 = vmatpush3.bf16.msra.mxu1 %v1937_v27  ;;  %v2016_v19 = vld [vmem:[%s2839_s1 + $0x180] sm:$0xff]   ;;  %v2008_v21 = vld [vmem:[%s2840_s0 + $0x194] ss:$28 sps:$4 sm:$0xff]   ;;  %v2019_v27 = vld [vmem:[%s2840_s0 + $0x4c] ss:$28 sps:$4 sm:$0xff]  }
  0x1e   :  { %1660 = vmatprep.subr.bf16.mxu1 %v1940_v30  ;;  %v2005_v22 = vld [vmem:[%s2840_s0 + $0x188] ss:$28 sps:$4 sm:$0xff]   ;;  %v2015_v23 = vld [vmem:[%s2840_s0 + $0x14] ss:$28 sps:$4 sm:$0xff]   ;;  %v2026_v32 = vld [vmem:[%s2840_s0 + $0xc0] ss:$28 sps:$4 sm:$0xff]  }
  0x1f   :  { %1597 = vmatpush3.bf16.msra.mxu0 %v1939_v29  ;;  %v2011_v24 = vld [vmem:[%s2840_s0 + $0x190] ss:$28 sps:$4 sm:$0xff]   ;;  %v2017_v25 = vld [vmem:[%s2840_s0 + $0x18] ss:$28 sps:$4 sm:$0xff]   ;;  %v2025_v29 = vld [vmem:[%s2840_s0 + $0x88] ss:$28 sps:$4 sm:$0xff]  }
  0x20   :  { %1710 = vmatprep.subr.bf16.mxu0 %v1945_v34  ;;  %v2013_v26 = vld [vmem:[%s2840_s0 + $0x10] ss:$28 sps:$4 sm:$0xff]   ;;  %v2021_v30 = vld [vmem:[%s2840_s0 + $0x48] ss:$28 sps:$4 sm:$0xff]   ;;  %v2024_v34 = vld [vmem:[%s2840_s0 + $0x80] ss:$28 sps:$4 sm:$0xff]  }
  0x21   :  { %1661 = vmatpush3.bf16.msra.mxu1 %v1944_v33  ;;  %v2018_v28 = vld [vmem:[%s2840_s0 + $0x50] ss:$28 sps:$4 sm:$0xff]   ;;  %v2033_v33 = vld [vmem:[%s2840_s0 + $0xf8] ss:$28 sps:$4 sm:$0xff]  }
  0x22   :  { %861 = vmatmul.mubr.bf16.vlgmr.msra.gmra.mxu0 %v1941_v31  ;;  %1822 = vmatprep.subr.bf16.mxu1 %v1978_v55  ;;  %v2022_v31 = vld [vmem:[%s2840_s0 + $0x84] ss:$28 sps:$4 sm:$0xff]   ;;  %v2034_v36 = vld [vmem:[%s2840_s0 + $0x130] ss:$28 sps:$4 sm:$0xff]  }
  0x23   :  { %1711 = vmatpush3.bf16.msra.mxu0 %v1949_v37  ;;  %868 = vmatprep.mubr.bf16.mxu0 %v1950_v38  ;;  %v2041_v37 = vld [vmem:[%s2840_s0 + $0x168] ss:$28 sps:$4 sm:$0xff]   ;;  %v2029_v38 = vld [vmem:[%s2840_s0 + $0xb8] ss:$28 sps:$4 sm:$0xff]  }
  0x24   :  { %958 = vmatmul.mubr.bf16.vlgmr.msra.gmra.mxu1 %v1946_v35  ;;  %1712 = vmatprep.subr.bf16.mxu0 %v1953_v40  ;;  %v2027_v35 = vld [vmem:[%s2840_s0 + $0xbc] ss:$28 sps:$4 sm:$0xff]  }
  0x25   :  { %965 = vmatprep.mubr.bf16.mxu1 %v1954_v41  ;;  %1823 = vmatpush3.bf16.msra.mxu1 %v1978_v55  ;;  %v2042_v40 = vld [vmem:[%s2840_s0 + $0x1a0] ss:$28 sps:$4 sm:$0xff]   ;;  %v2032_v41 = vld [vmem:[%s2840_s0 + $0xf0] ss:$28 sps:$4 sm:$0xff]  }
  0x26   :  { %1824 = vmatprep.subr.bf16.mxu1 %v1987_v62  ;;  %v1240_v55 = vld [vmem:[%s2841_s3 + $0x40] sm:$0xff] }
  0x27   :  { %1713 = vmatpush3.bf16.msra.mxu0 %v1956_v42  ;;  %v2035_v42 = vld [vmem:[%s2840_s0 + $0x12c] ss:$28 sps:$4 sm:$0xff]  }
  0x28   :  { %1714 = vmatprep.subr.bf16.mxu0 %v1961_v45  ;;  %v2040_v45 = vld [vmem:[%s2840_s0 + $0x160] ss:$28 sps:$4 sm:$0xff]  }
  0x29   :  { %1825 = vmatpush3.bf16.msra.mxu1 %v1987_v62  ;;  %v1233_v62 = vld [vmem:[%s2841_s3 + $0x8] sm:$0xff] }
  0x2a   :  { %869 = vmatmul.mubr.bf16.gmra.mxu0 %v1952_v39  ;;  %1826 = vmatprep.subr.bf16.mxu1 %v1992_v0  ;;  %v2030_v39 = vld [vmem:[%s2840_s0 + $0xf4] ss:$28 sps:$4 sm:$0xff]  }
  0x2b   :  { %876 = vmatprep.mubr.bf16.mxu0 %v1958_v44  ;;  %1715 = vmatpush3.bf16.msra.mxu0 %v1964_v47  ;;  %v2038_v44 = vld [vmem:[%s2840_s0 + $0x164] ss:$28 sps:$4 sm:$0xff]   ;;  %v1247_v47 = vld [vmem:[%s2841_s3 + $0x78] sm:$0xff] }
  0x2c   :  { %966 = vmatmul.mubr.bf16.gmra.mxu1 %v1957_v43  ;;  %1716 = vmatprep.subr.bf16.mxu0 %v1969_v50  ;;  %v2037_v43 = vld [vmem:[%s2840_s0 + $0x128] ss:$28 sps:$4 sm:$0xff]   ;;  %v2045_v50 = vld [vmem:[%s2840_s0 + $0x198] ss:$28 sps:$4 sm:$0xff]  }
  0x2d   :  { %973 = vmatprep.mubr.bf16.mxu1 %v1962_v46  ;;  %1827 = vmatpush3.bf16.msra.mxu1 %v1992_v0  ;;  %v2043_v46 = vld [vmem:[%s2840_s0 + $0x19c] ss:$28 sps:$4 sm:$0xff]  }
  0x2e   :  { %1828 = vmatprep.subr.bf16.mxu1 %v1997_v5 }
  0x2f   :  { %1717 = vmatpush3.bf16.msra.mxu0 %v1972_v52  ;;  %v1243_v52 = vld [vmem:[%s2841_s3 + $0x58] sm:$0xff] }
  0x30   :  { %1718 = vmatprep.subr.bf16.mxu0 %v1977_v54  ;;  %v1241_v54 = vld [vmem:[%s2841_s3 + $0x48] sm:$0xff] }
  0x31   :  { %1829 = vmatpush3.bf16.msra.mxu1 %v1997_v5 }
  0x32   :  { %877 = vmatmul.mubr.bf16.gmra.mxu0 %v1960_v48  ;;  %1830 = vmatprep.subr.bf16.mxu1 %v2002_v8  ;;  %v1246_v48 = vld [vmem:[%s2841_s3 + $0x70] sm:$0xff] }
  0x33   :  { %884 = vmatprep.mubr.bf16.mxu0 %v1966_v49  ;;  %1719 = vmatpush3.bf16.msra.mxu0 %v1981_v57  ;;  %v1245_v49 = vld [vmem:[%s2841_s3 + $0x68] sm:$0xff]  ;;  %v1238_v57 = vld [vmem:[%s2841_s3 + $0x30] sm:$0xff] }
  0x34   :  { %974 = vmatmul.mubr.bf16.gmra.mxu1 %v1965_v51  ;;  %1720 = vmatprep.subr.bf16.mxu0 %v1986_v61  ;;  %v1244_v51 = vld [vmem:[%s2841_s3 + $0x60] sm:$0xff]  ;;  %v1234_v61 = vld [vmem:[%s2841_s3 + $0x10] sm:$0xff] }
  0x35   :  { %981 = vmatprep.mubr.bf16.mxu1 %v1970_v53  ;;  %1831 = vmatpush3.bf16.msra.mxu1 %v2002_v8  ;;  %v1242_v53 = vld [vmem:[%s2841_s3 + $0x50] sm:$0xff] }
  0x36   :  { %1832 = vmatprep.subr.bf16.mxu1 %v2007_v13 }
  0x37   :  { %1721 = vmatpush3.bf16.msra.mxu0 %v1990_v63  ;;  %v1232_v63 = vld [vmem:[%s2841_s3] sm:$0xff] }
  0x38   :  { %1722 = vmatprep.subr.bf16.mxu0 %v1996_v4 }
  0x39   :  { %1833 = vmatpush3.bf16.msra.mxu1 %v2007_v13 }
  0x3a   :  { %885 = vmatmul.mubr.bf16.gmra.mxu0 %v1968_v56  ;;  %1834 = vmatprep.subr.bf16.mxu1 %v2012_v16  ;;  %v1239_v56 = vld [vmem:[%s2841_s3 + $0x38] sm:$0xff] }
  0x3b   :  { %892 = vmatprep.mubr.bf16.mxu0 %v1974_v58  ;;  %1723 = vmatpush3.bf16.msra.mxu0 %v2000_v7  ;;  %v1237_v58 = vld [vmem:[%s2841_s3 + $0x28] sm:$0xff] }
  0x3c   :  { %982 = vmatmul.mubr.bf16.gmra.mxu1 %v1973_v59  ;;  %1724 = vmatprep.subr.bf16.mxu0 %v2006_v10  ;;  %v1236_v59 = vld [vmem:[%s2841_s3 + $0x20] sm:$0xff] }
  0x3d   :  { %989 = vmatprep.mubr.bf16.mxu1 %v1979_v60  ;;  %1835 = vmatpush3.bf16.msra.mxu1 %v2012_v16  ;;  %v1235_v60 = vld [vmem:[%s2841_s3 + $0x18] sm:$0xff] }
  0x3e   :  { %1836 = vmatprep.subr.bf16.mxu1 %v2016_v19 }
  0x3f   :  { %1725 = vmatpush3.bf16.msra.mxu0 %v2010_v14 }
  0x41   :  { %1837 = vmatpush3.bf16.msra.mxu1 %v2016_v19 }
  0x42   :  { %893 = vmatmul.mubr.bf16.gmra.mxu0 %v1976_v1  ;;  %1854 = vmatprep.subr.mxu1 %v1247_v47 }
  0x43   :  { %900 = vmatprep.mubr.bf16.mxu0 %v1983_v3 }
  0x44   :  { %990 = vmatmul.mubr.bf16.gmra.mxu1 %v1982_v2 }
  0x45   :  { %997 = vmatprep.mubr.bf16.mxu1 %v1988_v6 }
  0x4a   :  { %901 = vmatmul.mubr.bf16.gmra.mxu0 %v1985_v9 }
  0x4b   :  { %908 = vmatprep.mubr.bf16.mxu0 %v1993_v12 }
  0x4c   :  { %998 = vmatmul.mubr.bf16.gmra.mxu1 %v1991_v11 }
  0x4d   :  { %1005 = vmatprep.mubr.bf16.mxu1 %v1998_v15 }
  0x52   :  { %909 = vmatmul.mubr.bf16.gmra.mxu0 %v1995_v17 }
  0x53   :  { %916 = vmatprep.mubr.bf16.mxu0 %v2003_v18 }
  0x54   :  { %1006 = vmatmul.mubr.bf16.gmra.mxu1 %v2001_v20 }
  0x55   :  { %1013 = vmatprep.mubr.bf16.mxu1 %v2008_v21 }
  0x5a   :  { %917 = vmatmul.mubr.bf16.gmra.mxu0 %v2005_v22 }
  0x5b   :  { %1054 = vmatprep.mubr.bf16.mxu0 %v2015_v23 }
  0x5c   :  { %1014 = vmatmul.mubr.bf16.gmra.mxu1 %v2011_v24 }
  0x5d   :  { %1838 = vmatprep.mubr.bf16.mxu1 %v2017_v25 }
  0x62   :  { %1055 = vmatmul.mubr.bf16.vlgmr.msra.gmra.mxu0 %v2013_v26 }
  0x63   :  { %1062 = vmatprep.mubr.bf16.mxu0 %v2019_v27 }
  0x64   :  { %1839 = vmatmul.mubr.bf16.vlgmr.msra.gmra.mxu1 %v2018_v28 }
  0x65   :  { %1842 = vmatprep.mubr.bf16.mxu1 %v2025_v29  ;;  %1855 = vmatpush3.msra.mxu1 %v1247_v47 }
  0x66   :  { %1856 = vmatprep.subr.mxu1 %v1246_v48 }
  0x67   :  { %1857 = vmatpush3.msra.mxu1 %v1246_v48 }
  0x68   :  { %1858 = vmatprep.subr.mxu1 %v1245_v49 }
  0x69   :  { %1859 = vmatpush3.msra.mxu1 %v1245_v49 }
  0x6a   :  { %1063 = vmatmul.mubr.bf16.gmra.mxu0 %v2021_v30  ;;  %1860 = vmatprep.subr.mxu1 %v1244_v51 }
  0x6b   :  { %1070 = vmatprep.mubr.bf16.mxu0 %v2022_v31  ;;  %1861 = vmatpush3.msra.mxu1 %v1244_v51 }
  0x6c   :  { %1843 = vmatmul.mubr.bf16.gmra.mxu1 %v2026_v32  ;;  %1862 = vmatprep.subr.mxu1 %v1243_v52 }
  0x6d   :  { %1846 = vmatprep.mubr.bf16.mxu1 %v2033_v33  ;;  %1863 = vmatpush3.msra.mxu1 %v1243_v52 }
  0x6e   :  { %1864 = vmatprep.subr.mxu1 %v1242_v53 }
  0x6f   :  { %1865 = vmatpush3.msra.mxu1 %v1242_v53 }
  0x70   :  { %1866 = vmatprep.subr.mxu1 %v1241_v54 }
  0x71   :  { %1867 = vmatpush3.msra.mxu1 %v1241_v54 }
  0x72   :  { %1071 = vmatmul.mubr.bf16.gmra.mxu0 %v2024_v34  ;;  %1868 = vmatprep.subr.mxu1 %v1240_v55 }
  0x73   :  { %1078 = vmatprep.mubr.bf16.mxu0 %v2027_v35  ;;  %1869 = vmatpush3.msra.mxu1 %v1240_v55 }
  0x74   :  { %1847 = vmatmul.mubr.bf16.gmra.mxu1 %v2034_v36  ;;  %1870 = vmatprep.subr.mxu1 %v1239_v56 }
  0x75   :  { %1850 = vmatprep.mubr.bf16.mxu1 %v2041_v37  ;;  %1871 = vmatpush3.msra.mxu1 %v1239_v56 }
  0x76   :  { %1872 = vmatprep.subr.mxu1 %v1238_v57 }
  0x77   :  { %1873 = vmatpush3.msra.mxu1 %v1238_v57 }
  0x78   :  { %1874 = vmatprep.subr.mxu1 %v1237_v58 }
  0x79   :  { %1875 = vmatpush3.msra.mxu1 %v1237_v58 }
  0x7a   :  { %1079 = vmatmul.mubr.bf16.gmra.mxu0 %v2029_v38  ;;  %1876 = vmatprep.subr.mxu1 %v1236_v59 }
  0x7b   :  { %1086 = vmatprep.mubr.bf16.mxu0 %v2030_v39  ;;  %1877 = vmatpush3.msra.mxu1 %v1236_v59 }
  0x7c   :  { %1851 = vmatmul.mubr.bf16.gmra.mxu1 %v2042_v40  ;;  %1878 = vmatprep.subr.mxu1 %v1235_v60 }
  0x7d   :  { %1879 = vmatpush3.msra.mxu1 %v1235_v60  ;;  %v2603_v60 = vld [vmem:[%s2842_s2] ss:$0 sm:$0xff] }
  0x7e   :  { %1880 = vmatprep.subr.mxu1 %v1234_v61 }
  0x7f   :  { %1881 = vmatpush3.msra.mxu1 %v1234_v61 }
  0x80   :  { %1882 = vmatprep.subr.mxu1 %v1233_v62 }
  0x81   :  { %1883 = vmatpush3.msra.mxu1 %v1233_v62 }
  0x82   :  { %1087 = vmatmul.mubr.bf16.gmra.mxu0 %v2032_v41  ;;  %1884 = vmatprep.subr.mxu1 %v1232_v63 }
  0x83   :  { %1094 = vmatprep.mubr.bf16.mxu0 %v2035_v42  ;;  %1885 = vmatpush3.msra.mxu1 %v1232_v63 }
  0x8a   :  { %1095 = vmatmul.mubr.bf16.gmra.mxu0 %v2037_v43 }
  0x8b   :  { %1102 = vmatprep.mubr.bf16.mxu0 %v2038_v44 }
  0x92   :  { %1103 = vmatmul.mubr.bf16.gmra.mxu0 %v2040_v45 }
  0x93   :  { %1110 = vmatprep.mubr.bf16.mxu0 %v2043_v46 }
  0x9a   :  { %1111 = vmatmul.mubr.bf16.gmra.mxu0 %v2045_v50 }
  0xe2   :  { %v1598_v0 = vpop.f32.mrf.mxu0 }
  0xe4   :  { %v1599_v1 = vpop.f32.mrf.mxu0  ;;  %v2492_v2 = vpop.f32.mrf.mxu1 }
  0xe5   :  { %v1600_v58 = vadd.f32 %v1599_v1, %v1598_v0 }
  0xe6   :  { %v2494_v3 = vpop.f32.mrf.mxu0  ;;  %v1663_v4 = vpop.f32.mrf.mxu1 }
  0xe8   :  { %v1602_v5 = vpop.f32.mrf.mxu0  ;;  %v2496_v6 = vpop.f32.mrf.mxu1 }
  0xea   :  { %v2498_v7 = vpop.f32.mrf.mxu0  ;;  %v2500_v8 = vpop.f32.mrf.mxu1 }
  0xec   :  { %v1605_v9 = vpop.f32.mrf.mxu0  ;;  %v2502_v10 = vpop.f32.mrf.mxu1 }
  0xee   :  { %v2504_v11 = vpop.f32.mrf.mxu0  ;;  %v2506_v12 = vpop.f32.mrf.mxu1 }
  0xf0   :  { %v2508_v13 = vpop.f32.mrf.mxu0  ;;  %v2510_v14 = vpop.f32.mrf.mxu1 }
  0xf2   :  { %v2512_v15 = vpop.f32.mrf.mxu0  ;;  %v2514_v16 = vpop.f32.mrf.mxu1 }
  0xf4   :  { %v2516_v17 = vpop.f32.mrf.mxu0  ;;  %v2518_v18 = vpop.f32.mrf.mxu1 }
  0xf6   :  { %v2520_v19 = vpop.f32.mrf.mxu0  ;;  %v2522_v20 = vpop.f32.mrf.mxu1 }
  0xf8   :  { %v2524_v21 = vpop.f32.mrf.mxu0  ;;  %v2526_v22 = vpop.f32.mrf.mxu1 }
  0xfa   :  { %v2528_v23 = vpop.f32.mrf.mxu0  ;;  %v2530_v24 = vpop.f32.mrf.mxu1 }
  0xfc   :  { %v2532_v25 = vpop.f32.mrf.mxu0  ;;  %v2534_v26 = vpop.f32.mrf.mxu1 }
  0xfe   :  { %v2536_v27 = vpop.f32.mrf.mxu0  ;;  %v2538_v28 = vpop.f32.mrf.mxu1 }
 0x100   :  { %v2540_v29 = vpop.f32.mrf.mxu0  ;;  %v2542_v30 = vpop.f32.mrf.mxu1 }
 0x102   :  { %v2544_v31 = vpop.f32.mrf.mxu0  ;;  %v2546_v32 = vpop.f32.mrf.mxu1 }
 0x104   :  { %v2548_v33 = vpop.f32.mrf.mxu0  ;;  %v2550_v34 = vpop.f32.mrf.mxu1 }
 0x106   :  { %v2552_v35 = vpop.f32.mrf.mxu0  ;;  %v2554_v36 = vpop.f32.mrf.mxu1 }
 0x108   :  { %v2556_v37 = vpop.f32.mrf.mxu0  ;;  %v2558_v38 = vpop.f32.mrf.mxu1 }
 0x10a   :  { %v2560_v39 = vpop.f32.mrf.mxu0  ;;  %v2562_v40 = vpop.f32.mrf.mxu1 }
 0x10c   :  { %v2564_v41 = vpop.f32.mrf.mxu0  ;;  %v2566_v42 = vpop.f32.mrf.mxu1 }
 0x10e   :  { %v2568_v43 = vpop.f32.mrf.mxu0  ;;  %v2570_v44 = vpop.f32.mrf.mxu1 }
 0x110   :  { %v2572_v45 = vpop.f32.mrf.mxu0  ;;  %v2574_v46 = vpop.f32.mrf.mxu1 }
 0x112   :  { %v2576_v47 = vpop.f32.mrf.mxu0  ;;  %v2578_v48 = vpop.f32.mrf.mxu1 }
 0x114   :  { %v2580_v49 = vpop.f32.mrf.mxu0  ;;  %v2582_v50 = vpop.f32.mrf.mxu1 }
 0x116   :  { %v2584_v51 = vpop.f32.mrf.mxu0  ;;  %v2586_v52 = vpop.f32.mrf.mxu1 }
 0x117   :  { %2845 = vst [vmem:[#allocation2_spill] sm:$0xff] %v2584_v51  ;;  %2846 = vst [vmem:[#allocation3_spill] sm:$0xff] %v2586_v52 }
 0x118   :  { %v2588_v53 = vpop.f32.mrf.mxu0  ;;  %v2590_v54 = vpop.f32.mrf.mxu1 }
 0x119   :  { %2847 = vst [vmem:[#allocation4_spill] sm:$0xff] %v2588_v53  ;;  %2848 = vst [vmem:[#allocation5_spill] sm:$0xff] %v2590_v54  ;;  %v863_v54 = vadd.f32 %v1600_v58, %v2603_v60 }
 0x11a   :  { %v2592_v55 = vpop.f32.mrf.mxu0  ;;  %v2594_v56 = vpop.f32.mrf.mxu1 }
 0x11b   :  { %2849 = vst [vmem:[#allocation6_spill] sm:$0xff] %v2592_v55  ;;  %2850 = vst [vmem:[#allocation7_spill] sm:$0xff] %v2594_v56  ;;  %v1664_v56 = vadd.f32 %v1663_v4, %v2492_v2  ;;  %v1606_v55 = vadd.f32 %v1605_v9, %v2498_v7  ;;  %v1609_v7 = vadd.f32 %v2508_v13, %v2504_v11 }
 0x11c   :  { %v2596_v57 = vpop.f32.mrf.mxu0  ;;  %v2598_v59 = vpop.f32.mrf.mxu1  ;;  %v1673_v11 = vadd.f32 %v2514_v16, %v2510_v14  ;;  %v1615_v14 = vadd.f32 %v2524_v21, %v2520_v19  ;;  %v1679_v19 = vadd.f32 %v2530_v24, %v2526_v22  ;;  %v1621_v22 = vadd.f32 %v2540_v29, %v2536_v27 }
 0x11d   :  { %2851 = vst [vmem:[#allocation8_spill] sm:$0xff] %v2596_v57  ;;  %2852 = vst [vmem:[#allocation9_spill] sm:$0xff] %v2598_v59  ;;  %v1603_v57 = vadd.f32 %v1602_v5, %v2494_v3  ;;  %v960_v51 = vadd.f32 %v1664_v56, %v863_v54  ;;  %v871_v3 = vadd.f32 %v1606_v55, %v2603_v60 }
 0x11e   :  { %v2605_v61 = vpop.f32.mrf.mxu0  ;;  %v2607_v62 = vpop.f32.mrf.mxu1  ;;  %v1670_v5 = vadd.f32 %v2506_v12, %v2502_v10  ;;  %v1612_v55 = vadd.f32 %v2516_v17, %v2512_v15  ;;  %v874_v12 = vadd.f32 %v1609_v7, %v2603_v60  ;;  %v1676_v15 = vadd.f32 %v2522_v20, %v2518_v18 }
 0x11f   :  { %2853 = vst [vmem:[#allocation10_spill] sm:$0xff] %v2605_v61  ;;  %2854 = vst [vmem:[#allocation11_spill] sm:$0xff] %v2607_v62  ;;  %v866_v61 = vadd.f32 %v1603_v57, %v2603_v60  ;;  %v882_v20 = vadd.f32 %v1615_v14, %v2603_v60  ;;  %v1685_v27 = vadd.f32 %v2546_v32, %v2542_v30 }
 0x120   :  { %v2609_v63 = vpop.f32.mrf.mxu0  ;;  %v2614_v0 = vpop.f32.mrf.mxu1  ;;  %v968_v57 = vadd.f32 %v1670_v5, %v871_v3  ;;  %v1627_v30 = vadd.f32 %v2556_v37, %v2552_v35  ;;  %v1691_v35 = vadd.f32 %v2562_v40, %v2558_v38  ;;  %v1633_v38 = vadd.f32 %v2572_v45, %v2568_v43 }
 0x121   :  { %2855 = vst [vmem:[#allocation12_spill] sm:$0xff] %v2609_v63  ;;  %2856 = vst [vmem:[#allocation13_spill] sm:$0xff] %v2614_v0  ;;  %v1667_v63 = vadd.f32 %v2500_v8, %v2496_v6  ;;  %v1697_v43 = vadd.f32 %v2578_v48, %v2574_v46 }
 0x122   :  { %v1726_v1 = vpop.f32.mrf.mxu0  ;;  %v2616_v59 = vpop.f32.mrf.mxu1 }
 0x123   :  { %2857 = vst [vmem:[#allocation14_spill] sm:$0xff] %v2616_v59  ;;  %v963_v0 = vadd.f32 %v1667_v63, %v866_v61 }
 0x124   :  { %v1727_v53 = vpop.f32.mrf.mxu0  ;;  %v1840_v58 = vpop.f32.mrf.mxu1 }
 0x125   :  { %v1728_v62 = vadd.f32 %v1727_v53, %v1726_v1  ;;  %v971_v1 = vadd.f32 %v1673_v11, %v874_v12 }
 0x126   :  { %v1729_v52 = vpop.f32.mrf.mxu0  ;;  %v1153_v4 = vpop.f32.mrf.mxu1 }
 0x127   :  { %v1057_v2 = vadd.f32 %v1728_v62, %v960_v51 }
 0x128   :  { %v1730_v59 = vpop.f32.mrf.mxu0  ;;  %v1841_v56 = vpop.f32.mrf.mxu1 }
 0x129   :  { %v1731_v9 = vadd.f32 %v1730_v59, %v1729_v52  ;;  %v2627_v54 = vadd.f32 %v1153_v4, %v1057_v2 }
 0x12a   :  { %v1732_v6 = vpop.f32.mrf.mxu0  ;;  %v1156_v53 = vpop.f32.mrf.mxu1 }
 0x12b   :  { %v1216_v8 = vmul.f32 %v2627_v54, %v2627_v54  ;;  %v1060_v51 = vadd.f32 %v1731_v9, %v963_v0  ;;  %v879_v0 = vadd.f32 %v1612_v55, %v2603_v60 }
 0x12c   :  { %v1733_v10 = vpop.f32.mrf.mxu0  ;;  %v1844_v61 = vpop.f32.mrf.mxu1 }
 0x12d   :  { %v1734_v13 = vadd.f32 %v1733_v10, %v1732_v6  ;;  %v2636_v52 = vadd.f32 %v1156_v53, %v1060_v51  ;;  %1886 = vmatprep.mubr.f32.mxu1 %v1216_v8  ;;  %v976_v9 = vadd.f32 %v1676_v15, %v879_v0  ;;  %v1618_v6 = vadd.f32 %v2532_v25, %v2528_v23 }
 0x12e   :  { %v1735_v59 = vpop.f32.mrf.mxu0  ;;  %v1169_v3 = vpop.f32.mrf.mxu1  ;;  %v1682_v23 = vadd.f32 %v2538_v28, %v2534_v26  ;;  %v979_v10 = vadd.f32 %v1679_v19, %v882_v20  ;;  %v890_v28 = vadd.f32 %v1621_v22, %v2603_v60  ;;  %v1630_v20 = vadd.f32 %v2564_v41, %v2560_v39 }
 0x12f   :  { %v1065_v62 = vadd.f32 %v1734_v13, %v968_v57  ;;  %v1217_v63 = vmul.f32 %v2636_v52, %v2636_v52  ;;  %v887_v55 = vadd.f32 %v1618_v6, %v2603_v60  ;;  %v1694_v39 = vadd.f32 %v2570_v44, %v2566_v42 }
 0x130   :  { %v1736_v17 = vpop.f32.mrf.mxu0  ;;  %v1845_v51 = vpop.f32.mrf.mxu1  ;;  %v906_v44 = vadd.f32 %v1633_v38, %v2603_v60  ;;  %v2868_v38 = vld [vmem:[#allocation12_spill] sm:$0xff] }
 0x131   :  { %v2645_v16 = vadd.f32 %v1840_v58, %v1065_v62  ;;  %v1737_v2 = vadd.f32 %v1736_v17, %v1735_v59  ;;  %1887 = vmatmul.mubr.f32.vlgmr.msra.gmra.mxu1 %v1217_v63  ;;  %v984_v62 = vadd.f32 %v1682_v23, %v887_v55  ;;  %v1624_v63 = vadd.f32 %v2548_v33, %v2544_v31 }
 0x132   :  { %v1738_v4 = vpop.f32.mrf.mxu0  ;;  %v1172_v11 = vpop.f32.mrf.mxu1  ;;  %v1688_v31 = vadd.f32 %v2554_v36, %v2550_v34  ;;  %v898_v36 = vadd.f32 %v1627_v30, %v2603_v60  ;;  %v2862_v30 = vld [vmem:[#allocation8_spill] sm:$0xff] }
 0x133   :  { %v1068_v5 = vadd.f32 %v1737_v2, %v971_v1  ;;  %v1218_v7 = vmul.f32 %v2645_v16, %v2645_v16  ;;  %v895_v2 = vadd.f32 %v1624_v63, %v2603_v60 }
 0x134   :  { %v1739_v18 = vpop.f32.mrf.mxu0  ;;  %v1848_v17 = vpop.f32.mrf.mxu1  ;;  %v995_v55 = vadd.f32 %v1691_v35, %v898_v36 }
 0x135   :  { %v2654_v21 = vadd.f32 %v1841_v56, %v1068_v5  ;;  %v1740_v58 = vadd.f32 %v1739_v18, %v1738_v4  ;;  %1889 = vmatprep.mubr.f32.mxu1 %v1218_v7  ;;  %v987_v4 = vadd.f32 %v1685_v27, %v890_v28  ;;  %v992_v18 = vadd.f32 %v1688_v31, %v895_v2 }
 0x136   :  { %v1741_v8 = vpop.f32.mrf.mxu0  ;;  %v1185_v7 = vpop.f32.mrf.mxu1  ;;  %v1003_v27 = vadd.f32 %v1697_v43, %v906_v44  ;;  %v2869_v43 = vld [vmem:[#allocation13_spill] sm:$0xff] }
 0x137   :  { %v1073_v53 = vadd.f32 %v1740_v58, %v976_v9  ;;  %v1219_v57 = vmul.f32 %v2654_v21, %v2654_v21 }
 0x138   :  { %v1742_v25 = vpop.f32.mrf.mxu0  ;;  %v1849_v58 = vpop.f32.mrf.mxu1 }
 0x139   :  { %v1743_v24 = vadd.f32 %v1742_v25, %v1741_v8  ;;  %v2663_v56 = vadd.f32 %v1169_v3, %v1073_v53  ;;  %1890 = vmatmul.mubr.f32.gmra.mxu1 %v1219_v57  ;;  %v903_v57 = vadd.f32 %v1630_v20, %v2603_v60 }
 0x13a   :  { %v1744_v12 = vpop.f32.mrf.mxu0  ;;  %v1188_v25 = vpop.f32.mrf.mxu1 }
 0x13b   :  { %v1220_v13 = vmul.f32 %v2663_v56, %v2663_v56  ;;  %v1076_v59 = vadd.f32 %v1743_v24, %v979_v10  ;;  %v1000_v24 = vadd.f32 %v1694_v39, %v903_v57 }
 0x13c   :  { %v1745_v26 = vpop.f32.mrf.mxu0  ;;  %v1852_v28 = vpop.f32.mrf.mxu1 }
 0x13d   :  { %v1746_v29 = vadd.f32 %v1745_v26, %v1744_v12  ;;  %v2672_v0 = vadd.f32 %v1172_v11, %v1076_v59  ;;  %1892 = vmatprep.mubr.f32.mxu1 %v1220_v13  ;;  %v1636_v12 = vadd.f32 %v2580_v49, %v2576_v47  ;;  %v2858_v26 = vld [vmem:[#allocation3_spill] sm:$0xff] }
 0x13e   :  { %v1747_v15 = vpop.f32.mrf.mxu0  ;;  %v1700_v47 = vadd.f32 %v2858_v26, %v2582_v50 }
 0x13f   :  { %v1081_v1 = vadd.f32 %v1746_v29, %v984_v62  ;;  %v1221_v14 = vmul.f32 %v2672_v0, %v2672_v0  ;;  %v911_v63 = vadd.f32 %v1636_v12, %v2603_v60  ;;  %v2859_v29 = vld [vmem:[#allocation2_spill] sm:$0xff] }
 0x140   :  { %v1748_v33 = vpop.f32.mrf.mxu0 }
 0x141   :  { %v2681_v32 = vadd.f32 %v1844_v61, %v1081_v1  ;;  %v1749_v3 = vadd.f32 %v1748_v33, %v1747_v15  ;;  %1893 = vmatmul.mubr.f32.gmra.mxu1 %v1221_v14  ;;  %v2860_v15 = vld [vmem:[#allocation4_spill] sm:$0xff]  ;;  %v1008_v33 = vadd.f32 %v1700_v47, %v911_v63 }
 0x142   :  { %v1750_v5 = vpop.f32.mrf.mxu0  ;;  %v1639_v46 = vadd.f32 %v2860_v15, %v2859_v29 }
 0x143   :  { %v1084_v9 = vadd.f32 %v1749_v3, %v987_v4  ;;  %v1222_v6 = vmul.f32 %v2681_v32, %v2681_v32  ;;  %v2861_v4 = vld [vmem:[#allocation6_spill] sm:$0xff] }
 0x144   :  { %v1751_v34 = vpop.f32.mrf.mxu0  ;;  %v1642_v3 = vadd.f32 %v2862_v30, %v2861_v4 }
 0x145   :  { %v2690_v37 = vadd.f32 %v1845_v51, %v1084_v9  ;;  %v1752_v61 = vadd.f32 %v1751_v34, %v1750_v5  ;;  %1895 = vmatprep.mubr.f32.mxu1 %v1222_v6  ;;  %v1201_v5 = vpop.f32.mrf.mxu1  ;;  %v2863_v9 = vld [vmem:[#allocation5_spill] sm:$0xff]  ;;  %v2864_v6 = vld [vmem:[#allocation7_spill] sm:$0xff] }
 0x146   :  { %v1753_v19 = vpop.f32.mrf.mxu0 }
 0x147   :  { %v1089_v8 = vadd.f32 %v1752_v61, %v992_v18  ;;  %v1223_v53 = vmul.f32 %v2690_v37, %v2690_v37  ;;  %v1703_v18 = vadd.f32 %v2864_v6, %v2863_v9  ;;  %v919_v61 = vadd.f32 %v1642_v3, %v2603_v60  ;;  %v1853_v39 = vpop.f32.mrf.mxu1 }
 0x148   :  { %v1754_v41 = vpop.f32.mrf.mxu0 }
 0x149   :  { %v1755_v40 = vadd.f32 %v1754_v41, %v1753_v19  ;;  %v2699_v51 = vadd.f32 %v1185_v7, %v1089_v8  ;;  %1896 = vmatmul.mubr.f32.gmra.mxu1 %v1223_v53  ;;  %v914_v7 = vadd.f32 %v1639_v46, %v2603_v60  ;;  %v2865_v19 = vld [vmem:[#allocation9_spill] sm:$0xff]  ;;  %v2866_v8 = vld [vmem:[#allocation11_spill] sm:$0xff]  ;;  %v1204_v12 = vpop.f32.mrf.mxu1 }
 0x14a   :  { %v1756_v23 = vpop.f32.mrf.mxu0  ;;  %v1706_v53 = vadd.f32 %v2866_v8, %v2865_v19 }
 0x14b   :  { %v1224_v10 = vmul.f32 %v2699_v51, %v2699_v51  ;;  %v1092_v22 = vadd.f32 %v1755_v40, %v995_v55  ;;  %v1011_v41 = vadd.f32 %v1703_v18, %v914_v7  ;;  %v2867_v55 = vld [vmem:[#allocation10_spill] sm:$0xff] }
 0x14c   :  { %v1757_v42 = vpop.f32.mrf.mxu0  ;;  %v1645_v40 = vadd.f32 %v2868_v38, %v2867_v55 }
 0x14d   :  { %v1758_v45 = vadd.f32 %v1757_v42, %v1756_v23  ;;  %v2708_v11 = vadd.f32 %v1188_v25, %v1092_v22  ;;  %1898 = vmatprep.mubr.f32.mxu1 %v1224_v10 }
 0x14e   :  { %v1759_v13 = vpop.f32.mrf.mxu0  ;;  %v922_v44 = vadd.f32 %v1645_v40, %v2603_v60 }
 0x14f   :  { %v1097_v59 = vadd.f32 %v1758_v45, %v1000_v24  ;;  %v1225_v62 = vmul.f32 %v2708_v11, %v2708_v11  ;;  %v1016_v24 = vadd.f32 %v1706_v53, %v919_v61  ;;  %v2870_v45 = vld [vmem:[#allocation14_spill] sm:$0xff] }
 0x150   :  { %v1760_v49 = vpop.f32.mrf.mxu0 }
 0x151   :  { %v2717_v48 = vadd.f32 %v1848_v17, %v1097_v59  ;;  %v1761_v1 = vadd.f32 %v1760_v49, %v1759_v13  ;;  %1899 = vmatmul.mubr.f32.gmra.mxu1 %v1225_v62  ;;  %v1709_v13 = vadd.f32 %v2870_v45, %v2869_v43 }
 0x152   :  { %v1762_v14 = vpop.f32.mrf.mxu0 }
 0x153   :  { %v1100_v2 = vadd.f32 %v1761_v1, %v1003_v27  ;;  %v1226_v31 = vmul.f32 %v2717_v48, %v2717_v48  ;;  %v1019_v27 = vadd.f32 %v1709_v13, %v922_v44 }
 0x154   :  { %v1763_v50 = vpop.f32.mrf.mxu0 }
 0x155   :  { %v2726_v17 = vadd.f32 %v1849_v58, %v1100_v2  ;;  %v1764_v20 = vadd.f32 %v1763_v50, %v1762_v14  ;;  %1901 = vmatprep.mubr.f32.mxu1 %v1226_v31  ;;  %v2757_v2 = vld [vmem:[%s2843_s4] ss:$0 sm:$0xff] }
 0x156   :  { %v1765_v34 = vpop.f32.mrf.mxu0 }
 0x157   :  { %v1105_v36 = vadd.f32 %v1764_v20, %v1008_v33  ;;  %v1227_v35 = vmul.f32 %v2726_v17, %v2726_v17 }
 0x158   :  { %v1766_v57 = vpop.f32.mrf.mxu0 }
 0x159   :  { %v2735_v58 = vadd.f32 %v1201_v5, %v1105_v36  ;;  %v1767_v23 = vadd.f32 %v1766_v57, %v1765_v34  ;;  %1902 = vmatmul.mubr.f32.gmra.mxu1 %v1227_v35 }
 0x15a   :  { %v1768_v25 = vpop.f32.mrf.mxu0 }
 0x15b   :  { %v1228_v10 = vmul.f32 %v2735_v58, %v2735_v58  ;;  %v1108_v22 = vadd.f32 %v1767_v23, %v1011_v41 }
 0x15c   :  { %v1769_v42 = vpop.f32.mrf.mxu0 }
 0x15d   :  { %v2742_v59 = vadd.f32 %v1204_v12, %v1108_v22  ;;  %v1770_v62 = vadd.f32 %v1769_v42, %v1768_v25  ;;  %1904 = vmatprep.mubr.f32.mxu1 %v1228_v10 }
 0x15e   :  { %v1771_v63 = vpop.f32.mrf.mxu0 }
 0x15f   :  { %v1229_v26 = vmul.f32 %v2742_v59, %v2742_v59  ;;  %v1113_v47 = vadd.f32 %v1770_v62, %v1016_v24 }
 0x160   :  { %v1772_v49 = vpop.f32.mrf.mxu0 }
 0x161   :  { %v2746_v29 = vadd.f32 %v1852_v28, %v1113_v47  ;;  %v1773_v15 = vadd.f32 %v1772_v49, %v1771_v63  ;;  %1905 = vmatmul.mubr.f32.gmra.mxu1 %v1229_v26 }
 0x163   :  { %v1116_v46 = vadd.f32 %v1773_v15, %v1019_v27  ;;  %v1230_v60 = vmul.f32 %v2746_v29, %v2746_v29 }
 0x165   :  { %v2750_v1 = vadd.f32 %v1853_v39, %v1116_v46  ;;  %1907 = vmatprep.mubr.f32.mxu1 %v1230_v60 }
 0x167   :  { %v1231_v14 = vmul.f32 %v2750_v1, %v2750_v1 }
 0x169   :  { %1908 = vmatmul.mubr.f32.gmra.mxu1 %v1231_v14 }
 0x1f1   :  { %v1888_v28 = vpop.f32.mrf.mxu1 }
 0x1f2   :  { %v1327_v31 = vadd.f32 %v1888_v28, %v2757_v2 }
 0x1f3   :  { %v1321_v33 = vpop.f32.mrf.mxu1 }
 0x1f4   :  { %v1401_v4 = vmax.f32 %v1327_v31, 1e-09  ;;  %v1322_v30 = vadd.f32 %v2757_v2, %v1321_v33 }
 0x1f6   :  { %2046 = vrsqrt.f32 %v1401_v4  ;;  %v1400_v3 = vmax.f32 %v1322_v30, 1e-09 }
 0x1f8   :  { %2048 = vrsqrt.f32 %v1400_v3 }
 0x1f9   :  { %v1891_v50 = vpop.f32.mrf.mxu1 }
 0x1fa   :  { %v1337_v5 = vadd.f32 %v1891_v50, %v2757_v2 }
 0x1fb   :  { %v1331_v7 = vpop.f32.mrf.mxu1 }
 0x1fc   :  { %v1403_v9 = vmax.f32 %v1337_v5, 1e-09  ;;  %v1332_v6 = vadd.f32 %v2757_v2, %v1331_v7 }
 0x1fe   :  { %2050 = vrsqrt.f32 %v1403_v9  ;;  %v1402_v18 = vmax.f32 %v1332_v6, 1e-09 }
 0x200   :  { %2052 = vrsqrt.f32 %v1402_v18 }
 0x201   :  { %v1894_v20 = vpop.f32.mrf.mxu1 }
 0x202   :  { %v1347_v34 = vadd.f32 %v1894_v20, %v2757_v2 }
 0x203   :  { %v2047_v36 = vpop.eup %2046  ;;  %v1341_v35 = vpop.f32.mrf.mxu1 }
 0x204   :  { %v1433_v61 = vmul.f32 %v2047_v36, %v2636_v52  ;;  %v1405_v19 = vmax.f32 %v1347_v34, 1e-09  ;;  %v1342_v8 = vadd.f32 %v2757_v2, %v1341_v35 }
 0x205   :  { %v2049_v53 = vpop.eup %2048 }
 0x206   :  { %1449 = vst [vmem:[%s2844_s5 + $0x8] sm:$0xff] %v1433_v61  ;;  %v1432_v57 = vmul.f32 %v2049_v53, %v2627_v54  ;;  %2054 = vrsqrt.f32 %v1405_v19  ;;  %v1404_v39 = vmax.f32 %v1342_v8, 1e-09 }
 0x208   :  { %1448 = vst [vmem:[%s2844_s5] sm:$0xff] %v1432_v57  ;;  %2056 = vrsqrt.f32 %v1404_v39 }
 0x209   :  { %v1897_v41 = vpop.f32.mrf.mxu1 }
 0x20a   :  { %v1357_v52 = vadd.f32 %v1897_v41, %v2757_v2 }
 0x20b   :  { %v2051_v55 = vpop.eup %2050  ;;  %v1351_v38 = vpop.f32.mrf.mxu1 }
 0x20c   :  { %v1435_v40 = vmul.f32 %v2051_v55, %v2654_v21  ;;  %v1407_v23 = vmax.f32 %v1357_v52, 1e-09  ;;  %v1352_v25 = vadd.f32 %v2757_v2, %v1351_v38 }
 0x20d   :  { %v2053_v10 = vpop.eup %2052 }
 0x20e   :  { %1451 = vst [vmem:[%s2844_s5 + $0x18] sm:$0xff] %v1435_v40  ;;  %v1434_v54 = vmul.f32 %v2053_v10, %v2645_v16  ;;  %2058 = vrsqrt.f32 %v1407_v23  ;;  %v1406_v22 = vmax.f32 %v1352_v25, 1e-09 }
 0x210   :  { %1450 = vst [vmem:[%s2844_s5 + $0x10] sm:$0xff] %v1434_v54  ;;  %2060 = vrsqrt.f32 %v1406_v22 }
 0x211   :  { %v1900_v24 = vpop.f32.mrf.mxu1 }
 0x212   :  { %v1367_v21 = vadd.f32 %v1900_v24, %v2757_v2 }
 0x213   :  { %v2055_v12 = vpop.eup %2054  ;;  %v1361_v42 = vpop.f32.mrf.mxu1 }
 0x214   :  { %v1437_v44 = vmul.f32 %v2055_v12, %v2672_v0  ;;  %v1409_v43 = vmax.f32 %v1367_v21, 1e-09  ;;  %v1362_v45 = vadd.f32 %v2757_v2, %v1361_v42 }
 0x215   :  { %v2057_v13 = vpop.eup %2056 }
 0x216   :  { %1453 = vst [vmem:[%s2844_s5 + $0x28] sm:$0xff] %v1437_v44  ;;  %v1436_v16 = vmul.f32 %v2057_v13, %v2663_v56  ;;  %2062 = vrsqrt.f32 %v1409_v43  ;;  %v1408_v62 = vmax.f32 %v1362_v45, 1e-09 }
 0x218   :  { %1452 = vst [vmem:[%s2844_s5 + $0x20] sm:$0xff] %v1436_v16  ;;  %2064 = vrsqrt.f32 %v1408_v62 }
 0x219   :  { %v1903_v63 = vpop.f32.mrf.mxu1 }
 0x21a   :  { %v1377_v0 = vadd.f32 %v1903_v63, %v2757_v2 }
 0x21b   :  { %v2059_v26 = vpop.eup %2058  ;;  %v1371_v47 = vpop.f32.mrf.mxu1 }
 0x21c   :  { %v1439_v49 = vmul.f32 %v2059_v26, %v2690_v37  ;;  %v1411_v27 = vmax.f32 %v1377_v0, 1e-09  ;;  %v1372_v15 = vadd.f32 %v2757_v2, %v1371_v47 }
 0x21d   :  { %v2061_v46 = vpop.eup %2060 }
 0x21e   :  { %1455 = vst [vmem:[%s2844_s5 + $0x38] sm:$0xff] %v1439_v49  ;;  %v1438_v56 = vmul.f32 %v2061_v46, %v2681_v32  ;;  %2066 = vrsqrt.f32 %v1411_v27  ;;  %v1410_v60 = vmax.f32 %v1372_v15, 1e-09 }
 0x220   :  { %1454 = vst [vmem:[%s2844_s5 + $0x30] sm:$0xff] %v1438_v56  ;;  %2068 = vrsqrt.f32 %v1410_v60 }
 0x221   :  { %v1906_v14 = vpop.f32.mrf.mxu1 }
 0x222   :  { %v1387_v37 = vadd.f32 %v1906_v14, %v2757_v2 }
 0x223   :  { %v2063_v28 = vpop.eup %2062  ;;  %v1381_v31 = vpop.f32.mrf.mxu1 }
 0x224   :  { %v1441_v33 = vmul.f32 %v2063_v28, %v2708_v11  ;;  %v1413_v4 = vmax.f32 %v1387_v37, 1e-09  ;;  %v1382_v30 = vadd.f32 %v2757_v2, %v1381_v31 }
 0x225   :  { %v2065_v3 = vpop.eup %2064 }
 0x226   :  { %1457 = vst [vmem:[%s2844_s5 + $0x48] sm:$0xff] %v1441_v33  ;;  %v1440_v32 = vmul.f32 %v2065_v3, %v2699_v51  ;;  %2070 = vrsqrt.f32 %v1413_v4  ;;  %v1412_v50 = vmax.f32 %v1382_v30, 1e-09 }
 0x228   :  { %1456 = vst [vmem:[%s2844_s5 + $0x40] sm:$0xff] %v1440_v32  ;;  %2072 = vrsqrt.f32 %v1412_v50 }
 0x229   :  { %v1909_v5 = vpop.f32.mrf.mxu1 }
 0x22a   :  { %v1397_v11 = vadd.f32 %v1909_v5, %v2757_v2 }
 0x22b   :  { %v2067_v7 = vpop.eup %2066  ;;  %v1391_v9 = vpop.f32.mrf.mxu1 }
 0x22c   :  { %v1443_v6 = vmul.f32 %v2067_v7, %v2726_v17  ;;  %v1415_v18 = vmax.f32 %v1397_v11, 1e-09  ;;  %v1392_v20 = vadd.f32 %v2757_v2, %v1391_v9 }
 0x22d   :  { %v2069_v34 = vpop.eup %2068 }
 0x22e   :  { %1459 = vst [vmem:[%s2844_s5 + $0x58] sm:$0xff] %v1443_v6  ;;  %v1442_v51 = vmul.f32 %v2069_v34, %v2717_v48  ;;  %2074 = vrsqrt.f32 %v1415_v18  ;;  %v1414_v36 = vmax.f32 %v1392_v20, 1e-09 }
 0x230   :  { %1458 = vst [vmem:[%s2844_s5 + $0x50] sm:$0xff] %v1442_v51  ;;  %2076 = vrsqrt.f32 %v1414_v36 }
 0x233   :  { %v2071_v35 = vpop.eup %2070 }
 0x234   :  { %v1445_v17 = vmul.f32 %v2071_v35, %v2742_v59 }
 0x235   :  { %v2073_v61 = vpop.eup %2072 }
 0x236   :  { %1461 = vst [vmem:[%s2844_s5 + $0x68] sm:$0xff] %v1445_v17  ;;  %v1444_v2 = vmul.f32 %v2073_v61, %v2735_v58 }
 0x238   :  { %1460 = vst [vmem:[%s2844_s5 + $0x60] sm:$0xff] %v1444_v2 }
 0x23b   :  { %v2075_v48 = vpop.eup %2074 }
 0x23c   :  { %v1447_v19 = vmul.f32 %v2075_v48, %v2750_v1 }
 0x23d   :  { %v2077_v8 = vpop.eup %2076 }
 0x23e   :  { %1463 = vst [vmem:[%s2844_s5 + $0x78] sm:$0xff] %v1447_v19  ;;  %v1446_v59 = vmul.f32 %v2077_v8, %v2746_v29 }
 0x240   :  { %1462 = vst [vmem:[%s2844_s5 + $0x70] sm:$0xff] %v1446_v59 }

// kernel: image_compressor_forward.31
= control target key start
LH: loop header
LB: loop body
LE: loop exit
PB: predicated region body
PF: predicated region fallthrough
CT: control target
= control target key end

     0   :  { %s2321_s1 = inlined_call_operand.vmem [shape: bf16[896,128], index: 1, kind: input, shape index: {}]   ;;  %s2322_s0 = inlined_call_operand.vmem [shape: bf16[128,896], index: 0, kind: input, shape index: {}]   ;;  %s2323_s2 = inlined_call_operand.vmem [shape: f32[1,128], index: 2, kind: input, shape index: {}]   ;;  %s2324_s3 = inlined_call_operand.vmem [shape: f32[128,128], index: 3, kind: output, shape index: {}]  }
   0x1   :  { %v1583_v0 = vld [vmem:[%s2321_s1 + $0x78] sm:$0xff]   ;;  %v1587_v4 = vld [vmem:[%s2321_s1 + $0x70] sm:$0xff]   ;;  %v1591_v8 = vld [vmem:[%s2321_s1 + $0x68] sm:$0xff]  }
   0x2   :  { %v1584_v1 = vld [vmem:[%s2321_s1 + $0x38] sm:$0xff]   ;;  %1343 = vmatprep.subr.bf16.mxu0 %v1583_v0  ;;  %v1588_v5 = vld [vmem:[%s2321_s1 + $0x30] sm:$0xff]   ;;  %v1592_v9 = vld [vmem:[%s2321_s1 + $0x28] sm:$0xff]  }
   0x3   :  { %v1585_v2 = vld [vmem:[%s2321_s1 + $0xf8] sm:$0xff]   ;;  %1344 = vmatpush3.bf16.msra.mxu0 %v1584_v1  ;;  %v1589_v6 = vld [vmem:[%s2321_s1 + $0xf0] sm:$0xff]   ;;  %v1593_v10 = vld [vmem:[%s2321_s1 + $0xe8] sm:$0xff]  }
   0x4   :  { %v1586_v3 = vld [vmem:[%s2321_s1 + $0xb8] sm:$0xff]   ;;  %1407 = vmatprep.subr.bf16.mxu1 %v1585_v2  ;;  %1345 = vmatprep.subr.bf16.mxu0 %v1587_v4  ;;  %v1590_v7 = vld [vmem:[%s2321_s1 + $0xb0] sm:$0xff]   ;;  %v1594_v11 = vld [vmem:[%s2321_s1 + $0xa8] sm:$0xff]  }
   0x5   :  { %1408 = vmatpush3.bf16.msra.mxu1 %v1586_v3  ;;  %v1595_v12 = vld [vmem:[%s2321_s1 + $0x60] sm:$0xff]   ;;  %v1599_v16 = vld [vmem:[%s2321_s1 + $0x58] sm:$0xff]   ;;  %v1603_v20 = vld [vmem:[%s2321_s1 + $0x50] sm:$0xff]  }
   0x6   :  { %1409 = vmatprep.subr.bf16.mxu1 %v1589_v6  ;;  %v1596_v13 = vld [vmem:[%s2321_s1 + $0x20] sm:$0xff]   ;;  %v1600_v17 = vld [vmem:[%s2321_s1 + $0x18] sm:$0xff]   ;;  %v1604_v21 = vld [vmem:[%s2321_s1 + $0x10] sm:$0xff]  }
   0x7   :  { %1346 = vmatpush3.bf16.msra.mxu0 %v1588_v5  ;;  %v1597_v14 = vld [vmem:[%s2321_s1 + $0xe0] sm:$0xff]   ;;  %v1601_v18 = vld [vmem:[%s2321_s1 + $0xd8] sm:$0xff]   ;;  %v1605_v22 = vld [vmem:[%s2321_s1 + $0xd0] sm:$0xff]  }
   0x8   :  { %1347 = vmatprep.subr.bf16.mxu0 %v1591_v8  ;;  %v1598_v15 = vld [vmem:[%s2321_s1 + $0xa0] sm:$0xff]   ;;  %v1602_v19 = vld [vmem:[%s2321_s1 + $0x98] sm:$0xff]   ;;  %v1606_v23 = vld [vmem:[%s2321_s1 + $0x90] sm:$0xff]  }
   0x9   :  { %1410 = vmatpush3.bf16.msra.mxu1 %v1590_v7  ;;  %v1607_v24 = vld [vmem:[%s2321_s1 + $0x48] sm:$0xff]   ;;  %v1611_v28 = vld [vmem:[%s2321_s1 + $0x40] sm:$0xff]   ;;  %v1618_v34 = vld [vmem:[%s2321_s1 + $0x178] sm:$0xff]  }
   0xa   :  { %1411 = vmatprep.subr.bf16.mxu1 %v1593_v10  ;;  %v1608_v25 = vld [vmem:[%s2321_s1 + $0x8] sm:$0xff]   ;;  %v1612_v29 = vld [vmem:[%s2321_s1] sm:$0xff]   ;;  %v1622_v37 = vld [vmem:[%s2321_s1 + $0x138] sm:$0xff]  }
   0xb   :  { %1348 = vmatpush3.bf16.msra.mxu0 %v1592_v9  ;;  %v1609_v26 = vld [vmem:[%s2321_s1 + $0xc8] sm:$0xff]   ;;  %v1613_v30 = vld [vmem:[%s2321_s1 + $0xc0] sm:$0xff]   ;;  %v1623_v38 = vld [vmem:[%s2322_s0 + $0x3c] ss:$28 sps:$4 sm:$0xff]  }
   0xc   :  { %1349 = vmatprep.subr.bf16.mxu0 %v1595_v12  ;;  %v1610_v27 = vld [vmem:[%s2321_s1 + $0x88] sm:$0xff]   ;;  %v1614_v31 = vld [vmem:[%s2322_s0] ss:$28 sps:$4 sm:$0xff]   ;;  %v1625_v39 = vld [vmem:[%s2322_s0 + $0x38] ss:$28 sps:$4 sm:$0xff]  }
   0xd   :  { %1412 = vmatpush3.bf16.msra.mxu1 %v1594_v11  ;;  %v1616_v32 = vld [vmem:[%s2322_s0 + $0x4] ss:$28 sps:$4 sm:$0xff]   ;;  %v1621_v36 = vld [vmem:[%s2322_s0 + $0xc] ss:$28 sps:$4 sm:$0xff]   ;;  %v1626_v40 = vld [vmem:[%s2321_s1 + $0x170] sm:$0xff]  }
   0xe   :  { %1413 = vmatprep.subr.bf16.mxu1 %v1597_v14  ;;  %v1617_v33 = vld [vmem:[%s2321_s1 + $0x80] sm:$0xff]   ;;  %854 = vmatprep.mubr.bf16.mxu0 %v1616_v32  ;;  %v1629_v42 = vld [vmem:[%s2321_s1 + $0x130] sm:$0xff]   ;;  %v1634_v45 = vld [vmem:[%s2321_s1 + $0x168] sm:$0xff]  }
   0xf   :  { %1350 = vmatpush3.bf16.msra.mxu0 %v1596_v13  ;;  %v1619_v35 = vld [vmem:[%s2322_s0 + $0x8] ss:$28 sps:$4 sm:$0xff]   ;;  %951 = vmatprep.mubr.bf16.mxu1 %v1621_v36  ;;  %v1630_v43 = vld [vmem:[%s2322_s0 + $0x40] ss:$28 sps:$4 sm:$0xff]   ;;  %v1631_v44 = vld [vmem:[%s2322_s0 + $0x74] ss:$28 sps:$4 sm:$0xff]  }
  0x10   :  { %1351 = vmatprep.subr.bf16.mxu0 %v1599_v16  ;;  %v1627_v41 = vld [vmem:[%s2322_s0 + $0x44] ss:$28 sps:$4 sm:$0xff]   ;;  %v1635_v46 = vld [vmem:[%s2322_s0 + $0x7c] ss:$28 sps:$4 sm:$0xff]   ;;  %v1637_v47 = vld [vmem:[%s2321_s1 + $0x128] sm:$0xff]  }
  0x11   :  { %1414 = vmatpush3.bf16.msra.mxu1 %v1598_v15  ;;  %v1633_v48 = vld [vmem:[%s2322_s0 + $0x70] ss:$28 sps:$4 sm:$0xff]   ;;  %v1642_v50 = vld [vmem:[%s2321_s1 + $0x160] sm:$0xff]   ;;  %v1638_v51 = vld [vmem:[%s2322_s0 + $0x78] ss:$28 sps:$4 sm:$0xff]  }
  0x12   :  { %1415 = vmatprep.subr.bf16.mxu1 %v1601_v18  ;;  %v1639_v49 = vld [vmem:[%s2322_s0 + $0xac] ss:$28 sps:$4 sm:$0xff]   ;;  %v1645_v52 = vld [vmem:[%s2321_s1 + $0x120] sm:$0xff]   ;;  %v1643_v53 = vld [vmem:[%s2322_s0 + $0xb4] ss:$28 sps:$4 sm:$0xff]  }
  0x13   :  { %1352 = vmatpush3.bf16.msra.mxu0 %v1600_v17  ;;  %v1650_v54 = vld [vmem:[%s2321_s1 + $0x158] sm:$0xff]   ;;  %v1641_v55 = vld [vmem:[%s2322_s0 + $0xa8] ss:$28 sps:$4 sm:$0xff]   ;;  %v1646_v59 = vld [vmem:[%s2322_s0 + $0xb0] ss:$28 sps:$4 sm:$0xff]  }
  0x14   :  { %1353 = vmatprep.subr.bf16.mxu0 %v1603_v20  ;;  %v1653_v56 = vld [vmem:[%s2321_s1 + $0x118] sm:$0xff]   ;;  %v1647_v57 = vld [vmem:[%s2322_s0 + $0xe4] ss:$28 sps:$4 sm:$0xff]   ;;  %v1651_v60 = vld [vmem:[%s2322_s0 + $0xec] ss:$28 sps:$4 sm:$0xff]  }
  0x15   :  { %1416 = vmatpush3.bf16.msra.mxu1 %v1602_v19  ;;  %v1655_v58 = vld [vmem:[%s2321_s1 + $0x1b8] sm:$0xff]   ;;  %v1659_v61 = vld [vmem:[%s2321_s1 + $0x150] sm:$0xff]   ;;  %v1665_v0 = vld [vmem:[%s2321_s1 + $0x1a8] sm:$0xff]  }
  0x16   :  { %1417 = vmatprep.subr.bf16.mxu1 %v1605_v22  ;;  %v1660_v62 = vld [vmem:[%s2321_s1 + $0x1b0] sm:$0xff]   ;;  %v1649_v1 = vld [vmem:[%s2322_s0 + $0xe0] ss:$28 sps:$4 sm:$0xff]   ;;  %v1654_v2 = vld [vmem:[%s2322_s0 + $0xe8] ss:$28 sps:$4 sm:$0xff]  }
  0x17   :  { %1354 = vmatpush3.bf16.msra.mxu0 %v1604_v21  ;;  %v1663_v63 = vld [vmem:[%s2321_s1 + $0x110] sm:$0xff]   ;;  %v1656_v3 = vld [vmem:[%s2322_s0 + $0x11c] ss:$28 sps:$4 sm:$0xff]   ;;  %v1669_v4 = vld [vmem:[%s2321_s1 + $0x148] sm:$0xff]  }
  0x18   :  { %1355 = vmatprep.subr.bf16.mxu0 %v1607_v24  ;;  %v1670_v5 = vld [vmem:[%s2321_s1 + $0x1a0] sm:$0xff]   ;;  %v1673_v7 = vld [vmem:[%s2321_s1 + $0x108] sm:$0xff]   ;;  %v1675_v8 = vld [vmem:[%s2321_s1 + $0x198] sm:$0xff]  }
  0x19   :  { %1418 = vmatpush3.bf16.msra.mxu1 %v1606_v23  ;;  %v1661_v6 = vld [vmem:[%s2322_s0 + $0x124] ss:$28 sps:$4 sm:$0xff]   ;;  %v1658_v9 = vld [vmem:[%s2322_s0 + $0x118] ss:$28 sps:$4 sm:$0xff]   ;;  %v1685_v16 = vld [vmem:[%s2321_s1 + $0x188] sm:$0xff]  }
  0x1a   :  { %1419 = vmatprep.subr.bf16.mxu1 %v1609_v26  ;;  %v1679_v10 = vld [vmem:[%s2321_s1 + $0x140] sm:$0xff]   ;;  %v1666_v12 = vld [vmem:[%s2322_s0 + $0x154] ss:$28 sps:$4 sm:$0xff]   ;;  %v1671_v15 = vld [vmem:[%s2322_s0 + $0x15c] ss:$28 sps:$4 sm:$0xff]  }
  0x1b   :  { %1356 = vmatpush3.bf16.msra.mxu0 %v1608_v25  ;;  %v1664_v11 = vld [vmem:[%s2322_s0 + $0x120] ss:$28 sps:$4 sm:$0xff]   ;;  %v1680_v13 = vld [vmem:[%s2321_s1 + $0x190] sm:$0xff]   ;;  %v1676_v18 = vld [vmem:[%s2322_s0 + $0x18c] ss:$28 sps:$4 sm:$0xff]  }
  0x1c   :  { %1357 = vmatprep.subr.bf16.mxu0 %v1611_v28  ;;  %v1683_v14 = vld [vmem:[%s2321_s1 + $0x100] sm:$0xff]   ;;  %v1668_v17 = vld [vmem:[%s2322_s0 + $0x150] ss:$28 sps:$4 sm:$0xff]   ;;  %v1674_v20 = vld [vmem:[%s2322_s0 + $0x158] ss:$28 sps:$4 sm:$0xff]  }
  0x1d   :  { %1420 = vmatpush3.bf16.msra.mxu1 %v1610_v27  ;;  %v1689_v19 = vld [vmem:[%s2321_s1 + $0x180] sm:$0xff]   ;;  %v1681_v21 = vld [vmem:[%s2322_s0 + $0x194] ss:$28 sps:$4 sm:$0xff]   ;;  %v1692_v27 = vld [vmem:[%s2322_s0 + $0x4c] ss:$28 sps:$4 sm:$0xff]  }
  0x1e   :  { %1421 = vmatprep.subr.bf16.mxu1 %v1613_v30  ;;  %v1678_v22 = vld [vmem:[%s2322_s0 + $0x188] ss:$28 sps:$4 sm:$0xff]   ;;  %v1688_v23 = vld [vmem:[%s2322_s0 + $0x14] ss:$28 sps:$4 sm:$0xff]   ;;  %v1699_v32 = vld [vmem:[%s2322_s0 + $0xc0] ss:$28 sps:$4 sm:$0xff]  }
  0x1f   :  { %1358 = vmatpush3.bf16.msra.mxu0 %v1612_v29  ;;  %v1684_v24 = vld [vmem:[%s2322_s0 + $0x190] ss:$28 sps:$4 sm:$0xff]   ;;  %v1690_v25 = vld [vmem:[%s2322_s0 + $0x18] ss:$28 sps:$4 sm:$0xff]   ;;  %v1698_v29 = vld [vmem:[%s2322_s0 + $0x88] ss:$28 sps:$4 sm:$0xff]  }
  0x20   :  { %1471 = vmatprep.subr.bf16.mxu0 %v1618_v34  ;;  %v1686_v26 = vld [vmem:[%s2322_s0 + $0x10] ss:$28 sps:$4 sm:$0xff]   ;;  %v1694_v30 = vld [vmem:[%s2322_s0 + $0x48] ss:$28 sps:$4 sm:$0xff]   ;;  %v1697_v34 = vld [vmem:[%s2322_s0 + $0x80] ss:$28 sps:$4 sm:$0xff]  }
  0x21   :  { %1422 = vmatpush3.bf16.msra.mxu1 %v1617_v33  ;;  %v1691_v28 = vld [vmem:[%s2322_s0 + $0x50] ss:$28 sps:$4 sm:$0xff]   ;;  %v1706_v33 = vld [vmem:[%s2322_s0 + $0xf8] ss:$28 sps:$4 sm:$0xff]  }
  0x22   :  { %855 = vmatmul.mubr.bf16.vlgmr.msra.gmra.mxu0 %v1614_v31  ;;  %1551 = vmatprep.subr.bf16.mxu1 %v1655_v58  ;;  %v1695_v31 = vld [vmem:[%s2322_s0 + $0x84] ss:$28 sps:$4 sm:$0xff]   ;;  %v1707_v36 = vld [vmem:[%s2322_s0 + $0x130] ss:$28 sps:$4 sm:$0xff]  }
  0x23   :  { %1472 = vmatpush3.bf16.msra.mxu0 %v1622_v37  ;;  %862 = vmatprep.mubr.bf16.mxu0 %v1623_v38  ;;  %v1714_v37 = vld [vmem:[%s2322_s0 + $0x168] ss:$28 sps:$4 sm:$0xff]   ;;  %v1702_v38 = vld [vmem:[%s2322_s0 + $0xb8] ss:$28 sps:$4 sm:$0xff]  }
  0x24   :  { %952 = vmatmul.mubr.bf16.vlgmr.msra.gmra.mxu1 %v1619_v35  ;;  %1473 = vmatprep.subr.bf16.mxu0 %v1626_v40  ;;  %v1700_v35 = vld [vmem:[%s2322_s0 + $0xbc] ss:$28 sps:$4 sm:$0xff]  }
  0x25   :  { %959 = vmatprep.mubr.bf16.mxu1 %v1627_v41  ;;  %1552 = vmatpush3.bf16.msra.mxu1 %v1655_v58  ;;  %v1715_v40 = vld [vmem:[%s2322_s0 + $0x1a0] ss:$28 sps:$4 sm:$0xff]   ;;  %v1705_v41 = vld [vmem:[%s2322_s0 + $0xf0] ss:$28 sps:$4 sm:$0xff]  }
  0x26   :  { %1553 = vmatprep.subr.bf16.mxu1 %v1660_v62 }
  0x27   :  { %1474 = vmatpush3.bf16.msra.mxu0 %v1629_v42  ;;  %v1708_v42 = vld [vmem:[%s2322_s0 + $0x12c] ss:$28 sps:$4 sm:$0xff]  }
  0x28   :  { %1475 = vmatprep.subr.bf16.mxu0 %v1634_v45  ;;  %v1713_v45 = vld [vmem:[%s2322_s0 + $0x160] ss:$28 sps:$4 sm:$0xff]  }
  0x29   :  { %1554 = vmatpush3.bf16.msra.mxu1 %v1660_v62 }
  0x2a   :  { %863 = vmatmul.mubr.bf16.gmra.mxu0 %v1625_v39  ;;  %1555 = vmatprep.subr.bf16.mxu1 %v1665_v0  ;;  %v1703_v39 = vld [vmem:[%s2322_s0 + $0xf4] ss:$28 sps:$4 sm:$0xff]  }
  0x2b   :  { %870 = vmatprep.mubr.bf16.mxu0 %v1631_v44  ;;  %1476 = vmatpush3.bf16.msra.mxu0 %v1637_v47  ;;  %v1711_v44 = vld [vmem:[%s2322_s0 + $0x164] ss:$28 sps:$4 sm:$0xff]   ;;  %v1718_v47 = vld [vmem:[%s2322_s0 + $0x198] ss:$28 sps:$4 sm:$0xff]  }
  0x2c   :  { %960 = vmatmul.mubr.bf16.gmra.mxu1 %v1630_v43  ;;  %1477 = vmatprep.subr.bf16.mxu0 %v1642_v50  ;;  %v1710_v43 = vld [vmem:[%s2322_s0 + $0x128] ss:$28 sps:$4 sm:$0xff]  }
  0x2d   :  { %967 = vmatprep.mubr.bf16.mxu1 %v1635_v46  ;;  %1556 = vmatpush3.bf16.msra.mxu1 %v1665_v0  ;;  %v1716_v46 = vld [vmem:[%s2322_s0 + $0x19c] ss:$28 sps:$4 sm:$0xff]  }
  0x2e   :  { %1557 = vmatprep.subr.bf16.mxu1 %v1670_v5 }
  0x2f   :  { %1478 = vmatpush3.bf16.msra.mxu0 %v1645_v52 }
  0x30   :  { %1479 = vmatprep.subr.bf16.mxu0 %v1650_v54 }
  0x31   :  { %1558 = vmatpush3.bf16.msra.mxu1 %v1670_v5 }
  0x32   :  { %871 = vmatmul.mubr.bf16.gmra.mxu0 %v1633_v48  ;;  %1559 = vmatprep.subr.bf16.mxu1 %v1675_v8 }
  0x33   :  { %878 = vmatprep.mubr.bf16.mxu0 %v1639_v49  ;;  %1480 = vmatpush3.bf16.msra.mxu0 %v1653_v56 }
  0x34   :  { %968 = vmatmul.mubr.bf16.gmra.mxu1 %v1638_v51  ;;  %1481 = vmatprep.subr.bf16.mxu0 %v1659_v61 }
  0x35   :  { %975 = vmatprep.mubr.bf16.mxu1 %v1643_v53  ;;  %1560 = vmatpush3.bf16.msra.mxu1 %v1675_v8 }
  0x36   :  { %1561 = vmatprep.subr.bf16.mxu1 %v1680_v13 }
  0x37   :  { %1482 = vmatpush3.bf16.msra.mxu0 %v1663_v63 }
  0x38   :  { %1483 = vmatprep.subr.bf16.mxu0 %v1669_v4 }
  0x39   :  { %1562 = vmatpush3.bf16.msra.mxu1 %v1680_v13 }
  0x3a   :  { %879 = vmatmul.mubr.bf16.gmra.mxu0 %v1641_v55  ;;  %1563 = vmatprep.subr.bf16.mxu1 %v1685_v16 }
  0x3b   :  { %886 = vmatprep.mubr.bf16.mxu0 %v1647_v57  ;;  %1484 = vmatpush3.bf16.msra.mxu0 %v1673_v7 }
  0x3c   :  { %976 = vmatmul.mubr.bf16.gmra.mxu1 %v1646_v59  ;;  %1485 = vmatprep.subr.bf16.mxu0 %v1679_v10 }
  0x3d   :  { %983 = vmatprep.mubr.bf16.mxu1 %v1651_v60  ;;  %1564 = vmatpush3.bf16.msra.mxu1 %v1685_v16 }
  0x3e   :  { %1565 = vmatprep.subr.bf16.mxu1 %v1689_v19 }
  0x3f   :  { %1486 = vmatpush3.bf16.msra.mxu0 %v1683_v14 }
  0x41   :  { %1566 = vmatpush3.bf16.msra.mxu1 %v1689_v19 }
  0x42   :  { %887 = vmatmul.mubr.bf16.gmra.mxu0 %v1649_v1 }
  0x43   :  { %894 = vmatprep.mubr.bf16.mxu0 %v1656_v3 }
  0x44   :  { %984 = vmatmul.mubr.bf16.gmra.mxu1 %v1654_v2 }
  0x45   :  { %991 = vmatprep.mubr.bf16.mxu1 %v1661_v6 }
  0x4a   :  { %895 = vmatmul.mubr.bf16.gmra.mxu0 %v1658_v9 }
  0x4b   :  { %902 = vmatprep.mubr.bf16.mxu0 %v1666_v12 }
  0x4c   :  { %992 = vmatmul.mubr.bf16.gmra.mxu1 %v1664_v11 }
  0x4d   :  { %999 = vmatprep.mubr.bf16.mxu1 %v1671_v15 }
  0x52   :  { %903 = vmatmul.mubr.bf16.gmra.mxu0 %v1668_v17 }
  0x53   :  { %910 = vmatprep.mubr.bf16.mxu0 %v1676_v18 }
  0x54   :  { %1000 = vmatmul.mubr.bf16.gmra.mxu1 %v1674_v20 }
  0x55   :  { %1007 = vmatprep.mubr.bf16.mxu1 %v1681_v21 }
  0x5a   :  { %911 = vmatmul.mubr.bf16.gmra.mxu0 %v1678_v22 }
  0x5b   :  { %1048 = vmatprep.mubr.bf16.mxu0 %v1688_v23 }
  0x5c   :  { %1008 = vmatmul.mubr.bf16.gmra.mxu1 %v1684_v24 }
  0x5d   :  { %1567 = vmatprep.mubr.bf16.mxu1 %v1690_v25 }
  0x62   :  { %1049 = vmatmul.mubr.bf16.vlgmr.msra.gmra.mxu0 %v1686_v26 }
  0x63   :  { %1056 = vmatprep.mubr.bf16.mxu0 %v1692_v27 }
  0x64   :  { %1568 = vmatmul.mubr.bf16.vlgmr.msra.gmra.mxu1 %v1691_v28 }
  0x65   :  { %1571 = vmatprep.mubr.bf16.mxu1 %v1698_v29 }
  0x6a   :  { %1057 = vmatmul.mubr.bf16.gmra.mxu0 %v1694_v30 }
  0x6b   :  { %1064 = vmatprep.mubr.bf16.mxu0 %v1695_v31 }
  0x6c   :  { %1572 = vmatmul.mubr.bf16.gmra.mxu1 %v1699_v32 }
  0x6d   :  { %1575 = vmatprep.mubr.bf16.mxu1 %v1706_v33 }
  0x72   :  { %1065 = vmatmul.mubr.bf16.gmra.mxu0 %v1697_v34 }
  0x73   :  { %1072 = vmatprep.mubr.bf16.mxu0 %v1700_v35 }
  0x74   :  { %1576 = vmatmul.mubr.bf16.gmra.mxu1 %v1707_v36 }
  0x75   :  { %1579 = vmatprep.mubr.bf16.mxu1 %v1714_v37 }
  0x7a   :  { %1073 = vmatmul.mubr.bf16.gmra.mxu0 %v1702_v38 }
  0x7b   :  { %1080 = vmatprep.mubr.bf16.mxu0 %v1703_v39 }
  0x7c   :  { %1580 = vmatmul.mubr.bf16.gmra.mxu1 %v1715_v40 }
  0x82   :  { %1081 = vmatmul.mubr.bf16.gmra.mxu0 %v1705_v41 }
  0x83   :  { %1088 = vmatprep.mubr.bf16.mxu0 %v1708_v42 }
  0x8a   :  { %1089 = vmatmul.mubr.bf16.gmra.mxu0 %v1710_v43 }
  0x8b   :  { %1096 = vmatprep.mubr.bf16.mxu0 %v1711_v44  ;;  %v2186_v44 = vld [vmem:[%s2323_s2] ss:$0 sm:$0xff] }
  0x92   :  { %1097 = vmatmul.mubr.bf16.gmra.mxu0 %v1713_v45 }
  0x93   :  { %1104 = vmatprep.mubr.bf16.mxu0 %v1716_v46 }
  0x9a   :  { %1105 = vmatmul.mubr.bf16.gmra.mxu0 %v1718_v47 }
  0xe2   :  { %v1359_v48 = vpop.f32.mrf.mxu0 }
  0xe4   :  { %v1360_v49 = vpop.f32.mrf.mxu0  ;;  %v2075_v50 = vpop.f32.mrf.mxu1 }
  0xe5   :  { %v1361_v42 = vadd.f32 %v1360_v49, %v1359_v48 }
  0xe6   :  { %v2077_v51 = vpop.f32.mrf.mxu0  ;;  %v1424_v52 = vpop.f32.mrf.mxu1 }
  0xe8   :  { %v1363_v53 = vpop.f32.mrf.mxu0  ;;  %v2079_v54 = vpop.f32.mrf.mxu1 }
  0xea   :  { %v2081_v55 = vpop.f32.mrf.mxu0  ;;  %v2083_v56 = vpop.f32.mrf.mxu1 }
  0xec   :  { %v1366_v57 = vpop.f32.mrf.mxu0  ;;  %v2085_v58 = vpop.f32.mrf.mxu1 }
  0xee   :  { %v2087_v59 = vpop.f32.mrf.mxu0  ;;  %v2089_v60 = vpop.f32.mrf.mxu1 }
  0xf0   :  { %v2091_v61 = vpop.f32.mrf.mxu0  ;;  %v2093_v62 = vpop.f32.mrf.mxu1 }
  0xf2   :  { %v2095_v63 = vpop.f32.mrf.mxu0  ;;  %v2097_v0 = vpop.f32.mrf.mxu1 }
  0xf4   :  { %v2099_v1 = vpop.f32.mrf.mxu0  ;;  %v2101_v2 = vpop.f32.mrf.mxu1 }
  0xf6   :  { %v2103_v3 = vpop.f32.mrf.mxu0  ;;  %v2105_v4 = vpop.f32.mrf.mxu1 }
  0xf8   :  { %v2107_v5 = vpop.f32.mrf.mxu0  ;;  %v2109_v6 = vpop.f32.mrf.mxu1 }
  0xfa   :  { %v2111_v7 = vpop.f32.mrf.mxu0  ;;  %v2113_v8 = vpop.f32.mrf.mxu1 }
  0xfc   :  { %v2115_v9 = vpop.f32.mrf.mxu0  ;;  %v2117_v10 = vpop.f32.mrf.mxu1 }
  0xfe   :  { %v2119_v11 = vpop.f32.mrf.mxu0  ;;  %v2121_v12 = vpop.f32.mrf.mxu1 }
 0x100   :  { %v2123_v13 = vpop.f32.mrf.mxu0  ;;  %v2125_v14 = vpop.f32.mrf.mxu1 }
 0x102   :  { %v2127_v15 = vpop.f32.mrf.mxu0  ;;  %v2129_v16 = vpop.f32.mrf.mxu1 }
 0x104   :  { %v2131_v17 = vpop.f32.mrf.mxu0  ;;  %v2133_v18 = vpop.f32.mrf.mxu1 }
 0x106   :  { %v2135_v19 = vpop.f32.mrf.mxu0  ;;  %v2137_v20 = vpop.f32.mrf.mxu1 }
 0x108   :  { %v2139_v21 = vpop.f32.mrf.mxu0  ;;  %v2141_v22 = vpop.f32.mrf.mxu1 }
 0x10a   :  { %v2143_v23 = vpop.f32.mrf.mxu0  ;;  %v2145_v24 = vpop.f32.mrf.mxu1 }
 0x10c   :  { %v2147_v25 = vpop.f32.mrf.mxu0  ;;  %v2149_v26 = vpop.f32.mrf.mxu1 }
 0x10e   :  { %v2151_v27 = vpop.f32.mrf.mxu0  ;;  %v2153_v28 = vpop.f32.mrf.mxu1 }
 0x110   :  { %v2155_v29 = vpop.f32.mrf.mxu0  ;;  %v2157_v30 = vpop.f32.mrf.mxu1 }
 0x112   :  { %v2159_v31 = vpop.f32.mrf.mxu0  ;;  %v2161_v32 = vpop.f32.mrf.mxu1 }
 0x114   :  { %v2163_v33 = vpop.f32.mrf.mxu0  ;;  %v2165_v34 = vpop.f32.mrf.mxu1 }
 0x116   :  { %v2167_v35 = vpop.f32.mrf.mxu0  ;;  %v2169_v36 = vpop.f32.mrf.mxu1 }
 0x117   :  { %2325 = vst [vmem:[#allocation2_spill] sm:$0xff] %v2167_v35  ;;  %2326 = vst [vmem:[#allocation3_spill] sm:$0xff] %v2169_v36 }
 0x118   :  { %v2171_v37 = vpop.f32.mrf.mxu0  ;;  %v2173_v38 = vpop.f32.mrf.mxu1 }
 0x119   :  { %2327 = vst [vmem:[#allocation4_spill] sm:$0xff] %v2171_v37  ;;  %2328 = vst [vmem:[#allocation5_spill] sm:$0xff] %v2173_v38  ;;  %v857_v38 = vadd.f32 %v1361_v42, %v2186_v44 }
 0x11a   :  { %v2175_v39 = vpop.f32.mrf.mxu0  ;;  %v2177_v40 = vpop.f32.mrf.mxu1 }
 0x11b   :  { %2329 = vst [vmem:[#allocation6_spill] sm:$0xff] %v2175_v39  ;;  %2330 = vst [vmem:[#allocation7_spill] sm:$0xff] %v2177_v40  ;;  %v1425_v40 = vadd.f32 %v1424_v52, %v2075_v50  ;;  %v1367_v39 = vadd.f32 %v1366_v57, %v2081_v55  ;;  %v1370_v55 = vadd.f32 %v2091_v61, %v2087_v59 }
 0x11c   :  { %v2179_v41 = vpop.f32.mrf.mxu0  ;;  %v2181_v43 = vpop.f32.mrf.mxu1  ;;  %v1434_v59 = vadd.f32 %v2097_v0, %v2093_v62 }
 0x11d   :  { %2331 = vst [vmem:[#allocation8_spill] sm:$0xff] %v2179_v41  ;;  %2332 = vst [vmem:[#allocation9_spill] sm:$0xff] %v2181_v43  ;;  %v1364_v41 = vadd.f32 %v1363_v53, %v2077_v51  ;;  %v954_v35 = vadd.f32 %v1425_v40, %v857_v38  ;;  %v865_v51 = vadd.f32 %v1367_v39, %v2186_v44 }
 0x11e   :  { %v2188_v45 = vpop.f32.mrf.mxu0  ;;  %v2190_v46 = vpop.f32.mrf.mxu1  ;;  %v1431_v53 = vadd.f32 %v2089_v60, %v2085_v58  ;;  %v868_v60 = vadd.f32 %v1370_v55, %v2186_v44 }
 0x11f   :  { %2333 = vst [vmem:[#allocation10_spill] sm:$0xff] %v2188_v45  ;;  %2334 = vst [vmem:[#allocation11_spill] sm:$0xff] %v2190_v46  ;;  %v860_v45 = vadd.f32 %v1364_v41, %v2186_v44 }
 0x120   :  { %v2192_v47 = vpop.f32.mrf.mxu0  ;;  %v2197_v48 = vpop.f32.mrf.mxu1 }
 0x121   :  { %2335 = vst [vmem:[#allocation12_spill] sm:$0xff] %v2192_v47  ;;  %2336 = vst [vmem:[#allocation13_spill] sm:$0xff] %v2197_v48  ;;  %v1428_v47 = vadd.f32 %v2083_v56, %v2079_v54 }
 0x122   :  { %v1487_v49 = vpop.f32.mrf.mxu0  ;;  %v2199_v43 = vpop.f32.mrf.mxu1 }
 0x123   :  { %2337 = vst [vmem:[#allocation14_spill] sm:$0xff] %v2199_v43  ;;  %v957_v48 = vadd.f32 %v1428_v47, %v860_v45  ;;  %v965_v47 = vadd.f32 %v1434_v59, %v868_v60  ;;  %v1385_v60 = vadd.f32 %v2131_v17, %v2127_v15  ;;  %v1449_v15 = vadd.f32 %v2137_v20, %v2133_v18 }
 0x124   :  { %v1488_v37 = vpop.f32.mrf.mxu0  ;;  %v1569_v42 = vpop.f32.mrf.mxu1  ;;  %v1452_v20 = vadd.f32 %v2145_v24, %v2141_v22 }
 0x125   :  { %v1489_v46 = vadd.f32 %v1488_v37, %v1487_v49  ;;  %v1373_v37 = vadd.f32 %v2099_v1, %v2095_v63  ;;  %v1437_v63 = vadd.f32 %v2105_v4, %v2101_v2  ;;  %v1440_v4 = vadd.f32 %v2113_v8, %v2109_v6 }
 0x126   :  { %v1490_v36 = vpop.f32.mrf.mxu0  ;;  %v1147_v52 = vpop.f32.mrf.mxu1 }
 0x127   :  { %v1051_v50 = vadd.f32 %v1489_v46, %v954_v35  ;;  %v962_v35 = vadd.f32 %v1431_v53, %v865_v51  ;;  %v873_v46 = vadd.f32 %v1373_v37, %v2186_v44  ;;  %v1379_v53 = vadd.f32 %v2115_v9, %v2111_v7 }
 0x128   :  { %v1491_v43 = vpop.f32.mrf.mxu0  ;;  %v1570_v40 = vpop.f32.mrf.mxu1  ;;  %v1443_v7 = vadd.f32 %v2121_v12, %v2117_v10  ;;  %v1446_v12 = vadd.f32 %v2129_v16, %v2125_v14 }
 0x129   :  { %v1492_v57 = vadd.f32 %v1491_v43, %v1490_v36  ;;  %v1148_v38 = vadd.f32 %v1147_v52, %v1051_v50  ;;  %v970_v51 = vadd.f32 %v1437_v63, %v873_v46  ;;  %v1388_v63 = vadd.f32 %v2139_v21, %v2135_v19 }
 0x12a   :  { %v1493_v41 = vpop.f32.mrf.mxu0  ;;  %v1150_v56 = vpop.f32.mrf.mxu1 }
 0x12b   :  { %1210 = vst [vmem:[%s2324_s3] sm:$0xff] %v1148_v38  ;;  %v1054_v54 = vadd.f32 %v1492_v57, %v957_v48  ;;  %v1376_v48 = vadd.f32 %v2107_v5, %v2103_v3  ;;  %v892_v18 = vadd.f32 %v1388_v63, %v2186_v44 }
 0x12c   :  { %v1494_v58 = vpop.f32.mrf.mxu0  ;;  %v1573_v43 = vpop.f32.mrf.mxu1 }
 0x12d   :  { %v1495_v61 = vadd.f32 %v1494_v58, %v1493_v41  ;;  %v1151_v36 = vadd.f32 %v1150_v56, %v1054_v54  ;;  %v876_v2 = vadd.f32 %v1376_v48, %v2186_v44  ;;  %v881_v41 = vadd.f32 %v1379_v53, %v2186_v44 }
 0x12e   :  { %v1496_v39 = vpop.f32.mrf.mxu0  ;;  %v1163_v50 = vpop.f32.mrf.mxu1  ;;  %v1382_v56 = vadd.f32 %v2123_v13, %v2119_v11  ;;  %v989_v53 = vadd.f32 %v1452_v20, %v892_v18 }
 0x12f   :  { %v1059_v45 = vadd.f32 %v1495_v61, %v962_v35  ;;  %1211 = vst [vmem:[%s2324_s3 + $0x8] sm:$0xff] %v1151_v36  ;;  %v973_v54 = vadd.f32 %v1440_v4, %v876_v2  ;;  %v978_v58 = vadd.f32 %v1443_v7, %v881_v41 }
 0x130   :  { %v1497_v1 = vpop.f32.mrf.mxu0  ;;  %v1574_v57 = vpop.f32.mrf.mxu1  ;;  %v884_v10 = vadd.f32 %v1382_v56, %v2186_v44 }
 0x131   :  { %v1156_v62 = vadd.f32 %v1569_v42, %v1059_v45  ;;  %v1498_v0 = vadd.f32 %v1497_v1, %v1496_v39  ;;  %v889_v45 = vadd.f32 %v1385_v60, %v2186_v44 }
 0x132   :  { %v1499_v49 = vpop.f32.mrf.mxu0  ;;  %v1166_v35 = vpop.f32.mrf.mxu1  ;;  %v981_v46 = vadd.f32 %v1446_v12, %v884_v10  ;;  %v2342_v10 = vld [vmem:[#allocation8_spill] sm:$0xff] }
 0x133   :  { %1212 = vst [vmem:[%s2324_s3 + $0x10] sm:$0xff] %v1156_v62  ;;  %v1062_v52 = vadd.f32 %v1498_v0, %v965_v47  ;;  %v986_v62 = vadd.f32 %v1449_v15, %v889_v45  ;;  %v1391_v0 = vadd.f32 %v2147_v25, %v2143_v23  ;;  %v1455_v23 = vadd.f32 %v2153_v28, %v2149_v26 }
 0x134   :  { %v1500_v55 = vpop.f32.mrf.mxu0  ;;  %v1577_v36 = vpop.f32.mrf.mxu1  ;;  %v1458_v28 = vadd.f32 %v2161_v32, %v2157_v30 }
 0x135   :  { %v1159_v3 = vadd.f32 %v1570_v40, %v1062_v52  ;;  %v1501_v5 = vadd.f32 %v1500_v55, %v1499_v49  ;;  %v1394_v55 = vadd.f32 %v2155_v29, %v2151_v27 }
 0x136   :  { %v1502_v42 = vpop.f32.mrf.mxu0  ;;  %v1179_v47 = vpop.f32.mrf.mxu1 }
 0x137   :  { %1213 = vst [vmem:[%s2324_s3 + $0x18] sm:$0xff] %v1159_v3  ;;  %v1067_v38 = vadd.f32 %v1501_v5, %v970_v51  ;;  %v897_v51 = vadd.f32 %v1391_v0, %v2186_v44  ;;  %v900_v26 = vadd.f32 %v1394_v55, %v2186_v44  ;;  %v2348_v0 = vld [vmem:[#allocation12_spill] sm:$0xff] }
 0x138   :  { %v1503_v9 = vpop.f32.mrf.mxu0 }
 0x139   :  { %v1504_v6 = vadd.f32 %v1503_v9, %v1502_v42  ;;  %v1164_v8 = vadd.f32 %v1163_v50, %v1067_v38  ;;  %v1578_v50 = vpop.f32.mrf.mxu1  ;;  %v994_v5 = vadd.f32 %v1455_v23, %v897_v51  ;;  %v1397_v42 = vadd.f32 %v2163_v33, %v2159_v31  ;;  %v2349_v23 = vld [vmem:[#allocation13_spill] sm:$0xff] }
 0x13a   :  { %v1505_v40 = vpop.f32.mrf.mxu0  ;;  %v997_v56 = vadd.f32 %v1458_v28, %v900_v26 }
 0x13b   :  { %1214 = vst [vmem:[%s2324_s3 + $0x20] sm:$0xff] %v1164_v8  ;;  %v1070_v37 = vadd.f32 %v1504_v6, %v973_v54  ;;  %v1182_v4 = vpop.f32.mrf.mxu1  ;;  %v905_v9 = vadd.f32 %v1397_v42, %v2186_v44  ;;  %v2338_v54 = vld [vmem:[#allocation3_spill] sm:$0xff]  ;;  %v2339_v6 = vld [vmem:[#allocation2_spill] sm:$0xff]  ;;  %v2340_v8 = vld [vmem:[#allocation4_spill] sm:$0xff] }
 0x13c   :  { %v1506_v59 = vpop.f32.mrf.mxu0  ;;  %v1461_v31 = vadd.f32 %v2338_v54, %v2165_v34 }
 0x13d   :  { %v1507_v11 = vadd.f32 %v1506_v59, %v1505_v40  ;;  %v1167_v13 = vadd.f32 %v1166_v35, %v1070_v37  ;;  %v1581_v41 = vpop.f32.mrf.mxu1  ;;  %v1400_v40 = vadd.f32 %v2340_v8, %v2339_v6  ;;  %v2341_v59 = vld [vmem:[#allocation6_spill] sm:$0xff] }
 0x13e   :  { %v1508_v61 = vpop.f32.mrf.mxu0  ;;  %v1002_v60 = vadd.f32 %v1461_v31, %v905_v9  ;;  %v1403_v12 = vadd.f32 %v2342_v10, %v2341_v59 }
 0x13f   :  { %v1075_v39 = vadd.f32 %v1507_v11, %v978_v58  ;;  %1215 = vst [vmem:[%s2324_s3 + $0x28] sm:$0xff] %v1167_v13  ;;  %v1195_v37 = vpop.f32.mrf.mxu1  ;;  %v908_v34 = vadd.f32 %v1400_v40, %v2186_v44  ;;  %v2343_v13 = vld [vmem:[#allocation5_spill] sm:$0xff] }
 0x140   :  { %v1509_v17 = vpop.f32.mrf.mxu0  ;;  %v913_v63 = vadd.f32 %v1403_v12, %v2186_v44 }
 0x141   :  { %v1172_v14 = vadd.f32 %v1573_v43, %v1075_v39  ;;  %v1510_v16 = vadd.f32 %v1509_v17, %v1508_v61  ;;  %v2344_v61 = vld [vmem:[#allocation7_spill] sm:$0xff]  ;;  %v1582_v17 = vpop.f32.mrf.mxu1 }
 0x142   :  { %v1511_v1 = vpop.f32.mrf.mxu0  ;;  %v1464_v39 = vadd.f32 %v2344_v61, %v2343_v13 }
 0x143   :  { %1216 = vst [vmem:[%s2324_s3 + $0x30] sm:$0xff] %v1172_v14  ;;  %v1078_v48 = vadd.f32 %v1510_v16, %v981_v46  ;;  %v2345_v14 = vld [vmem:[#allocation9_spill] sm:$0xff]  ;;  %v2346_v16 = vld [vmem:[#allocation11_spill] sm:$0xff] }
 0x144   :  { %v1512_v49 = vpop.f32.mrf.mxu0 }
 0x145   :  { %v1175_v19 = vadd.f32 %v1574_v57, %v1078_v48  ;;  %v1513_v21 = vadd.f32 %v1512_v49, %v1511_v1  ;;  %v1467_v1 = vadd.f32 %v2346_v16, %v2345_v14  ;;  %v1005_v48 = vadd.f32 %v1464_v39, %v908_v34 }
 0x146   :  { %v1514_v43 = vpop.f32.mrf.mxu0 }
 0x147   :  { %1217 = vst [vmem:[%s2324_s3 + $0x38] sm:$0xff] %v1175_v19  ;;  %v1083_v52 = vadd.f32 %v1513_v21, %v986_v62  ;;  %v2347_v62 = vld [vmem:[#allocation10_spill] sm:$0xff]  ;;  %v1198_v21 = vpop.f32.mrf.mxu1 }
 0x148   :  { %v1515_v25 = vpop.f32.mrf.mxu0  ;;  %v1406_v49 = vadd.f32 %v2348_v0, %v2347_v62 }
 0x149   :  { %v1516_v22 = vadd.f32 %v1515_v25, %v1514_v43  ;;  %v1180_v24 = vadd.f32 %v1179_v47, %v1083_v52  ;;  %v2350_v25 = vld [vmem:[#allocation14_spill] sm:$0xff] }
 0x14a   :  { %v1517_v2 = vpop.f32.mrf.mxu0  ;;  %v916_v51 = vadd.f32 %v1406_v49, %v2186_v44 }
 0x14b   :  { %1218 = vst [vmem:[%s2324_s3 + $0x40] sm:$0xff] %v1180_v24  ;;  %v1086_v3 = vadd.f32 %v1516_v22, %v989_v53  ;;  %v1470_v53 = vadd.f32 %v2350_v25, %v2349_v23 }
 0x14c   :  { %v1518_v57 = vpop.f32.mrf.mxu0 }
 0x14d   :  { %v1519_v27 = vadd.f32 %v1518_v57, %v1517_v2  ;;  %v1183_v29 = vadd.f32 %v1182_v4, %v1086_v3  ;;  %v1013_v3 = vadd.f32 %v1470_v53, %v916_v51 }
 0x14e   :  { %v1520_v38 = vpop.f32.mrf.mxu0 }
 0x14f   :  { %v1091_v7 = vadd.f32 %v1519_v27, %v994_v5  ;;  %1219 = vst [vmem:[%s2324_s3 + $0x48] sm:$0xff] %v1183_v29 }
 0x150   :  { %v1521_v33 = vpop.f32.mrf.mxu0 }
 0x151   :  { %v1188_v30 = vadd.f32 %v1577_v36, %v1091_v7  ;;  %v1522_v32 = vadd.f32 %v1521_v33, %v1520_v38 }
 0x152   :  { %v1523_v35 = vpop.f32.mrf.mxu0 }
 0x153   :  { %1220 = vst [vmem:[%s2324_s3 + $0x50] sm:$0xff] %v1188_v30  ;;  %v1094_v58 = vadd.f32 %v1522_v32, %v997_v56 }
 0x154   :  { %v1524_v11 = vpop.f32.mrf.mxu0 }
 0x155   :  { %v1191_v45 = vadd.f32 %v1578_v50, %v1094_v58  ;;  %v1525_v36 = vadd.f32 %v1524_v11, %v1523_v35  ;;  %v1010_v50 = vadd.f32 %v1467_v1, %v913_v63 }
 0x156   :  { %v1526_v15 = vpop.f32.mrf.mxu0 }
 0x157   :  { %1221 = vst [vmem:[%s2324_s3 + $0x58] sm:$0xff] %v1191_v45  ;;  %v1099_v46 = vadd.f32 %v1525_v36, %v1002_v60 }
 0x158   :  { %v1527_v47 = vpop.f32.mrf.mxu0 }
 0x159   :  { %v1528_v18 = vadd.f32 %v1527_v47, %v1526_v15  ;;  %v1196_v20 = vadd.f32 %v1195_v37, %v1099_v46 }
 0x15a   :  { %v1529_v19 = vpop.f32.mrf.mxu0 }
 0x15b   :  { %1222 = vst [vmem:[%s2324_s3 + $0x60] sm:$0xff] %v1196_v20  ;;  %v1102_v43 = vadd.f32 %v1528_v18, %v1005_v48 }
 0x15c   :  { %v1530_v52 = vpop.f32.mrf.mxu0 }
 0x15d   :  { %v1531_v55 = vadd.f32 %v1530_v52, %v1529_v19  ;;  %v1199_v22 = vadd.f32 %v1198_v21, %v1102_v43 }
 0x15e   :  { %v1532_v24 = vpop.f32.mrf.mxu0 }
 0x15f   :  { %v1107_v2 = vadd.f32 %v1531_v55, %v1010_v50  ;;  %1223 = vst [vmem:[%s2324_s3 + $0x68] sm:$0xff] %v1199_v22 }
 0x160   :  { %v1533_v4 = vpop.f32.mrf.mxu0 }
 0x161   :  { %v1204_v5 = vadd.f32 %v1581_v41, %v1107_v2  ;;  %v1534_v42 = vadd.f32 %v1533_v4, %v1532_v24 }
 0x163   :  { %1224 = vst [vmem:[%s2324_s3 + $0x70] sm:$0xff] %v1204_v5  ;;  %v1110_v44 = vadd.f32 %v1534_v42, %v1013_v3 }
 0x165   :  { %v1207_v57 = vadd.f32 %v1582_v17, %v1110_v44 }
 0x167   :  { %1225 = vst [vmem:[%s2324_s3 + $0x78] sm:$0xff] %v1207_v57 }

// kernel: image_compressor_forward.35
= control target key start
LH: loop header
LB: loop body
LE: loop exit
PB: predicated region body
PF: predicated region fallthrough
CT: control target
= control target key end

     0   :  { %s1207_s1 = inlined_call_operand.vmem [shape: bf16[128,128], index: 1, kind: input, shape index: {}]   ;;  %s1208_s0 = inlined_call_operand.vmem [shape: bf16[128,128], index: 0, kind: input, shape index: {}]   ;;  %s1209_s3 = inlined_call_operand.vmem [shape: f32[128,128], index: 3, kind: input, shape index: {}]   ;;  %s1210_s2 = inlined_call_operand.vmem [shape: f32[1,128], index: 2, kind: input, shape index: {}]   ;;  %s1211_s4 = inlined_call_operand.vmem [shape: f32[1,128], index: 4, kind: input, shape index: {}]   ;;  %s1212_s5 = inlined_call_operand.vmem [shape: f32[128,128], index: 5, kind: output, shape index: {}]  }
   0x1   :  { %v755_v0 = vld [vmem:[%s1207_s1 + $0x38] sm:$0xff]   ;;  %v756_v1 = vld [vmem:[%s1207_s1 + $0x30] sm:$0xff]   ;;  %v757_v2 = vld [vmem:[%s1207_s1 + $0x28] sm:$0xff]  }
   0x2   :  { %667 = vmatprep.subr.bf16.mxu0 %v755_v0  ;;  %v758_v3 = vld [vmem:[%s1207_s1 + $0x20] sm:$0xff]   ;;  %v759_v5 = vld [vmem:[%s1207_s1 + $0x18] sm:$0xff]   ;;  %v760_v6 = vld [vmem:[%s1207_s1 + $0x10] sm:$0xff]  }
   0x3   :  { %668 = vmatpush3.bf16.msra.mxu0 %v755_v0  ;;  %v763_v4 = vld [vmem:[%s1208_s0] sm:$0xff]   ;;  %v284_v7 = vld [vmem:[%s1209_s3 + $0x78] sm:$0xff]  ;;  %v283_v8 = vld [vmem:[%s1209_s3 + $0x70] sm:$0xff] }
   0x4   :  { %669 = vmatprep.subr.bf16.mxu0 %v756_v1  ;;  %683 = vmatprep.mubr.bf16.mxu0 %v763_v4  ;;  %v282_v9 = vld [vmem:[%s1209_s3 + $0x68] sm:$0xff]  ;;  %v281_v11 = vld [vmem:[%s1209_s3 + $0x60] sm:$0xff]  ;;  %v280_v12 = vld [vmem:[%s1209_s3 + $0x58] sm:$0xff] }
   0x5   :  { %699 = vmatprep.subr.mxu1 %v284_v7  ;;  %v761_v10 = vld [vmem:[%s1207_s1 + $0x8] sm:$0xff]   ;;  %v762_v13 = vld [vmem:[%s1207_s1] sm:$0xff]   ;;  %v279_v14 = vld [vmem:[%s1209_s3 + $0x50] sm:$0xff] }
   0x6   :  { %700 = vmatpush3.msra.mxu1 %v284_v7  ;;  %v278_v15 = vld [vmem:[%s1209_s3 + $0x48] sm:$0xff]  ;;  %v277_v16 = vld [vmem:[%s1209_s3 + $0x40] sm:$0xff]  ;;  %v276_v18 = vld [vmem:[%s1209_s3 + $0x38] sm:$0xff] }
   0x7   :  { %670 = vmatpush3.bf16.msra.mxu0 %v756_v1  ;;  %701 = vmatprep.subr.mxu1 %v283_v8  ;;  %v764_v17 = vld [vmem:[%s1208_s0 + $0x8] sm:$0xff]   ;;  %v765_v19 = vld [vmem:[%s1208_s0 + $0x10] sm:$0xff]   ;;  %v766_v22 = vld [vmem:[%s1208_s0 + $0x18] sm:$0xff]  }
   0x8   :  { %671 = vmatprep.subr.bf16.mxu0 %v757_v2  ;;  %702 = vmatpush3.msra.mxu1 %v283_v8  ;;  %v275_v20 = vld [vmem:[%s1209_s3 + $0x30] sm:$0xff]  ;;  %v274_v21 = vld [vmem:[%s1209_s3 + $0x28] sm:$0xff]  ;;  %v767_v23 = vld [vmem:[%s1208_s0 + $0x20] sm:$0xff]  }
   0x9   :  { %703 = vmatprep.subr.mxu1 %v282_v9  ;;  %v768_v24 = vld [vmem:[%s1208_s0 + $0x28] sm:$0xff]   ;;  %v769_v25 = vld [vmem:[%s1208_s0 + $0x30] sm:$0xff]   ;;  %v770_v26 = vld [vmem:[%s1208_s0 + $0x38] sm:$0xff]  }
   0xa   :  { %704 = vmatpush3.msra.mxu1 %v282_v9  ;;  %v273_v27 = vld [vmem:[%s1209_s3 + $0x20] sm:$0xff]  ;;  %v272_v28 = vld [vmem:[%s1209_s3 + $0x18] sm:$0xff]  ;;  %v271_v29 = vld [vmem:[%s1209_s3 + $0x10] sm:$0xff] }
   0xb   :  { %672 = vmatpush3.bf16.msra.mxu0 %v757_v2  ;;  %705 = vmatprep.subr.mxu1 %v281_v11  ;;  %v270_v30 = vld [vmem:[%s1209_s3 + $0x8] sm:$0xff]  ;;  %v269_v31 = vld [vmem:[%s1209_s3] sm:$0xff] }
   0xc   :  { %673 = vmatprep.subr.bf16.mxu0 %v758_v3  ;;  %706 = vmatpush3.msra.mxu1 %v281_v11  ;;  %v601_v33 = vld [vmem:[%s1210_s2] ss:$0 sm:$0xff] }
   0xd   :  { %707 = vmatprep.subr.mxu1 %v280_v12 }
   0xe   :  { %708 = vmatpush3.msra.mxu1 %v280_v12 }
   0xf   :  { %674 = vmatpush3.bf16.msra.mxu0 %v758_v3  ;;  %709 = vmatprep.subr.mxu1 %v279_v14 }
  0x10   :  { %675 = vmatprep.subr.bf16.mxu0 %v759_v5  ;;  %710 = vmatpush3.msra.mxu1 %v279_v14 }
  0x11   :  { %711 = vmatprep.subr.mxu1 %v278_v15 }
  0x12   :  { %712 = vmatpush3.msra.mxu1 %v278_v15 }
  0x13   :  { %676 = vmatpush3.bf16.msra.mxu0 %v759_v5  ;;  %713 = vmatprep.subr.mxu1 %v277_v16 }
  0x14   :  { %677 = vmatprep.subr.bf16.mxu0 %v760_v6  ;;  %714 = vmatpush3.msra.mxu1 %v277_v16 }
  0x15   :  { %715 = vmatprep.subr.mxu1 %v276_v18 }
  0x16   :  { %716 = vmatpush3.msra.mxu1 %v276_v18 }
  0x17   :  { %678 = vmatpush3.bf16.msra.mxu0 %v760_v6  ;;  %717 = vmatprep.subr.mxu1 %v275_v20 }
  0x18   :  { %679 = vmatprep.subr.bf16.mxu0 %v761_v10  ;;  %718 = vmatpush3.msra.mxu1 %v275_v20 }
  0x19   :  { %719 = vmatprep.subr.mxu1 %v274_v21 }
  0x1a   :  { %720 = vmatpush3.msra.mxu1 %v274_v21 }
  0x1b   :  { %680 = vmatpush3.bf16.msra.mxu0 %v761_v10  ;;  %721 = vmatprep.subr.mxu1 %v273_v27 }
  0x1c   :  { %681 = vmatprep.subr.bf16.mxu0 %v762_v13  ;;  %722 = vmatpush3.msra.mxu1 %v273_v27 }
  0x1d   :  { %723 = vmatprep.subr.mxu1 %v272_v28 }
  0x1e   :  { %724 = vmatpush3.msra.mxu1 %v272_v28 }
  0x1f   :  { %682 = vmatpush3.bf16.msra.mxu0 %v762_v13  ;;  %725 = vmatprep.subr.mxu1 %v271_v29 }
  0x20   :  { %726 = vmatpush3.msra.mxu1 %v271_v29 }
  0x21   :  { %727 = vmatprep.subr.mxu1 %v270_v30 }
  0x22   :  { %684 = vmatmul.mubr.bf16.vlgmr.msra.gmra.mxu0 %v764_v17  ;;  %728 = vmatpush3.msra.mxu1 %v270_v30  ;;  %v999_v17 = vld [vmem:[%s1211_s4] ss:$0 sm:$0xff] }
  0x23   :  { %687 = vmatprep.mubr.bf16.mxu0 %v765_v19  ;;  %729 = vmatprep.subr.mxu1 %v269_v31 }
  0x24   :  { %730 = vmatpush3.msra.mxu1 %v269_v31 }
  0x2a   :  { %688 = vmatmul.mubr.bf16.gmra.mxu0 %v766_v22 }
  0x2b   :  { %691 = vmatprep.mubr.bf16.mxu0 %v767_v23 }
  0x32   :  { %692 = vmatmul.mubr.bf16.gmra.mxu0 %v768_v24 }
  0x33   :  { %695 = vmatprep.mubr.bf16.mxu0 %v769_v25 }
  0x3a   :  { %696 = vmatmul.mubr.bf16.gmra.mxu0 %v770_v26 }
  0xe2   :  { %v685_v32 = vpop.f32.mrf.mxu0 }
  0xe3   :  { %v936_v38 = vadd.f32 %v685_v32, %v601_v33 }
  0xe4   :  { %v190_v34 = vpop.f32.mrf.mxu0 }
  0xe5   :  { %v932_v35 = vadd.f32 %v601_v33, %v190_v34  ;;  %v255_v44 = vmul.f32 %v936_v38, %v936_v38 }
  0xe6   :  { %v686_v36 = vpop.f32.mrf.mxu0 }
  0xe7   :  { %v253_v37 = vmul.f32 %v932_v35, %v932_v35  ;;  %v940_v42 = vadd.f32 %v686_v36, %v601_v33 }
  0xe8   :  { %v193_v39 = vpop.f32.mrf.mxu0 }
  0xe9   :  { %v938_v40 = vadd.f32 %v601_v33, %v193_v39  ;;  %731 = vmatprep.mubr.f32.mxu1 %v253_v37  ;;  %v256_v48 = vmul.f32 %v940_v42, %v940_v42 }
  0xea   :  { %v689_v41 = vpop.f32.mrf.mxu0 }
  0xeb   :  { %v254_v43 = vmul.f32 %v938_v40, %v938_v40  ;;  %v952_v50 = vadd.f32 %v689_v41, %v601_v33 }
  0xec   :  { %v206_v45 = vpop.f32.mrf.mxu0 }
  0xed   :  { %v946_v46 = vadd.f32 %v601_v33, %v206_v45  ;;  %732 = vmatmul.mubr.f32.vlgmr.msra.gmra.mxu1 %v254_v43  ;;  %v259_v56 = vmul.f32 %v952_v50, %v952_v50 }
  0xee   :  { %v690_v47 = vpop.f32.mrf.mxu0  ;;  %734 = vmatprep.mubr.f32.mxu1 %v255_v44 }
  0xef   :  { %v257_v49 = vmul.f32 %v946_v46, %v946_v46  ;;  %v956_v54 = vadd.f32 %v690_v47, %v601_v33 }
  0xf0   :  { %v209_v51 = vpop.f32.mrf.mxu0 }
  0xf1   :  { %v954_v52 = vadd.f32 %v601_v33, %v209_v51  ;;  %735 = vmatmul.mubr.f32.gmra.mxu1 %v256_v48  ;;  %v260_v60 = vmul.f32 %v956_v54, %v956_v54 }
  0xf2   :  { %v693_v53 = vpop.f32.mrf.mxu0  ;;  %737 = vmatprep.mubr.f32.mxu1 %v257_v49 }
  0xf3   :  { %v258_v55 = vmul.f32 %v954_v52, %v954_v52  ;;  %v968_v62 = vadd.f32 %v693_v53, %v601_v33 }
  0xf4   :  { %v222_v57 = vpop.f32.mrf.mxu0 }
  0xf5   :  { %v962_v58 = vadd.f32 %v601_v33, %v222_v57  ;;  %738 = vmatmul.mubr.f32.gmra.mxu1 %v258_v55  ;;  %v263_v4 = vmul.f32 %v968_v62, %v968_v62 }
  0xf6   :  { %v694_v59 = vpop.f32.mrf.mxu0  ;;  %740 = vmatprep.mubr.f32.mxu1 %v259_v56 }
  0xf7   :  { %v261_v61 = vmul.f32 %v962_v58, %v962_v58  ;;  %v972_v2 = vadd.f32 %v694_v59, %v601_v33 }
  0xf8   :  { %v225_v63 = vpop.f32.mrf.mxu0 }
  0xf9   :  { %v970_v0 = vadd.f32 %v601_v33, %v225_v63  ;;  %741 = vmatmul.mubr.f32.gmra.mxu1 %v260_v60  ;;  %v264_v8 = vmul.f32 %v972_v2, %v972_v2 }
  0xfa   :  { %v697_v1 = vpop.f32.mrf.mxu0  ;;  %743 = vmatprep.mubr.f32.mxu1 %v261_v61 }
  0xfb   :  { %v262_v3 = vmul.f32 %v970_v0, %v970_v0  ;;  %v984_v10 = vadd.f32 %v697_v1, %v601_v33 }
  0xfc   :  { %v238_v5 = vpop.f32.mrf.mxu0 }
  0xfd   :  { %v978_v6 = vadd.f32 %v601_v33, %v238_v5  ;;  %744 = vmatmul.mubr.f32.gmra.mxu1 %v262_v3  ;;  %v267_v15 = vmul.f32 %v984_v10, %v984_v10 }
  0xfe   :  { %v698_v7 = vpop.f32.mrf.mxu0  ;;  %746 = vmatprep.mubr.f32.mxu1 %v263_v4 }
  0xff   :  { %v265_v9 = vmul.f32 %v978_v6, %v978_v6  ;;  %v988_v13 = vadd.f32 %v698_v7, %v601_v33 }
 0x100   :  { %v241_v11 = vpop.f32.mrf.mxu0 }
 0x101   :  { %v986_v12 = vadd.f32 %v601_v33, %v241_v11  ;;  %747 = vmatmul.mubr.f32.gmra.mxu1 %v264_v8  ;;  %v268_v16 = vmul.f32 %v988_v13, %v988_v13 }
 0x102   :  { %749 = vmatprep.mubr.f32.mxu1 %v265_v9 }
 0x103   :  { %v266_v14 = vmul.f32 %v986_v12, %v986_v12 }
 0x105   :  { %750 = vmatmul.mubr.f32.gmra.mxu1 %v266_v14 }
 0x106   :  { %752 = vmatprep.mubr.f32.mxu1 %v267_v15 }
 0x109   :  { %753 = vmatmul.mubr.f32.gmra.mxu1 %v268_v16 }
 0x1ad   :  { %v733_v18 = vpop.f32.mrf.mxu1 }
 0x1ae   :  { %v364_v19 = vadd.f32 %v733_v18, %v999_v17 }
 0x1af   :  { %v358_v20 = vpop.f32.mrf.mxu1 }
 0x1b0   :  { %v438_v21 = vmax.f32 %v364_v19, 1e-09  ;;  %v359_v22 = vadd.f32 %v999_v17, %v358_v20 }
 0x1b1   :  { %v736_v23 = vpop.f32.mrf.mxu1 }
 0x1b2   :  { %771 = vrsqrt.f32 %v438_v21  ;;  %v437_v24 = vmax.f32 %v359_v22, 1e-09  ;;  %v374_v25 = vadd.f32 %v736_v23, %v999_v17  ;;  %vm462_vm0 = vcmp.eq.f32.partialorder %v438_v21, inf }
 0x1b3   :  { %v368_v26 = vpop.f32.mrf.mxu1  ;;  %vm464_vm1 = vcmp.eq.f32.partialorder %v438_v21, 0.0  ;;  %v465_v53 = vand.u32 2147483648, %v438_v21 }
 0x1b4   :  { %v369_v27 = vadd.f32 %v999_v17, %v368_v26  ;;  %773 = vrsqrt.f32 %v437_v24  ;;  %v1005_v29 = vmax.f32 %v374_v25, 1e-09  ;;  %vm455_vm2 = vcmp.eq.f32.partialorder %v437_v24, inf }
 0x1b5   :  { %v739_v28 = vpop.f32.mrf.mxu1  ;;  %vm457_vm3 = vcmp.eq.f32.partialorder %v437_v24, 0.0  ;;  %v458_v4 = vand.u32 2147483648, %v437_v24 }
 0x1b6   :  { %v1007_v30 = vmax.f32 %v369_v27, 1e-09  ;;  %v384_v31 = vadd.f32 %v739_v28, %v999_v17  ;;  %775 = vrsqrt.f32 %v1005_v29  ;;  %vm476_vm4 = vcmp.eq.f32.partialorder %v1005_v29, inf }
 0x1b7   :  { %v378_v32 = vpop.f32.mrf.mxu1  ;;  %vm478_vm5 = vcmp.eq.f32.partialorder %v1005_v29, 0.0  ;;  %v479_v11 = vand.u32 2147483648, %v1005_v29 }
 0x1b8   :  { %777 = vrsqrt.f32 %v1007_v30  ;;  %v1012_v34 = vmax.f32 %v384_v31, 1e-09  ;;  %v379_v36 = vadd.f32 %v999_v17, %v378_v32  ;;  %vm469_vm6 = vcmp.eq.f32.partialorder %v1007_v30, inf }
 0x1b9   :  { %v742_v33 = vpop.f32.mrf.mxu1  ;;  %vm471_vm7 = vcmp.eq.f32.partialorder %v1007_v30, 0.0  ;;  %v472_v22 = vand.u32 2147483648, %v1007_v30 }
 0x1ba   :  { %v394_v37 = vadd.f32 %v742_v33, %v999_v17  ;;  %779 = vrsqrt.f32 %v1012_v34  ;;  %v1017_v41 = vmax.f32 %v379_v36, 1e-09  ;;  %vm490_vm8 = vcmp.eq.f32.partialorder %v1012_v34, inf }
 0x1bb   :  { %v388_v39 = vpop.f32.mrf.mxu1  ;;  %vm492_vm9 = vcmp.eq.f32.partialorder %v1012_v34, 0.0  ;;  %v493_v36 = vand.u32 2147483648, %v1012_v34 }
 0x1bc   :  { %v1019_v43 = vmax.f32 %v394_v37, 1e-09  ;;  %v389_v44 = vadd.f32 %v999_v17, %v388_v39  ;;  %781 = vrsqrt.f32 %v1017_v41  ;;  %vm483_vm10 = vcmp.eq.f32.partialorder %v1017_v41, inf }
 0x1bd   :  { %v745_v45 = vpop.f32.mrf.mxu1  ;;  %vm485_vm11 = vcmp.eq.f32.partialorder %v1017_v41, 0.0 }
 0x1be   :  { %v404_v47 = vadd.f32 %v745_v45, %v999_v17  ;;  %783 = vrsqrt.f32 %v1019_v43  ;;  %v1025_v55 = vmax.f32 %v389_v44, 1e-09  ;;  %vm504_vm12 = vcmp.eq.f32.partialorder %v1019_v43, inf }
 0x1bf   :  { %v772_v48 = vpop.eup %771  ;;  %v398_v49 = vpop.f32.mrf.mxu1  ;;  %vm506_vm13 = vcmp.eq.f32.partialorder %v1019_v43, 0.0 }
 0x1c0   :  { %v461_v51 = vmul.f32 %v772_v48, %v438_v21  ;;  %v1027_v56 = vmax.f32 %v404_v47, 1e-09  ;;  %v399_v61 = vadd.f32 %v999_v17, %v398_v49  ;;  %785 = vrsqrt.f32 %v1025_v55 }
 0x1c1   :  { %v748_v57 = vpop.f32.mrf.mxu1  ;;  %v774_v59 = vpop.eup %773  ;;  %vm497_vm14 = vcmp.eq.f32.partialorder %v1025_v55, inf  ;;  %vm499_vm15 = vcmp.eq.f32.partialorder %v1025_v55, 0.0 }
 0x1c2   :  { %v463_v60 = vsel %vm462_vm0, %v438_v21, %v461_v51  ;;  %v414_v63 = vadd.f32 %v748_v57, %v999_v17  ;;  %v454_v3 = vmul.f32 %v774_v59, %v437_v24  ;;  %787 = vrsqrt.f32 %v1027_v56 }
 0x1c3   :  { %v466_v1 = vsel %vm464_vm1, %v465_v53, %v463_v60  ;;  %v408_v5 = vpop.f32.mrf.mxu1  ;;  %v776_v8 = vpop.eup %775  ;;  %v1045_v18 = vmax.f32 %v399_v61, 1e-09  ;;  %vm518_vm0 = vcmp.eq.f32.partialorder %v1027_v56, inf  ;;  %vm520_vm1 = vcmp.eq.f32.partialorder %v1027_v56, 0.0 }
 0x1c4   :  { %v566_v7 = vmul.f32 %v466_v1, %v938_v40  ;;  %v456_v9 = vsel %vm455_vm2, %v437_v24, %v454_v3  ;;  %v475_v16 = vmul.f32 %v776_v8, %v1005_v29  ;;  %v1047_v19 = vmax.f32 %v414_v63, 1e-09 }
 0x1c5   :  { %v751_v14 = vpop.f32.mrf.mxu1  ;;  %v778_v15 = vpop.eup %777  ;;  %v459_v40 = vsel %vm457_vm3, %v458_v4, %v456_v9  ;;  %v409_v23 = vadd.f32 %v999_v17, %v408_v5  ;;  %789 = vrsqrt.f32 %v1045_v18  ;;  %v500_v9 = vand.u32 2147483648, %v1025_v55 }
 0x1c6   :  { %582 = vst [vmem:[%s1212_s5 + $0x8] sm:$0xff] %v566_v7  ;;  %v565_v20 = vmul.f32 %v459_v40, %v932_v35  ;;  %v468_v21 = vmul.f32 %v778_v15, %v1007_v30  ;;  %v477_v24 = vsel %vm476_vm4, %v1005_v29, %v475_v16  ;;  %v424_v26 = vadd.f32 %v751_v14, %v999_v17 }
 0x1c7   :  { %v418_v25 = vpop.f32.mrf.mxu1  ;;  %v780_v27 = vpop.eup %779  ;;  %v480_v35 = vsel %vm478_vm5, %v479_v11, %v477_v24  ;;  %791 = vrsqrt.f32 %v1047_v19  ;;  %v1077_v39 = vmax.f32 %v409_v23, 1e-09  ;;  %v521_v11 = vand.u32 2147483648, %v1027_v56 }
 0x1c8   :  { %581 = vst [vmem:[%s1212_s5] sm:$0xff] %v565_v20  ;;  %v470_v28 = vsel %vm469_vm6, %v1007_v30, %v468_v21  ;;  %v568_v31 = vmul.f32 %v480_v35, %v940_v42  ;;  %v489_v33 = vmul.f32 %v780_v27, %v1012_v34  ;;  %v486_v30 = vand.u32 2147483648, %v1017_v41 }
 0x1c9   :  { %v473_v32 = vsel %vm471_vm7, %v472_v22, %v470_v28  ;;  %v754_v37 = vpop.f32.mrf.mxu1  ;;  %v782_v44 = vpop.eup %781  ;;  %v1086_v45 = vmax.f32 %v424_v26, 1e-09  ;;  %793 = vrsqrt.f32 %v1077_v39  ;;  %vm511_vm2 = vcmp.eq.f32.partialorder %v1045_v18, inf }
 0x1ca   :  { %v567_v29 = vmul.f32 %v473_v32, %v936_v38  ;;  %584 = vst [vmem:[%s1212_s5 + $0x18] sm:$0xff] %v568_v31  ;;  %v491_v42 = vsel %vm490_vm8, %v1012_v34, %v489_v33  ;;  %v419_v38 = vadd.f32 %v999_v17, %v418_v25  ;;  %v482_v49 = vmul.f32 %v782_v44, %v1017_v41 }
 0x1cb   :  { %v784_v47 = vpop.eup %783  ;;  %v494_v48 = vsel %vm492_vm9, %v493_v36, %v491_v42  ;;  %v434_v51 = vadd.f32 %v754_v37, %v999_v17  ;;  %v507_v34 = vand.u32 2147483648, %v1019_v43  ;;  %795 = vrsqrt.f32 %v1086_v45 }
 0x1cc   :  { %583 = vst [vmem:[%s1212_s5 + $0x10] sm:$0xff] %v567_v29  ;;  %v570_v53 = vmul.f32 %v494_v48, %v954_v52  ;;  %v503_v57 = vmul.f32 %v784_v47, %v1019_v43  ;;  %v484_v59 = vsel %vm483_vm10, %v1017_v41, %v482_v49  ;;  %v1114_v63 = vmax.f32 %v419_v38, 1e-09 }
 0x1cd   :  { %v786_v60 = vpop.eup %785  ;;  %v487_v52 = vsel %vm485_vm11, %v486_v30, %v484_v59  ;;  %v1118_v7 = vmax.f32 %v434_v51, 1e-09  ;;  %vm513_vm3 = vcmp.eq.f32.partialorder %v1045_v18, 0.0  ;;  %vm532_vm4 = vcmp.eq.f32.partialorder %v1047_v19, inf }
 0x1ce   :  { %586 = vst [vmem:[%s1212_s5 + $0x28] sm:$0xff] %v570_v53  ;;  %v505_v61 = vsel %vm504_vm12, %v1019_v43, %v503_v57  ;;  %v569_v3 = vmul.f32 %v487_v52, %v946_v46  ;;  %v496_v5 = vmul.f32 %v786_v60, %v1025_v55  ;;  %797 = vrsqrt.f32 %v1114_v63  ;;  %v428_v43 = vpop.f32.mrf.mxu1 }
 0x1cf   :  { %v788_v1 = vpop.eup %787  ;;  %v508_v4 = vsel %vm506_vm13, %v507_v34, %v505_v61  ;;  %799 = vrsqrt.f32 %v1118_v7  ;;  %v429_v20 = vadd.f32 %v999_v17, %v428_v43  ;;  %vm534_vm5 = vcmp.eq.f32.partialorder %v1047_v19, 0.0 }
 0x1d0   :  { %v572_v8 = vmul.f32 %v508_v4, %v956_v54  ;;  %v517_v41 = vmul.f32 %v788_v1, %v1027_v56  ;;  %585 = vst [vmem:[%s1212_s5 + $0x20] sm:$0xff] %v569_v3  ;;  %v498_v46 = vsel %vm497_vm14, %v1025_v55, %v496_v5  ;;  %v514_v55 = vand.u32 2147483648, %v1045_v18 }
 0x1d1   :  { %v501_v54 = vsel %vm499_vm15, %v500_v9, %v498_v46  ;;  %v451_v25 = vmax.f32 %v429_v20, 1e-09  ;;  %vm525_vm6 = vcmp.eq.f32.partialorder %v1077_v39, inf  ;;  %vm527_vm7 = vcmp.eq.f32.partialorder %v1077_v39, 0.0 }
 0x1d2   :  { %588 = vst [vmem:[%s1212_s5 + $0x38] sm:$0xff] %v572_v8  ;;  %v519_v14 = vsel %vm518_vm0, %v1027_v56, %v517_v41  ;;  %v790_v15 = vpop.eup %789  ;;  %v571_v40 = vmul.f32 %v501_v54, %v952_v50  ;;  %vm546_vm8 = vcmp.eq.f32.partialorder %v1086_v45, inf  ;;  %v549_v33 = vand.u32 2147483648, %v1086_v45 }
 0x1d3   :  { %v522_v16 = vsel %vm520_vm1, %v521_v11, %v519_v14  ;;  %v510_v23 = vmul.f32 %v790_v15, %v1045_v18  ;;  %801 = vrsqrt.f32 %v451_v25  ;;  %vm548_vm9 = vcmp.eq.f32.partialorder %v1086_v45, 0.0 }
 0x1d4   :  { %v792_v21 = vpop.eup %791  ;;  %v574_v22 = vmul.f32 %v522_v16, %v970_v0  ;;  %587 = vst [vmem:[%s1212_s5 + $0x30] sm:$0xff] %v571_v40  ;;  %v535_v0 = vand.u32 2147483648, %v1047_v19  ;;  %vm539_vm10 = vcmp.eq.f32.partialorder %v1114_v63, inf  ;;  %v542_v38 = vand.u32 2147483648, %v1114_v63 }
 0x1d5   :  { %v531_v56 = vmul.f32 %v792_v21, %v1047_v19  ;;  %v512_v50 = vsel %vm511_vm2, %v1045_v18, %v510_v23  ;;  %v528_v18 = vand.u32 2147483648, %v1077_v39  ;;  %vm541_vm11 = vcmp.eq.f32.partialorder %v1114_v63, 0.0 }
 0x1d6   :  { %590 = vst [vmem:[%s1212_s5 + $0x48] sm:$0xff] %v574_v22  ;;  %v515_v17 = vsel %vm513_vm3, %v514_v55, %v512_v50  ;;  %v794_v26 = vpop.eup %793  ;;  %vm560_vm12 = vcmp.eq.f32.partialorder %v1118_v7, inf  ;;  %vm562_vm13 = vcmp.eq.f32.partialorder %v1118_v7, 0.0  ;;  %vm553_vm14 = vcmp.eq.f32.partialorder %v451_v25, inf }
 0x1d7   :  { %v533_v24 = vsel %vm532_vm4, %v1047_v19, %v531_v56  ;;  %v573_v27 = vmul.f32 %v515_v17, %v962_v58  ;;  %v524_v31 = vmul.f32 %v794_v26, %v1077_v39  ;;  %v556_v34 = vand.u32 2147483648, %v451_v25 }
 0x1d8   :  { %v536_v35 = vsel %vm534_vm5, %v535_v0, %v533_v24  ;;  %v796_v32 = vpop.eup %795  ;;  %vm555_vm15 = vcmp.eq.f32.partialorder %v451_v25, 0.0 }
 0x1d9   :  { %v576_v28 = vmul.f32 %v536_v35, %v972_v2  ;;  %589 = vst [vmem:[%s1212_s5 + $0x40] sm:$0xff] %v573_v27  ;;  %v526_v58 = vsel %vm525_vm6, %v1077_v39, %v524_v31  ;;  %v545_v2 = vmul.f32 %v796_v32, %v1086_v45 }
 0x1da   :  { %v529_v19 = vsel %vm527_vm7, %v528_v18, %v526_v58 }
 0x1db   :  { %592 = vst [vmem:[%s1212_s5 + $0x58] sm:$0xff] %v576_v28  ;;  %v798_v36 = vpop.eup %797  ;;  %v575_v37 = vmul.f32 %v529_v19, %v968_v62  ;;  %v547_v29 = vsel %vm546_vm8, %v1086_v45, %v545_v2  ;;  %v563_v45 = vand.u32 2147483648, %v1118_v7 }
 0x1dc   :  { %v800_v44 = vpop.eup %799  ;;  %v550_v42 = vsel %vm548_vm9, %v549_v33, %v547_v29  ;;  %v538_v30 = vmul.f32 %v798_v36, %v1114_v63 }
 0x1dd   :  { %591 = vst [vmem:[%s1212_s5 + $0x50] sm:$0xff] %v575_v37  ;;  %v578_v39 = vmul.f32 %v550_v42, %v986_v12  ;;  %v559_v62 = vmul.f32 %v800_v44, %v1118_v7 }
 0x1de   :  { %v540_v47 = vsel %vm539_vm10, %v1114_v63, %v538_v30 }
 0x1df   :  { %594 = vst [vmem:[%s1212_s5 + $0x68] sm:$0xff] %v578_v39  ;;  %v543_v48 = vsel %vm541_vm11, %v542_v38, %v540_v47  ;;  %v561_v12 = vsel %vm560_vm12, %v1118_v7, %v559_v62 }
 0x1e0   :  { %v577_v49 = vmul.f32 %v543_v48, %v978_v6  ;;  %v564_v51 = vsel %vm562_vm13, %v563_v45, %v561_v12  ;;  %v802_v57 = vpop.eup %801 }
 0x1e1   :  { %v580_v53 = vmul.f32 %v564_v51, %v988_v13  ;;  %v552_v59 = vmul.f32 %v802_v57, %v451_v25 }
 0x1e2   :  { %593 = vst [vmem:[%s1212_s5 + $0x60] sm:$0xff] %v577_v49 }
 0x1e3   :  { %596 = vst [vmem:[%s1212_s5 + $0x78] sm:$0xff] %v580_v53  ;;  %v554_v60 = vsel %vm553_vm14, %v451_v25, %v552_v59 }
 0x1e4   :  { %v557_v52 = vsel %vm555_vm15, %v556_v34, %v554_v60 }
 0x1e5   :  { %v579_v6 = vmul.f32 %v557_v52, %v984_v10 }
 0x1e7   :  { %595 = vst [vmem:[%s1212_s5 + $0x70] sm:$0xff] %v579_v6 }

// kernel: image_compressor_forward.32
= control target key start
LH: loop header
LB: loop body
LE: loop exit
PB: predicated region body
PF: predicated region fallthrough
CT: control target
= control target key end

     0   :  { %s1708_s1 = inlined_call_operand.vmem [shape: bf16[384,128], index: 1, kind: input, shape index: {}]   ;;  %s1709_s0 = inlined_call_operand.vmem [shape: bf16[128,384], index: 0, kind: input, shape index: {}]   ;;  %s1710_s3 = inlined_call_operand.vmem [shape: f32[128,128], index: 3, kind: input, shape index: {}]   ;;  %s1711_s2 = inlined_call_operand.vmem [shape: f32[1,128], index: 2, kind: input, shape index: {}]   ;;  %s1712_s4 = inlined_call_operand.vmem [shape: f32[1,128], index: 4, kind: input, shape index: {}]   ;;  %s1713_s5 = inlined_call_operand.vmem [shape: f32[128,128], index: 5, kind: output, shape index: {}]  }
   0x1   :  { %v1172_v0 = vld [vmem:[%s1708_s1 + $0x78] sm:$0xff]   ;;  %v1174_v2 = vld [vmem:[%s1708_s1 + $0x70] sm:$0xff]   ;;  %v1177_v5 = vld [vmem:[%s1708_s1 + $0x68] sm:$0xff]  }
   0x2   :  { %v1173_v1 = vld [vmem:[%s1708_s1 + $0x38] sm:$0xff]   ;;  %972 = vmatprep.subr.bf16.mxu0 %v1172_v0  ;;  %v1176_v4 = vld [vmem:[%s1708_s1 + $0x30] sm:$0xff]   ;;  %v1179_v7 = vld [vmem:[%s1708_s1 + $0x28] sm:$0xff]  }
   0x3   :  { %973 = vmatpush3.bf16.msra.mxu0 %v1173_v1  ;;  %v1175_v3 = vld [vmem:[%s1708_s1 + $0xb8] sm:$0xff]   ;;  %v1178_v6 = vld [vmem:[%s1708_s1 + $0xb0] sm:$0xff]   ;;  %v1180_v8 = vld [vmem:[%s1708_s1 + $0x60] sm:$0xff]  }
   0x4   :  { %974 = vmatprep.subr.bf16.mxu0 %v1174_v2  ;;  %1084 = vmatprep.subr.bf16.mxu1 %v1175_v3  ;;  %v1181_v9 = vld [vmem:[%s1708_s1 + $0xa8] sm:$0xff]   ;;  %v1182_v10 = vld [vmem:[%s1708_s1 + $0x20] sm:$0xff]   ;;  %v1183_v11 = vld [vmem:[%s1708_s1 + $0x58] sm:$0xff]  }
   0x5   :  { %1085 = vmatpush3.bf16.msra.mxu1 %v1175_v3  ;;  %v1184_v12 = vld [vmem:[%s1708_s1 + $0xa0] sm:$0xff]   ;;  %v1185_v13 = vld [vmem:[%s1708_s1 + $0x18] sm:$0xff]   ;;  %v1186_v15 = vld [vmem:[%s1708_s1 + $0x50] sm:$0xff]  }
   0x6   :  { %1086 = vmatprep.subr.bf16.mxu1 %v1178_v6  ;;  %v1187_v14 = vld [vmem:[%s1708_s1 + $0x98] sm:$0xff]   ;;  %v1188_v16 = vld [vmem:[%s1708_s1 + $0x10] sm:$0xff]   ;;  %v1189_v18 = vld [vmem:[%s1708_s1 + $0x48] sm:$0xff]  }
   0x7   :  { %975 = vmatpush3.bf16.msra.mxu0 %v1176_v4  ;;  %v1190_v17 = vld [vmem:[%s1708_s1 + $0x90] sm:$0xff]   ;;  %v1191_v19 = vld [vmem:[%s1708_s1 + $0x8] sm:$0xff]   ;;  %v1192_v20 = vld [vmem:[%s1708_s1 + $0x40] sm:$0xff]  }
   0x8   :  { %976 = vmatprep.subr.bf16.mxu0 %v1177_v5  ;;  %v1193_v21 = vld [vmem:[%s1708_s1 + $0x88] sm:$0xff]   ;;  %v1197_v22 = vld [vmem:[%s1709_s0 + $0x4] ss:$12 sps:$4 sm:$0xff]   ;;  %v1204_v31 = vld [vmem:[%s1709_s0 + $0x34] ss:$12 sps:$4 sm:$0xff]  }
   0x9   :  { %1087 = vmatpush3.bf16.msra.mxu1 %v1178_v6  ;;  %v1194_v23 = vld [vmem:[%s1708_s1] sm:$0xff]   ;;  %412 = vmatprep.mubr.bf16.mxu0 %v1197_v22  ;;  %v1199_v24 = vld [vmem:[%s1709_s0 + $0x8] ss:$12 sps:$4 sm:$0xff]   ;;  %v1208_v32 = vld [vmem:[%s1709_s0 + $0x50] ss:$12 sps:$4 sm:$0xff]  }
   0xa   :  { %1088 = vmatprep.subr.bf16.mxu1 %v1181_v9  ;;  %v1198_v25 = vld [vmem:[%s1708_s1 + $0x80] sm:$0xff]   ;;  %1100 = vmatprep.mubr.bf16.mxu1 %v1199_v24  ;;  %v1201_v27 = vld [vmem:[%s1709_s0 + $0x1c] ss:$12 sps:$4 sm:$0xff]   ;;  %v604_v35 = vld [vmem:[%s1710_s3 + $0x70] sm:$0xff] }
   0xb   :  { %977 = vmatpush3.bf16.msra.mxu0 %v1179_v7  ;;  %v1195_v26 = vld [vmem:[%s1709_s0] ss:$12 sps:$4 sm:$0xff]   ;;  %v1207_v29 = vld [vmem:[%s1709_s0 + $0x38] ss:$12 sps:$4 sm:$0xff]   ;;  %v1215_v33 = vld [vmem:[%s1709_s0 + $0x68] ss:$12 sps:$4 sm:$0xff]  }
   0xc   :  { %978 = vmatprep.subr.bf16.mxu0 %v1180_v8  ;;  %v1200_v28 = vld [vmem:[%s1709_s0 + $0x20] ss:$12 sps:$4 sm:$0xff]   ;;  %v1203_v30 = vld [vmem:[%s1709_s0 + $0x18] ss:$12 sps:$4 sm:$0xff]   ;;  %v1206_v37 = vld [vmem:[%s1709_s0 + $0x30] ss:$12 sps:$4 sm:$0xff]  }
   0xd   :  { %1089 = vmatpush3.bf16.msra.mxu1 %v1181_v9  ;;  %v605_v34 = vld [vmem:[%s1710_s3 + $0x78] sm:$0xff]  ;;  %v603_v36 = vld [vmem:[%s1710_s3 + $0x68] sm:$0xff]  ;;  %v602_v38 = vld [vmem:[%s1710_s3 + $0x60] sm:$0xff] }
   0xe   :  { %1090 = vmatprep.subr.bf16.mxu1 %v1184_v12  ;;  %v1209_v39 = vld [vmem:[%s1709_s0 + $0x4c] ss:$12 sps:$4 sm:$0xff]   ;;  %v600_v43 = vld [vmem:[%s1710_s3 + $0x50] sm:$0xff]  ;;  %v598_v46 = vld [vmem:[%s1710_s3 + $0x40] sm:$0xff] }
   0xf   :  { %979 = vmatpush3.bf16.msra.mxu0 %v1182_v10  ;;  %v601_v40 = vld [vmem:[%s1710_s3 + $0x58] sm:$0xff]  ;;  %v1216_v41 = vld [vmem:[%s1709_s0 + $0x80] ss:$12 sps:$4 sm:$0xff]   ;;  %v1211_v45 = vld [vmem:[%s1709_s0 + $0x48] ss:$12 sps:$4 sm:$0xff]  }
  0x10   :  { %980 = vmatprep.subr.bf16.mxu0 %v1183_v11  ;;  %v1223_v42 = vld [vmem:[%s1709_s0 + $0x98] ss:$12 sps:$4 sm:$0xff]   ;;  %v599_v44 = vld [vmem:[%s1710_s3 + $0x48] sm:$0xff]  ;;  %v1224_v49 = vld [vmem:[%s1709_s0 + $0xb0] ss:$12 sps:$4 sm:$0xff]  }
  0x11   :  { %1091 = vmatpush3.bf16.msra.mxu1 %v1184_v12  ;;  %v1212_v47 = vld [vmem:[%s1709_s0 + $0x64] ss:$12 sps:$4 sm:$0xff]   ;;  %v597_v48 = vld [vmem:[%s1710_s3 + $0x38] sm:$0xff]  ;;  %v1214_v50 = vld [vmem:[%s1709_s0 + $0x60] ss:$12 sps:$4 sm:$0xff]  }
  0x12   :  { %1092 = vmatprep.subr.bf16.mxu1 %v1187_v14  ;;  %v1217_v51 = vld [vmem:[%s1709_s0 + $0x7c] ss:$12 sps:$4 sm:$0xff]   ;;  %v1219_v52 = vld [vmem:[%s1709_s0 + $0x78] ss:$12 sps:$4 sm:$0xff]   ;;  %v1220_v53 = vld [vmem:[%s1709_s0 + $0x94] ss:$12 sps:$4 sm:$0xff]  }
  0x13   :  { %981 = vmatpush3.bf16.msra.mxu0 %v1185_v13  ;;  %v1222_v54 = vld [vmem:[%s1709_s0 + $0x90] ss:$12 sps:$4 sm:$0xff]   ;;  %v1225_v55 = vld [vmem:[%s1709_s0 + $0xac] ss:$12 sps:$4 sm:$0xff]   ;;  %v1227_v56 = vld [vmem:[%s1709_s0 + $0xa8] ss:$12 sps:$4 sm:$0xff]  }
  0x14   :  { %982 = vmatprep.subr.bf16.mxu0 %v1186_v15  ;;  %v596_v57 = vld [vmem:[%s1710_s3 + $0x30] sm:$0xff]  ;;  %v595_v58 = vld [vmem:[%s1710_s3 + $0x28] sm:$0xff]  ;;  %v594_v59 = vld [vmem:[%s1710_s3 + $0x20] sm:$0xff] }
  0x15   :  { %1093 = vmatpush3.bf16.msra.mxu1 %v1187_v14  ;;  %v593_v60 = vld [vmem:[%s1710_s3 + $0x18] sm:$0xff]  ;;  %v592_v61 = vld [vmem:[%s1710_s3 + $0x10] sm:$0xff]  ;;  %v591_v62 = vld [vmem:[%s1710_s3 + $0x8] sm:$0xff] }
  0x16   :  { %1094 = vmatprep.subr.bf16.mxu1 %v1190_v17  ;;  %v590_v63 = vld [vmem:[%s1710_s3] sm:$0xff] }
  0x17   :  { %983 = vmatpush3.bf16.msra.mxu0 %v1188_v16  ;;  %v1485_v2 = vld [vmem:[%s1711_s2] ss:$0 sm:$0xff] }
  0x18   :  { %984 = vmatprep.subr.bf16.mxu0 %v1189_v18 }
  0x19   :  { %1095 = vmatpush3.bf16.msra.mxu1 %v1190_v17 }
  0x1a   :  { %1096 = vmatprep.subr.bf16.mxu1 %v1193_v21 }
  0x1b   :  { %985 = vmatpush3.bf16.msra.mxu0 %v1191_v19 }
  0x1c   :  { %986 = vmatprep.subr.bf16.mxu0 %v1192_v20 }
  0x1d   :  { %1097 = vmatpush3.bf16.msra.mxu1 %v1193_v21 }
  0x1e   :  { %1098 = vmatprep.subr.bf16.mxu1 %v1198_v25 }
  0x1f   :  { %987 = vmatpush3.bf16.msra.mxu0 %v1194_v23 }
  0x21   :  { %1099 = vmatpush3.bf16.msra.mxu1 %v1198_v25 }
  0x22   :  { %413 = vmatmul.mubr.bf16.vlgmr.msra.gmra.mxu0 %v1195_v26  ;;  %1116 = vmatprep.subr.mxu1 %v605_v34 }
  0x23   :  { %420 = vmatprep.mubr.bf16.mxu0 %v1201_v27 }
  0x24   :  { %1101 = vmatmul.mubr.bf16.vlgmr.msra.gmra.mxu1 %v1200_v28 }
  0x25   :  { %1104 = vmatprep.mubr.bf16.mxu1 %v1207_v29  ;;  %1117 = vmatpush3.msra.mxu1 %v605_v34 }
  0x26   :  { %1118 = vmatprep.subr.mxu1 %v604_v35 }
  0x27   :  { %1119 = vmatpush3.msra.mxu1 %v604_v35 }
  0x28   :  { %1120 = vmatprep.subr.mxu1 %v603_v36 }
  0x29   :  { %1121 = vmatpush3.msra.mxu1 %v603_v36 }
  0x2a   :  { %421 = vmatmul.mubr.bf16.gmra.mxu0 %v1203_v30  ;;  %1122 = vmatprep.subr.mxu1 %v602_v38 }
  0x2b   :  { %428 = vmatprep.mubr.bf16.mxu0 %v1204_v31  ;;  %1123 = vmatpush3.msra.mxu1 %v602_v38 }
  0x2c   :  { %1105 = vmatmul.mubr.bf16.gmra.mxu1 %v1208_v32  ;;  %1124 = vmatprep.subr.mxu1 %v601_v40 }
  0x2d   :  { %1108 = vmatprep.mubr.bf16.mxu1 %v1215_v33  ;;  %1125 = vmatpush3.msra.mxu1 %v601_v40 }
  0x2e   :  { %1126 = vmatprep.subr.mxu1 %v600_v43 }
  0x2f   :  { %1127 = vmatpush3.msra.mxu1 %v600_v43 }
  0x30   :  { %1128 = vmatprep.subr.mxu1 %v599_v44 }
  0x31   :  { %1129 = vmatpush3.msra.mxu1 %v599_v44 }
  0x32   :  { %429 = vmatmul.mubr.bf16.gmra.mxu0 %v1206_v37  ;;  %1130 = vmatprep.subr.mxu1 %v598_v46 }
  0x33   :  { %436 = vmatprep.mubr.bf16.mxu0 %v1209_v39  ;;  %1131 = vmatpush3.msra.mxu1 %v598_v46 }
  0x34   :  { %1109 = vmatmul.mubr.bf16.gmra.mxu1 %v1216_v41  ;;  %1132 = vmatprep.subr.mxu1 %v597_v48 }
  0x35   :  { %1112 = vmatprep.mubr.bf16.mxu1 %v1223_v42  ;;  %1133 = vmatpush3.msra.mxu1 %v597_v48 }
  0x36   :  { %1134 = vmatprep.subr.mxu1 %v596_v57 }
  0x37   :  { %1135 = vmatpush3.msra.mxu1 %v596_v57 }
  0x38   :  { %1136 = vmatprep.subr.mxu1 %v595_v58 }
  0x39   :  { %1137 = vmatpush3.msra.mxu1 %v595_v58 }
  0x3a   :  { %437 = vmatmul.mubr.bf16.gmra.mxu0 %v1211_v45  ;;  %1138 = vmatprep.subr.mxu1 %v594_v59 }
  0x3b   :  { %444 = vmatprep.mubr.bf16.mxu0 %v1212_v47  ;;  %1139 = vmatpush3.msra.mxu1 %v594_v59 }
  0x3c   :  { %1113 = vmatmul.mubr.bf16.gmra.mxu1 %v1224_v49  ;;  %1140 = vmatprep.subr.mxu1 %v593_v60 }
  0x3d   :  { %1141 = vmatpush3.msra.mxu1 %v593_v60 }
  0x3e   :  { %1142 = vmatprep.subr.mxu1 %v592_v61 }
  0x3f   :  { %1143 = vmatpush3.msra.mxu1 %v592_v61 }
  0x40   :  { %1144 = vmatprep.subr.mxu1 %v591_v62 }
  0x41   :  { %1145 = vmatpush3.msra.mxu1 %v591_v62 }
  0x42   :  { %445 = vmatmul.mubr.bf16.gmra.mxu0 %v1214_v50  ;;  %1146 = vmatprep.subr.mxu1 %v590_v63 }
  0x43   :  { %452 = vmatprep.mubr.bf16.mxu0 %v1217_v51  ;;  %1147 = vmatpush3.msra.mxu1 %v590_v63 }
  0x4a   :  { %453 = vmatmul.mubr.bf16.gmra.mxu0 %v1219_v52 }
  0x4b   :  { %460 = vmatprep.mubr.bf16.mxu0 %v1220_v53 }
  0x52   :  { %461 = vmatmul.mubr.bf16.gmra.mxu0 %v1222_v54 }
  0x53   :  { %468 = vmatprep.mubr.bf16.mxu0 %v1225_v55 }
  0x5a   :  { %469 = vmatmul.mubr.bf16.gmra.mxu0 %v1227_v56 }
  0xe2   :  { %v988_v0 = vpop.f32.mrf.mxu0 }
  0xe4   :  { %v989_v1 = vpop.f32.mrf.mxu0  ;;  %v1102_v4 = vpop.f32.mrf.mxu1 }
  0xe5   :  { %v990_v3 = vadd.f32 %v989_v1, %v988_v0 }
  0xe6   :  { %v991_v5 = vpop.f32.mrf.mxu0  ;;  %v511_v7 = vpop.f32.mrf.mxu1 }
  0xe7   :  { %v415_v6 = vadd.f32 %v990_v3, %v1485_v2 }
  0xe8   :  { %v992_v8 = vpop.f32.mrf.mxu0  ;;  %v1103_v11 = vpop.f32.mrf.mxu1 }
  0xe9   :  { %v993_v9 = vadd.f32 %v992_v8, %v991_v5  ;;  %v1488_v10 = vadd.f32 %v511_v7, %v415_v6 }
  0xea   :  { %v994_v12 = vpop.f32.mrf.mxu0  ;;  %v514_v15 = vpop.f32.mrf.mxu1 }
  0xeb   :  { %v574_v13 = vmul.f32 %v1488_v10, %v1488_v10  ;;  %v418_v14 = vadd.f32 %v993_v9, %v1485_v2 }
  0xec   :  { %v995_v16 = vpop.f32.mrf.mxu0  ;;  %v1106_v20 = vpop.f32.mrf.mxu1 }
  0xed   :  { %v996_v17 = vadd.f32 %v995_v16, %v994_v12  ;;  %v1493_v18 = vadd.f32 %v514_v15, %v418_v14  ;;  %1148 = vmatprep.mubr.f32.mxu1 %v574_v13 }
  0xee   :  { %v997_v19 = vpop.f32.mrf.mxu0  ;;  %v527_v27 = vpop.f32.mrf.mxu1 }
  0xef   :  { %v423_v21 = vadd.f32 %v996_v17, %v1485_v2  ;;  %v575_v22 = vmul.f32 %v1493_v18, %v1493_v18 }
  0xf0   :  { %v998_v23 = vpop.f32.mrf.mxu0  ;;  %v1107_v34 = vpop.f32.mrf.mxu1 }
  0xf1   :  { %v1498_v24 = vadd.f32 %v1102_v4, %v423_v21  ;;  %v999_v25 = vadd.f32 %v998_v23, %v997_v19  ;;  %1149 = vmatmul.mubr.f32.vlgmr.msra.gmra.mxu1 %v575_v22 }
  0xf2   :  { %v1000_v26 = vpop.f32.mrf.mxu0  ;;  %v530_v41 = vpop.f32.mrf.mxu1 }
  0xf3   :  { %v426_v28 = vadd.f32 %v999_v25, %v1485_v2  ;;  %v576_v29 = vmul.f32 %v1498_v24, %v1498_v24 }
  0xf4   :  { %v1001_v30 = vpop.f32.mrf.mxu0  ;;  %v1110_v48 = vpop.f32.mrf.mxu1 }
  0xf5   :  { %v1503_v31 = vadd.f32 %v1103_v11, %v426_v28  ;;  %v1002_v32 = vadd.f32 %v1001_v30, %v1000_v26  ;;  %1151 = vmatprep.mubr.f32.mxu1 %v576_v29 }
  0xf6   :  { %v1003_v33 = vpop.f32.mrf.mxu0  ;;  %v543_v55 = vpop.f32.mrf.mxu1 }
  0xf7   :  { %v431_v35 = vadd.f32 %v1002_v32, %v1485_v2  ;;  %v577_v36 = vmul.f32 %v1503_v31, %v1503_v31 }
  0xf8   :  { %v1004_v37 = vpop.f32.mrf.mxu0  ;;  %v1111_v62 = vpop.f32.mrf.mxu1 }
  0xf9   :  { %v1005_v38 = vadd.f32 %v1004_v37, %v1003_v33  ;;  %v1508_v39 = vadd.f32 %v527_v27, %v431_v35  ;;  %1152 = vmatmul.mubr.f32.gmra.mxu1 %v577_v36 }
  0xfa   :  { %v1006_v40 = vpop.f32.mrf.mxu0  ;;  %v546_v6 = vpop.f32.mrf.mxu1 }
  0xfb   :  { %v578_v42 = vmul.f32 %v1508_v39, %v1508_v39  ;;  %v434_v43 = vadd.f32 %v1005_v38, %v1485_v2 }
  0xfc   :  { %v1007_v44 = vpop.f32.mrf.mxu0  ;;  %v1114_v17 = vpop.f32.mrf.mxu1 }
  0xfd   :  { %v1008_v45 = vadd.f32 %v1007_v44, %v1006_v40  ;;  %v1513_v46 = vadd.f32 %v530_v41, %v434_v43  ;;  %1154 = vmatprep.mubr.f32.mxu1 %v578_v42 }
  0xfe   :  { %v1009_v47 = vpop.f32.mrf.mxu0  ;;  %v559_v26 = vpop.f32.mrf.mxu1 }
  0xff   :  { %v439_v49 = vadd.f32 %v1008_v45, %v1485_v2  ;;  %v579_v50 = vmul.f32 %v1513_v46, %v1513_v46 }
 0x100   :  { %v1010_v51 = vpop.f32.mrf.mxu0 }
 0x101   :  { %v1518_v52 = vadd.f32 %v1106_v20, %v439_v49  ;;  %v1011_v53 = vadd.f32 %v1010_v51, %v1009_v47  ;;  %1155 = vmatmul.mubr.f32.gmra.mxu1 %v579_v50 }
 0x102   :  { %v1012_v54 = vpop.f32.mrf.mxu0 }
 0x103   :  { %v442_v56 = vadd.f32 %v1011_v53, %v1485_v2  ;;  %v580_v57 = vmul.f32 %v1518_v52, %v1518_v52 }
 0x104   :  { %v1013_v58 = vpop.f32.mrf.mxu0 }
 0x105   :  { %v1523_v59 = vadd.f32 %v1107_v34, %v442_v56  ;;  %v1014_v60 = vadd.f32 %v1013_v58, %v1012_v54  ;;  %1157 = vmatprep.mubr.f32.mxu1 %v580_v57  ;;  %v1115_v34 = vpop.f32.mrf.mxu1  ;;  %v1570_v57 = vld [vmem:[%s1712_s4] ss:$0 sm:$0xff] }
 0x106   :  { %v1015_v61 = vpop.f32.mrf.mxu0 }
 0x107   :  { %v447_v63 = vadd.f32 %v1014_v60, %v1485_v2  ;;  %v581_v0 = vmul.f32 %v1523_v59, %v1523_v59  ;;  %v562_v41 = vpop.f32.mrf.mxu1 }
 0x108   :  { %v1016_v1 = vpop.f32.mrf.mxu0 }
 0x109   :  { %v1017_v3 = vadd.f32 %v1016_v1, %v1015_v61  ;;  %v1528_v4 = vadd.f32 %v543_v55, %v447_v63  ;;  %1158 = vmatmul.mubr.f32.gmra.mxu1 %v581_v0 }
 0x10a   :  { %v1018_v5 = vpop.f32.mrf.mxu0 }
 0x10b   :  { %v582_v7 = vmul.f32 %v1528_v4, %v1528_v4  ;;  %v450_v8 = vadd.f32 %v1017_v3, %v1485_v2 }
 0x10c   :  { %v1019_v9 = vpop.f32.mrf.mxu0 }
 0x10d   :  { %v1020_v11 = vadd.f32 %v1019_v9, %v1018_v5  ;;  %v1533_v12 = vadd.f32 %v546_v6, %v450_v8  ;;  %1160 = vmatprep.mubr.f32.mxu1 %v582_v7 }
 0x10e   :  { %v1021_v13 = vpop.f32.mrf.mxu0 }
 0x10f   :  { %v455_v14 = vadd.f32 %v1020_v11, %v1485_v2  ;;  %v583_v15 = vmul.f32 %v1533_v12, %v1533_v12 }
 0x110   :  { %v1022_v16 = vpop.f32.mrf.mxu0 }
 0x111   :  { %v1538_v19 = vadd.f32 %v1110_v48, %v455_v14  ;;  %v1023_v20 = vadd.f32 %v1022_v16, %v1021_v13  ;;  %1161 = vmatmul.mubr.f32.gmra.mxu1 %v583_v15 }
 0x112   :  { %v1024_v21 = vpop.f32.mrf.mxu0 }
 0x113   :  { %v458_v22 = vadd.f32 %v1023_v20, %v1485_v2  ;;  %v584_v23 = vmul.f32 %v1538_v19, %v1538_v19 }
 0x114   :  { %v1025_v25 = vpop.f32.mrf.mxu0 }
 0x115   :  { %v1543_v27 = vadd.f32 %v1111_v62, %v458_v22  ;;  %v1026_v28 = vadd.f32 %v1025_v25, %v1024_v21  ;;  %1163 = vmatprep.mubr.f32.mxu1 %v584_v23 }
 0x116   :  { %v1027_v29 = vpop.f32.mrf.mxu0 }
 0x117   :  { %v463_v30 = vadd.f32 %v1026_v28, %v1485_v2  ;;  %v585_v32 = vmul.f32 %v1543_v27, %v1543_v27 }
 0x118   :  { %v1028_v33 = vpop.f32.mrf.mxu0 }
 0x119   :  { %v1548_v35 = vadd.f32 %v559_v26, %v463_v30  ;;  %v1029_v36 = vadd.f32 %v1028_v33, %v1027_v29  ;;  %1164 = vmatmul.mubr.f32.gmra.mxu1 %v585_v32 }
 0x11a   :  { %v1030_v37 = vpop.f32.mrf.mxu0 }
 0x11b   :  { %v586_v38 = vmul.f32 %v1548_v35, %v1548_v35  ;;  %v466_v40 = vadd.f32 %v1029_v36, %v1485_v2 }
 0x11c   :  { %v1031_v42 = vpop.f32.mrf.mxu0 }
 0x11d   :  { %v1553_v43 = vadd.f32 %v562_v41, %v466_v40  ;;  %v1032_v44 = vadd.f32 %v1031_v42, %v1030_v37  ;;  %1166 = vmatprep.mubr.f32.mxu1 %v586_v38 }
 0x11e   :  { %v1033_v45 = vpop.f32.mrf.mxu0 }
 0x11f   :  { %v587_v47 = vmul.f32 %v1553_v43, %v1553_v43  ;;  %v471_v48 = vadd.f32 %v1032_v44, %v1485_v2 }
 0x120   :  { %v1034_v49 = vpop.f32.mrf.mxu0 }
 0x121   :  { %v1558_v50 = vadd.f32 %v1114_v17, %v471_v48  ;;  %v1035_v51 = vadd.f32 %v1034_v49, %v1033_v45  ;;  %1167 = vmatmul.mubr.f32.gmra.mxu1 %v587_v47 }
 0x123   :  { %v474_v53 = vadd.f32 %v1035_v51, %v1485_v2  ;;  %v588_v54 = vmul.f32 %v1558_v50, %v1558_v50 }
 0x125   :  { %v1563_v55 = vadd.f32 %v1115_v34, %v474_v53  ;;  %1169 = vmatprep.mubr.f32.mxu1 %v588_v54 }
 0x127   :  { %v589_v56 = vmul.f32 %v1563_v55, %v1563_v55 }
 0x129   :  { %1170 = vmatmul.mubr.f32.gmra.mxu1 %v589_v56 }
 0x1b1   :  { %v1150_v58 = vpop.f32.mrf.mxu1 }
 0x1b2   :  { %v685_v60 = vadd.f32 %v1150_v58, %v1570_v57 }
 0x1b3   :  { %v679_v61 = vpop.f32.mrf.mxu1 }
 0x1b4   :  { %v759_v2 = vmax.f32 %v685_v60, 1e-09  ;;  %v680_v62 = vadd.f32 %v1570_v57, %v679_v61 }
 0x1b6   :  { %1228 = vrsqrt.f32 %v759_v2  ;;  %v758_v63 = vmax.f32 %v680_v62, 1e-09  ;;  %vm783_vm0 = vcmp.eq.f32.partialorder %v759_v2, inf  ;;  %v786_v17 = vand.u32 2147483648, %v759_v2 }
 0x1b7   :  { %vm785_vm1 = vcmp.eq.f32.partialorder %v759_v2, 0.0 }
 0x1b8   :  { %1230 = vrsqrt.f32 %v758_v63  ;;  %vm776_vm2 = vcmp.eq.f32.partialorder %v758_v63, inf  ;;  %v779_v28 = vand.u32 2147483648, %v758_v63  ;;  %vm778_vm3 = vcmp.eq.f32.partialorder %v758_v63, 0.0 }
 0x1b9   :  { %v1153_v0 = vpop.f32.mrf.mxu1 }
 0x1ba   :  { %v695_v1 = vadd.f32 %v1153_v0, %v1570_v57 }
 0x1bb   :  { %v689_v3 = vpop.f32.mrf.mxu1 }
 0x1bc   :  { %v761_v5 = vmax.f32 %v695_v1, 1e-09  ;;  %v690_v6 = vadd.f32 %v1570_v57, %v689_v3 }
 0x1be   :  { %1232 = vrsqrt.f32 %v761_v5  ;;  %v760_v7 = vmax.f32 %v690_v6, 1e-09  ;;  %vm797_vm4 = vcmp.eq.f32.partialorder %v761_v5, inf  ;;  %v800_v41 = vand.u32 2147483648, %v761_v5 }
 0x1bf   :  { %vm799_vm5 = vcmp.eq.f32.partialorder %v761_v5, 0.0 }
 0x1c0   :  { %1234 = vrsqrt.f32 %v760_v7  ;;  %vm790_vm6 = vcmp.eq.f32.partialorder %v760_v7, inf  ;;  %v793_v49 = vand.u32 2147483648, %v760_v7  ;;  %vm792_vm7 = vcmp.eq.f32.partialorder %v760_v7, 0.0 }
 0x1c1   :  { %v1156_v8 = vpop.f32.mrf.mxu1 }
 0x1c2   :  { %v705_v9 = vadd.f32 %v1156_v8, %v1570_v57 }
 0x1c3   :  { %v1229_v11 = vpop.eup %1228  ;;  %v699_v13 = vpop.f32.mrf.mxu1 }
 0x1c4   :  { %v782_v14 = vmul.f32 %v1229_v11, %v759_v2  ;;  %v1577_v15 = vmax.f32 %v705_v9, 1e-09  ;;  %v700_v16 = vadd.f32 %v1570_v57, %v699_v13 }
 0x1c5   :  { %v1231_v20 = vpop.eup %1230 }
 0x1c6   :  { %v784_v21 = vsel %vm783_vm0, %v759_v2, %v782_v14  ;;  %1236 = vrsqrt.f32 %v1577_v15  ;;  %v775_v23 = vmul.f32 %v1231_v20, %v758_v63  ;;  %v1581_v25 = vmax.f32 %v700_v16, 1e-09 }
 0x1c7   :  { %v787_v22 = vsel %vm785_vm1, %v786_v17, %v784_v21  ;;  %vm811_vm8 = vcmp.eq.f32.partialorder %v1577_v15, inf  ;;  %vm813_vm9 = vcmp.eq.f32.partialorder %v1577_v15, 0.0 }
 0x1c8   :  { %v887_v26 = vmul.f32 %v787_v22, %v1493_v18  ;;  %v777_v29 = vsel %vm776_vm2, %v758_v63, %v775_v23  ;;  %1238 = vrsqrt.f32 %v1581_v25  ;;  %v814_v63 = vand.u32 2147483648, %v1577_v15 }
 0x1c9   :  { %v1159_v30 = vpop.f32.mrf.mxu1  ;;  %v780_v32 = vsel %vm778_vm3, %v779_v28, %v777_v29  ;;  %vm804_vm10 = vcmp.eq.f32.partialorder %v1581_v25, inf  ;;  %vm806_vm11 = vcmp.eq.f32.partialorder %v1581_v25, 0.0 }
 0x1ca   :  { %903 = vst [vmem:[%s1713_s5 + $0x8] sm:$0xff] %v887_v26  ;;  %v715_v33 = vadd.f32 %v1159_v30, %v1570_v57  ;;  %v886_v36 = vmul.f32 %v780_v32, %v1488_v10 }
 0x1cb   :  { %v1233_v34 = vpop.eup %1232  ;;  %v709_v37 = vpop.f32.mrf.mxu1 }
 0x1cc   :  { %v796_v38 = vmul.f32 %v1233_v34, %v761_v5  ;;  %v1590_v18 = vmax.f32 %v715_v33, 1e-09  ;;  %v710_v40 = vadd.f32 %v1570_v57, %v709_v37  ;;  %902 = vst [vmem:[%s1713_s5] sm:$0xff] %v886_v36 }
 0x1cd   :  { %v1235_v42 = vpop.eup %1234 }
 0x1ce   :  { %v798_v44 = vsel %vm797_vm4, %v761_v5, %v796_v38  ;;  %1240 = vrsqrt.f32 %v1590_v18  ;;  %v789_v47 = vmul.f32 %v1235_v42, %v760_v7  ;;  %v1597_v10 = vmax.f32 %v710_v40, 1e-09 }
 0x1cf   :  { %v801_v45 = vsel %vm799_vm5, %v800_v41, %v798_v44  ;;  %vm825_vm12 = vcmp.eq.f32.partialorder %v1590_v18, inf  ;;  %v828_v21 = vand.u32 2147483648, %v1590_v18  ;;  %vm827_vm13 = vcmp.eq.f32.partialorder %v1590_v18, 0.0 }
 0x1d0   :  { %v889_v48 = vmul.f32 %v801_v45, %v1503_v31  ;;  %v791_v51 = vsel %vm790_vm6, %v760_v7, %v789_v47  ;;  %1242 = vrsqrt.f32 %v1597_v10  ;;  %v807_v7 = vand.u32 2147483648, %v1581_v25 }
 0x1d1   :  { %v1162_v53 = vpop.f32.mrf.mxu1  ;;  %v794_v54 = vsel %vm792_vm7, %v793_v49, %v791_v51  ;;  %vm818_vm14 = vcmp.eq.f32.partialorder %v1597_v10, inf  ;;  %v821_v29 = vand.u32 2147483648, %v1597_v10  ;;  %vm820_vm15 = vcmp.eq.f32.partialorder %v1597_v10, 0.0 }
 0x1d2   :  { %905 = vst [vmem:[%s1713_s5 + $0x18] sm:$0xff] %v889_v48  ;;  %v725_v56 = vadd.f32 %v1162_v53, %v1570_v57  ;;  %v888_v60 = vmul.f32 %v794_v54, %v1498_v24 }
 0x1d3   :  { %v1237_v58 = vpop.eup %1236  ;;  %v719_v61 = vpop.f32.mrf.mxu1 }
 0x1d4   :  { %v810_v31 = vmul.f32 %v1237_v58, %v1577_v15  ;;  %v1607_v2 = vmax.f32 %v725_v56, 1e-09  ;;  %v720_v62 = vadd.f32 %v1570_v57, %v719_v61  ;;  %904 = vst [vmem:[%s1713_s5 + $0x10] sm:$0xff] %v888_v60 }
 0x1d5   :  { %v1239_v0 = vpop.eup %1238 }
 0x1d6   :  { %v812_v1 = vsel %vm811_vm8, %v1577_v15, %v810_v31  ;;  %1244 = vrsqrt.f32 %v1607_v2  ;;  %v803_v3 = vmul.f32 %v1239_v0, %v1581_v25  ;;  %v1619_v5 = vmax.f32 %v720_v62, 1e-09 }
 0x1d7   :  { %v815_v24 = vsel %vm813_vm9, %v814_v63, %v812_v1  ;;  %vm839_vm0 = vcmp.eq.f32.partialorder %v1607_v2, inf  ;;  %v842_v41 = vand.u32 2147483648, %v1607_v2  ;;  %vm841_vm1 = vcmp.eq.f32.partialorder %v1607_v2, 0.0 }
 0x1d8   :  { %v891_v6 = vmul.f32 %v815_v24, %v1513_v46  ;;  %v805_v8 = vsel %vm804_vm10, %v1581_v25, %v803_v3  ;;  %1246 = vrsqrt.f32 %v1619_v5  ;;  %vm832_vm2 = vcmp.eq.f32.partialorder %v1619_v5, inf }
 0x1d9   :  { %v1165_v9 = vpop.f32.mrf.mxu1  ;;  %v808_v11 = vsel %vm806_vm11, %v807_v7, %v805_v8  ;;  %v835_v48 = vand.u32 2147483648, %v1619_v5  ;;  %vm834_vm3 = vcmp.eq.f32.partialorder %v1619_v5, 0.0 }
 0x1da   :  { %907 = vst [vmem:[%s1713_s5 + $0x28] sm:$0xff] %v891_v6  ;;  %v735_v13 = vadd.f32 %v1165_v9, %v1570_v57  ;;  %v890_v46 = vmul.f32 %v808_v11, %v1508_v39 }
 0x1db   :  { %v1241_v14 = vpop.eup %1240  ;;  %v729_v15 = vpop.f32.mrf.mxu1 }
 0x1dc   :  { %v824_v16 = vmul.f32 %v1241_v14, %v1590_v18  ;;  %v1633_v17 = vmax.f32 %v735_v13, 1e-09  ;;  %v730_v20 = vadd.f32 %v1570_v57, %v729_v15  ;;  %906 = vst [vmem:[%s1713_s5 + $0x20] sm:$0xff] %v890_v46 }
 0x1dd   :  { %v1243_v22 = vpop.eup %1242 }
 0x1de   :  { %v826_v23 = vsel %vm825_vm12, %v1590_v18, %v824_v16  ;;  %1248 = vrsqrt.f32 %v1633_v17  ;;  %v817_v25 = vmul.f32 %v1243_v22, %v1597_v10  ;;  %v768_v26 = vmax.f32 %v730_v20, 1e-09 }
 0x1df   :  { %v829_v39 = vsel %vm827_vm13, %v828_v21, %v826_v23  ;;  %vm853_vm4 = vcmp.eq.f32.partialorder %v1633_v17, inf  ;;  %vm855_vm5 = vcmp.eq.f32.partialorder %v1633_v17, 0.0 }
 0x1e0   :  { %v893_v28 = vmul.f32 %v829_v39, %v1523_v59  ;;  %v819_v30 = vsel %vm818_vm14, %v1597_v10, %v817_v25  ;;  %1250 = vrsqrt.f32 %v768_v26  ;;  %vm846_vm6 = vcmp.eq.f32.partialorder %v768_v26, inf }
 0x1e1   :  { %v1168_v32 = vpop.f32.mrf.mxu1  ;;  %v822_v33 = vsel %vm820_vm15, %v821_v29, %v819_v30  ;;  %vm848_vm7 = vcmp.eq.f32.partialorder %v768_v26, 0.0 }
 0x1e2   :  { %909 = vst [vmem:[%s1713_s5 + $0x38] sm:$0xff] %v893_v28  ;;  %v745_v34 = vadd.f32 %v1168_v32, %v1570_v57  ;;  %v892_v59 = vmul.f32 %v822_v33, %v1518_v52 }
 0x1e3   :  { %v1245_v36 = vpop.eup %1244  ;;  %v739_v37 = vpop.f32.mrf.mxu1 }
 0x1e4   :  { %v838_v38 = vmul.f32 %v1245_v36, %v1607_v2  ;;  %v771_v18 = vmax.f32 %v745_v34, 1e-09  ;;  %v740_v40 = vadd.f32 %v1570_v57, %v739_v37  ;;  %908 = vst [vmem:[%s1713_s5 + $0x30] sm:$0xff] %v892_v59 }
 0x1e5   :  { %v1247_v42 = vpop.eup %1246 }
 0x1e6   :  { %v840_v44 = vsel %vm839_vm0, %v1607_v2, %v838_v38  ;;  %1252 = vrsqrt.f32 %v771_v18  ;;  %v831_v45 = vmul.f32 %v1247_v42, %v1619_v5  ;;  %v770_v47 = vmax.f32 %v740_v40, 1e-09 }
 0x1e7   :  { %v843_v52 = vsel %vm841_vm1, %v842_v41, %v840_v44  ;;  %v856_v2 = vand.u32 2147483648, %v1633_v17  ;;  %vm867_vm8 = vcmp.eq.f32.partialorder %v771_v18, inf  ;;  %vm869_vm9 = vcmp.eq.f32.partialorder %v771_v18, 0.0 }
 0x1e8   :  { %v895_v10 = vmul.f32 %v843_v52, %v1533_v12  ;;  %v833_v49 = vsel %vm832_vm2, %v1619_v5, %v831_v45  ;;  %1254 = vrsqrt.f32 %v770_v47  ;;  %vm860_vm10 = vcmp.eq.f32.partialorder %v770_v47, inf }
 0x1e9   :  { %v1171_v51 = vpop.f32.mrf.mxu1  ;;  %v836_v53 = vsel %vm834_vm3, %v835_v48, %v833_v49  ;;  %v863_v15 = vand.u32 2147483648, %v770_v47  ;;  %vm862_vm11 = vcmp.eq.f32.partialorder %v770_v47, 0.0 }
 0x1ea   :  { %911 = vst [vmem:[%s1713_s5 + $0x48] sm:$0xff] %v895_v10  ;;  %v755_v54 = vadd.f32 %v1171_v51, %v1570_v57  ;;  %v894_v12 = vmul.f32 %v836_v53, %v1528_v4 }
 0x1eb   :  { %v1249_v56 = vpop.eup %1248  ;;  %v749_v58 = vpop.f32.mrf.mxu1 }
 0x1ec   :  { %v852_v60 = vmul.f32 %v1249_v56, %v1633_v17  ;;  %v773_v61 = vmax.f32 %v755_v54, 1e-09  ;;  %v750_v31 = vadd.f32 %v1570_v57, %v749_v58  ;;  %910 = vst [vmem:[%s1713_s5 + $0x40] sm:$0xff] %v894_v12  ;;  %v849_v57 = vand.u32 2147483648, %v768_v26 }
 0x1ed   :  { %v1251_v62 = vpop.eup %1250 }
 0x1ee   :  { %v854_v63 = vsel %vm853_vm4, %v1633_v17, %v852_v60  ;;  %1256 = vrsqrt.f32 %v773_v61  ;;  %v845_v0 = vmul.f32 %v1251_v62, %v768_v26  ;;  %v772_v1 = vmax.f32 %v750_v31, 1e-09 }
 0x1ef   :  { %v857_v4 = vsel %vm855_vm5, %v856_v2, %v854_v63  ;;  %vm881_vm12 = vcmp.eq.f32.partialorder %v773_v61, inf  ;;  %v884_v22 = vand.u32 2147483648, %v773_v61  ;;  %vm883_vm13 = vcmp.eq.f32.partialorder %v773_v61, 0.0 }
 0x1f0   :  { %v897_v24 = vmul.f32 %v857_v4, %v1543_v27  ;;  %v847_v3 = vsel %vm846_vm6, %v768_v26, %v845_v0  ;;  %1258 = vrsqrt.f32 %v772_v1  ;;  %v870_v27 = vand.u32 2147483648, %v771_v18 }
 0x1f1   :  { %v850_v5 = vsel %vm848_vm7, %v849_v57, %v847_v3  ;;  %vm874_vm14 = vcmp.eq.f32.partialorder %v772_v1, inf  ;;  %v877_v28 = vand.u32 2147483648, %v772_v1  ;;  %vm876_vm15 = vcmp.eq.f32.partialorder %v772_v1, 0.0 }
 0x1f2   :  { %913 = vst [vmem:[%s1713_s5 + $0x58] sm:$0xff] %v897_v24  ;;  %v896_v7 = vmul.f32 %v850_v5, %v1538_v19 }
 0x1f3   :  { %v1253_v6 = vpop.eup %1252 }
 0x1f4   :  { %v866_v8 = vmul.f32 %v1253_v6, %v771_v18  ;;  %912 = vst [vmem:[%s1713_s5 + $0x50] sm:$0xff] %v896_v7 }
 0x1f5   :  { %v1255_v9 = vpop.eup %1254 }
 0x1f6   :  { %v868_v11 = vsel %vm867_vm8, %v771_v18, %v866_v8  ;;  %v859_v14 = vmul.f32 %v1255_v9, %v770_v47 }
 0x1f7   :  { %v871_v13 = vsel %vm869_vm9, %v870_v27, %v868_v11 }
 0x1f8   :  { %v899_v46 = vmul.f32 %v871_v13, %v1553_v43  ;;  %v861_v16 = vsel %vm860_vm10, %v770_v47, %v859_v14 }
 0x1f9   :  { %v864_v19 = vsel %vm862_vm11, %v863_v15, %v861_v16 }
 0x1fa   :  { %915 = vst [vmem:[%s1713_s5 + $0x68] sm:$0xff] %v899_v46  ;;  %v898_v20 = vmul.f32 %v864_v19, %v1548_v35 }
 0x1fb   :  { %v1257_v17 = vpop.eup %1256 }
 0x1fc   :  { %v880_v21 = vmul.f32 %v1257_v17, %v773_v61  ;;  %914 = vst [vmem:[%s1713_s5 + $0x60] sm:$0xff] %v898_v20 }
 0x1fd   :  { %v1259_v43 = vpop.eup %1258 }
 0x1fe   :  { %v882_v23 = vsel %vm881_vm12, %v773_v61, %v880_v21  ;;  %v873_v25 = vmul.f32 %v1259_v43, %v772_v1 }
 0x1ff   :  { %v885_v39 = vsel %vm883_vm13, %v884_v22, %v882_v23 }
 0x200   :  { %v901_v26 = vmul.f32 %v885_v39, %v1563_v55  ;;  %v875_v29 = vsel %vm874_vm14, %v772_v1, %v873_v25 }
 0x201   :  { %v878_v35 = vsel %vm876_vm15, %v877_v28, %v875_v29 }
 0x202   :  { %917 = vst [vmem:[%s1713_s5 + $0x78] sm:$0xff] %v901_v26  ;;  %v900_v30 = vmul.f32 %v878_v35, %v1558_v50 }
 0x204   :  { %916 = vst [vmem:[%s1713_s5 + $0x70] sm:$0xff] %v900_v30 }

// kernel: image_compressor_forward.33
= control target key start
LH: loop header
LB: loop body
LE: loop exit
PB: predicated region body
PF: predicated region fallthrough
CT: control target
= control target key end

     0   :  { %s1355_s1 = inlined_call_operand.vmem [shape: bf16[256,128], index: 1, kind: input, shape index: {}]   ;;  %s1356_s0 = inlined_call_operand.vmem [shape: bf16[128,256], index: 0, kind: input, shape index: {}]   ;;  %s1357_s3 = inlined_call_operand.vmem [shape: f32[128,128], index: 3, kind: input, shape index: {}]   ;;  %s1358_s2 = inlined_call_operand.vmem [shape: f32[1,128], index: 2, kind: input, shape index: {}]   ;;  %s1359_s4 = inlined_call_operand.vmem [shape: f32[1,128], index: 4, kind: input, shape index: {}]   ;;  %s1360_s5 = inlined_call_operand.vmem [shape: f32[128,128], index: 5, kind: output, shape index: {}]  }
   0x1   :  { %v883_v0 = vld [vmem:[%s1355_s1 + $0x78] sm:$0xff]   ;;  %v885_v2 = vld [vmem:[%s1355_s1 + $0x70] sm:$0xff]   ;;  %v887_v4 = vld [vmem:[%s1355_s1 + $0x68] sm:$0xff]  }
   0x2   :  { %v884_v1 = vld [vmem:[%s1355_s1 + $0x38] sm:$0xff]   ;;  %731 = vmatprep.subr.bf16.mxu0 %v883_v0  ;;  %v886_v3 = vld [vmem:[%s1355_s1 + $0x30] sm:$0xff]   ;;  %v888_v5 = vld [vmem:[%s1355_s1 + $0x28] sm:$0xff]  }
   0x3   :  { %732 = vmatpush3.bf16.msra.mxu0 %v884_v1  ;;  %v889_v6 = vld [vmem:[%s1355_s1 + $0x60] sm:$0xff]   ;;  %v891_v8 = vld [vmem:[%s1355_s1 + $0x58] sm:$0xff]   ;;  %v893_v10 = vld [vmem:[%s1355_s1 + $0x50] sm:$0xff]  }
   0x4   :  { %733 = vmatprep.subr.bf16.mxu0 %v885_v2  ;;  %v890_v7 = vld [vmem:[%s1355_s1 + $0x20] sm:$0xff]   ;;  %v892_v9 = vld [vmem:[%s1355_s1 + $0x18] sm:$0xff]   ;;  %v894_v12 = vld [vmem:[%s1355_s1 + $0x10] sm:$0xff]  }
   0x5   :  { %v901_v11 = vld [vmem:[%s1356_s0 + $0x4] ss:$8 sps:$4 sm:$0xff]   ;;  %v380_v16 = vld [vmem:[%s1357_s3 + $0x78] sm:$0xff]  ;;  %v379_v18 = vld [vmem:[%s1357_s3 + $0x70] sm:$0xff] }
   0x6   :  { %284 = vmatprep.mubr.bf16.mxu0 %v901_v11  ;;  %v895_v13 = vld [vmem:[%s1355_s1 + $0x48] sm:$0xff]   ;;  %v897_v15 = vld [vmem:[%s1355_s1 + $0x40] sm:$0xff]   ;;  %827 = vmatprep.subr.mxu1 %v380_v16  ;;  %v902_v22 = vld [vmem:[%s1356_s0 + $0x14] ss:$8 sps:$4 sm:$0xff]  }
   0x7   :  { %734 = vmatpush3.bf16.msra.mxu0 %v886_v3  ;;  %v896_v14 = vld [vmem:[%s1355_s1 + $0x8] sm:$0xff]   ;;  %v898_v17 = vld [vmem:[%s1355_s1] sm:$0xff]   ;;  %828 = vmatpush3.msra.mxu1 %v380_v16  ;;  %v376_v23 = vld [vmem:[%s1357_s3 + $0x58] sm:$0xff] }
   0x8   :  { %735 = vmatprep.subr.bf16.mxu0 %v887_v4  ;;  %v378_v19 = vld [vmem:[%s1357_s3 + $0x68] sm:$0xff]  ;;  %829 = vmatprep.subr.mxu1 %v379_v18  ;;  %v377_v21 = vld [vmem:[%s1357_s3 + $0x60] sm:$0xff]  ;;  %v375_v24 = vld [vmem:[%s1357_s3 + $0x50] sm:$0xff] }
   0x9   :  { %v899_v20 = vld [vmem:[%s1356_s0] ss:$8 sps:$4 sm:$0xff]   ;;  %830 = vmatpush3.msra.mxu1 %v379_v18  ;;  %v904_v26 = vld [vmem:[%s1356_s0 + $0x10] ss:$8 sps:$4 sm:$0xff]   ;;  %v905_v28 = vld [vmem:[%s1356_s0 + $0x24] ss:$8 sps:$4 sm:$0xff]  }
   0xa   :  { %831 = vmatprep.subr.mxu1 %v378_v19  ;;  %v374_v25 = vld [vmem:[%s1357_s3 + $0x48] sm:$0xff]  ;;  %v373_v27 = vld [vmem:[%s1357_s3 + $0x40] sm:$0xff]  ;;  %v372_v29 = vld [vmem:[%s1357_s3 + $0x38] sm:$0xff] }
   0xb   :  { %736 = vmatpush3.bf16.msra.mxu0 %v888_v5  ;;  %832 = vmatpush3.msra.mxu1 %v378_v19  ;;  %v371_v30 = vld [vmem:[%s1357_s3 + $0x30] sm:$0xff]  ;;  %v907_v31 = vld [vmem:[%s1356_s0 + $0x20] ss:$8 sps:$4 sm:$0xff]   ;;  %v911_v34 = vld [vmem:[%s1356_s0 + $0x44] ss:$8 sps:$4 sm:$0xff]  }
   0xc   :  { %737 = vmatprep.subr.bf16.mxu0 %v889_v6  ;;  %833 = vmatprep.subr.mxu1 %v377_v21  ;;  %v908_v32 = vld [vmem:[%s1356_s0 + $0x34] ss:$8 sps:$4 sm:$0xff]   ;;  %v910_v33 = vld [vmem:[%s1356_s0 + $0x30] ss:$8 sps:$4 sm:$0xff]   ;;  %v913_v35 = vld [vmem:[%s1356_s0 + $0x40] ss:$8 sps:$4 sm:$0xff]  }
   0xd   :  { %834 = vmatpush3.msra.mxu1 %v377_v21  ;;  %v914_v36 = vld [vmem:[%s1356_s0 + $0x54] ss:$8 sps:$4 sm:$0xff]   ;;  %v916_v37 = vld [vmem:[%s1356_s0 + $0x50] ss:$8 sps:$4 sm:$0xff]   ;;  %v917_v38 = vld [vmem:[%s1356_s0 + $0x64] ss:$8 sps:$4 sm:$0xff]  }
   0xe   :  { %835 = vmatprep.subr.mxu1 %v376_v23  ;;  %v919_v39 = vld [vmem:[%s1356_s0 + $0x60] ss:$8 sps:$4 sm:$0xff]   ;;  %v920_v40 = vld [vmem:[%s1356_s0 + $0x74] ss:$8 sps:$4 sm:$0xff]   ;;  %v922_v41 = vld [vmem:[%s1356_s0 + $0x70] ss:$8 sps:$4 sm:$0xff]  }
   0xf   :  { %738 = vmatpush3.bf16.msra.mxu0 %v890_v7  ;;  %836 = vmatpush3.msra.mxu1 %v376_v23  ;;  %v370_v42 = vld [vmem:[%s1357_s3 + $0x28] sm:$0xff]  ;;  %v369_v43 = vld [vmem:[%s1357_s3 + $0x20] sm:$0xff]  ;;  %v368_v44 = vld [vmem:[%s1357_s3 + $0x18] sm:$0xff] }
  0x10   :  { %739 = vmatprep.subr.bf16.mxu0 %v891_v8  ;;  %837 = vmatprep.subr.mxu1 %v375_v24  ;;  %v367_v45 = vld [vmem:[%s1357_s3 + $0x10] sm:$0xff]  ;;  %v366_v46 = vld [vmem:[%s1357_s3 + $0x8] sm:$0xff]  ;;  %v365_v47 = vld [vmem:[%s1357_s3] sm:$0xff] }
  0x11   :  { %838 = vmatpush3.msra.mxu1 %v375_v24  ;;  %v1132_v50 = vld [vmem:[%s1358_s2] ss:$0 sm:$0xff] }
  0x12   :  { %839 = vmatprep.subr.mxu1 %v374_v25 }
  0x13   :  { %740 = vmatpush3.bf16.msra.mxu0 %v892_v9  ;;  %840 = vmatpush3.msra.mxu1 %v374_v25 }
  0x14   :  { %741 = vmatprep.subr.bf16.mxu0 %v893_v10  ;;  %841 = vmatprep.subr.mxu1 %v373_v27 }
  0x15   :  { %842 = vmatpush3.msra.mxu1 %v373_v27 }
  0x16   :  { %843 = vmatprep.subr.mxu1 %v372_v29 }
  0x17   :  { %742 = vmatpush3.bf16.msra.mxu0 %v894_v12  ;;  %844 = vmatpush3.msra.mxu1 %v372_v29 }
  0x18   :  { %743 = vmatprep.subr.bf16.mxu0 %v895_v13  ;;  %845 = vmatprep.subr.mxu1 %v371_v30 }
  0x19   :  { %846 = vmatpush3.msra.mxu1 %v371_v30 }
  0x1a   :  { %847 = vmatprep.subr.mxu1 %v370_v42 }
  0x1b   :  { %744 = vmatpush3.bf16.msra.mxu0 %v896_v14  ;;  %848 = vmatpush3.msra.mxu1 %v370_v42 }
  0x1c   :  { %745 = vmatprep.subr.bf16.mxu0 %v897_v15  ;;  %849 = vmatprep.subr.mxu1 %v369_v43 }
  0x1d   :  { %850 = vmatpush3.msra.mxu1 %v369_v43 }
  0x1e   :  { %851 = vmatprep.subr.mxu1 %v368_v44 }
  0x1f   :  { %746 = vmatpush3.bf16.msra.mxu0 %v898_v17  ;;  %852 = vmatpush3.msra.mxu1 %v368_v44 }
  0x20   :  { %853 = vmatprep.subr.mxu1 %v367_v45 }
  0x21   :  { %854 = vmatpush3.msra.mxu1 %v367_v45 }
  0x22   :  { %285 = vmatmul.mubr.bf16.vlgmr.msra.gmra.mxu0 %v899_v20  ;;  %855 = vmatprep.subr.mxu1 %v366_v46 }
  0x23   :  { %292 = vmatprep.mubr.bf16.mxu0 %v902_v22  ;;  %856 = vmatpush3.msra.mxu1 %v366_v46 }
  0x24   :  { %857 = vmatprep.subr.mxu1 %v365_v47 }
  0x25   :  { %858 = vmatpush3.msra.mxu1 %v365_v47 }
  0x2a   :  { %293 = vmatmul.mubr.bf16.gmra.mxu0 %v904_v26 }
  0x2b   :  { %300 = vmatprep.mubr.bf16.mxu0 %v905_v28 }
  0x32   :  { %301 = vmatmul.mubr.bf16.gmra.mxu0 %v907_v31 }
  0x33   :  { %308 = vmatprep.mubr.bf16.mxu0 %v908_v32 }
  0x3a   :  { %309 = vmatmul.mubr.bf16.gmra.mxu0 %v910_v33 }
  0x3b   :  { %316 = vmatprep.mubr.bf16.mxu0 %v911_v34 }
  0x42   :  { %317 = vmatmul.mubr.bf16.gmra.mxu0 %v913_v35 }
  0x43   :  { %324 = vmatprep.mubr.bf16.mxu0 %v914_v36 }
  0x4a   :  { %325 = vmatmul.mubr.bf16.gmra.mxu0 %v916_v37 }
  0x4b   :  { %332 = vmatprep.mubr.bf16.mxu0 %v917_v38 }
  0x52   :  { %333 = vmatmul.mubr.bf16.gmra.mxu0 %v919_v39 }
  0x53   :  { %340 = vmatprep.mubr.bf16.mxu0 %v920_v40 }
  0x5a   :  { %341 = vmatmul.mubr.bf16.gmra.mxu0 %v922_v41 }
  0xe2   :  { %v747_v48 = vpop.f32.mrf.mxu0 }
  0xe4   :  { %v748_v49 = vpop.f32.mrf.mxu0 }
  0xe5   :  { %v749_v51 = vadd.f32 %v748_v49, %v747_v48 }
  0xe6   :  { %v750_v52 = vpop.f32.mrf.mxu0 }
  0xe7   :  { %v1135_v53 = vadd.f32 %v749_v51, %v1132_v50 }
  0xe8   :  { %v751_v54 = vpop.f32.mrf.mxu0 }
  0xe9   :  { %v752_v55 = vadd.f32 %v751_v54, %v750_v52  ;;  %v349_v56 = vmul.f32 %v1135_v53, %v1135_v53 }
  0xea   :  { %v753_v57 = vpop.f32.mrf.mxu0 }
  0xeb   :  { %v1140_v58 = vadd.f32 %v752_v55, %v1132_v50  ;;  %859 = vmatprep.mubr.f32.mxu1 %v349_v56 }
  0xec   :  { %v754_v59 = vpop.f32.mrf.mxu0 }
  0xed   :  { %v755_v60 = vadd.f32 %v754_v59, %v753_v57  ;;  %v350_v61 = vmul.f32 %v1140_v58, %v1140_v58 }
  0xee   :  { %v756_v62 = vpop.f32.mrf.mxu0 }
  0xef   :  { %v1145_v63 = vadd.f32 %v755_v60, %v1132_v50  ;;  %860 = vmatmul.mubr.f32.vlgmr.msra.gmra.mxu1 %v350_v61 }
  0xf0   :  { %v757_v0 = vpop.f32.mrf.mxu0 }
  0xf1   :  { %v758_v1 = vadd.f32 %v757_v0, %v756_v62  ;;  %v351_v2 = vmul.f32 %v1145_v63, %v1145_v63 }
  0xf2   :  { %v759_v3 = vpop.f32.mrf.mxu0 }
  0xf3   :  { %v1150_v4 = vadd.f32 %v758_v1, %v1132_v50  ;;  %862 = vmatprep.mubr.f32.mxu1 %v351_v2 }
  0xf4   :  { %v760_v5 = vpop.f32.mrf.mxu0 }
  0xf5   :  { %v761_v6 = vadd.f32 %v760_v5, %v759_v3  ;;  %v352_v7 = vmul.f32 %v1150_v4, %v1150_v4 }
  0xf6   :  { %v762_v8 = vpop.f32.mrf.mxu0 }
  0xf7   :  { %v1155_v9 = vadd.f32 %v761_v6, %v1132_v50  ;;  %863 = vmatmul.mubr.f32.gmra.mxu1 %v352_v7  ;;  %v1217_v6 = vld [vmem:[%s1359_s4] ss:$0 sm:$0xff] }
  0xf8   :  { %v763_v10 = vpop.f32.mrf.mxu0 }
  0xf9   :  { %v764_v11 = vadd.f32 %v763_v10, %v762_v8  ;;  %v353_v12 = vmul.f32 %v1155_v9, %v1155_v9 }
  0xfa   :  { %v765_v13 = vpop.f32.mrf.mxu0 }
  0xfb   :  { %v1160_v14 = vadd.f32 %v764_v11, %v1132_v50  ;;  %865 = vmatprep.mubr.f32.mxu1 %v353_v12 }
  0xfc   :  { %v766_v15 = vpop.f32.mrf.mxu0 }
  0xfd   :  { %v767_v16 = vadd.f32 %v766_v15, %v765_v13  ;;  %v354_v17 = vmul.f32 %v1160_v14, %v1160_v14 }
  0xfe   :  { %v768_v18 = vpop.f32.mrf.mxu0 }
  0xff   :  { %v1165_v19 = vadd.f32 %v767_v16, %v1132_v50  ;;  %866 = vmatmul.mubr.f32.gmra.mxu1 %v354_v17 }
 0x100   :  { %v769_v20 = vpop.f32.mrf.mxu0 }
 0x101   :  { %v770_v21 = vadd.f32 %v769_v20, %v768_v18  ;;  %v355_v22 = vmul.f32 %v1165_v19, %v1165_v19 }
 0x102   :  { %v771_v23 = vpop.f32.mrf.mxu0 }
 0x103   :  { %v1170_v24 = vadd.f32 %v770_v21, %v1132_v50  ;;  %868 = vmatprep.mubr.f32.mxu1 %v355_v22 }
 0x104   :  { %v772_v25 = vpop.f32.mrf.mxu0 }
 0x105   :  { %v773_v26 = vadd.f32 %v772_v25, %v771_v23  ;;  %v356_v27 = vmul.f32 %v1170_v24, %v1170_v24 }
 0x106   :  { %v774_v28 = vpop.f32.mrf.mxu0 }
 0x107   :  { %v1175_v29 = vadd.f32 %v773_v26, %v1132_v50  ;;  %869 = vmatmul.mubr.f32.gmra.mxu1 %v356_v27 }
 0x108   :  { %v775_v30 = vpop.f32.mrf.mxu0 }
 0x109   :  { %v776_v31 = vadd.f32 %v775_v30, %v774_v28  ;;  %v357_v32 = vmul.f32 %v1175_v29, %v1175_v29 }
 0x10a   :  { %v777_v33 = vpop.f32.mrf.mxu0 }
 0x10b   :  { %v1180_v34 = vadd.f32 %v776_v31, %v1132_v50  ;;  %871 = vmatprep.mubr.f32.mxu1 %v357_v32 }
 0x10c   :  { %v778_v35 = vpop.f32.mrf.mxu0 }
 0x10d   :  { %v779_v36 = vadd.f32 %v778_v35, %v777_v33  ;;  %v358_v37 = vmul.f32 %v1180_v34, %v1180_v34 }
 0x10e   :  { %v780_v38 = vpop.f32.mrf.mxu0 }
 0x10f   :  { %v1185_v39 = vadd.f32 %v779_v36, %v1132_v50  ;;  %872 = vmatmul.mubr.f32.gmra.mxu1 %v358_v37 }
 0x110   :  { %v781_v40 = vpop.f32.mrf.mxu0 }
 0x111   :  { %v782_v41 = vadd.f32 %v781_v40, %v780_v38  ;;  %v359_v42 = vmul.f32 %v1185_v39, %v1185_v39 }
 0x112   :  { %v783_v43 = vpop.f32.mrf.mxu0 }
 0x113   :  { %v1190_v44 = vadd.f32 %v782_v41, %v1132_v50  ;;  %874 = vmatprep.mubr.f32.mxu1 %v359_v42 }
 0x114   :  { %v784_v45 = vpop.f32.mrf.mxu0 }
 0x115   :  { %v785_v46 = vadd.f32 %v784_v45, %v783_v43  ;;  %v360_v47 = vmul.f32 %v1190_v44, %v1190_v44 }
 0x116   :  { %v786_v48 = vpop.f32.mrf.mxu0 }
 0x117   :  { %v1195_v49 = vadd.f32 %v785_v46, %v1132_v50  ;;  %875 = vmatmul.mubr.f32.gmra.mxu1 %v360_v47 }
 0x118   :  { %v787_v51 = vpop.f32.mrf.mxu0 }
 0x119   :  { %v788_v52 = vadd.f32 %v787_v51, %v786_v48  ;;  %v361_v54 = vmul.f32 %v1195_v49, %v1195_v49 }
 0x11a   :  { %v789_v55 = vpop.f32.mrf.mxu0 }
 0x11b   :  { %v1200_v56 = vadd.f32 %v788_v52, %v1132_v50  ;;  %877 = vmatprep.mubr.f32.mxu1 %v361_v54 }
 0x11c   :  { %v790_v57 = vpop.f32.mrf.mxu0 }
 0x11d   :  { %v791_v59 = vadd.f32 %v790_v57, %v789_v55  ;;  %v362_v60 = vmul.f32 %v1200_v56, %v1200_v56 }
 0x11e   :  { %v792_v61 = vpop.f32.mrf.mxu0 }
 0x11f   :  { %v1205_v62 = vadd.f32 %v791_v59, %v1132_v50  ;;  %878 = vmatmul.mubr.f32.gmra.mxu1 %v362_v60 }
 0x120   :  { %v793_v0 = vpop.f32.mrf.mxu0 }
 0x121   :  { %v794_v1 = vadd.f32 %v793_v0, %v792_v61  ;;  %v363_v2 = vmul.f32 %v1205_v62, %v1205_v62 }
 0x123   :  { %v1210_v3 = vadd.f32 %v794_v1, %v1132_v50  ;;  %880 = vmatprep.mubr.f32.mxu1 %v363_v2 }
 0x125   :  { %v364_v5 = vmul.f32 %v1210_v3, %v1210_v3 }
 0x127   :  { %881 = vmatmul.mubr.f32.gmra.mxu1 %v364_v5 }
 0x1af   :  { %v861_v7 = vpop.f32.mrf.mxu1 }
 0x1b0   :  { %v460_v8 = vadd.f32 %v861_v7, %v1217_v6 }
 0x1b1   :  { %v454_v10 = vpop.f32.mrf.mxu1 }
 0x1b2   :  { %v534_v11 = vmax.f32 %v460_v8, 1e-09  ;;  %v455_v12 = vadd.f32 %v1217_v6, %v454_v10 }
 0x1b4   :  { %923 = vrsqrt.f32 %v534_v11  ;;  %v533_v50 = vmax.f32 %v455_v12, 1e-09  ;;  %vm558_vm0 = vcmp.eq.f32.partialorder %v534_v11, inf  ;;  %v561_v30 = vand.u32 2147483648, %v534_v11 }
 0x1b5   :  { %vm560_vm1 = vcmp.eq.f32.partialorder %v534_v11, 0.0 }
 0x1b6   :  { %925 = vrsqrt.f32 %v533_v50  ;;  %vm551_vm2 = vcmp.eq.f32.partialorder %v533_v50, inf  ;;  %v554_v38 = vand.u32 2147483648, %v533_v50  ;;  %vm553_vm3 = vcmp.eq.f32.partialorder %v533_v50, 0.0 }
 0x1b7   :  { %v864_v13 = vpop.f32.mrf.mxu1 }
 0x1b8   :  { %v470_v15 = vadd.f32 %v864_v13, %v1217_v6 }
 0x1b9   :  { %v464_v16 = vpop.f32.mrf.mxu1 }
 0x1ba   :  { %v536_v17 = vmax.f32 %v470_v15, 1e-09  ;;  %v465_v18 = vadd.f32 %v1217_v6, %v464_v16 }
 0x1bc   :  { %927 = vrsqrt.f32 %v536_v17  ;;  %v535_v20 = vmax.f32 %v465_v18, 1e-09  ;;  %vm572_vm4 = vcmp.eq.f32.partialorder %v536_v17, inf  ;;  %v575_v52 = vand.u32 2147483648, %v536_v17 }
 0x1bd   :  { %vm574_vm5 = vcmp.eq.f32.partialorder %v536_v17, 0.0 }
 0x1be   :  { %929 = vrsqrt.f32 %v535_v20  ;;  %vm565_vm6 = vcmp.eq.f32.partialorder %v535_v20, inf  ;;  %v568_v61 = vand.u32 2147483648, %v535_v20  ;;  %vm567_vm7 = vcmp.eq.f32.partialorder %v535_v20, 0.0 }
 0x1bf   :  { %v867_v21 = vpop.f32.mrf.mxu1 }
 0x1c0   :  { %v480_v22 = vadd.f32 %v867_v21, %v1217_v6 }
 0x1c1   :  { %v924_v23 = vpop.eup %923  ;;  %v474_v25 = vpop.f32.mrf.mxu1 }
 0x1c2   :  { %v557_v26 = vmul.f32 %v924_v23, %v534_v11  ;;  %v1224_v27 = vmax.f32 %v480_v22, 1e-09  ;;  %v475_v28 = vadd.f32 %v1217_v6, %v474_v25 }
 0x1c3   :  { %v926_v31 = vpop.eup %925 }
 0x1c4   :  { %v559_v32 = vsel %vm558_vm0, %v534_v11, %v557_v26  ;;  %931 = vrsqrt.f32 %v1224_v27  ;;  %v550_v35 = vmul.f32 %v926_v31, %v533_v50  ;;  %v1228_v36 = vmax.f32 %v475_v28, 1e-09 }
 0x1c5   :  { %v562_v33 = vsel %vm560_vm1, %v561_v30, %v559_v32  ;;  %vm586_vm8 = vcmp.eq.f32.partialorder %v1224_v27, inf  ;;  %vm588_vm9 = vcmp.eq.f32.partialorder %v1224_v27, 0.0 }
 0x1c6   :  { %v662_v37 = vmul.f32 %v562_v33, %v1140_v58  ;;  %v552_v40 = vsel %vm551_vm2, %v533_v50, %v550_v35  ;;  %933 = vrsqrt.f32 %v1228_v36  ;;  %v589_v50 = vand.u32 2147483648, %v1224_v27 }
 0x1c7   :  { %v870_v41 = vpop.f32.mrf.mxu1  ;;  %v555_v42 = vsel %vm553_vm3, %v554_v38, %v552_v40  ;;  %vm579_vm10 = vcmp.eq.f32.partialorder %v1228_v36, inf  ;;  %vm581_vm11 = vcmp.eq.f32.partialorder %v1228_v36, 0.0 }
 0x1c8   :  { %678 = vst [vmem:[%s1360_s5 + $0x8] sm:$0xff] %v662_v37  ;;  %v490_v43 = vadd.f32 %v870_v41, %v1217_v6  ;;  %v661_v46 = vmul.f32 %v555_v42, %v1135_v53 }
 0x1c9   :  { %v928_v45 = vpop.eup %927  ;;  %v484_v47 = vpop.f32.mrf.mxu1 }
 0x1ca   :  { %v571_v48 = vmul.f32 %v928_v45, %v536_v17  ;;  %v1237_v58 = vmax.f32 %v490_v43, 1e-09  ;;  %v485_v51 = vadd.f32 %v1217_v6, %v484_v47  ;;  %677 = vst [vmem:[%s1360_s5] sm:$0xff] %v661_v46 }
 0x1cb   :  { %v930_v54 = vpop.eup %929 }
 0x1cc   :  { %v573_v55 = vsel %vm572_vm4, %v536_v17, %v571_v48  ;;  %935 = vrsqrt.f32 %v1237_v58  ;;  %v564_v59 = vmul.f32 %v930_v54, %v535_v20  ;;  %v1244_v53 = vmax.f32 %v485_v51, 1e-09 }
 0x1cd   :  { %v576_v57 = vsel %vm574_vm5, %v575_v52, %v573_v55  ;;  %vm600_vm12 = vcmp.eq.f32.partialorder %v1237_v58, inf  ;;  %v603_v32 = vand.u32 2147483648, %v1237_v58  ;;  %vm602_vm13 = vcmp.eq.f32.partialorder %v1237_v58, 0.0 }
 0x1ce   :  { %v664_v60 = vmul.f32 %v576_v57, %v1150_v4  ;;  %v566_v0 = vsel %vm565_vm6, %v535_v20, %v564_v59  ;;  %937 = vrsqrt.f32 %v1244_v53  ;;  %v582_v20 = vand.u32 2147483648, %v1228_v36 }
 0x1cf   :  { %v873_v1 = vpop.f32.mrf.mxu1  ;;  %v569_v2 = vsel %vm567_vm7, %v568_v61, %v566_v0  ;;  %vm593_vm14 = vcmp.eq.f32.partialorder %v1244_v53, inf  ;;  %v596_v40 = vand.u32 2147483648, %v1244_v53  ;;  %vm595_vm15 = vcmp.eq.f32.partialorder %v1244_v53, 0.0 }
 0x1d0   :  { %680 = vst [vmem:[%s1360_s5 + $0x18] sm:$0xff] %v664_v60  ;;  %v500_v5 = vadd.f32 %v873_v1, %v1217_v6  ;;  %v663_v8 = vmul.f32 %v569_v2, %v1145_v63 }
 0x1d1   :  { %v932_v7 = vpop.eup %931  ;;  %v494_v10 = vpop.f32.mrf.mxu1 }
 0x1d2   :  { %v585_v4 = vmul.f32 %v932_v7, %v1224_v27  ;;  %v1254_v11 = vmax.f32 %v500_v5, 1e-09  ;;  %v495_v12 = vadd.f32 %v1217_v6, %v494_v10  ;;  %679 = vst [vmem:[%s1360_s5 + $0x10] sm:$0xff] %v663_v8 }
 0x1d3   :  { %v934_v13 = vpop.eup %933 }
 0x1d4   :  { %v587_v15 = vsel %vm586_vm8, %v1224_v27, %v585_v4  ;;  %939 = vrsqrt.f32 %v1254_v11  ;;  %v578_v16 = vmul.f32 %v934_v13, %v1228_v36  ;;  %v1266_v17 = vmax.f32 %v495_v12, 1e-09 }
 0x1d5   :  { %v590_v63 = vsel %vm588_vm9, %v589_v50, %v587_v15  ;;  %vm614_vm0 = vcmp.eq.f32.partialorder %v1254_v11, inf  ;;  %v617_v52 = vand.u32 2147483648, %v1254_v11  ;;  %vm616_vm1 = vcmp.eq.f32.partialorder %v1254_v11, 0.0 }
 0x1d6   :  { %v666_v18 = vmul.f32 %v590_v63, %v1160_v14  ;;  %v580_v21 = vsel %vm579_vm10, %v1228_v36, %v578_v16  ;;  %941 = vrsqrt.f32 %v1266_v17  ;;  %vm607_vm2 = vcmp.eq.f32.partialorder %v1266_v17, inf }
 0x1d7   :  { %v876_v22 = vpop.f32.mrf.mxu1  ;;  %v583_v23 = vsel %vm581_vm11, %v582_v20, %v580_v21  ;;  %v610_v60 = vand.u32 2147483648, %v1266_v17  ;;  %vm609_vm3 = vcmp.eq.f32.partialorder %v1266_v17, 0.0 }
 0x1d8   :  { %682 = vst [vmem:[%s1360_s5 + $0x28] sm:$0xff] %v666_v18  ;;  %v510_v25 = vadd.f32 %v876_v22, %v1217_v6  ;;  %v665_v14 = vmul.f32 %v583_v23, %v1155_v9 }
 0x1d9   :  { %v936_v26 = vpop.eup %935  ;;  %v504_v27 = vpop.f32.mrf.mxu1 }
 0x1da   :  { %v599_v28 = vmul.f32 %v936_v26, %v1237_v58  ;;  %v1280_v30 = vmax.f32 %v510_v25, 1e-09  ;;  %v505_v31 = vadd.f32 %v1217_v6, %v504_v27  ;;  %681 = vst [vmem:[%s1360_s5 + $0x20] sm:$0xff] %v665_v14 }
 0x1db   :  { %v938_v33 = vpop.eup %937 }
 0x1dc   :  { %v601_v35 = vsel %vm600_vm12, %v1237_v58, %v599_v28  ;;  %943 = vrsqrt.f32 %v1280_v30  ;;  %v592_v36 = vmul.f32 %v938_v33, %v1244_v53  ;;  %v543_v37 = vmax.f32 %v505_v31, 1e-09 }
 0x1dd   :  { %v604_v9 = vsel %vm602_vm13, %v603_v32, %v601_v35  ;;  %vm628_vm4 = vcmp.eq.f32.partialorder %v1280_v30, inf  ;;  %vm630_vm5 = vcmp.eq.f32.partialorder %v1280_v30, 0.0 }
 0x1de   :  { %v668_v38 = vmul.f32 %v604_v9, %v1170_v24  ;;  %v594_v41 = vsel %vm593_vm14, %v1244_v53, %v592_v36  ;;  %945 = vrsqrt.f32 %v543_v37  ;;  %vm621_vm6 = vcmp.eq.f32.partialorder %v543_v37, inf }
 0x1df   :  { %v879_v42 = vpop.f32.mrf.mxu1  ;;  %v597_v43 = vsel %vm595_vm15, %v596_v40, %v594_v41  ;;  %vm623_vm7 = vcmp.eq.f32.partialorder %v543_v37, 0.0 }
 0x1e0   :  { %684 = vst [vmem:[%s1360_s5 + $0x38] sm:$0xff] %v668_v38  ;;  %v520_v45 = vadd.f32 %v879_v42, %v1217_v6  ;;  %v667_v24 = vmul.f32 %v597_v43, %v1165_v19 }
 0x1e1   :  { %v940_v46 = vpop.eup %939  ;;  %v514_v47 = vpop.f32.mrf.mxu1 }
 0x1e2   :  { %v613_v48 = vmul.f32 %v940_v46, %v1254_v11  ;;  %v546_v58 = vmax.f32 %v520_v45, 1e-09  ;;  %v515_v51 = vadd.f32 %v1217_v6, %v514_v47  ;;  %683 = vst [vmem:[%s1360_s5 + $0x30] sm:$0xff] %v667_v24 }
 0x1e3   :  { %v942_v54 = vpop.eup %941 }
 0x1e4   :  { %v615_v55 = vsel %vm614_vm0, %v1254_v11, %v613_v48  ;;  %947 = vrsqrt.f32 %v546_v58  ;;  %v606_v57 = vmul.f32 %v942_v54, %v1266_v17  ;;  %v545_v59 = vmax.f32 %v515_v51, 1e-09 }
 0x1e5   :  { %v618_v19 = vsel %vm616_vm1, %v617_v52, %v615_v55  ;;  %v631_v11 = vand.u32 2147483648, %v1280_v30  ;;  %vm642_vm8 = vcmp.eq.f32.partialorder %v546_v58, inf  ;;  %vm644_vm9 = vcmp.eq.f32.partialorder %v546_v58, 0.0 }
 0x1e6   :  { %v670_v53 = vmul.f32 %v618_v19, %v1180_v34  ;;  %v608_v61 = vsel %vm607_vm2, %v1266_v17, %v606_v57  ;;  %949 = vrsqrt.f32 %v545_v59  ;;  %vm635_vm10 = vcmp.eq.f32.partialorder %v545_v59, inf }
 0x1e7   :  { %v882_v0 = vpop.f32.mrf.mxu1  ;;  %v611_v1 = vsel %vm609_vm3, %v610_v60, %v608_v61  ;;  %v638_v27 = vand.u32 2147483648, %v545_v59  ;;  %vm637_vm11 = vcmp.eq.f32.partialorder %v545_v59, 0.0 }
 0x1e8   :  { %686 = vst [vmem:[%s1360_s5 + $0x48] sm:$0xff] %v670_v53  ;;  %v530_v2 = vadd.f32 %v882_v0, %v1217_v6  ;;  %v669_v34 = vmul.f32 %v611_v1, %v1175_v29 }
 0x1e9   :  { %v944_v5 = vpop.eup %943  ;;  %v524_v7 = vpop.f32.mrf.mxu1 }
 0x1ea   :  { %v627_v8 = vmul.f32 %v944_v5, %v1280_v30  ;;  %v548_v10 = vmax.f32 %v530_v2, 1e-09  ;;  %v525_v4 = vadd.f32 %v1217_v6, %v524_v7  ;;  %685 = vst [vmem:[%s1360_s5 + $0x40] sm:$0xff] %v669_v34  ;;  %v624_v6 = vand.u32 2147483648, %v543_v37 }
 0x1eb   :  { %v946_v12 = vpop.eup %945 }
 0x1ec   :  { %v629_v50 = vsel %vm628_vm4, %v1280_v30, %v627_v8  ;;  %951 = vrsqrt.f32 %v548_v10  ;;  %v620_v13 = vmul.f32 %v946_v12, %v543_v37  ;;  %v547_v15 = vmax.f32 %v525_v4, 1e-09 }
 0x1ed   :  { %v632_v29 = vsel %vm630_vm5, %v631_v11, %v629_v50  ;;  %vm656_vm12 = vcmp.eq.f32.partialorder %v548_v10, inf  ;;  %v659_v33 = vand.u32 2147483648, %v548_v10  ;;  %vm658_vm13 = vcmp.eq.f32.partialorder %v548_v10, 0.0 }
 0x1ee   :  { %v672_v63 = vmul.f32 %v632_v29, %v1190_v44  ;;  %v622_v16 = vsel %vm621_vm6, %v543_v37, %v620_v13  ;;  %953 = vrsqrt.f32 %v547_v15  ;;  %v645_v44 = vand.u32 2147483648, %v546_v58 }
 0x1ef   :  { %v625_v17 = vsel %vm623_vm7, %v624_v6, %v622_v16  ;;  %vm649_vm14 = vcmp.eq.f32.partialorder %v547_v15, inf  ;;  %v652_v38 = vand.u32 2147483648, %v547_v15  ;;  %vm651_vm15 = vcmp.eq.f32.partialorder %v547_v15, 0.0 }
 0x1f0   :  { %688 = vst [vmem:[%s1360_s5 + $0x58] sm:$0xff] %v672_v63  ;;  %v671_v20 = vmul.f32 %v625_v17, %v1185_v39 }
 0x1f1   :  { %v948_v18 = vpop.eup %947 }
 0x1f2   :  { %v641_v21 = vmul.f32 %v948_v18, %v546_v58  ;;  %687 = vst [vmem:[%s1360_s5 + $0x50] sm:$0xff] %v671_v20 }
 0x1f3   :  { %v950_v22 = vpop.eup %949 }
 0x1f4   :  { %v643_v23 = vsel %vm642_vm8, %v546_v58, %v641_v21  ;;  %v634_v26 = vmul.f32 %v950_v22, %v545_v59 }
 0x1f5   :  { %v646_v25 = vsel %vm644_vm9, %v645_v44, %v643_v23 }
 0x1f6   :  { %v674_v14 = vmul.f32 %v646_v25, %v1200_v56  ;;  %v636_v28 = vsel %vm635_vm10, %v545_v59, %v634_v26 }
 0x1f7   :  { %v639_v39 = vsel %vm637_vm11, %v638_v27, %v636_v28 }
 0x1f8   :  { %690 = vst [vmem:[%s1360_s5 + $0x68] sm:$0xff] %v674_v14  ;;  %v673_v31 = vmul.f32 %v639_v39, %v1195_v49 }
 0x1f9   :  { %v952_v30 = vpop.eup %951 }
 0x1fa   :  { %v655_v32 = vmul.f32 %v952_v30, %v548_v10  ;;  %689 = vst [vmem:[%s1360_s5 + $0x60] sm:$0xff] %v673_v31 }
 0x1fb   :  { %v954_v56 = vpop.eup %953 }
 0x1fc   :  { %v657_v35 = vsel %vm656_vm12, %v548_v10, %v655_v32  ;;  %v648_v36 = vmul.f32 %v954_v56, %v547_v15 }
 0x1fd   :  { %v660_v9 = vsel %vm658_vm13, %v659_v33, %v657_v35 }
 0x1fe   :  { %v676_v37 = vmul.f32 %v660_v9, %v1210_v3  ;;  %v650_v40 = vsel %vm649_vm14, %v547_v15, %v648_v36 }
 0x1ff   :  { %v653_v49 = vsel %vm651_vm15, %v652_v38, %v650_v40 }
 0x200   :  { %692 = vst [vmem:[%s1360_s5 + $0x78] sm:$0xff] %v676_v37  ;;  %v675_v41 = vmul.f32 %v653_v49, %v1205_v62 }
 0x202   :  { %691 = vst [vmem:[%s1360_s5 + $0x70] sm:$0xff] %v675_v41 }

// kernel: image_compressor_forward.43
= control target key start
LH: loop header
LB: loop body
LE: loop exit
PB: predicated region body
PF: predicated region fallthrough
CT: control target
= control target key end

     0   :  { %s701_s1 = inlined_call_operand.vmem [shape: bf16[256,128], index: 1, kind: input, shape index: {}]   ;;  %s702_s0 = inlined_call_operand.vmem [shape: bf16[128,256], index: 0, kind: input, shape index: {}]   ;;  %s703_s2 = inlined_call_operand.vmem [shape: f32[1,128], index: 2, kind: input, shape index: {}]   ;;  %s704_s3 = inlined_call_operand.vmem [shape: f32[128,128], index: 3, kind: output, shape index: {}]  }
   0x1   :  { %v476_v0 = vld [vmem:[%s701_s1 + $0x78] sm:$0xff]   ;;  %v478_v2 = vld [vmem:[%s701_s1 + $0x70] sm:$0xff]   ;;  %v480_v4 = vld [vmem:[%s701_s1 + $0x68] sm:$0xff]  }
   0x2   :  { %v477_v1 = vld [vmem:[%s701_s1 + $0x38] sm:$0xff]   ;;  %396 = vmatprep.subr.bf16.mxu0 %v476_v0  ;;  %460 = vmatprep.subr.bf16.mxu1 %v476_v0  ;;  %v479_v3 = vld [vmem:[%s701_s1 + $0x30] sm:$0xff]   ;;  %v481_v5 = vld [vmem:[%s701_s1 + $0x28] sm:$0xff]  }
   0x3   :  { %397 = vmatpush3.bf16.msra.mxu0 %v477_v1  ;;  %468 = vmatpush3.bf16.msra.mxu1 %v477_v1  ;;  %v482_v6 = vld [vmem:[%s701_s1 + $0x60] sm:$0xff]   ;;  %v484_v8 = vld [vmem:[%s701_s1 + $0x58] sm:$0xff]   ;;  %v486_v10 = vld [vmem:[%s701_s1 + $0x50] sm:$0xff]  }
   0x4   :  { %398 = vmatprep.subr.bf16.mxu0 %v478_v2  ;;  %461 = vmatprep.subr.bf16.mxu1 %v478_v2  ;;  %v483_v7 = vld [vmem:[%s701_s1 + $0x20] sm:$0xff]   ;;  %v485_v9 = vld [vmem:[%s701_s1 + $0x18] sm:$0xff]   ;;  %v487_v13 = vld [vmem:[%s701_s1 + $0x10] sm:$0xff]  }
   0x5   :  { %v494_v11 = vld [vmem:[%s702_s0 + $0x4] ss:$8 sps:$4 sm:$0xff]   ;;  %v492_v18 = vld [vmem:[%s702_s0] ss:$8 sps:$4 sm:$0xff]   ;;  %v498_v20 = vld [vmem:[%s702_s0 + $0x14] ss:$8 sps:$4 sm:$0xff]  }
   0x6   :  { %v497_v12 = vld [vmem:[%s702_s0 + $0x44] ss:$8 sps:$4 sm:$0xff]   ;;  %278 = vmatprep.mubr.bf16.mxu0 %v494_v11  ;;  %v495_v19 = vld [vmem:[%s702_s0 + $0x40] ss:$8 sps:$4 sm:$0xff]   ;;  %v500_v21 = vld [vmem:[%s702_s0 + $0x54] ss:$8 sps:$4 sm:$0xff]  }
   0x7   :  { %399 = vmatpush3.bf16.msra.mxu0 %v479_v3  ;;  %469 = vmatpush3.bf16.msra.mxu1 %v479_v3  ;;  %v488_v14 = vld [vmem:[%s701_s1 + $0x48] sm:$0xff]   ;;  %v490_v16 = vld [vmem:[%s701_s1 + $0x40] sm:$0xff]   ;;  %v502_v22 = vld [vmem:[%s702_s0 + $0x10] ss:$8 sps:$4 sm:$0xff]  }
   0x8   :  { %400 = vmatprep.subr.bf16.mxu0 %v480_v4  ;;  %462 = vmatprep.subr.bf16.mxu1 %v480_v4  ;;  %v489_v15 = vld [vmem:[%s701_s1 + $0x8] sm:$0xff]   ;;  %v491_v17 = vld [vmem:[%s701_s1] sm:$0xff]   ;;  %v503_v23 = vld [vmem:[%s702_s0 + $0x50] ss:$8 sps:$4 sm:$0xff]  }
   0x9   :  { %310 = vmatprep.mubr.bf16.mxu1 %v497_v12  ;;  %v504_v24 = vld [vmem:[%s702_s0 + $0x24] ss:$8 sps:$4 sm:$0xff]   ;;  %v508_v26 = vld [vmem:[%s702_s0 + $0x20] ss:$8 sps:$4 sm:$0xff]   ;;  %v510_v28 = vld [vmem:[%s702_s0 + $0x34] ss:$8 sps:$4 sm:$0xff]  }
   0xa   :  { %v506_v25 = vld [vmem:[%s702_s0 + $0x64] ss:$8 sps:$4 sm:$0xff]   ;;  %v509_v27 = vld [vmem:[%s702_s0 + $0x60] ss:$8 sps:$4 sm:$0xff]   ;;  %v512_v29 = vld [vmem:[%s702_s0 + $0x74] ss:$8 sps:$4 sm:$0xff]  }
   0xb   :  { %401 = vmatpush3.bf16.msra.mxu0 %v481_v5  ;;  %470 = vmatpush3.bf16.msra.mxu1 %v481_v5  ;;  %v514_v30 = vld [vmem:[%s702_s0 + $0x30] ss:$8 sps:$4 sm:$0xff]   ;;  %v635_v34 = vld [vmem:[%s703_s2] ss:$0 sm:$0xff] }
   0xc   :  { %402 = vmatprep.subr.bf16.mxu0 %v482_v6  ;;  %463 = vmatprep.subr.bf16.mxu1 %v482_v6  ;;  %v515_v31 = vld [vmem:[%s702_s0 + $0x70] ss:$8 sps:$4 sm:$0xff]  }
   0xf   :  { %403 = vmatpush3.bf16.msra.mxu0 %v483_v7  ;;  %471 = vmatpush3.bf16.msra.mxu1 %v483_v7 }
  0x10   :  { %404 = vmatprep.subr.bf16.mxu0 %v484_v8  ;;  %464 = vmatprep.subr.bf16.mxu1 %v484_v8 }
  0x13   :  { %405 = vmatpush3.bf16.msra.mxu0 %v485_v9  ;;  %472 = vmatpush3.bf16.msra.mxu1 %v485_v9 }
  0x14   :  { %406 = vmatprep.subr.bf16.mxu0 %v486_v10  ;;  %465 = vmatprep.subr.bf16.mxu1 %v486_v10 }
  0x17   :  { %407 = vmatpush3.bf16.msra.mxu0 %v487_v13  ;;  %473 = vmatpush3.bf16.msra.mxu1 %v487_v13 }
  0x18   :  { %408 = vmatprep.subr.bf16.mxu0 %v488_v14  ;;  %466 = vmatprep.subr.bf16.mxu1 %v488_v14 }
  0x1b   :  { %409 = vmatpush3.bf16.msra.mxu0 %v489_v15  ;;  %474 = vmatpush3.bf16.msra.mxu1 %v489_v15 }
  0x1c   :  { %410 = vmatprep.subr.bf16.mxu0 %v490_v16  ;;  %467 = vmatprep.subr.bf16.mxu1 %v490_v16 }
  0x1f   :  { %411 = vmatpush3.bf16.msra.mxu0 %v491_v17  ;;  %475 = vmatpush3.bf16.msra.mxu1 %v491_v17 }
  0x22   :  { %279 = vmatmul.mubr.bf16.vlgmr.msra.gmra.mxu0 %v492_v18  ;;  %311 = vmatmul.mubr.bf16.vlgmr.msra.gmra.mxu1 %v495_v19 }
  0x23   :  { %286 = vmatprep.mubr.bf16.mxu0 %v498_v20  ;;  %318 = vmatprep.mubr.bf16.mxu1 %v500_v21 }
  0x2a   :  { %287 = vmatmul.mubr.bf16.gmra.mxu0 %v502_v22  ;;  %319 = vmatmul.mubr.bf16.gmra.mxu1 %v503_v23 }
  0x2b   :  { %294 = vmatprep.mubr.bf16.mxu0 %v504_v24  ;;  %326 = vmatprep.mubr.bf16.mxu1 %v506_v25 }
  0x32   :  { %295 = vmatmul.mubr.bf16.gmra.mxu0 %v508_v26  ;;  %327 = vmatmul.mubr.bf16.gmra.mxu1 %v509_v27 }
  0x33   :  { %302 = vmatprep.mubr.bf16.mxu0 %v510_v28  ;;  %334 = vmatprep.mubr.bf16.mxu1 %v512_v29 }
  0x3a   :  { %303 = vmatmul.mubr.bf16.gmra.mxu0 %v514_v30  ;;  %335 = vmatmul.mubr.bf16.gmra.mxu1 %v515_v31 }
  0xe2   :  { %v412_v32 = vpop.f32.mrf.mxu0  ;;  %v436_v33 = vpop.f32.mrf.mxu1 }
  0xe4   :  { %v413_v35 = vpop.f32.mrf.mxu0  ;;  %v437_v36 = vpop.f32.mrf.mxu1 }
  0xe5   :  { %v414_v37 = vadd.f32 %v413_v35, %v412_v32  ;;  %v438_v38 = vadd.f32 %v437_v36, %v436_v33 }
  0xe6   :  { %v415_v39 = vpop.f32.mrf.mxu0  ;;  %v439_v40 = vpop.f32.mrf.mxu1 }
  0xe7   :  { %v281_v41 = vadd.f32 %v414_v37, %v635_v34  ;;  %v313_v42 = vadd.f32 %v438_v38, %v635_v34 }
  0xe8   :  { %v416_v43 = vpop.f32.mrf.mxu0  ;;  %v440_v44 = vpop.f32.mrf.mxu1 }
  0xe9   :  { %343 = vst [vmem:[%s704_s3] sm:$0xff] %v281_v41  ;;  %351 = vst [vmem:[%s704_s3 + $0x40] sm:$0xff] %v313_v42  ;;  %v417_v45 = vadd.f32 %v416_v43, %v415_v39  ;;  %v441_v46 = vadd.f32 %v440_v44, %v439_v40 }
  0xea   :  { %v418_v47 = vpop.f32.mrf.mxu0  ;;  %v442_v48 = vpop.f32.mrf.mxu1 }
  0xeb   :  { %v284_v49 = vadd.f32 %v417_v45, %v635_v34  ;;  %v316_v50 = vadd.f32 %v441_v46, %v635_v34 }
  0xec   :  { %v419_v51 = vpop.f32.mrf.mxu0  ;;  %v443_v52 = vpop.f32.mrf.mxu1 }
  0xed   :  { %344 = vst [vmem:[%s704_s3 + $0x8] sm:$0xff] %v284_v49  ;;  %352 = vst [vmem:[%s704_s3 + $0x48] sm:$0xff] %v316_v50  ;;  %v420_v53 = vadd.f32 %v419_v51, %v418_v47  ;;  %v444_v54 = vadd.f32 %v443_v52, %v442_v48 }
  0xee   :  { %v421_v55 = vpop.f32.mrf.mxu0  ;;  %v445_v56 = vpop.f32.mrf.mxu1 }
  0xef   :  { %v289_v57 = vadd.f32 %v420_v53, %v635_v34  ;;  %v321_v58 = vadd.f32 %v444_v54, %v635_v34 }
  0xf0   :  { %v422_v59 = vpop.f32.mrf.mxu0  ;;  %v446_v60 = vpop.f32.mrf.mxu1 }
  0xf1   :  { %345 = vst [vmem:[%s704_s3 + $0x10] sm:$0xff] %v289_v57  ;;  %353 = vst [vmem:[%s704_s3 + $0x50] sm:$0xff] %v321_v58  ;;  %v423_v61 = vadd.f32 %v422_v59, %v421_v55  ;;  %v447_v62 = vadd.f32 %v446_v60, %v445_v56 }
  0xf2   :  { %v424_v63 = vpop.f32.mrf.mxu0  ;;  %v448_v0 = vpop.f32.mrf.mxu1 }
  0xf3   :  { %v292_v1 = vadd.f32 %v423_v61, %v635_v34  ;;  %v324_v2 = vadd.f32 %v447_v62, %v635_v34 }
  0xf4   :  { %v425_v3 = vpop.f32.mrf.mxu0  ;;  %v449_v4 = vpop.f32.mrf.mxu1 }
  0xf5   :  { %346 = vst [vmem:[%s704_s3 + $0x18] sm:$0xff] %v292_v1  ;;  %354 = vst [vmem:[%s704_s3 + $0x58] sm:$0xff] %v324_v2  ;;  %v426_v5 = vadd.f32 %v425_v3, %v424_v63  ;;  %v450_v6 = vadd.f32 %v449_v4, %v448_v0 }
  0xf6   :  { %v427_v7 = vpop.f32.mrf.mxu0  ;;  %v451_v8 = vpop.f32.mrf.mxu1 }
  0xf7   :  { %v297_v9 = vadd.f32 %v426_v5, %v635_v34  ;;  %v329_v10 = vadd.f32 %v450_v6, %v635_v34 }
  0xf8   :  { %v428_v11 = vpop.f32.mrf.mxu0  ;;  %v452_v12 = vpop.f32.mrf.mxu1 }
  0xf9   :  { %347 = vst [vmem:[%s704_s3 + $0x20] sm:$0xff] %v297_v9  ;;  %355 = vst [vmem:[%s704_s3 + $0x60] sm:$0xff] %v329_v10  ;;  %v429_v13 = vadd.f32 %v428_v11, %v427_v7  ;;  %v453_v14 = vadd.f32 %v452_v12, %v451_v8 }
  0xfa   :  { %v430_v15 = vpop.f32.mrf.mxu0  ;;  %v454_v16 = vpop.f32.mrf.mxu1 }
  0xfb   :  { %v300_v17 = vadd.f32 %v429_v13, %v635_v34  ;;  %v332_v18 = vadd.f32 %v453_v14, %v635_v34 }
  0xfc   :  { %v431_v19 = vpop.f32.mrf.mxu0  ;;  %v455_v20 = vpop.f32.mrf.mxu1 }
  0xfd   :  { %348 = vst [vmem:[%s704_s3 + $0x28] sm:$0xff] %v300_v17  ;;  %356 = vst [vmem:[%s704_s3 + $0x68] sm:$0xff] %v332_v18  ;;  %v432_v21 = vadd.f32 %v431_v19, %v430_v15  ;;  %v456_v22 = vadd.f32 %v455_v20, %v454_v16 }
  0xfe   :  { %v433_v23 = vpop.f32.mrf.mxu0  ;;  %v457_v24 = vpop.f32.mrf.mxu1 }
  0xff   :  { %v305_v25 = vadd.f32 %v432_v21, %v635_v34  ;;  %v337_v26 = vadd.f32 %v456_v22, %v635_v34 }
 0x100   :  { %v434_v27 = vpop.f32.mrf.mxu0  ;;  %v458_v28 = vpop.f32.mrf.mxu1 }
 0x101   :  { %349 = vst [vmem:[%s704_s3 + $0x30] sm:$0xff] %v305_v25  ;;  %357 = vst [vmem:[%s704_s3 + $0x70] sm:$0xff] %v337_v26  ;;  %v435_v29 = vadd.f32 %v434_v27, %v433_v23  ;;  %v459_v30 = vadd.f32 %v458_v28, %v457_v24 }
 0x103   :  { %v308_v31 = vadd.f32 %v435_v29, %v635_v34  ;;  %v340_v32 = vadd.f32 %v459_v30, %v635_v34 }
 0x105   :  { %350 = vst [vmem:[%s704_s3 + $0x38] sm:$0xff] %v308_v31  ;;  %358 = vst [vmem:[%s704_s3 + $0x78] sm:$0xff] %v340_v32 }

// kernel: image_compressor_forward.40
= control target key start
LH: loop header
LB: loop body
LE: loop exit
PB: predicated region body
PF: predicated region fallthrough
CT: control target
= control target key end

     0   :  { %s1038_s1 = inlined_call_operand.vmem [shape: bf16[384,128], index: 1, kind: input, shape index: {}]   ;;  %s1039_s0 = inlined_call_operand.vmem [shape: bf16[128,384], index: 0, kind: input, shape index: {}]   ;;  %s1040_s2 = inlined_call_operand.vmem [shape: f32[1,128], index: 2, kind: input, shape index: {}]   ;;  %s1041_s3 = inlined_call_operand.vmem [shape: f32[128,128], index: 3, kind: output, shape index: {}]  }
   0x1   :  { %v749_v0 = vld [vmem:[%s1038_s1 + $0x78] sm:$0xff]   ;;  %v751_v2 = vld [vmem:[%s1038_s1 + $0x70] sm:$0xff]   ;;  %v754_v5 = vld [vmem:[%s1038_s1 + $0x68] sm:$0xff]  }
   0x2   :  { %v750_v1 = vld [vmem:[%s1038_s1 + $0x38] sm:$0xff]   ;;  %637 = vmatprep.subr.bf16.mxu0 %v749_v0  ;;  %v753_v4 = vld [vmem:[%s1038_s1 + $0x30] sm:$0xff]   ;;  %v756_v7 = vld [vmem:[%s1038_s1 + $0x28] sm:$0xff]  }
   0x3   :  { %638 = vmatpush3.bf16.msra.mxu0 %v750_v1  ;;  %v752_v3 = vld [vmem:[%s1038_s1 + $0xb8] sm:$0xff]   ;;  %v755_v6 = vld [vmem:[%s1038_s1 + $0xb0] sm:$0xff]   ;;  %v757_v8 = vld [vmem:[%s1038_s1 + $0x60] sm:$0xff]  }
   0x4   :  { %639 = vmatprep.subr.bf16.mxu0 %v751_v2  ;;  %717 = vmatprep.subr.bf16.mxu1 %v752_v3  ;;  %v758_v9 = vld [vmem:[%s1038_s1 + $0xa8] sm:$0xff]   ;;  %v759_v10 = vld [vmem:[%s1038_s1 + $0x20] sm:$0xff]   ;;  %v760_v11 = vld [vmem:[%s1038_s1 + $0x58] sm:$0xff]  }
   0x5   :  { %718 = vmatpush3.bf16.msra.mxu1 %v752_v3  ;;  %v761_v12 = vld [vmem:[%s1038_s1 + $0xa0] sm:$0xff]   ;;  %v762_v13 = vld [vmem:[%s1038_s1 + $0x18] sm:$0xff]   ;;  %v763_v15 = vld [vmem:[%s1038_s1 + $0x50] sm:$0xff]  }
   0x6   :  { %719 = vmatprep.subr.bf16.mxu1 %v755_v6  ;;  %v764_v14 = vld [vmem:[%s1038_s1 + $0x98] sm:$0xff]   ;;  %v765_v16 = vld [vmem:[%s1038_s1 + $0x10] sm:$0xff]   ;;  %v766_v18 = vld [vmem:[%s1038_s1 + $0x48] sm:$0xff]  }
   0x7   :  { %640 = vmatpush3.bf16.msra.mxu0 %v753_v4  ;;  %v767_v17 = vld [vmem:[%s1038_s1 + $0x90] sm:$0xff]   ;;  %v768_v19 = vld [vmem:[%s1038_s1 + $0x8] sm:$0xff]   ;;  %v769_v20 = vld [vmem:[%s1038_s1 + $0x40] sm:$0xff]  }
   0x8   :  { %641 = vmatprep.subr.bf16.mxu0 %v754_v5  ;;  %v770_v21 = vld [vmem:[%s1038_s1 + $0x88] sm:$0xff]   ;;  %v774_v22 = vld [vmem:[%s1039_s0 + $0x4] ss:$12 sps:$4 sm:$0xff]   ;;  %v781_v31 = vld [vmem:[%s1039_s0 + $0x34] ss:$12 sps:$4 sm:$0xff]  }
   0x9   :  { %720 = vmatpush3.bf16.msra.mxu1 %v755_v6  ;;  %v771_v23 = vld [vmem:[%s1038_s1] sm:$0xff]   ;;  %406 = vmatprep.mubr.bf16.mxu0 %v774_v22  ;;  %v776_v24 = vld [vmem:[%s1039_s0 + $0x8] ss:$12 sps:$4 sm:$0xff]   ;;  %v785_v32 = vld [vmem:[%s1039_s0 + $0x50] ss:$12 sps:$4 sm:$0xff]  }
   0xa   :  { %721 = vmatprep.subr.bf16.mxu1 %v758_v9  ;;  %v775_v25 = vld [vmem:[%s1038_s1 + $0x80] sm:$0xff]   ;;  %733 = vmatprep.mubr.bf16.mxu1 %v776_v24  ;;  %v778_v27 = vld [vmem:[%s1039_s0 + $0x1c] ss:$12 sps:$4 sm:$0xff]   ;;  %v786_v35 = vld [vmem:[%s1039_s0 + $0x4c] ss:$12 sps:$4 sm:$0xff]  }
   0xb   :  { %642 = vmatpush3.bf16.msra.mxu0 %v756_v7  ;;  %v772_v26 = vld [vmem:[%s1039_s0] ss:$12 sps:$4 sm:$0xff]   ;;  %v784_v29 = vld [vmem:[%s1039_s0 + $0x38] ss:$12 sps:$4 sm:$0xff]   ;;  %v792_v33 = vld [vmem:[%s1039_s0 + $0x68] ss:$12 sps:$4 sm:$0xff]  }
   0xc   :  { %643 = vmatprep.subr.bf16.mxu0 %v757_v8  ;;  %v777_v28 = vld [vmem:[%s1039_s0 + $0x20] ss:$12 sps:$4 sm:$0xff]   ;;  %v780_v30 = vld [vmem:[%s1039_s0 + $0x18] ss:$12 sps:$4 sm:$0xff]   ;;  %v783_v34 = vld [vmem:[%s1039_s0 + $0x30] ss:$12 sps:$4 sm:$0xff]  }
   0xd   :  { %722 = vmatpush3.bf16.msra.mxu1 %v758_v9  ;;  %v793_v36 = vld [vmem:[%s1039_s0 + $0x80] ss:$12 sps:$4 sm:$0xff]   ;;  %v800_v37 = vld [vmem:[%s1039_s0 + $0x98] ss:$12 sps:$4 sm:$0xff]   ;;  %v788_v38 = vld [vmem:[%s1039_s0 + $0x48] ss:$12 sps:$4 sm:$0xff]  }
   0xe   :  { %723 = vmatprep.subr.bf16.mxu1 %v761_v12  ;;  %v789_v39 = vld [vmem:[%s1039_s0 + $0x64] ss:$12 sps:$4 sm:$0xff]   ;;  %v791_v41 = vld [vmem:[%s1039_s0 + $0x60] ss:$12 sps:$4 sm:$0xff]   ;;  %v794_v42 = vld [vmem:[%s1039_s0 + $0x7c] ss:$12 sps:$4 sm:$0xff]  }
   0xf   :  { %644 = vmatpush3.bf16.msra.mxu0 %v759_v10  ;;  %v801_v40 = vld [vmem:[%s1039_s0 + $0xb0] ss:$12 sps:$4 sm:$0xff]   ;;  %v796_v43 = vld [vmem:[%s1039_s0 + $0x78] ss:$12 sps:$4 sm:$0xff]   ;;  %v797_v44 = vld [vmem:[%s1039_s0 + $0x94] ss:$12 sps:$4 sm:$0xff]  }
  0x10   :  { %645 = vmatprep.subr.bf16.mxu0 %v760_v11  ;;  %v799_v45 = vld [vmem:[%s1039_s0 + $0x90] ss:$12 sps:$4 sm:$0xff]   ;;  %v802_v46 = vld [vmem:[%s1039_s0 + $0xac] ss:$12 sps:$4 sm:$0xff]   ;;  %v804_v47 = vld [vmem:[%s1039_s0 + $0xa8] ss:$12 sps:$4 sm:$0xff]  }
  0x11   :  { %724 = vmatpush3.bf16.msra.mxu1 %v761_v12  ;;  %v972_v50 = vld [vmem:[%s1040_s2] ss:$0 sm:$0xff] }
  0x12   :  { %725 = vmatprep.subr.bf16.mxu1 %v764_v14 }
  0x13   :  { %646 = vmatpush3.bf16.msra.mxu0 %v762_v13 }
  0x14   :  { %647 = vmatprep.subr.bf16.mxu0 %v763_v15 }
  0x15   :  { %726 = vmatpush3.bf16.msra.mxu1 %v764_v14 }
  0x16   :  { %727 = vmatprep.subr.bf16.mxu1 %v767_v17 }
  0x17   :  { %648 = vmatpush3.bf16.msra.mxu0 %v765_v16 }
  0x18   :  { %649 = vmatprep.subr.bf16.mxu0 %v766_v18 }
  0x19   :  { %728 = vmatpush3.bf16.msra.mxu1 %v767_v17 }
  0x1a   :  { %729 = vmatprep.subr.bf16.mxu1 %v770_v21 }
  0x1b   :  { %650 = vmatpush3.bf16.msra.mxu0 %v768_v19 }
  0x1c   :  { %651 = vmatprep.subr.bf16.mxu0 %v769_v20 }
  0x1d   :  { %730 = vmatpush3.bf16.msra.mxu1 %v770_v21 }
  0x1e   :  { %731 = vmatprep.subr.bf16.mxu1 %v775_v25 }
  0x1f   :  { %652 = vmatpush3.bf16.msra.mxu0 %v771_v23 }
  0x21   :  { %732 = vmatpush3.bf16.msra.mxu1 %v775_v25 }
  0x22   :  { %407 = vmatmul.mubr.bf16.vlgmr.msra.gmra.mxu0 %v772_v26 }
  0x23   :  { %414 = vmatprep.mubr.bf16.mxu0 %v778_v27 }
  0x24   :  { %734 = vmatmul.mubr.bf16.vlgmr.msra.gmra.mxu1 %v777_v28 }
  0x25   :  { %737 = vmatprep.mubr.bf16.mxu1 %v784_v29 }
  0x2a   :  { %415 = vmatmul.mubr.bf16.gmra.mxu0 %v780_v30 }
  0x2b   :  { %422 = vmatprep.mubr.bf16.mxu0 %v781_v31 }
  0x2c   :  { %738 = vmatmul.mubr.bf16.gmra.mxu1 %v785_v32 }
  0x2d   :  { %741 = vmatprep.mubr.bf16.mxu1 %v792_v33 }
  0x32   :  { %423 = vmatmul.mubr.bf16.gmra.mxu0 %v783_v34 }
  0x33   :  { %430 = vmatprep.mubr.bf16.mxu0 %v786_v35 }
  0x34   :  { %742 = vmatmul.mubr.bf16.gmra.mxu1 %v793_v36 }
  0x35   :  { %745 = vmatprep.mubr.bf16.mxu1 %v800_v37 }
  0x3a   :  { %431 = vmatmul.mubr.bf16.gmra.mxu0 %v788_v38 }
  0x3b   :  { %438 = vmatprep.mubr.bf16.mxu0 %v789_v39 }
  0x3c   :  { %746 = vmatmul.mubr.bf16.gmra.mxu1 %v801_v40 }
  0x42   :  { %439 = vmatmul.mubr.bf16.gmra.mxu0 %v791_v41 }
  0x43   :  { %446 = vmatprep.mubr.bf16.mxu0 %v794_v42 }
  0x4a   :  { %447 = vmatmul.mubr.bf16.gmra.mxu0 %v796_v43 }
  0x4b   :  { %454 = vmatprep.mubr.bf16.mxu0 %v797_v44 }
  0x52   :  { %455 = vmatmul.mubr.bf16.gmra.mxu0 %v799_v45 }
  0x53   :  { %462 = vmatprep.mubr.bf16.mxu0 %v802_v46 }
  0x5a   :  { %463 = vmatmul.mubr.bf16.gmra.mxu0 %v804_v47 }
  0xe2   :  { %v653_v48 = vpop.f32.mrf.mxu0 }
  0xe4   :  { %v654_v49 = vpop.f32.mrf.mxu0  ;;  %v735_v52 = vpop.f32.mrf.mxu1 }
  0xe5   :  { %v655_v51 = vadd.f32 %v654_v49, %v653_v48 }
  0xe6   :  { %v656_v53 = vpop.f32.mrf.mxu0  ;;  %v505_v55 = vpop.f32.mrf.mxu1 }
  0xe7   :  { %v409_v54 = vadd.f32 %v655_v51, %v972_v50 }
  0xe8   :  { %v657_v56 = vpop.f32.mrf.mxu0  ;;  %v736_v59 = vpop.f32.mrf.mxu1 }
  0xe9   :  { %v658_v57 = vadd.f32 %v657_v56, %v656_v53  ;;  %v506_v58 = vadd.f32 %v505_v55, %v409_v54 }
  0xea   :  { %v659_v60 = vpop.f32.mrf.mxu0  ;;  %v508_v62 = vpop.f32.mrf.mxu1 }
  0xeb   :  { %568 = vst [vmem:[%s1041_s3] sm:$0xff] %v506_v58  ;;  %v412_v61 = vadd.f32 %v658_v57, %v972_v50 }
  0xec   :  { %v660_v63 = vpop.f32.mrf.mxu0  ;;  %v739_v3 = vpop.f32.mrf.mxu1 }
  0xed   :  { %v661_v0 = vadd.f32 %v660_v63, %v659_v60  ;;  %v509_v1 = vadd.f32 %v508_v62, %v412_v61 }
  0xee   :  { %v662_v2 = vpop.f32.mrf.mxu0  ;;  %v521_v9 = vpop.f32.mrf.mxu1 }
  0xef   :  { %v417_v4 = vadd.f32 %v661_v0, %v972_v50  ;;  %569 = vst [vmem:[%s1041_s3 + $0x8] sm:$0xff] %v509_v1 }
  0xf0   :  { %v663_v5 = vpop.f32.mrf.mxu0  ;;  %v740_v15 = vpop.f32.mrf.mxu1 }
  0xf1   :  { %v514_v6 = vadd.f32 %v735_v52, %v417_v4  ;;  %v664_v7 = vadd.f32 %v663_v5, %v662_v2 }
  0xf2   :  { %v665_v8 = vpop.f32.mrf.mxu0  ;;  %v524_v21 = vpop.f32.mrf.mxu1 }
  0xf3   :  { %570 = vst [vmem:[%s1041_s3 + $0x10] sm:$0xff] %v514_v6  ;;  %v420_v10 = vadd.f32 %v664_v7, %v972_v50 }
  0xf4   :  { %v666_v11 = vpop.f32.mrf.mxu0  ;;  %v743_v27 = vpop.f32.mrf.mxu1 }
  0xf5   :  { %v517_v12 = vadd.f32 %v736_v59, %v420_v10  ;;  %v667_v13 = vadd.f32 %v666_v11, %v665_v8 }
  0xf6   :  { %v668_v14 = vpop.f32.mrf.mxu0  ;;  %v537_v33 = vpop.f32.mrf.mxu1 }
  0xf7   :  { %571 = vst [vmem:[%s1041_s3 + $0x18] sm:$0xff] %v517_v12  ;;  %v425_v16 = vadd.f32 %v667_v13, %v972_v50 }
  0xf8   :  { %v669_v17 = vpop.f32.mrf.mxu0  ;;  %v744_v39 = vpop.f32.mrf.mxu1 }
  0xf9   :  { %v670_v18 = vadd.f32 %v669_v17, %v668_v14  ;;  %v522_v19 = vadd.f32 %v521_v9, %v425_v16 }
  0xfa   :  { %v671_v20 = vpop.f32.mrf.mxu0  ;;  %v540_v45 = vpop.f32.mrf.mxu1 }
  0xfb   :  { %572 = vst [vmem:[%s1041_s3 + $0x20] sm:$0xff] %v522_v19  ;;  %v428_v22 = vadd.f32 %v670_v18, %v972_v50 }
  0xfc   :  { %v672_v23 = vpop.f32.mrf.mxu0  ;;  %v747_v52 = vpop.f32.mrf.mxu1 }
  0xfd   :  { %v673_v24 = vadd.f32 %v672_v23, %v671_v20  ;;  %v525_v25 = vadd.f32 %v524_v21, %v428_v22 }
  0xfe   :  { %v674_v26 = vpop.f32.mrf.mxu0  ;;  %v553_v58 = vpop.f32.mrf.mxu1 }
  0xff   :  { %v433_v28 = vadd.f32 %v673_v24, %v972_v50  ;;  %573 = vst [vmem:[%s1041_s3 + $0x28] sm:$0xff] %v525_v25 }
 0x100   :  { %v675_v29 = vpop.f32.mrf.mxu0  ;;  %v748_v0 = vpop.f32.mrf.mxu1 }
 0x101   :  { %v530_v30 = vadd.f32 %v739_v3, %v433_v28  ;;  %v676_v31 = vadd.f32 %v675_v29, %v674_v26 }
 0x102   :  { %v677_v32 = vpop.f32.mrf.mxu0  ;;  %v556_v6 = vpop.f32.mrf.mxu1 }
 0x103   :  { %574 = vst [vmem:[%s1041_s3 + $0x30] sm:$0xff] %v530_v30  ;;  %v436_v34 = vadd.f32 %v676_v31, %v972_v50 }
 0x104   :  { %v678_v35 = vpop.f32.mrf.mxu0 }
 0x105   :  { %v533_v36 = vadd.f32 %v740_v15, %v436_v34  ;;  %v679_v37 = vadd.f32 %v678_v35, %v677_v32 }
 0x106   :  { %v680_v38 = vpop.f32.mrf.mxu0 }
 0x107   :  { %575 = vst [vmem:[%s1041_s3 + $0x38] sm:$0xff] %v533_v36  ;;  %v441_v40 = vadd.f32 %v679_v37, %v972_v50 }
 0x108   :  { %v681_v41 = vpop.f32.mrf.mxu0 }
 0x109   :  { %v682_v42 = vadd.f32 %v681_v41, %v680_v38  ;;  %v538_v43 = vadd.f32 %v537_v33, %v441_v40 }
 0x10a   :  { %v683_v44 = vpop.f32.mrf.mxu0 }
 0x10b   :  { %576 = vst [vmem:[%s1041_s3 + $0x40] sm:$0xff] %v538_v43  ;;  %v444_v46 = vadd.f32 %v682_v42, %v972_v50 }
 0x10c   :  { %v684_v47 = vpop.f32.mrf.mxu0 }
 0x10d   :  { %v685_v48 = vadd.f32 %v684_v47, %v683_v44  ;;  %v541_v49 = vadd.f32 %v540_v45, %v444_v46 }
 0x10e   :  { %v686_v51 = vpop.f32.mrf.mxu0 }
 0x10f   :  { %v449_v53 = vadd.f32 %v685_v48, %v972_v50  ;;  %577 = vst [vmem:[%s1041_s3 + $0x48] sm:$0xff] %v541_v49 }
 0x110   :  { %v687_v54 = vpop.f32.mrf.mxu0 }
 0x111   :  { %v546_v55 = vadd.f32 %v743_v27, %v449_v53  ;;  %v688_v56 = vadd.f32 %v687_v54, %v686_v51 }
 0x112   :  { %v689_v57 = vpop.f32.mrf.mxu0 }
 0x113   :  { %578 = vst [vmem:[%s1041_s3 + $0x50] sm:$0xff] %v546_v55  ;;  %v452_v59 = vadd.f32 %v688_v56, %v972_v50 }
 0x114   :  { %v690_v60 = vpop.f32.mrf.mxu0 }
 0x115   :  { %v549_v61 = vadd.f32 %v744_v39, %v452_v59  ;;  %v691_v62 = vadd.f32 %v690_v60, %v689_v57 }
 0x116   :  { %v692_v63 = vpop.f32.mrf.mxu0 }
 0x117   :  { %579 = vst [vmem:[%s1041_s3 + $0x58] sm:$0xff] %v549_v61  ;;  %v457_v1 = vadd.f32 %v691_v62, %v972_v50 }
 0x118   :  { %v693_v2 = vpop.f32.mrf.mxu0 }
 0x119   :  { %v694_v3 = vadd.f32 %v693_v2, %v692_v63  ;;  %v554_v4 = vadd.f32 %v553_v58, %v457_v1 }
 0x11a   :  { %v695_v5 = vpop.f32.mrf.mxu0 }
 0x11b   :  { %580 = vst [vmem:[%s1041_s3 + $0x60] sm:$0xff] %v554_v4  ;;  %v460_v7 = vadd.f32 %v694_v3, %v972_v50 }
 0x11c   :  { %v696_v8 = vpop.f32.mrf.mxu0 }
 0x11d   :  { %v697_v9 = vadd.f32 %v696_v8, %v695_v5  ;;  %v557_v10 = vadd.f32 %v556_v6, %v460_v7 }
 0x11e   :  { %v698_v11 = vpop.f32.mrf.mxu0 }
 0x11f   :  { %v465_v12 = vadd.f32 %v697_v9, %v972_v50  ;;  %581 = vst [vmem:[%s1041_s3 + $0x68] sm:$0xff] %v557_v10 }
 0x120   :  { %v699_v13 = vpop.f32.mrf.mxu0 }
 0x121   :  { %v562_v14 = vadd.f32 %v747_v52, %v465_v12  ;;  %v700_v15 = vadd.f32 %v699_v13, %v698_v11 }
 0x123   :  { %582 = vst [vmem:[%s1041_s3 + $0x70] sm:$0xff] %v562_v14  ;;  %v468_v16 = vadd.f32 %v700_v15, %v972_v50 }
 0x125   :  { %v565_v17 = vadd.f32 %v748_v0, %v468_v16 }
 0x127   :  { %583 = vst [vmem:[%s1041_s3 + $0x78] sm:$0xff] %v565_v17 }

// kernel: image_compressor_forward.55
= control target key start
LH: loop header
LB: loop body
LE: loop exit
PB: predicated region body
PF: predicated region fallthrough
CT: control target
= control target key end

     0   :  { %s483_s1 = inlined_call_operand.vmem [shape: bf16[128,128], index: 1, kind: input, shape index: {}]   ;;  %s484_s0 = inlined_call_operand.vmem [shape: bf16[128,128], index: 0, kind: input, shape index: {}]   ;;  %s485_s2 = inlined_call_operand.vmem [shape: f32[1,128], index: 2, kind: input, shape index: {}]   ;;  %s486_s3 = inlined_call_operand.vmem [shape: f32[128,128], index: 3, kind: output, shape index: {}]  }
   0x1   :  { %v348_v0 = vld [vmem:[%s483_s1 + $0x38] sm:$0xff]   ;;  %v349_v1 = vld [vmem:[%s483_s1 + $0x30] sm:$0xff]   ;;  %v350_v2 = vld [vmem:[%s483_s1 + $0x28] sm:$0xff]  }
   0x2   :  { %300 = vmatprep.subr.bf16.mxu0 %v348_v0  ;;  %332 = vmatprep.subr.bf16.mxu1 %v348_v0  ;;  %v351_v3 = vld [vmem:[%s483_s1 + $0x20] sm:$0xff]   ;;  %v352_v6 = vld [vmem:[%s483_s1 + $0x18] sm:$0xff]   ;;  %v353_v7 = vld [vmem:[%s483_s1 + $0x10] sm:$0xff]  }
   0x3   :  { %301 = vmatpush3.bf16.msra.mxu0 %v348_v0  ;;  %340 = vmatpush3.bf16.msra.mxu1 %v348_v0  ;;  %v356_v4 = vld [vmem:[%s484_s0] sm:$0xff]   ;;  %v354_v8 = vld [vmem:[%s483_s1 + $0x8] sm:$0xff]   ;;  %v360_v12 = vld [vmem:[%s484_s0 + $0x10] sm:$0xff]  }
   0x4   :  { %302 = vmatprep.subr.bf16.mxu0 %v349_v1  ;;  %333 = vmatprep.subr.bf16.mxu1 %v349_v1  ;;  %v357_v5 = vld [vmem:[%s484_s0 + $0x20] sm:$0xff]   ;;  %v358_v10 = vld [vmem:[%s484_s0 + $0x8] sm:$0xff]   ;;  %v361_v13 = vld [vmem:[%s484_s0 + $0x30] sm:$0xff]  }
   0x5   :  { %316 = vmatprep.mubr.bf16.mxu0 %v356_v4  ;;  %324 = vmatprep.mubr.bf16.mxu1 %v357_v5  ;;  %v355_v9 = vld [vmem:[%s483_s1] sm:$0xff]   ;;  %v359_v11 = vld [vmem:[%s484_s0 + $0x28] sm:$0xff]   ;;  %v362_v14 = vld [vmem:[%s484_s0 + $0x18] sm:$0xff]  }
   0x6   :  { %v363_v15 = vld [vmem:[%s484_s0 + $0x38] sm:$0xff]   ;;  %v267_v16 = vld [vmem:[%s485_s2] ss:$0 sm:$0xff] }
   0x7   :  { %303 = vmatpush3.bf16.msra.mxu0 %v349_v1  ;;  %341 = vmatpush3.bf16.msra.mxu1 %v349_v1 }
   0x8   :  { %304 = vmatprep.subr.bf16.mxu0 %v350_v2  ;;  %334 = vmatprep.subr.bf16.mxu1 %v350_v2 }
   0xb   :  { %305 = vmatpush3.bf16.msra.mxu0 %v350_v2  ;;  %342 = vmatpush3.bf16.msra.mxu1 %v350_v2 }
   0xc   :  { %306 = vmatprep.subr.bf16.mxu0 %v351_v3  ;;  %335 = vmatprep.subr.bf16.mxu1 %v351_v3 }
   0xf   :  { %307 = vmatpush3.bf16.msra.mxu0 %v351_v3  ;;  %343 = vmatpush3.bf16.msra.mxu1 %v351_v3 }
  0x10   :  { %308 = vmatprep.subr.bf16.mxu0 %v352_v6  ;;  %336 = vmatprep.subr.bf16.mxu1 %v352_v6 }
  0x13   :  { %309 = vmatpush3.bf16.msra.mxu0 %v352_v6  ;;  %344 = vmatpush3.bf16.msra.mxu1 %v352_v6 }
  0x14   :  { %310 = vmatprep.subr.bf16.mxu0 %v353_v7  ;;  %337 = vmatprep.subr.bf16.mxu1 %v353_v7 }
  0x17   :  { %311 = vmatpush3.bf16.msra.mxu0 %v353_v7  ;;  %345 = vmatpush3.bf16.msra.mxu1 %v353_v7 }
  0x18   :  { %312 = vmatprep.subr.bf16.mxu0 %v354_v8  ;;  %338 = vmatprep.subr.bf16.mxu1 %v354_v8 }
  0x1b   :  { %313 = vmatpush3.bf16.msra.mxu0 %v354_v8  ;;  %346 = vmatpush3.bf16.msra.mxu1 %v354_v8 }
  0x1c   :  { %314 = vmatprep.subr.bf16.mxu0 %v355_v9  ;;  %339 = vmatprep.subr.bf16.mxu1 %v355_v9 }
  0x1f   :  { %315 = vmatpush3.bf16.msra.mxu0 %v355_v9  ;;  %347 = vmatpush3.bf16.msra.mxu1 %v355_v9 }
  0x22   :  { %317 = vmatmul.mubr.bf16.vlgmr.msra.gmra.mxu0 %v358_v10  ;;  %325 = vmatmul.mubr.bf16.vlgmr.msra.gmra.mxu1 %v359_v11 }
  0x23   :  { %320 = vmatprep.mubr.bf16.mxu0 %v360_v12  ;;  %328 = vmatprep.mubr.bf16.mxu1 %v361_v13 }
  0x2a   :  { %321 = vmatmul.mubr.bf16.gmra.mxu0 %v362_v14  ;;  %329 = vmatmul.mubr.bf16.gmra.mxu1 %v363_v15 }
  0xe2   :  { %v318_v17 = vpop.f32.mrf.mxu0  ;;  %v326_v18 = vpop.f32.mrf.mxu1 }
  0xe3   :  { %v193_v19 = vadd.f32 %v318_v17, %v267_v16  ;;  %v225_v20 = vadd.f32 %v326_v18, %v267_v16 }
  0xe4   :  { %v184_v21 = vpop.f32.mrf.mxu0  ;;  %v216_v22 = vpop.f32.mrf.mxu1 }
  0xe5   :  { %249 = vst [vmem:[%s486_s3 + $0x10] sm:$0xff] %v193_v19  ;;  %257 = vst [vmem:[%s486_s3 + $0x50] sm:$0xff] %v225_v20  ;;  %v185_v23 = vadd.f32 %v267_v16, %v184_v21  ;;  %v217_v24 = vadd.f32 %v267_v16, %v216_v22 }
  0xe6   :  { %v319_v25 = vpop.f32.mrf.mxu0  ;;  %v327_v26 = vpop.f32.mrf.mxu1 }
  0xe7   :  { %247 = vst [vmem:[%s486_s3] sm:$0xff] %v185_v23  ;;  %255 = vst [vmem:[%s486_s3 + $0x40] sm:$0xff] %v217_v24  ;;  %v196_v27 = vadd.f32 %v319_v25, %v267_v16  ;;  %v228_v28 = vadd.f32 %v327_v26, %v267_v16 }
  0xe8   :  { %v187_v29 = vpop.f32.mrf.mxu0  ;;  %v219_v30 = vpop.f32.mrf.mxu1 }
  0xe9   :  { %250 = vst [vmem:[%s486_s3 + $0x18] sm:$0xff] %v196_v27  ;;  %258 = vst [vmem:[%s486_s3 + $0x58] sm:$0xff] %v228_v28  ;;  %v188_v31 = vadd.f32 %v267_v16, %v187_v29  ;;  %v220_v32 = vadd.f32 %v267_v16, %v219_v30 }
  0xea   :  { %v322_v33 = vpop.f32.mrf.mxu0  ;;  %v330_v34 = vpop.f32.mrf.mxu1 }
  0xeb   :  { %248 = vst [vmem:[%s486_s3 + $0x8] sm:$0xff] %v188_v31  ;;  %256 = vst [vmem:[%s486_s3 + $0x48] sm:$0xff] %v220_v32  ;;  %v209_v35 = vadd.f32 %v322_v33, %v267_v16  ;;  %v241_v36 = vadd.f32 %v330_v34, %v267_v16 }
  0xec   :  { %v200_v37 = vpop.f32.mrf.mxu0  ;;  %v232_v38 = vpop.f32.mrf.mxu1 }
  0xed   :  { %253 = vst [vmem:[%s486_s3 + $0x30] sm:$0xff] %v209_v35  ;;  %261 = vst [vmem:[%s486_s3 + $0x70] sm:$0xff] %v241_v36  ;;  %v201_v39 = vadd.f32 %v267_v16, %v200_v37  ;;  %v233_v40 = vadd.f32 %v267_v16, %v232_v38 }
  0xee   :  { %v323_v41 = vpop.f32.mrf.mxu0  ;;  %v331_v42 = vpop.f32.mrf.mxu1 }
  0xef   :  { %251 = vst [vmem:[%s486_s3 + $0x20] sm:$0xff] %v201_v39  ;;  %259 = vst [vmem:[%s486_s3 + $0x60] sm:$0xff] %v233_v40  ;;  %v212_v43 = vadd.f32 %v323_v41, %v267_v16  ;;  %v244_v44 = vadd.f32 %v331_v42, %v267_v16 }
  0xf0   :  { %v203_v45 = vpop.f32.mrf.mxu0  ;;  %v235_v46 = vpop.f32.mrf.mxu1 }
  0xf1   :  { %254 = vst [vmem:[%s486_s3 + $0x38] sm:$0xff] %v212_v43  ;;  %262 = vst [vmem:[%s486_s3 + $0x78] sm:$0xff] %v244_v44  ;;  %v204_v47 = vadd.f32 %v267_v16, %v203_v45  ;;  %v236_v48 = vadd.f32 %v267_v16, %v235_v46 }
  0xf3   :  { %252 = vst [vmem:[%s486_s3 + $0x28] sm:$0xff] %v204_v47  ;;  %260 = vst [vmem:[%s486_s3 + $0x68] sm:$0xff] %v236_v48 }

// kernel: tile.19
= control target key start
LH: loop header
LB: loop body
LE: loop exit
PB: predicated region body
PF: predicated region fallthrough
CT: control target
= control target key end

     0   :  { %vm22_vm0 = vcmask 261120   ;;  %s59_s14 = smov 32   ;;  %s60_s15 = smov 64   ;;  %vm28_vm1 = vcmask 1048320   ;;  %vm34_vm2 = vcmask 785920   ;;  %vm40_vm3 = vcmask 523520   ;;  %s86_s0 = inlined_call_operand.vmem [shape: f32[4,4,32], index: 0, kind: input, shape index: {}]   ;;  %s87_s1 = inlined_call_operand.vmem [shape: f32[4,128], index: 1, kind: output, shape index: {}]  }
   0x1   :  { %v52_v0 = vld [vmem:[%s86_s0 + $0xc] sm:$0xf]  ;;  %v53_v1 = vld [vmem:[%s86_s0 + $0x8] sm:$0xf]  ;;  %v54_v2 = vld [vmem:[%s86_s0 + $0x4] sm:$0xf] }
   0x2   :  { %9 = vst [vmem:[#allocation1 + $0x18] sm:$0xf] %v52_v0  ;;  %14 = vst [vmem:[#allocation1 + $0x10] sm:$0xf] %v53_v1  ;;  %v19_v3 = vld [vmem:[%s86_s0] sm:$0xf] }
   0x3   :  { %18 = vst [vmem:[#allocation1 + $0x8] sm:$0xf] %v54_v2  ;;  %20 = vst [vmem:[#allocation1] sm:$0xf] %v19_v3  ;;  %s58_s0 = smov 96  }
   0xa   :  { %v25_v4 = vld [vmem:[#allocation1 + $0x3] ss:$8 sm:$0xf]   ;;  %v37_v5 = vld [vmem:[#allocation1 + $0x1] ss:$8 sm:$0xf]  }
   0xb   :  { %26 = vrot.lane.b32.xlu0 %v25_v4, %s58_s0  ;;  %v21_v6 = vld [vmem:[#allocation1] ss:$8 sm:$0xf]   ;;  %v31_v7 = vld [vmem:[#allocation1 + $0x2] ss:$8 sm:$0xf]   ;;  %38 = vrot.lane.b32.xlu1 %v37_v5, %s59_s14 }
   0xc   :  { %23 = vst.msk [vmem:[#allocation0] sm:$0xf] %vm22_vm0, %v21_v6  }
   0xf   :  { %32 = vrot.lane.b32.xlu0 %v31_v7, %s60_s15 }
  0x7d   :  { %v27_v8 = vpop.permute.xlu0 %26   ;;  %v39_v9 = vpop.permute.xlu1 %38  }
  0x7e   :  { %29 = vst.msk [vmem:[#allocation0] sm:$0xf] %vm28_vm1, %v27_v8  }
  0x81   :  { %v33_v10 = vpop.permute.xlu0 %32  }
  0x82   :  { %35 = vst.msk [vmem:[#allocation0] sm:$0xf] %vm34_vm2, %v33_v10  }
  0x83   :  { %41 = vst.msk [vmem:[#allocation0] sm:$0xf] %vm40_vm3, %v39_v9  }
  0x8a   :  { %v46_v11 = vld [vmem:[#allocation0] sm:$0xf] }
  0x8b   :  { %49 = vst [vmem:[%s87_s1] sm:$0xf] %v46_v11 }

// kernel: tile.29
= control target key start
LH: loop header
LB: loop body
LE: loop exit
PB: predicated region body
PF: predicated region fallthrough
CT: control target
= control target key end

     0   :  { %vm17_vm0 = vcmask 261120   ;;  %s52_s12 = smov 32   ;;  %s53_s13 = smov 64   ;;  %vm23_vm1 = vcmask 1048320   ;;  %vm29_vm2 = vcmask 785920   ;;  %vm35_vm3 = vcmask 523520   ;;  %s76_s0 = inlined_call_operand.vmem [shape: f32[3,4,32], index: 0, kind: input, shape index: {}]   ;;  %s77_s1 = inlined_call_operand.vmem [shape: f32[3,128], index: 1, kind: output, shape index: {}]  }
   0x1   :  { %v46_v0 = vld [vmem:[%s76_s0 + $0x8] sm:$0xf]  ;;  %v47_v1 = vld [vmem:[%s76_s0 + $0x4] sm:$0xf]  ;;  %v14_v2 = vld [vmem:[%s76_s0] sm:$0xf] }
   0x2   :  { %9 = vst [vmem:[#allocation1 + $0x10] sm:$0xf] %v46_v0  ;;  %13 = vst [vmem:[#allocation1 + $0x8] sm:$0xf] %v47_v1  ;;  %s51_s0 = smov 96  }
   0x3   :  { %15 = vst [vmem:[#allocation1] sm:$0xf] %v14_v2 }
   0xa   :  { %v20_v3 = vld [vmem:[#allocation1 + $0x3] ss:$8 sm:$0x7]   ;;  %v32_v4 = vld [vmem:[#allocation1 + $0x1] ss:$8 sm:$0x7]  }
   0xb   :  { %21 = vrot.lane.b32.xlu0 %v20_v3, %s51_s0  ;;  %v16_v5 = vld [vmem:[#allocation1] ss:$8 sm:$0x7]   ;;  %v26_v6 = vld [vmem:[#allocation1 + $0x2] ss:$8 sm:$0x7]   ;;  %33 = vrot.lane.b32.xlu1 %v32_v4, %s52_s12 }
   0xc   :  { %18 = vst.msk [vmem:[#allocation0] sm:$0x7] %vm17_vm0, %v16_v5  }
   0xf   :  { %27 = vrot.lane.b32.xlu0 %v26_v6, %s53_s13 }
  0x7d   :  { %v22_v7 = vpop.permute.xlu0 %21   ;;  %v34_v8 = vpop.permute.xlu1 %33  }
  0x7e   :  { %24 = vst.msk [vmem:[#allocation0] sm:$0x7] %vm23_vm1, %v22_v7  }
  0x81   :  { %v28_v9 = vpop.permute.xlu0 %27  }
  0x82   :  { %30 = vst.msk [vmem:[#allocation0] sm:$0x7] %vm29_vm2, %v28_v9  }
  0x83   :  { %36 = vst.msk [vmem:[#allocation0] sm:$0x7] %vm35_vm3, %v34_v8  }
  0x8a   :  { %v41_v10 = vld [vmem:[#allocation0] sm:$0xf] }
  0x8b   :  { %44 = vst [vmem:[%s77_s1] sm:$0xf] %v41_v10 }

// kernel: image_compressor_forward.56
= control target key start
LH: loop header
LB: loop body
LE: loop exit
PB: predicated region body
PF: predicated region fallthrough
CT: control target
= control target key end

     0   :  { %s99_s0 = inlined_call_operand.vmem [shape: f32[48,128], index: 0, kind: input, shape index: {}]   ;;  %s100_s1 = inlined_call_operand.vmem [shape: f32[48,128], index: 1, kind: input, shape index: {}]   ;;  %s101_s2 = inlined_call_operand.vmem [shape: f32[8,128], index: 2, kind: output, shape index: {}]  }
   0x1   :  { %v11_v0 = vld [vmem:[%s99_s0] sm:$0xff]  ;;  %v12_v1 = vld [vmem:[%s99_s0 + $0x8] sm:$0xff]  ;;  %v13_v2 = vld [vmem:[%s99_s0 + $0x10] sm:$0xff] }
   0x2   :  { %v14_v3 = vld [vmem:[%s99_s0 + $0x18] sm:$0xff]  ;;  %v15_v4 = vld [vmem:[%s99_s0 + $0x20] sm:$0xff]  ;;  %v18_v6 = vld [vmem:[%s100_s1 + $0x8] sm:$0xff] }
   0x3   :  { %v17_v5 = vld [vmem:[%s100_s1] sm:$0xff]  ;;  %v19_v7 = vld [vmem:[%s100_s1 + $0x10] sm:$0xff]  ;;  %v20_v8 = vld [vmem:[%s100_s1 + $0x18] sm:$0xff]  ;;  %v24_v11 = vsub.f32 %v12_v1, %v18_v6 }
   0x4   :  { %v21_v9 = vld [vmem:[%s100_s1 + $0x20] sm:$0xff]  ;;  %v23_v10 = vsub.f32 %v11_v0, %v17_v5  ;;  %v25_v12 = vsub.f32 %v13_v2, %v19_v7  ;;  %v16_v13 = vld [vmem:[%s99_s0 + $0x28] sm:$0xff]  ;;  %v26_v15 = vsub.f32 %v14_v3, %v20_v8 }
   0x5   :  { %v22_v14 = vld [vmem:[%s100_s1 + $0x28] sm:$0xff]  ;;  %v27_v16 = vsub.f32 %v15_v4, %v21_v9  ;;  %v30_v18 = vmul.f32 %v24_v11, %v24_v11 }
   0x6   :  { %v29_v17 = vmul.f32 %v23_v10, %v23_v10  ;;  %v31_v19 = vmul.f32 %v25_v12, %v25_v12  ;;  %v28_v20 = vsub.f32 %v16_v13, %v22_v14  ;;  %v32_v21 = vmul.f32 %v26_v15, %v26_v15 }
   0x7   :  { %v33_v23 = vmul.f32 %v27_v16, %v27_v16 }
   0x8   :  { %v35_v22 = vadd.f32 %v30_v18, %v29_v17  ;;  %v34_v25 = vmul.f32 %v28_v20, %v28_v20 }
   0xa   :  { %v36_v24 = vadd.f32 %v35_v22, %v31_v19 }
   0xc   :  { %v37_v26 = vadd.f32 %v36_v24, %v32_v21 }
   0xe   :  { %v38_v27 = vadd.f32 %v37_v26, %v33_v23 }
  0x10   :  { %v39_v28 = vadd.f32 %v38_v27, %v34_v25 }
  0x12   :  { %40 = vst [vmem:[%s101_s2] sm:$0xff] %v39_v28 }

// kernel: image_compressor_forward.57
= control target key start
LH: loop header
LB: loop body
LE: loop exit
PB: predicated region body
PF: predicated region fallthrough
CT: control target
= control target key end

     0   :  { %v41_v0 = vlaneseq  ;;  %s246_s1 = inlined_call_operand.vmem [shape: f32[4,128], index: 1, kind: input, shape index: {}]   ;;  %s247_s2 = inlined_call_operand.vmem [shape: f32[4,128], index: 2, kind: input, shape index: {}]   ;;  %s248_s0 = inlined_call_operand.vmem [shape: f32[8,128], index: 0, kind: input, shape index: {}]   ;;  %s249_s3 = inlined_call_operand.vmem [shape: f32[3,128], index: 3, kind: input, shape index: {}]   ;;  %s250_s4 = inlined_call_operand.vmem [shape: f32[8,128], index: 4, kind: output, shape index: {}]  }
   0x1   :  { %v18_v1 = vld [vmem:[%s246_s1] sm:$0xf] }
   0x2   :  { %v22_v2 = vand.u32 2147483647, %v18_v1  ;;  %v42_v3 = vshrl.u32 %v41_v0, 7  ;;  %v224_v7 = vld [vmem:[%s247_s2] sm:$0xf]  ;;  %v19_v16 = vmax.f32 %v18_v1, 0.0  ;;  %vm20_vm1 = vcmp.ne.f32.partialorder %v18_v1, %v18_v1 }
   0x3   :  { %v17_v18 = vld [vmem:[%s248_s0] sm:$0xff]  ;;  %v146_v26 = vand.u32 127, %v41_v0 }
   0x4   :  { %v23_v4 = vsub.f32 0.0, %v22_v2  ;;  %v94_v5 = vsub.s32 3, %v42_v3  ;;  %v43_v20 = vsub.s32 0, %v42_v3  ;;  %v38_v22 = vld [vmem:[%s249_s3] sm:$0x7]  ;;  %v40_v23 = vadd.f32 0.5, %v17_v18 }
   0x5   :  { %v160_v24 = vadd.f32 -0.5, %v17_v18  ;;  %v147_v27 = vmul.u32 128, %v42_v3  ;;  %v60_v38 = vsub.s32 1, %v42_v3  ;;  %v77_v52 = vsub.s32 2, %v42_v3 }
   0x6   :  { %v24_v6 = vmul.f32 1.442695, %v23_v4  ;;  %v227_v8 = vrot.slane %v224_v7, %v94_v5  ;;  %v49_v29 = vrot.slane %v224_v7, %v43_v20 }
   0x7   :  { %v236_v31 = vadd.s32 %v147_v27, %v146_v26  ;;  %v66_v45 = vrot.slane %v224_v7, %v60_v38  ;;  %v83_v59 = vrot.slane %v224_v7, %v77_v52  ;;  %v192_v27 = vmov 0.0  }
   0x8   :  { %164 = vpow2.f32 %v24_v6 }
   0x9   :  { %vm149_vm2 = vcmp.lt.s32.totalorder %v236_v31, 256 }
  0x15   :  { %v165_v9 = vpop.eup %164 }
  0x16   :  { %v26_v10 = vadd.f32 1.0, %v165_v9  ;;  %v29_v11 = vmul.f32 -0.5, %v165_v9  ;;  %v32_v13 = vand.u32 2147483647, %v165_v9 }
  0x18   :  { %166 = vlog2.f32 %v26_v10  ;;  %v30_v12 = vadd.f32 1.0, %v29_v11  ;;  %vm33_vm0 = vcmp.lt.f32.partialorder %v32_v13, 0.0004427343 }
  0x19   :  { %168 = vtanh.f32 %v38_v22 }
  0x1a   :  { %v31_v14 = vmul.f32 %v165_v9, %v30_v12 }
  0x25   :  { %v167_v15 = vpop.eup %166 }
  0x26   :  { %v28_v17 = vmul.f32 0.6931472, %v167_v15  ;;  %v169_v36 = vpop.eup %168 }
  0x27   :  { %v55_v37 = vrot.slane %v169_v36, %v43_v20  ;;  %v72_v51 = vrot.slane %v169_v36, %v60_v38 }
  0x28   :  { %v34_v19 = vsel %vm33_vm0, %v31_v14, %v28_v17 }
  0x29   :  { %v35_v21 = vadd.f32 %v34_v19, %v19_v16 }
  0x2b   :  { %v36_v25 = vsel %vm20_vm1, %v18_v1, %v35_v21  ;;  %v89_v1 = vrot.slane %v169_v36, %v77_v52 }
  0x2c   :  { %v44_v28 = vrot.slane %v36_v25, %v43_v20  ;;  %v95_v30 = vrot.slane %v36_v25, %v94_v5  ;;  %v61_v42 = vrot.slane %v36_v25, %v60_v38  ;;  %v78_v56 = vrot.slane %v36_v25, %v77_v52 }
  0x2e   :  { %v45_v32 = vmul.f32 %v44_v28, %v40_v23  ;;  %v109_v33 = vmul.f32 %v160_v24, %v44_v28  ;;  %v162_v28 = vsel %vm149_vm2, 1.0, %v192_v27 }
  0x30   :  { %v50_v34 = vadd.f32 %v49_v29, %v45_v32  ;;  %v110_v35 = vadd.f32 %v109_v33, %v49_v29 }
  0x32   :  { %170 = vtanh.f32 %v50_v34 }
  0x33   :  { %172 = vtanh.f32 %v110_v35 }
  0x3f   :  { %v171_v39 = vpop.eup %170 }
  0x40   :  { %v173_v40 = vpop.eup %172  ;;  %v56_v41 = vmul.f32 %v171_v39, %v55_v37 }
  0x41   :  { %v112_v43 = vmul.f32 %v173_v40, %v55_v37 }
  0x42   :  { %v57_v44 = vadd.f32 %v56_v41, %v50_v34 }
  0x43   :  { %v113_v46 = vadd.f32 %v112_v43, %v110_v35 }
  0x44   :  { %v62_v47 = vmul.f32 %v61_v42, %v57_v44 }
  0x45   :  { %v114_v48 = vmul.f32 %v113_v46, %v61_v42 }
  0x46   :  { %v67_v49 = vadd.f32 %v66_v45, %v62_v47 }
  0x47   :  { %v115_v50 = vadd.f32 %v114_v48, %v66_v45 }
  0x48   :  { %174 = vtanh.f32 %v67_v49 }
  0x49   :  { %176 = vtanh.f32 %v115_v50 }
  0x55   :  { %v175_v53 = vpop.eup %174 }
  0x56   :  { %v177_v54 = vpop.eup %176  ;;  %v73_v55 = vmul.f32 %v175_v53, %v72_v51 }
  0x57   :  { %v117_v57 = vmul.f32 %v177_v54, %v72_v51 }
  0x58   :  { %v74_v58 = vadd.f32 %v73_v55, %v67_v49 }
  0x59   :  { %v118_v60 = vadd.f32 %v117_v57, %v115_v50 }
  0x5a   :  { %v79_v61 = vmul.f32 %v78_v56, %v74_v58 }
  0x5b   :  { %v119_v62 = vmul.f32 %v118_v60, %v78_v56 }
  0x5c   :  { %v84_v63 = vadd.f32 %v83_v59, %v79_v61 }
  0x5d   :  { %v120_v0 = vadd.f32 %v119_v62, %v83_v59 }
  0x5e   :  { %178 = vtanh.f32 %v84_v63 }
  0x5f   :  { %180 = vtanh.f32 %v120_v0 }
  0x6b   :  { %v179_v2 = vpop.eup %178 }
  0x6c   :  { %v181_v4 = vpop.eup %180  ;;  %v90_v5 = vmul.f32 %v179_v2, %v89_v1 }
  0x6d   :  { %v122_v3 = vmul.f32 %v181_v4, %v89_v1 }
  0x6e   :  { %v91_v6 = vadd.f32 %v90_v5, %v84_v63 }
  0x6f   :  { %v123_v9 = vadd.f32 %v122_v3, %v120_v0 }
  0x70   :  { %v96_v10 = vmul.f32 %v95_v30, %v91_v6 }
  0x71   :  { %v124_v11 = vmul.f32 %v123_v9, %v95_v30 }
  0x72   :  { %v101_v12 = vadd.f32 %v227_v8, %v96_v10 }
  0x73   :  { %v125_v7 = vadd.f32 %v124_v11, %v227_v8 }
  0x74   :  { %v159_v13 = vmul.f32 -1.442695, %v101_v12 }
  0x75   :  { %v161_v14 = vmul.f32 -1.442695, %v125_v7 }
  0x76   :  { %182 = vpow2.f32 %v159_v13 }
  0x77   :  { %184 = vpow2.f32 %v161_v14 }
  0x83   :  { %v183_v15 = vpop.eup %182 }
  0x84   :  { %v185_v16 = vpop.eup %184  ;;  %v105_v17 = vadd.f32 1.0, %v183_v15 }
  0x85   :  { %v129_v18 = vadd.f32 1.0, %v185_v16 }
  0x86   :  { %186 = vrcp.f32 %v105_v17 }
  0x87   :  { %188 = vrcp.f32 %v129_v18 }
  0x93   :  { %v187_v19 = vpop.eup %186 }
  0x94   :  { %v189_v20 = vpop.eup %188 }
  0x95   :  { %v132_v21 = vsub.f32 %v187_v19, %v189_v20 }
  0x97   :  { %v133_v22 = vadd.f32 1e-10, %v132_v21 }
  0x99   :  { %190 = vlog2.f32 %v133_v22 }
  0xa6   :  { %v191_v23 = vpop.eup %190 }
  0xa7   :  { %v135_v24 = vmul.f32 0.6931472, %v191_v23 }
  0xa9   :  { %v136_v25 = vsub.f32 0.0, %v135_v24 }
  0xab   :  { %v137_v26 = vmul.f32 1.442695, %v136_v25 }
  0xad   :  { %v138_v8 = vmax.f32 %v137_v26, 0.0 }
  0xaf   :  { %v139_v29 = vmin.f32 %v138_v8, 50.0 }
  0xb1   :  { %v152_v30 = vmul.f32 %v162_v28, %v139_v29 }
  0xb3   :  { %154 = vst [vmem:[%s250_s4] sm:$0xff] %v152_v30 }

</bundles_post_ra>
